<compile_context>
chip_gen: v7x
topology: tpu7x:2x2x1
jax: 0.10.0
libtpu: 0.0.40
codegen_flags: <defaults>
</compile_context>

<pallas_src>
import functools

import jax
import jax.numpy as jnp
from jax.experimental import pallas as pl
from jax.experimental.pallas import tpu as pltpu

# Model hyperparameters (mirroring BiLSTM_ATTN.__init__) at small sizes.
EMBED_DIM = 32
MAX_LEN = 8
VOCAB_SIZE = 20
NUM_CLASSES = 4
N_HIDDEN = 150                 # hard-coded in the PyTorch module
CHAR_SIZE = VOCAB_SIZE + 2
BATCH = 2


# ---------------------------------------------------------------------------
# Single fused kernel: input projections -> bidirectional LSTM recurrence ->
# attention (bmm + softmax + weighted sum) -> output Linear.
# ---------------------------------------------------------------------------
def _bilstm_attn_kernel(x_ref,
                        wih_f_ref, b_f_ref, wih_b_ref, b_b_ref,
                        whh_f_ref, whh_b_ref,
                        w_out_lo_ref, w_out_hi_ref, b_out_ref,
                        logits_ref, attn_ref,
                        outf_buf, outb_buf,
                        *, B, L, H):
    f32 = jnp.float32

    # ---- hoisted input projections: one big matmul per direction ----------
    x = x_ref[...]                                              # (L*B, E), row t*B+b
    xproj_f = (jnp.dot(x, wih_f_ref[...], preferred_element_type=f32)
               + b_f_ref[...])                                  # (L*B, 4H)
    xproj_b = (jnp.dot(x, wih_b_ref[...], preferred_element_type=f32)
               + b_b_ref[...])                                  # (L*B, 4H)

    whh_f = whh_f_ref[...]                                      # (H, 4H)
    whh_b = whh_b_ref[...]

    def cell(gates, c):
        # PyTorch gate order [i, f, g, o], packed along the last axis.
        i = jax.nn.sigmoid(gates[:, 0 * H:1 * H])
        f = jax.nn.sigmoid(gates[:, 1 * H:2 * H])
        g = jnp.tanh(gates[:, 2 * H:3 * H])
        o = jax.nn.sigmoid(gates[:, 3 * H:4 * H])
        c_new = f * c + i * g
        h_new = o * jnp.tanh(c_new)
        return h_new, c_new

    hf = jnp.zeros((B, H), f32)
    cf = jnp.zeros((B, H), f32)
    hb = jnp.zeros((B, H), f32)
    cb = jnp.zeros((B, H), f32)

    # ---- recurrence: fully unrolled, one fused (B,H)x(H,4H) matmul per
    # ---- direction per step; per-step hidden outputs parked in VMEM scratch.
    for t in range(L):
        tb = L - 1 - t
        gates_f = xproj_f[t * B:(t + 1) * B, :] + jnp.dot(
            hf, whh_f, preferred_element_type=f32)
        gates_b = xproj_b[tb * B:(tb + 1) * B, :] + jnp.dot(
            hb, whh_b, preferred_element_type=f32)
        hf, cf = cell(gates_f, cf)
        hb, cb = cell(gates_b, cb)
        outf_buf[t] = hf          # forward hidden for position t
        outb_buf[tb] = hb         # backward hidden for position tb

    # ---- attention + output Linear epilogue (fused) ------------------------
    # PyTorch: hidden = h_n.view(-1, 2H, 1) with h_n = (2, B, H) contiguous.
    # Row r of `hidden` is [h_flat[2r] | h_flat[2r+1]] with h_flat = (2B, H).
    h_flat = jnp.concatenate([hf, hb], axis=0)                  # (2B, H)
    hid_lo = jnp.concatenate(
        [h_flat[2 * r:2 * r + 1] for r in range(B)], axis=0)    # (B, H)
    hid_hi = jnp.concatenate(
        [h_flat[2 * r + 1:2 * r + 2] for r in range(B)], axis=0)  # (B, H)

    # scores[b,l] = <lstm_out[b,l,:H], hid_lo[b]> + <lstm_out[b,l,H:], hid_hi[b]>
    cols = []
    for l in range(L):
        of_l = outf_buf[l]                                      # (B, H)
        ob_l = outb_buf[l]
        s = (jnp.sum(of_l * hid_lo, axis=1, keepdims=True)
             + jnp.sum(ob_l * hid_hi, axis=1, keepdims=True))   # (B, 1)
        cols.append(s)
    scores = jnp.concatenate(cols, axis=1)                      # (B, L)

    m = jnp.max(scores, axis=1, keepdims=True)
    e = jnp.exp(scores - m)
    soft = e / jnp.sum(e, axis=1, keepdims=True)                # (B, L)
    attn_ref[...] = soft                                        # single store

    # context[b, :2H] = sum_l soft[b, l] * lstm_out[b, l, :]  (kept as halves)
    ctx_f = jnp.zeros((B, H), f32)
    ctx_b = jnp.zeros((B, H), f32)
    for l in range(L):
        w = soft[:, l:l + 1]                                    # (B, 1)
        ctx_f = ctx_f + w * outf_buf[l]
        ctx_b = ctx_b + w * outb_buf[l]

    logits = (jnp.dot(ctx_f, w_out_lo_ref[...], preferred_element_type=f32)
              + jnp.dot(ctx_b, w_out_hi_ref[...], preferred_element_type=f32)
              + b_out_ref[...])                                 # (B, C)
    logits_ref[...] = logits                                    # single store


# ---------------------------------------------------------------------------
# Full forward pass (embedding gather + flatten are cheap XLA glue).
# ---------------------------------------------------------------------------
def bilstm_attn_forward(data, params):
    B, L = data.shape
    E, H, C = EMBED_DIM, N_HIDDEN, NUM_CLASSES

    embeds = jnp.take(params["embedding"], data, axis=0)        # (B, L, E)
    x = jnp.transpose(embeds, (1, 0, 2)).reshape(L * B, E)      # row t*B + b

    def full(shape):
        return pl.BlockSpec(shape, lambda i: (0,) * len(shape))

    kernel = functools.partial(_bilstm_attn_kernel, B=B, L=L, H=H)

    logits, attn = pl.pallas_call(
        kernel,
        out_shape=(jax.ShapeDtypeStruct((B, C), jnp.float32),
                   jax.ShapeDtypeStruct((B, L), jnp.float32)),
        grid=(1,),
        in_specs=[
            full((L * B, E)),                                   # x
            full((E, 4 * H)), full((1, 4 * H)),                 # fwd W_ih, bias
            full((E, 4 * H)), full((1, 4 * H)),                 # bwd W_ih, bias
            full((H, 4 * H)), full((H, 4 * H)),                 # W_hh fwd / bwd
            full((H, C)), full((H, C)), full((1, C)),           # out Linear
        ],
        out_specs=(full((B, C)), full((B, L))),
        scratch_shapes=[
            pltpu.VMEM((L, B, H), jnp.float32),                 # fwd hiddens
            pltpu.VMEM((L, B, H), jnp.float32),                 # bwd hiddens
        ],
        compiler_params=pltpu.CompilerParams(
            dimension_semantics=("arbitrary",)),
    )(x,
      params["wih_f"], params["b_f"], params["wih_b"], params["b_b"],
      params["whh_f"], params["whh_b"],
      params["w_out_lo"], params["w_out_hi"], params["b_out"])
    return logits, attn


# ---------------------------------------------------------------------------
# Deterministic parameter init (shapes from BiLSTM_ATTN.__init__),
# stored in the fused-gate / pre-transposed layout the kernel expects.
# ---------------------------------------------------------------------------
def init_params(key):
    H, E, C = N_HIDDEN, EMBED_DIM, NUM_CLASSES
    ks = jax.random.split(key, 11)
    s_lstm = 1.0 / float(H) ** 0.5
    s_out = 1.0 / float(2 * H) ** 0.5

    def u(k, shape, scale):
        return jax.random.uniform(k, shape, jnp.float32, -scale, scale)

    w_out_t = u(ks[9], (2 * H, C), s_out)                       # (2H, C)
    return {
        "embedding": jax.random.normal(ks[0], (CHAR_SIZE, E), jnp.float32),
        # fused gate layout: columns = [i | f | g | o]
        "wih_f": u(ks[1], (E, 4 * H), s_lstm),
        "whh_f": u(ks[2], (H, 4 * H), s_lstm),
        "b_f": u(ks[3], (1, 4 * H), s_lstm) + u(ks[4], (1, 4 * H), s_lstm),
        "wih_b": u(ks[5], (E, 4 * H), s_lstm),
        "whh_b": u(ks[6], (H, 4 * H), s_lstm),
        "b_b": u(ks[7], (1, 4 * H), s_lstm) + u(ks[8], (1, 4 * H), s_lstm),
        # output Linear, transposed and split into the two H-halves
        "w_out_lo": w_out_t[:H],
        "w_out_hi": w_out_t[H:],
        "b_out": u(ks[10], (1, C), s_out),
    }


if __name__ == "__main__":
    key = jax.random.PRNGKey(0)
    pkey, dkey = jax.random.split(key)
    params = init_params(pkey)
    data = jax.random.randint(dkey, (BATCH, MAX_LEN), 0, CHAR_SIZE,
                              dtype=jnp.int32)

    logits, attn = jax.jit(bilstm_attn_forward)(data, params)
    jax.block_until_ready((logits, attn))

    assert logits.shape == (BATCH, NUM_CLASSES), logits.shape
    assert attn.shape == (BATCH, MAX_LEN), attn.shape
    assert bool(jnp.all(jnp.isfinite(logits)))
    assert bool(jnp.allclose(jnp.sum(attn, axis=1), 1.0, atol=1e-5))
    print("KERNEL_OK")
</pallas_src>

<mosaic_0001>
module attributes {stable_mosaic.version = 11 : i64} {
  func.func @_bilstm_attn_kernel(%arg0: i32, %arg1: memref<16x32xf32, #tpu.memory_space<vmem>>, %arg2: memref<32x600xf32, #tpu.memory_space<vmem>>, %arg3: memref<1x600xf32, #tpu.memory_space<vmem>>, %arg4: memref<32x600xf32, #tpu.memory_space<vmem>>, %arg5: memref<1x600xf32, #tpu.memory_space<vmem>>, %arg6: memref<150x600xf32, #tpu.memory_space<vmem>>, %arg7: memref<150x600xf32, #tpu.memory_space<vmem>>, %arg8: memref<150x4xf32, #tpu.memory_space<vmem>>, %arg9: memref<150x4xf32, #tpu.memory_space<vmem>>, %arg10: memref<1x4xf32, #tpu.memory_space<vmem>>, %arg11: memref<2x4xf32, #tpu.memory_space<vmem>>, %arg12: memref<2x8xf32, #tpu.memory_space<vmem>>, %arg13: memref<8x2x150xf32, #tpu.memory_space<vmem>>, %arg14: memref<8x2x150xf32, #tpu.memory_space<vmem>>) attributes {dimension_semantics = [#tpu.dimension_semantics<arbitrary>], iteration_bounds = array<i64: 1>, scalar_prefetch = 0 : i64, scratch_operands = 2 : i64, tpu.core_type = #tpu.core_type<tc>, window_params = [{pipeline_mode = #tpu.pipeline_mode<synchronous>, transform_indices = @transform_0, window_bounds = array<i64: 16, 32>}, {pipeline_mode = #tpu.pipeline_mode<synchronous>, transform_indices = @transform_1, window_bounds = array<i64: 32, 600>}, {pipeline_mode = #tpu.pipeline_mode<synchronous>, transform_indices = @transform_2, window_bounds = array<i64: 1, 600>}, {pipeline_mode = #tpu.pipeline_mode<synchronous>, transform_indices = @transform_3, window_bounds = array<i64: 32, 600>}, {pipeline_mode = #tpu.pipeline_mode<synchronous>, transform_indices = @transform_4, window_bounds = array<i64: 1, 600>}, {pipeline_mode = #tpu.pipeline_mode<synchronous>, transform_indices = @transform_5, window_bounds = array<i64: 150, 600>}, {pipeline_mode = #tpu.pipeline_mode<synchronous>, transform_indices = @transform_6, window_bounds = array<i64: 150, 600>}, {pipeline_mode = #tpu.pipeline_mode<synchronous>, transform_indices = @transform_7, window_bounds = array<i64: 150, 4>}, {pipeline_mode = #tpu.pipeline_mode<synchronous>, transform_indices = @transform_8, window_bounds = array<i64: 150, 4>}, {pipeline_mode = #tpu.pipeline_mode<synchronous>, transform_indices = @transform_9, window_bounds = array<i64: 1, 4>}, {pipeline_mode = #tpu.pipeline_mode<synchronous>, transform_indices = @transform_10, window_bounds = array<i64: 2, 4>}, {pipeline_mode = #tpu.pipeline_mode<synchronous>, transform_indices = @transform_11, window_bounds = array<i64: 2, 8>}]} {
    %c0 = arith.constant 0 : index
    %c0_0 = arith.constant 0 : index
    %0 = vector.load %arg1[%c0, %c0_0] : memref<16x32xf32, #tpu.memory_space<vmem>>, vector<16x32xf32>
    %c0_1 = arith.constant 0 : index
    %c0_2 = arith.constant 0 : index
    %1 = vector.load %arg2[%c0_1, %c0_2] : memref<32x600xf32, #tpu.memory_space<vmem>>, vector<32x600xf32>
    %cst = arith.constant dense<0.000000e+00> : vector<16x600xf32>
    %2 = tpu.matmul %0, %1, %cst {dimension_numbers = #tpu.dot_dimension_numbers<[1], [0], [0], [1], [0, 0, 1, 1], [], []>} : vector<16x32xf32>, vector<32x600xf32>, vector<16x600xf32> -> vector<16x600xf32>
    %c0_3 = arith.constant 0 : index
    %c0_4 = arith.constant 0 : index
    %3 = vector.load %arg3[%c0_3, %c0_4] : memref<1x600xf32, #tpu.memory_space<vmem>>, vector<1x600xf32>
    %4 = vector.broadcast %3 : vector<1x600xf32> to vector<16x600xf32>
    %5 = arith.addf %2, %4 : vector<16x600xf32>
    %c0_5 = arith.constant 0 : index
    %c0_6 = arith.constant 0 : index
    %6 = vector.load %arg4[%c0_5, %c0_6] : memref<32x600xf32, #tpu.memory_space<vmem>>, vector<32x600xf32>
    %cst_7 = arith.constant dense<0.000000e+00> : vector<16x600xf32>
    %7 = tpu.matmul %0, %6, %cst_7 {dimension_numbers = #tpu.dot_dimension_numbers<[1], [0], [0], [1], [0, 0, 1, 1], [], []>} : vector<16x32xf32>, vector<32x600xf32>, vector<16x600xf32> -> vector<16x600xf32>
    %c0_8 = arith.constant 0 : index
    %c0_9 = arith.constant 0 : index
    %8 = vector.load %arg5[%c0_8, %c0_9] : memref<1x600xf32, #tpu.memory_space<vmem>>, vector<1x600xf32>
    %9 = vector.broadcast %8 : vector<1x600xf32> to vector<16x600xf32>
    %10 = arith.addf %7, %9 : vector<16x600xf32>
    %c0_10 = arith.constant 0 : index
    %c0_11 = arith.constant 0 : index
    %11 = vector.load %arg6[%c0_10, %c0_11] : memref<150x600xf32, #tpu.memory_space<vmem>>, vector<150x600xf32>
    %c0_12 = arith.constant 0 : index
    %c0_13 = arith.constant 0 : index
    %12 = vector.load %arg7[%c0_12, %c0_13] : memref<150x600xf32, #tpu.memory_space<vmem>>, vector<150x600xf32>
    %cst_14 = arith.constant 0.000000e+00 : f32
    %13 = vector.broadcast %cst_14 : f32 to vector<2x150xf32>
    %cst_15 = arith.constant 0.000000e+00 : f32
    %14 = vector.broadcast %cst_15 : f32 to vector<2x150xf32>
    %cst_16 = arith.constant 0.000000e+00 : f32
    %15 = vector.broadcast %cst_16 : f32 to vector<2x150xf32>
    %cst_17 = arith.constant 0.000000e+00 : f32
    %16 = vector.broadcast %cst_17 : f32 to vector<2x150xf32>
    %17 = vector.extract_strided_slice %5 {offsets = [0, 0], sizes = [2, 600], strides = [1, 1]} : vector<16x600xf32> to vector<2x600xf32>
    %cst_18 = arith.constant dense<0.000000e+00> : vector<2x600xf32>
    %18 = tpu.matmul %13, %11, %cst_18 {dimension_numbers = #tpu.dot_dimension_numbers<[1], [0], [0], [1], [0, 0, 1, 1], [], []>} : vector<2x150xf32>, vector<150x600xf32>, vector<2x600xf32> -> vector<2x600xf32>
    %19 = arith.addf %17, %18 : vector<2x600xf32>
    %20 = vector.extract_strided_slice %10 {offsets = [14, 0], sizes = [2, 600], strides = [1, 1]} : vector<16x600xf32> to vector<2x600xf32>
    %cst_19 = arith.constant dense<0.000000e+00> : vector<2x600xf32>
    %21 = tpu.matmul %15, %12, %cst_19 {dimension_numbers = #tpu.dot_dimension_numbers<[1], [0], [0], [1], [0, 0, 1, 1], [], []>} : vector<2x150xf32>, vector<150x600xf32>, vector<2x600xf32> -> vector<2x600xf32>
    %22 = arith.addf %20, %21 : vector<2x600xf32>
    %23 = vector.extract_strided_slice %19 {offsets = [0, 0], sizes = [2, 150], strides = [1, 1]} : vector<2x600xf32> to vector<2x150xf32>
    %24 = arith.negf %23 : vector<2x150xf32>
    %25 = math.exp %24 : vector<2x150xf32>
    %cst_20 = arith.constant 1.000000e+00 : f32
    %26 = vector.broadcast %cst_20 : f32 to vector<2x150xf32>
    %27 = arith.addf %26, %25 : vector<2x150xf32>
    %28 = arith.divf %26, %27 : vector<2x150xf32>
    %29 = vector.extract_strided_slice %19 {offsets = [0, 150], sizes = [2, 150], strides = [1, 1]} : vector<2x600xf32> to vector<2x150xf32>
    %30 = arith.negf %29 : vector<2x150xf32>
    %31 = math.exp %30 : vector<2x150xf32>
    %cst_21 = arith.constant 1.000000e+00 : f32
    %32 = vector.broadcast %cst_21 : f32 to vector<2x150xf32>
    %33 = arith.addf %32, %31 : vector<2x150xf32>
    %34 = arith.divf %32, %33 : vector<2x150xf32>
    %35 = vector.extract_strided_slice %19 {offsets = [0, 300], sizes = [2, 150], strides = [1, 1]} : vector<2x600xf32> to vector<2x150xf32>
    %36 = math.tanh %35 : vector<2x150xf32>
    %37 = vector.extract_strided_slice %19 {offsets = [0, 450], sizes = [2, 150], strides = [1, 1]} : vector<2x600xf32> to vector<2x150xf32>
    %38 = arith.negf %37 : vector<2x150xf32>
    %39 = math.exp %38 : vector<2x150xf32>
    %cst_22 = arith.constant 1.000000e+00 : f32
    %40 = vector.broadcast %cst_22 : f32 to vector<2x150xf32>
    %41 = arith.addf %40, %39 : vector<2x150xf32>
    %42 = arith.divf %40, %41 : vector<2x150xf32>
    %43 = arith.mulf %34, %14 : vector<2x150xf32>
    %44 = arith.mulf %28, %36 : vector<2x150xf32>
    %45 = arith.addf %43, %44 : vector<2x150xf32>
    %46 = math.tanh %45 : vector<2x150xf32>
    %47 = arith.mulf %42, %46 : vector<2x150xf32>
    %48 = vector.extract_strided_slice %22 {offsets = [0, 0], sizes = [2, 150], strides = [1, 1]} : vector<2x600xf32> to vector<2x150xf32>
    %49 = arith.negf %48 : vector<2x150xf32>
    %50 = math.exp %49 : vector<2x150xf32>
    %cst_23 = arith.constant 1.000000e+00 : f32
    %51 = vector.broadcast %cst_23 : f32 to vector<2x150xf32>
    %52 = arith.addf %51, %50 : vector<2x150xf32>
    %53 = arith.divf %51, %52 : vector<2x150xf32>
    %54 = vector.extract_strided_slice %22 {offsets = [0, 150], sizes = [2, 150], strides = [1, 1]} : vector<2x600xf32> to vector<2x150xf32>
    %55 = arith.negf %54 : vector<2x150xf32>
    %56 = math.exp %55 : vector<2x150xf32>
    %cst_24 = arith.constant 1.000000e+00 : f32
    %57 = vector.broadcast %cst_24 : f32 to vector<2x150xf32>
    %58 = arith.addf %57, %56 : vector<2x150xf32>
    %59 = arith.divf %57, %58 : vector<2x150xf32>
    %60 = vector.extract_strided_slice %22 {offsets = [0, 300], sizes = [2, 150], strides = [1, 1]} : vector<2x600xf32> to vector<2x150xf32>
    %61 = math.tanh %60 : vector<2x150xf32>
    %62 = vector.extract_strided_slice %22 {offsets = [0, 450], sizes = [2, 150], strides = [1, 1]} : vector<2x600xf32> to vector<2x150xf32>
    %63 = arith.negf %62 : vector<2x150xf32>
    %64 = math.exp %63 : vector<2x150xf32>
    %cst_25 = arith.constant 1.000000e+00 : f32
    %65 = vector.broadcast %cst_25 : f32 to vector<2x150xf32>
    %66 = arith.addf %65, %64 : vector<2x150xf32>
    %67 = arith.divf %65, %66 : vector<2x150xf32>
    %68 = arith.mulf %59, %16 : vector<2x150xf32>
    %69 = arith.mulf %53, %61 : vector<2x150xf32>
    %70 = arith.addf %68, %69 : vector<2x150xf32>
    %71 = math.tanh %70 : vector<2x150xf32>
    %72 = arith.mulf %67, %71 : vector<2x150xf32>
    %c0_26 = arith.constant 0 : index
    %c0_27 = arith.constant 0 : index
    %c0_28 = arith.constant 0 : index
    %73 = vector.load %arg13[%c0_26, %c0_27, %c0_28] : memref<8x2x150xf32, #tpu.memory_space<vmem>>, vector<1x2x150xf32>
    %74 = vector.shape_cast %73 : vector<1x2x150xf32> to vector<2x150xf32>
    %75 = vector.shape_cast %47 : vector<2x150xf32> to vector<1x2x150xf32>
    tpu.vector_store %arg13[%c0_26, %c0_27, %c0_28], %75 {strides = array<i32>} : memref<8x2x150xf32, #tpu.memory_space<vmem>>, vector<1x2x150xf32>,
    %c7 = arith.constant 7 : index
    %c0_29 = arith.constant 0 : index
    %c0_30 = arith.constant 0 : index
    %76 = vector.load %arg14[%c7, %c0_29, %c0_30] : memref<8x2x150xf32, #tpu.memory_space<vmem>>, vector<1x2x150xf32>
    %77 = vector.shape_cast %76 : vector<1x2x150xf32> to vector<2x150xf32>
    %78 = vector.shape_cast %72 : vector<2x150xf32> to vector<1x2x150xf32>
    tpu.vector_store %arg14[%c7, %c0_29, %c0_30], %78 {strides = array<i32>} : memref<8x2x150xf32, #tpu.memory_space<vmem>>, vector<1x2x150xf32>,
    %79 = vector.extract_strided_slice %5 {offsets = [2, 0], sizes = [2, 600], strides = [1, 1]} : vector<16x600xf32> to vector<2x600xf32>
    %cst_31 = arith.constant dense<0.000000e+00> : vector<2x600xf32>
    %80 = tpu.matmul %47, %11, %cst_31 {dimension_numbers = #tpu.dot_dimension_numbers<[1], [0], [0], [1], [0, 0, 1, 1], [], []>} : vector<2x150xf32>, vector<150x600xf32>, vector<2x600xf32> -> vector<2x600xf32>
    %81 = arith.addf %79, %80 : vector<2x600xf32>
    %82 = vector.extract_strided_slice %10 {offsets = [12, 0], sizes = [2, 600], strides = [1, 1]} : vector<16x600xf32> to vector<2x600xf32>
    %cst_32 = arith.constant dense<0.000000e+00> : vector<2x600xf32>
    %83 = tpu.matmul %72, %12, %cst_32 {dimension_numbers = #tpu.dot_dimension_numbers<[1], [0], [0], [1], [0, 0, 1, 1], [], []>} : vector<2x150xf32>, vector<150x600xf32>, vector<2x600xf32> -> vector<2x600xf32>
    %84 = arith.addf %82, %83 : vector<2x600xf32>
    %85 = vector.extract_strided_slice %81 {offsets = [0, 0], sizes = [2, 150], strides = [1, 1]} : vector<2x600xf32> to vector<2x150xf32>
    %86 = arith.negf %85 : vector<2x150xf32>
    %87 = math.exp %86 : vector<2x150xf32>
    %cst_33 = arith.constant 1.000000e+00 : f32
    %88 = vector.broadcast %cst_33 : f32 to vector<2x150xf32>
    %89 = arith.addf %88, %87 : vector<2x150xf32>
    %90 = arith.divf %88, %89 : vector<2x150xf32>
    %91 = vector.extract_strided_slice %81 {offsets = [0, 150], sizes = [2, 150], strides = [1, 1]} : vector<2x600xf32> to vector<2x150xf32>
    %92 = arith.negf %91 : vector<2x150xf32>
    %93 = math.exp %92 : vector<2x150xf32>
    %cst_34 = arith.constant 1.000000e+00 : f32
    %94 = vector.broadcast %cst_34 : f32 to vector<2x150xf32>
    %95 = arith.addf %94, %93 : vector<2x150xf32>
    %96 = arith.divf %94, %95 : vector<2x150xf32>
    %97 = vector.extract_strided_slice %81 {offsets = [0, 300], sizes = [2, 150], strides = [1, 1]} : vector<2x600xf32> to vector<2x150xf32>
    %98 = math.tanh %97 : vector<2x150xf32>
    %99 = vector.extract_strided_slice %81 {offsets = [0, 450], sizes = [2, 150], strides = [1, 1]} : vector<2x600xf32> to vector<2x150xf32>
    %100 = arith.negf %99 : vector<2x150xf32>
    %101 = math.exp %100 : vector<2x150xf32>
    %cst_35 = arith.constant 1.000000e+00 : f32
    %102 = vector.broadcast %cst_35 : f32 to vector<2x150xf32>
    %103 = arith.addf %102, %101 : vector<2x150xf32>
    %104 = arith.divf %102, %103 : vector<2x150xf32>
    %105 = arith.mulf %96, %45 : vector<2x150xf32>
    %106 = arith.mulf %90, %98 : vector<2x150xf32>
    %107 = arith.addf %105, %106 : vector<2x150xf32>
    %108 = math.tanh %107 : vector<2x150xf32>
    %109 = arith.mulf %104, %108 : vector<2x150xf32>
    %110 = vector.extract_strided_slice %84 {offsets = [0, 0], sizes = [2, 150], strides = [1, 1]} : vector<2x600xf32> to vector<2x150xf32>
    %111 = arith.negf %110 : vector<2x150xf32>
    %112 = math.exp %111 : vector<2x150xf32>
    %cst_36 = arith.constant 1.000000e+00 : f32
    %113 = vector.broadcast %cst_36 : f32 to vector<2x150xf32>
    %114 = arith.addf %113, %112 : vector<2x150xf32>
    %115 = arith.divf %113, %114 : vector<2x150xf32>
    %116 = vector.extract_strided_slice %84 {offsets = [0, 150], sizes = [2, 150], strides = [1, 1]} : vector<2x600xf32> to vector<2x150xf32>
    %117 = arith.negf %116 : vector<2x150xf32>
    %118 = math.exp %117 : vector<2x150xf32>
    %cst_37 = arith.constant 1.000000e+00 : f32
    %119 = vector.broadcast %cst_37 : f32 to vector<2x150xf32>
    %120 = arith.addf %119, %118 : vector<2x150xf32>
    %121 = arith.divf %119, %120 : vector<2x150xf32>
    %122 = vector.extract_strided_slice %84 {offsets = [0, 300], sizes = [2, 150], strides = [1, 1]} : vector<2x600xf32> to vector<2x150xf32>
    %123 = math.tanh %122 : vector<2x150xf32>
    %124 = vector.extract_strided_slice %84 {offsets = [0, 450], sizes = [2, 150], strides = [1, 1]} : vector<2x600xf32> to vector<2x150xf32>
    %125 = arith.negf %124 : vector<2x150xf32>
    %126 = math.exp %125 : vector<2x150xf32>
    %cst_38 = arith.constant 1.000000e+00 : f32
    %127 = vector.broadcast %cst_38 : f32 to vector<2x150xf32>
    %128 = arith.addf %127, %126 : vector<2x150xf32>
    %129 = arith.divf %127, %128 : vector<2x150xf32>
    %130 = arith.mulf %121, %70 : vector<2x150xf32>
    %131 = arith.mulf %115, %123 : vector<2x150xf32>
    %132 = arith.addf %130, %131 : vector<2x150xf32>
    %133 = math.tanh %132 : vector<2x150xf32>
    %134 = arith.mulf %129, %133 : vector<2x150xf32>
    %c1 = arith.constant 1 : index
    %c0_39 = arith.constant 0 : index
    %c0_40 = arith.constant 0 : index
    %135 = vector.load %arg13[%c1, %c0_39, %c0_40] : memref<8x2x150xf32, #tpu.memory_space<vmem>>, vector<1x2x150xf32>
    %136 = vector.shape_cast %135 : vector<1x2x150xf32> to vector<2x150xf32>
    %137 = vector.shape_cast %109 : vector<2x150xf32> to vector<1x2x150xf32>
    tpu.vector_store %arg13[%c1, %c0_39, %c0_40], %137 {strides = array<i32>} : memref<8x2x150xf32, #tpu.memory_space<vmem>>, vector<1x2x150xf32>,
    %c6 = arith.constant 6 : index
    %c0_41 = arith.constant 0 : index
    %c0_42 = arith.constant 0 : index
    %138 = vector.load %arg14[%c6, %c0_41, %c0_42] : memref<8x2x150xf32, #tpu.memory_space<vmem>>, vector<1x2x150xf32>
    %139 = vector.shape_cast %138 : vector<1x2x150xf32> to vector<2x150xf32>
    %140 = vector.shape_cast %134 : vector<2x150xf32> to vector<1x2x150xf32>
    tpu.vector_store %arg14[%c6, %c0_41, %c0_42], %140 {strides = array<i32>} : memref<8x2x150xf32, #tpu.memory_space<vmem>>, vector<1x2x150xf32>,
    %141 = vector.extract_strided_slice %5 {offsets = [4, 0], sizes = [2, 600], strides = [1, 1]} : vector<16x600xf32> to vector<2x600xf32>
    %cst_43 = arith.constant dense<0.000000e+00> : vector<2x600xf32>
    %142 = tpu.matmul %109, %11, %cst_43 {dimension_numbers = #tpu.dot_dimension_numbers<[1], [0], [0], [1], [0, 0, 1, 1], [], []>} : vector<2x150xf32>, vector<150x600xf32>, vector<2x600xf32> -> vector<2x600xf32>
    %143 = arith.addf %141, %142 : vector<2x600xf32>
    %144 = vector.extract_strided_slice %10 {offsets = [10, 0], sizes = [2, 600], strides = [1, 1]} : vector<16x600xf32> to vector<2x600xf32>
    %cst_44 = arith.constant dense<0.000000e+00> : vector<2x600xf32>
    %145 = tpu.matmul %134, %12, %cst_44 {dimension_numbers = #tpu.dot_dimension_numbers<[1], [0], [0], [1], [0, 0, 1, 1], [], []>} : vector<2x150xf32>, vector<150x600xf32>, vector<2x600xf32> -> vector<2x600xf32>
    %146 = arith.addf %144, %145 : vector<2x600xf32>
    %147 = vector.extract_strided_slice %143 {offsets = [0, 0], sizes = [2, 150], strides = [1, 1]} : vector<2x600xf32> to vector<2x150xf32>
    %148 = arith.negf %147 : vector<2x150xf32>
    %149 = math.exp %148 : vector<2x150xf32>
    %cst_45 = arith.constant 1.000000e+00 : f32
    %150 = vector.broadcast %cst_45 : f32 to vector<2x150xf32>
    %151 = arith.addf %150, %149 : vector<2x150xf32>
    %152 = arith.divf %150, %151 : vector<2x150xf32>
    %153 = vector.extract_strided_slice %143 {offsets = [0, 150], sizes = [2, 150], strides = [1, 1]} : vector<2x600xf32> to vector<2x150xf32>
    %154 = arith.negf %153 : vector<2x150xf32>
    %155 = math.exp %154 : vector<2x150xf32>
    %cst_46 = arith.constant 1.000000e+00 : f32
    %156 = vector.broadcast %cst_46 : f32 to vector<2x150xf32>
    %157 = arith.addf %156, %155 : vector<2x150xf32>
    %158 = arith.divf %156, %157 : vector<2x150xf32>
    %159 = vector.extract_strided_slice %143 {offsets = [0, 300], sizes = [2, 150], strides = [1, 1]} : vector<2x600xf32> to vector<2x150xf32>
    %160 = math.tanh %159 : vector<2x150xf32>
    %161 = vector.extract_strided_slice %143 {offsets = [0, 450], sizes = [2, 150], strides = [1, 1]} : vector<2x600xf32> to vector<2x150xf32>
    %162 = arith.negf %161 : vector<2x150xf32>
    %163 = math.exp %162 : vector<2x150xf32>
    %cst_47 = arith.constant 1.000000e+00 : f32
    %164 = vector.broadcast %cst_47 : f32 to vector<2x150xf32>
    %165 = arith.addf %164, %163 : vector<2x150xf32>
    %166 = arith.divf %164, %165 : vector<2x150xf32>
    %167 = arith.mulf %158, %107 : vector<2x150xf32>
    %168 = arith.mulf %152, %160 : vector<2x150xf32>
    %169 = arith.addf %167, %168 : vector<2x150xf32>
    %170 = math.tanh %169 : vector<2x150xf32>
    %171 = arith.mulf %166, %170 : vector<2x150xf32>
    %172 = vector.extract_strided_slice %146 {offsets = [0, 0], sizes = [2, 150], strides = [1, 1]} : vector<2x600xf32> to vector<2x150xf32>
    %173 = arith.negf %172 : vector<2x150xf32>
    %174 = math.exp %173 : vector<2x150xf32>
    %cst_48 = arith.constant 1.000000e+00 : f32
    %175 = vector.broadcast %cst_48 : f32 to vector<2x150xf32>
    %176 = arith.addf %175, %174 : vector<2x150xf32>
    %177 = arith.divf %175, %176 : vector<2x150xf32>
    %178 = vector.extract_strided_slice %146 {offsets = [0, 150], sizes = [2, 150], strides = [1, 1]} : vector<2x600xf32> to vector<2x150xf32>
    %179 = arith.negf %178 : vector<2x150xf32>
    %180 = math.exp %179 : vector<2x150xf32>
    %cst_49 = arith.constant 1.000000e+00 : f32
    %181 = vector.broadcast %cst_49 : f32 to vector<2x150xf32>
    %182 = arith.addf %181, %180 : vector<2x150xf32>
    %183 = arith.divf %181, %182 : vector<2x150xf32>
    %184 = vector.extract_strided_slice %146 {offsets = [0, 300], sizes = [2, 150], strides = [1, 1]} : vector<2x600xf32> to vector<2x150xf32>
    %185 = math.tanh %184 : vector<2x150xf32>
    %186 = vector.extract_strided_slice %146 {offsets = [0, 450], sizes = [2, 150], strides = [1, 1]} : vector<2x600xf32> to vector<2x150xf32>
    %187 = arith.negf %186 : vector<2x150xf32>
    %188 = math.exp %187 : vector<2x150xf32>
    %cst_50 = arith.constant 1.000000e+00 : f32
    %189 = vector.broadcast %cst_50 : f32 to vector<2x150xf32>
    %190 = arith.addf %189, %188 : vector<2x150xf32>
    %191 = arith.divf %189, %190 : vector<2x150xf32>
    %192 = arith.mulf %183, %132 : vector<2x150xf32>
    %193 = arith.mulf %177, %185 : vector<2x150xf32>
    %194 = arith.addf %192, %193 : vector<2x150xf32>
    %195 = math.tanh %194 : vector<2x150xf32>
    %196 = arith.mulf %191, %195 : vector<2x150xf32>
    %c2 = arith.constant 2 : index
    %c0_51 = arith.constant 0 : index
    %c0_52 = arith.constant 0 : index
    %197 = vector.load %arg13[%c2, %c0_51, %c0_52] : memref<8x2x150xf32, #tpu.memory_space<vmem>>, vector<1x2x150xf32>
    %198 = vector.shape_cast %197 : vector<1x2x150xf32> to vector<2x150xf32>
    %199 = vector.shape_cast %171 : vector<2x150xf32> to vector<1x2x150xf32>
    tpu.vector_store %arg13[%c2, %c0_51, %c0_52], %199 {strides = array<i32>} : memref<8x2x150xf32, #tpu.memory_space<vmem>>, vector<1x2x150xf32>,
    %c5 = arith.constant 5 : index
    %c0_53 = arith.constant 0 : index
    %c0_54 = arith.constant 0 : index
    %200 = vector.load %arg14[%c5, %c0_53, %c0_54] : memref<8x2x150xf32, #tpu.memory_space<vmem>>, vector<1x2x150xf32>
    %201 = vector.shape_cast %200 : vector<1x2x150xf32> to vector<2x150xf32>
    %202 = vector.shape_cast %196 : vector<2x150xf32> to vector<1x2x150xf32>
    tpu.vector_store %arg14[%c5, %c0_53, %c0_54], %202 {strides = array<i32>} : memref<8x2x150xf32, #tpu.memory_space<vmem>>, vector<1x2x150xf32>,
    %203 = vector.extract_strided_slice %5 {offsets = [6, 0], sizes = [2, 600], strides = [1, 1]} : vector<16x600xf32> to vector<2x600xf32>
    %cst_55 = arith.constant dense<0.000000e+00> : vector<2x600xf32>
    %204 = tpu.matmul %171, %11, %cst_55 {dimension_numbers = #tpu.dot_dimension_numbers<[1], [0], [0], [1], [0, 0, 1, 1], [], []>} : vector<2x150xf32>, vector<150x600xf32>, vector<2x600xf32> -> vector<2x600xf32>
    %205 = arith.addf %203, %204 : vector<2x600xf32>
    %206 = vector.extract_strided_slice %10 {offsets = [8, 0], sizes = [2, 600], strides = [1, 1]} : vector<16x600xf32> to vector<2x600xf32>
    %cst_56 = arith.constant dense<0.000000e+00> : vector<2x600xf32>
    %207 = tpu.matmul %196, %12, %cst_56 {dimension_numbers = #tpu.dot_dimension_numbers<[1], [0], [0], [1], [0, 0, 1, 1], [], []>} : vector<2x150xf32>, vector<150x600xf32>, vector<2x600xf32> -> vector<2x600xf32>
    %208 = arith.addf %206, %207 : vector<2x600xf32>
    %209 = vector.extract_strided_slice %205 {offsets = [0, 0], sizes = [2, 150], strides = [1, 1]} : vector<2x600xf32> to vector<2x150xf32>
    %210 = arith.negf %209 : vector<2x150xf32>
    %211 = math.exp %210 : vector<2x150xf32>
    %cst_57 = arith.constant 1.000000e+00 : f32
    %212 = vector.broadcast %cst_57 : f32 to vector<2x150xf32>
    %213 = arith.addf %212, %211 : vector<2x150xf32>
    %214 = arith.divf %212, %213 : vector<2x150xf32>
    %215 = vector.extract_strided_slice %205 {offsets = [0, 150], sizes = [2, 150], strides = [1, 1]} : vector<2x600xf32> to vector<2x150xf32>
    %216 = arith.negf %215 : vector<2x150xf32>
    %217 = math.exp %216 : vector<2x150xf32>
    %cst_58 = arith.constant 1.000000e+00 : f32
    %218 = vector.broadcast %cst_58 : f32 to vector<2x150xf32>
    %219 = arith.addf %218, %217 : vector<2x150xf32>
    %220 = arith.divf %218, %219 : vector<2x150xf32>
    %221 = vector.extract_strided_slice %205 {offsets = [0, 300], sizes = [2, 150], strides = [1, 1]} : vector<2x600xf32> to vector<2x150xf32>
    %222 = math.tanh %221 : vector<2x150xf32>
    %223 = vector.extract_strided_slice %205 {offsets = [0, 450], sizes = [2, 150], strides = [1, 1]} : vector<2x600xf32> to vector<2x150xf32>
    %224 = arith.negf %223 : vector<2x150xf32>
    %225 = math.exp %224 : vector<2x150xf32>
    %cst_59 = arith.constant 1.000000e+00 : f32
    %226 = vector.broadcast %cst_59 : f32 to vector<2x150xf32>
    %227 = arith.addf %226, %225 : vector<2x150xf32>
    %228 = arith.divf %226, %227 : vector<2x150xf32>
    %229 = arith.mulf %220, %169 : vector<2x150xf32>
    %230 = arith.mulf %214, %222 : vector<2x150xf32>
    %231 = arith.addf %229, %230 : vector<2x150xf32>
    %232 = math.tanh %231 : vector<2x150xf32>
    %233 = arith.mulf %228, %232 : vector<2x150xf32>
    %234 = vector.extract_strided_slice %208 {offsets = [0, 0], sizes = [2, 150], strides = [1, 1]} : vector<2x600xf32> to vector<2x150xf32>
    %235 = arith.negf %234 : vector<2x150xf32>
    %236 = math.exp %235 : vector<2x150xf32>
    %cst_60 = arith.constant 1.000000e+00 : f32
    %237 = vector.broadcast %cst_60 : f32 to vector<2x150xf32>
    %238 = arith.addf %237, %236 : vector<2x150xf32>
    %239 = arith.divf %237, %238 : vector<2x150xf32>
    %240 = vector.extract_strided_slice %208 {offsets = [0, 150], sizes = [2, 150], strides = [1, 1]} : vector<2x600xf32> to vector<2x150xf32>
    %241 = arith.negf %240 : vector<2x150xf32>
    %242 = math.exp %241 : vector<2x150xf32>
    %cst_61 = arith.constant 1.000000e+00 : f32
    %243 = vector.broadcast %cst_61 : f32 to vector<2x150xf32>
    %244 = arith.addf %243, %242 : vector<2x150xf32>
    %245 = arith.divf %243, %244 : vector<2x150xf32>
    %246 = vector.extract_strided_slice %208 {offsets = [0, 300], sizes = [2, 150], strides = [1, 1]} : vector<2x600xf32> to vector<2x150xf32>
    %247 = math.tanh %246 : vector<2x150xf32>
    %248 = vector.extract_strided_slice %208 {offsets = [0, 450], sizes = [2, 150], strides = [1, 1]} : vector<2x600xf32> to vector<2x150xf32>
    %249 = arith.negf %248 : vector<2x150xf32>
    %250 = math.exp %249 : vector<2x150xf32>
    %cst_62 = arith.constant 1.000000e+00 : f32
    %251 = vector.broadcast %cst_62 : f32 to vector<2x150xf32>
    %252 = arith.addf %251, %250 : vector<2x150xf32>
    %253 = arith.divf %251, %252 : vector<2x150xf32>
    %254 = arith.mulf %245, %194 : vector<2x150xf32>
    %255 = arith.mulf %239, %247 : vector<2x150xf32>
    %256 = arith.addf %254, %255 : vector<2x150xf32>
    %257 = math.tanh %256 : vector<2x150xf32>
    %258 = arith.mulf %253, %257 : vector<2x150xf32>
    %c3 = arith.constant 3 : index
    %c0_63 = arith.constant 0 : index
    %c0_64 = arith.constant 0 : index
    %259 = vector.load %arg13[%c3, %c0_63, %c0_64] : memref<8x2x150xf32, #tpu.memory_space<vmem>>, vector<1x2x150xf32>
    %260 = vector.shape_cast %259 : vector<1x2x150xf32> to vector<2x150xf32>
    %261 = vector.shape_cast %233 : vector<2x150xf32> to vector<1x2x150xf32>
    tpu.vector_store %arg13[%c3, %c0_63, %c0_64], %261 {strides = array<i32>} : memref<8x2x150xf32, #tpu.memory_space<vmem>>, vector<1x2x150xf32>,
    %c4 = arith.constant 4 : index
    %c0_65 = arith.constant 0 : index
    %c0_66 = arith.constant 0 : index
    %262 = vector.load %arg14[%c4, %c0_65, %c0_66] : memref<8x2x150xf32, #tpu.memory_space<vmem>>, vector<1x2x150xf32>
    %263 = vector.shape_cast %262 : vector<1x2x150xf32> to vector<2x150xf32>
    %264 = vector.shape_cast %258 : vector<2x150xf32> to vector<1x2x150xf32>
    tpu.vector_store %arg14[%c4, %c0_65, %c0_66], %264 {strides = array<i32>} : memref<8x2x150xf32, #tpu.memory_space<vmem>>, vector<1x2x150xf32>,
    %265 = vector.extract_strided_slice %5 {offsets = [8, 0], sizes = [2, 600], strides = [1, 1]} : vector<16x600xf32> to vector<2x600xf32>
    %cst_67 = arith.constant dense<0.000000e+00> : vector<2x600xf32>
    %266 = tpu.matmul %233, %11, %cst_67 {dimension_numbers = #tpu.dot_dimension_numbers<[1], [0], [0], [1], [0, 0, 1, 1], [], []>} : vector<2x150xf32>, vector<150x600xf32>, vector<2x600xf32> -> vector<2x600xf32>
    %267 = arith.addf %265, %266 : vector<2x600xf32>
    %268 = vector.extract_strided_slice %10 {offsets = [6, 0], sizes = [2, 600], strides = [1, 1]} : vector<16x600xf32> to vector<2x600xf32>
    %cst_68 = arith.constant dense<0.000000e+00> : vector<2x600xf32>
    %269 = tpu.matmul %258, %12, %cst_68 {dimension_numbers = #tpu.dot_dimension_numbers<[1], [0], [0], [1], [0, 0, 1, 1], [], []>} : vector<2x150xf32>, vector<150x600xf32>, vector<2x600xf32> -> vector<2x600xf32>
    %270 = arith.addf %268, %269 : vector<2x600xf32>
    %271 = vector.extract_strided_slice %267 {offsets = [0, 0], sizes = [2, 150], strides = [1, 1]} : vector<2x600xf32> to vector<2x150xf32>
    %272 = arith.negf %271 : vector<2x150xf32>
    %273 = math.exp %272 : vector<2x150xf32>
    %cst_69 = arith.constant 1.000000e+00 : f32
    %274 = vector.broadcast %cst_69 : f32 to vector<2x150xf32>
    %275 = arith.addf %274, %273 : vector<2x150xf32>
    %276 = arith.divf %274, %275 : vector<2x150xf32>
    %277 = vector.extract_strided_slice %267 {offsets = [0, 150], sizes = [2, 150], strides = [1, 1]} : vector<2x600xf32> to vector<2x150xf32>
    %278 = arith.negf %277 : vector<2x150xf32>
    %279 = math.exp %278 : vector<2x150xf32>
    %cst_70 = arith.constant 1.000000e+00 : f32
    %280 = vector.broadcast %cst_70 : f32 to vector<2x150xf32>
    %281 = arith.addf %280, %279 : vector<2x150xf32>
    %282 = arith.divf %280, %281 : vector<2x150xf32>
    %283 = vector.extract_strided_slice %267 {offsets = [0, 300], sizes = [2, 150], strides = [1, 1]} : vector<2x600xf32> to vector<2x150xf32>
    %284 = math.tanh %283 : vector<2x150xf32>
    %285 = vector.extract_strided_slice %267 {offsets = [0, 450], sizes = [2, 150], strides = [1, 1]} : vector<2x600xf32> to vector<2x150xf32>
    %286 = arith.negf %285 : vector<2x150xf32>
    %287 = math.exp %286 : vector<2x150xf32>
    %cst_71 = arith.constant 1.000000e+00 : f32
    %288 = vector.broadcast %cst_71 : f32 to vector<2x150xf32>
    %289 = arith.addf %288, %287 : vector<2x150xf32>
    %290 = arith.divf %288, %289 : vector<2x150xf32>
    %291 = arith.mulf %282, %231 : vector<2x150xf32>
    %292 = arith.mulf %276, %284 : vector<2x150xf32>
    %293 = arith.addf %291, %292 : vector<2x150xf32>
    %294 = math.tanh %293 : vector<2x150xf32>
    %295 = arith.mulf %290, %294 : vector<2x150xf32>
    %296 = vector.extract_strided_slice %270 {offsets = [0, 0], sizes = [2, 150], strides = [1, 1]} : vector<2x600xf32> to vector<2x150xf32>
    %297 = arith.negf %296 : vector<2x150xf32>
    %298 = math.exp %297 : vector<2x150xf32>
    %cst_72 = arith.constant 1.000000e+00 : f32
    %299 = vector.broadcast %cst_72 : f32 to vector<2x150xf32>
    %300 = arith.addf %299, %298 : vector<2x150xf32>
    %301 = arith.divf %299, %300 : vector<2x150xf32>
    %302 = vector.extract_strided_slice %270 {offsets = [0, 150], sizes = [2, 150], strides = [1, 1]} : vector<2x600xf32> to vector<2x150xf32>
    %303 = arith.negf %302 : vector<2x150xf32>
    %304 = math.exp %303 : vector<2x150xf32>
    %cst_73 = arith.constant 1.000000e+00 : f32
    %305 = vector.broadcast %cst_73 : f32 to vector<2x150xf32>
    %306 = arith.addf %305, %304 : vector<2x150xf32>
    %307 = arith.divf %305, %306 : vector<2x150xf32>
    %308 = vector.extract_strided_slice %270 {offsets = [0, 300], sizes = [2, 150], strides = [1, 1]} : vector<2x600xf32> to vector<2x150xf32>
    %309 = math.tanh %308 : vector<2x150xf32>
    %310 = vector.extract_strided_slice %270 {offsets = [0, 450], sizes = [2, 150], strides = [1, 1]} : vector<2x600xf32> to vector<2x150xf32>
    %311 = arith.negf %310 : vector<2x150xf32>
    %312 = math.exp %311 : vector<2x150xf32>
    %cst_74 = arith.constant 1.000000e+00 : f32
    %313 = vector.broadcast %cst_74 : f32 to vector<2x150xf32>
    %314 = arith.addf %313, %312 : vector<2x150xf32>
    %315 = arith.divf %313, %314 : vector<2x150xf32>
    %316 = arith.mulf %307, %256 : vector<2x150xf32>
    %317 = arith.mulf %301, %309 : vector<2x150xf32>
    %318 = arith.addf %316, %317 : vector<2x150xf32>
    %319 = math.tanh %318 : vector<2x150xf32>
    %320 = arith.mulf %315, %319 : vector<2x150xf32>
    %c4_75 = arith.constant 4 : index
    %c0_76 = arith.constant 0 : index
    %c0_77 = arith.constant 0 : index
    %321 = vector.load %arg13[%c4_75, %c0_76, %c0_77] : memref<8x2x150xf32, #tpu.memory_space<vmem>>, vector<1x2x150xf32>
    %322 = vector.shape_cast %321 : vector<1x2x150xf32> to vector<2x150xf32>
    %323 = vector.shape_cast %295 : vector<2x150xf32> to vector<1x2x150xf32>
    tpu.vector_store %arg13[%c4_75, %c0_76, %c0_77], %323 {strides = array<i32>} : memref<8x2x150xf32, #tpu.memory_space<vmem>>, vector<1x2x150xf32>,
    %c3_78 = arith.constant 3 : index
    %c0_79 = arith.constant 0 : index
    %c0_80 = arith.constant 0 : index
    %324 = vector.load %arg14[%c3_78, %c0_79, %c0_80] : memref<8x2x150xf32, #tpu.memory_space<vmem>>, vector<1x2x150xf32>
    %325 = vector.shape_cast %324 : vector<1x2x150xf32> to vector<2x150xf32>
    %326 = vector.shape_cast %320 : vector<2x150xf32> to vector<1x2x150xf32>
    tpu.vector_store %arg14[%c3_78, %c0_79, %c0_80], %326 {strides = array<i32>} : memref<8x2x150xf32, #tpu.memory_space<vmem>>, vector<1x2x150xf32>,
    %327 = vector.extract_strided_slice %5 {offsets = [10, 0], sizes = [2, 600], strides = [1, 1]} : vector<16x600xf32> to vector<2x600xf32>
    %cst_81 = arith.constant dense<0.000000e+00> : vector<2x600xf32>
    %328 = tpu.matmul %295, %11, %cst_81 {dimension_numbers = #tpu.dot_dimension_numbers<[1], [0], [0], [1], [0, 0, 1, 1], [], []>} : vector<2x150xf32>, vector<150x600xf32>, vector<2x600xf32> -> vector<2x600xf32>
    %329 = arith.addf %327, %328 : vector<2x600xf32>
    %330 = vector.extract_strided_slice %10 {offsets = [4, 0], sizes = [2, 600], strides = [1, 1]} : vector<16x600xf32> to vector<2x600xf32>
    %cst_82 = arith.constant dense<0.000000e+00> : vector<2x600xf32>
    %331 = tpu.matmul %320, %12, %cst_82 {dimension_numbers = #tpu.dot_dimension_numbers<[1], [0], [0], [1], [0, 0, 1, 1], [], []>} : vector<2x150xf32>, vector<150x600xf32>, vector<2x600xf32> -> vector<2x600xf32>
    %332 = arith.addf %330, %331 : vector<2x600xf32>
    %333 = vector.extract_strided_slice %329 {offsets = [0, 0], sizes = [2, 150], strides = [1, 1]} : vector<2x600xf32> to vector<2x150xf32>
    %334 = arith.negf %333 : vector<2x150xf32>
    %335 = math.exp %334 : vector<2x150xf32>
    %cst_83 = arith.constant 1.000000e+00 : f32
    %336 = vector.broadcast %cst_83 : f32 to vector<2x150xf32>
    %337 = arith.addf %336, %335 : vector<2x150xf32>
    %338 = arith.divf %336, %337 : vector<2x150xf32>
    %339 = vector.extract_strided_slice %329 {offsets = [0, 150], sizes = [2, 150], strides = [1, 1]} : vector<2x600xf32> to vector<2x150xf32>
    %340 = arith.negf %339 : vector<2x150xf32>
    %341 = math.exp %340 : vector<2x150xf32>
    %cst_84 = arith.constant 1.000000e+00 : f32
    %342 = vector.broadcast %cst_84 : f32 to vector<2x150xf32>
    %343 = arith.addf %342, %341 : vector<2x150xf32>
    %344 = arith.divf %342, %343 : vector<2x150xf32>
    %345 = vector.extract_strided_slice %329 {offsets = [0, 300], sizes = [2, 150], strides = [1, 1]} : vector<2x600xf32> to vector<2x150xf32>
    %346 = math.tanh %345 : vector<2x150xf32>
    %347 = vector.extract_strided_slice %329 {offsets = [0, 450], sizes = [2, 150], strides = [1, 1]} : vector<2x600xf32> to vector<2x150xf32>
    %348 = arith.negf %347 : vector<2x150xf32>
    %349 = math.exp %348 : vector<2x150xf32>
    %cst_85 = arith.constant 1.000000e+00 : f32
    %350 = vector.broadcast %cst_85 : f32 to vector<2x150xf32>
    %351 = arith.addf %350, %349 : vector<2x150xf32>
    %352 = arith.divf %350, %351 : vector<2x150xf32>
    %353 = arith.mulf %344, %293 : vector<2x150xf32>
    %354 = arith.mulf %338, %346 : vector<2x150xf32>
    %355 = arith.addf %353, %354 : vector<2x150xf32>
    %356 = math.tanh %355 : vector<2x150xf32>
    %357 = arith.mulf %352, %356 : vector<2x150xf32>
    %358 = vector.extract_strided_slice %332 {offsets = [0, 0], sizes = [2, 150], strides = [1, 1]} : vector<2x600xf32> to vector<2x150xf32>
    %359 = arith.negf %358 : vector<2x150xf32>
    %360 = math.exp %359 : vector<2x150xf32>
    %cst_86 = arith.constant 1.000000e+00 : f32
    %361 = vector.broadcast %cst_86 : f32 to vector<2x150xf32>
    %362 = arith.addf %361, %360 : vector<2x150xf32>
    %363 = arith.divf %361, %362 : vector<2x150xf32>
    %364 = vector.extract_strided_slice %332 {offsets = [0, 150], sizes = [2, 150], strides = [1, 1]} : vector<2x600xf32> to vector<2x150xf32>
    %365 = arith.negf %364 : vector<2x150xf32>
    %366 = math.exp %365 : vector<2x150xf32>
    %cst_87 = arith.constant 1.000000e+00 : f32
    %367 = vector.broadcast %cst_87 : f32 to vector<2x150xf32>
    %368 = arith.addf %367, %366 : vector<2x150xf32>
    %369 = arith.divf %367, %368 : vector<2x150xf32>
    %370 = vector.extract_strided_slice %332 {offsets = [0, 300], sizes = [2, 150], strides = [1, 1]} : vector<2x600xf32> to vector<2x150xf32>
    %371 = math.tanh %370 : vector<2x150xf32>
    %372 = vector.extract_strided_slice %332 {offsets = [0, 450], sizes = [2, 150], strides = [1, 1]} : vector<2x600xf32> to vector<2x150xf32>
    %373 = arith.negf %372 : vector<2x150xf32>
    %374 = math.exp %373 : vector<2x150xf32>
    %cst_88 = arith.constant 1.000000e+00 : f32
    %375 = vector.broadcast %cst_88 : f32 to vector<2x150xf32>
    %376 = arith.addf %375, %374 : vector<2x150xf32>
    %377 = arith.divf %375, %376 : vector<2x150xf32>
    %378 = arith.mulf %369, %318 : vector<2x150xf32>
    %379 = arith.mulf %363, %371 : vector<2x150xf32>
    %380 = arith.addf %378, %379 : vector<2x150xf32>
    %381 = math.tanh %380 : vector<2x150xf32>
    %382 = arith.mulf %377, %381 : vector<2x150xf32>
    %c5_89 = arith.constant 5 : index
    %c0_90 = arith.constant 0 : index
    %c0_91 = arith.constant 0 : index
    %383 = vector.load %arg13[%c5_89, %c0_90, %c0_91] : memref<8x2x150xf32, #tpu.memory_space<vmem>>, vector<1x2x150xf32>
    %384 = vector.shape_cast %383 : vector<1x2x150xf32> to vector<2x150xf32>
    %385 = vector.shape_cast %357 : vector<2x150xf32> to vector<1x2x150xf32>
    tpu.vector_store %arg13[%c5_89, %c0_90, %c0_91], %385 {strides = array<i32>} : memref<8x2x150xf32, #tpu.memory_space<vmem>>, vector<1x2x150xf32>,
    %c2_92 = arith.constant 2 : index
    %c0_93 = arith.constant 0 : index
    %c0_94 = arith.constant 0 : index
    %386 = vector.load %arg14[%c2_92, %c0_93, %c0_94] : memref<8x2x150xf32, #tpu.memory_space<vmem>>, vector<1x2x150xf32>
    %387 = vector.shape_cast %386 : vector<1x2x150xf32> to vector<2x150xf32>
    %388 = vector.shape_cast %382 : vector<2x150xf32> to vector<1x2x150xf32>
    tpu.vector_store %arg14[%c2_92, %c0_93, %c0_94], %388 {strides = array<i32>} : memref<8x2x150xf32, #tpu.memory_space<vmem>>, vector<1x2x150xf32>,
    %389 = vector.extract_strided_slice %5 {offsets = [12, 0], sizes = [2, 600], strides = [1, 1]} : vector<16x600xf32> to vector<2x600xf32>
    %cst_95 = arith.constant dense<0.000000e+00> : vector<2x600xf32>
    %390 = tpu.matmul %357, %11, %cst_95 {dimension_numbers = #tpu.dot_dimension_numbers<[1], [0], [0], [1], [0, 0, 1, 1], [], []>} : vector<2x150xf32>, vector<150x600xf32>, vector<2x600xf32> -> vector<2x600xf32>
    %391 = arith.addf %389, %390 : vector<2x600xf32>
    %392 = vector.extract_strided_slice %10 {offsets = [2, 0], sizes = [2, 600], strides = [1, 1]} : vector<16x600xf32> to vector<2x600xf32>
    %cst_96 = arith.constant dense<0.000000e+00> : vector<2x600xf32>
    %393 = tpu.matmul %382, %12, %cst_96 {dimension_numbers = #tpu.dot_dimension_numbers<[1], [0], [0], [1], [0, 0, 1, 1], [], []>} : vector<2x150xf32>, vector<150x600xf32>, vector<2x600xf32> -> vector<2x600xf32>
    %394 = arith.addf %392, %393 : vector<2x600xf32>
    %395 = vector.extract_strided_slice %391 {offsets = [0, 0], sizes = [2, 150], strides = [1, 1]} : vector<2x600xf32> to vector<2x150xf32>
    %396 = arith.negf %395 : vector<2x150xf32>
    %397 = math.exp %396 : vector<2x150xf32>
    %cst_97 = arith.constant 1.000000e+00 : f32
    %398 = vector.broadcast %cst_97 : f32 to vector<2x150xf32>
    %399 = arith.addf %398, %397 : vector<2x150xf32>
    %400 = arith.divf %398, %399 : vector<2x150xf32>
    %401 = vector.extract_strided_slice %391 {offsets = [0, 150], sizes = [2, 150], strides = [1, 1]} : vector<2x600xf32> to vector<2x150xf32>
    %402 = arith.negf %401 : vector<2x150xf32>
    %403 = math.exp %402 : vector<2x150xf32>
    %cst_98 = arith.constant 1.000000e+00 : f32
    %404 = vector.broadcast %cst_98 : f32 to vector<2x150xf32>
    %405 = arith.addf %404, %403 : vector<2x150xf32>
    %406 = arith.divf %404, %405 : vector<2x150xf32>
    %407 = vector.extract_strided_slice %391 {offsets = [0, 300], sizes = [2, 150], strides = [1, 1]} : vector<2x600xf32> to vector<2x150xf32>
    %408 = math.tanh %407 : vector<2x150xf32>
    %409 = vector.extract_strided_slice %391 {offsets = [0, 450], sizes = [2, 150], strides = [1, 1]} : vector<2x600xf32> to vector<2x150xf32>
    %410 = arith.negf %409 : vector<2x150xf32>
    %411 = math.exp %410 : vector<2x150xf32>
    %cst_99 = arith.constant 1.000000e+00 : f32
    %412 = vector.broadcast %cst_99 : f32 to vector<2x150xf32>
    %413 = arith.addf %412, %411 : vector<2x150xf32>
    %414 = arith.divf %412, %413 : vector<2x150xf32>
    %415 = arith.mulf %406, %355 : vector<2x150xf32>
    %416 = arith.mulf %400, %408 : vector<2x150xf32>
    %417 = arith.addf %415, %416 : vector<2x150xf32>
    %418 = math.tanh %417 : vector<2x150xf32>
    %419 = arith.mulf %414, %418 : vector<2x150xf32>
    %420 = vector.extract_strided_slice %394 {offsets = [0, 0], sizes = [2, 150], strides = [1, 1]} : vector<2x600xf32> to vector<2x150xf32>
    %421 = arith.negf %420 : vector<2x150xf32>
    %422 = math.exp %421 : vector<2x150xf32>
    %cst_100 = arith.constant 1.000000e+00 : f32
    %423 = vector.broadcast %cst_100 : f32 to vector<2x150xf32>
    %424 = arith.addf %423, %422 : vector<2x150xf32>
    %425 = arith.divf %423, %424 : vector<2x150xf32>
    %426 = vector.extract_strided_slice %394 {offsets = [0, 150], sizes = [2, 150], strides = [1, 1]} : vector<2x600xf32> to vector<2x150xf32>
    %427 = arith.negf %426 : vector<2x150xf32>
    %428 = math.exp %427 : vector<2x150xf32>
    %cst_101 = arith.constant 1.000000e+00 : f32
    %429 = vector.broadcast %cst_101 : f32 to vector<2x150xf32>
    %430 = arith.addf %429, %428 : vector<2x150xf32>
    %431 = arith.divf %429, %430 : vector<2x150xf32>
    %432 = vector.extract_strided_slice %394 {offsets = [0, 300], sizes = [2, 150], strides = [1, 1]} : vector<2x600xf32> to vector<2x150xf32>
    %433 = math.tanh %432 : vector<2x150xf32>
    %434 = vector.extract_strided_slice %394 {offsets = [0, 450], sizes = [2, 150], strides = [1, 1]} : vector<2x600xf32> to vector<2x150xf32>
    %435 = arith.negf %434 : vector<2x150xf32>
    %436 = math.exp %435 : vector<2x150xf32>
    %cst_102 = arith.constant 1.000000e+00 : f32
    %437 = vector.broadcast %cst_102 : f32 to vector<2x150xf32>
    %438 = arith.addf %437, %436 : vector<2x150xf32>
    %439 = arith.divf %437, %438 : vector<2x150xf32>
    %440 = arith.mulf %431, %380 : vector<2x150xf32>
    %441 = arith.mulf %425, %433 : vector<2x150xf32>
    %442 = arith.addf %440, %441 : vector<2x150xf32>
    %443 = math.tanh %442 : vector<2x150xf32>
    %444 = arith.mulf %439, %443 : vector<2x150xf32>
    %c6_103 = arith.constant 6 : index
    %c0_104 = arith.constant 0 : index
    %c0_105 = arith.constant 0 : index
    %445 = vector.load %arg13[%c6_103, %c0_104, %c0_105] : memref<8x2x150xf32, #tpu.memory_space<vmem>>, vector<1x2x150xf32>
    %446 = vector.shape_cast %445 : vector<1x2x150xf32> to vector<2x150xf32>
    %447 = vector.shape_cast %419 : vector<2x150xf32> to vector<1x2x150xf32>
    tpu.vector_store %arg13[%c6_103, %c0_104, %c0_105], %447 {strides = array<i32>} : memref<8x2x150xf32, #tpu.memory_space<vmem>>, vector<1x2x150xf32>,
    %c1_106 = arith.constant 1 : index
    %c0_107 = arith.constant 0 : index
    %c0_108 = arith.constant 0 : index
    %448 = vector.load %arg14[%c1_106, %c0_107, %c0_108] : memref<8x2x150xf32, #tpu.memory_space<vmem>>, vector<1x2x150xf32>
    %449 = vector.shape_cast %448 : vector<1x2x150xf32> to vector<2x150xf32>
    %450 = vector.shape_cast %444 : vector<2x150xf32> to vector<1x2x150xf32>
    tpu.vector_store %arg14[%c1_106, %c0_107, %c0_108], %450 {strides = array<i32>} : memref<8x2x150xf32, #tpu.memory_space<vmem>>, vector<1x2x150xf32>,
    %451 = vector.extract_strided_slice %5 {offsets = [14, 0], sizes = [2, 600], strides = [1, 1]} : vector<16x600xf32> to vector<2x600xf32>
    %cst_109 = arith.constant dense<0.000000e+00> : vector<2x600xf32>
    %452 = tpu.matmul %419, %11, %cst_109 {dimension_numbers = #tpu.dot_dimension_numbers<[1], [0], [0], [1], [0, 0, 1, 1], [], []>} : vector<2x150xf32>, vector<150x600xf32>, vector<2x600xf32> -> vector<2x600xf32>
    %453 = arith.addf %451, %452 : vector<2x600xf32>
    %454 = vector.extract_strided_slice %10 {offsets = [0, 0], sizes = [2, 600], strides = [1, 1]} : vector<16x600xf32> to vector<2x600xf32>
    %cst_110 = arith.constant dense<0.000000e+00> : vector<2x600xf32>
    %455 = tpu.matmul %444, %12, %cst_110 {dimension_numbers = #tpu.dot_dimension_numbers<[1], [0], [0], [1], [0, 0, 1, 1], [], []>} : vector<2x150xf32>, vector<150x600xf32>, vector<2x600xf32> -> vector<2x600xf32>
    %456 = arith.addf %454, %455 : vector<2x600xf32>
    %457 = vector.extract_strided_slice %453 {offsets = [0, 0], sizes = [2, 150], strides = [1, 1]} : vector<2x600xf32> to vector<2x150xf32>
    %458 = arith.negf %457 : vector<2x150xf32>
    %459 = math.exp %458 : vector<2x150xf32>
    %cst_111 = arith.constant 1.000000e+00 : f32
    %460 = vector.broadcast %cst_111 : f32 to vector<2x150xf32>
    %461 = arith.addf %460, %459 : vector<2x150xf32>
    %462 = arith.divf %460, %461 : vector<2x150xf32>
    %463 = vector.extract_strided_slice %453 {offsets = [0, 150], sizes = [2, 150], strides = [1, 1]} : vector<2x600xf32> to vector<2x150xf32>
    %464 = arith.negf %463 : vector<2x150xf32>
    %465 = math.exp %464 : vector<2x150xf32>
    %cst_112 = arith.constant 1.000000e+00 : f32
    %466 = vector.broadcast %cst_112 : f32 to vector<2x150xf32>
    %467 = arith.addf %466, %465 : vector<2x150xf32>
    %468 = arith.divf %466, %467 : vector<2x150xf32>
    %469 = vector.extract_strided_slice %453 {offsets = [0, 300], sizes = [2, 150], strides = [1, 1]} : vector<2x600xf32> to vector<2x150xf32>
    %470 = math.tanh %469 : vector<2x150xf32>
    %471 = vector.extract_strided_slice %453 {offsets = [0, 450], sizes = [2, 150], strides = [1, 1]} : vector<2x600xf32> to vector<2x150xf32>
    %472 = arith.negf %471 : vector<2x150xf32>
    %473 = math.exp %472 : vector<2x150xf32>
    %cst_113 = arith.constant 1.000000e+00 : f32
    %474 = vector.broadcast %cst_113 : f32 to vector<2x150xf32>
    %475 = arith.addf %474, %473 : vector<2x150xf32>
    %476 = arith.divf %474, %475 : vector<2x150xf32>
    %477 = arith.mulf %468, %417 : vector<2x150xf32>
    %478 = arith.mulf %462, %470 : vector<2x150xf32>
    %479 = arith.addf %477, %478 : vector<2x150xf32>
    %480 = math.tanh %479 : vector<2x150xf32>
    %481 = arith.mulf %476, %480 : vector<2x150xf32>
    %482 = vector.extract_strided_slice %456 {offsets = [0, 0], sizes = [2, 150], strides = [1, 1]} : vector<2x600xf32> to vector<2x150xf32>
    %483 = arith.negf %482 : vector<2x150xf32>
    %484 = math.exp %483 : vector<2x150xf32>
    %cst_114 = arith.constant 1.000000e+00 : f32
    %485 = vector.broadcast %cst_114 : f32 to vector<2x150xf32>
    %486 = arith.addf %485, %484 : vector<2x150xf32>
    %487 = arith.divf %485, %486 : vector<2x150xf32>
    %488 = vector.extract_strided_slice %456 {offsets = [0, 150], sizes = [2, 150], strides = [1, 1]} : vector<2x600xf32> to vector<2x150xf32>
    %489 = arith.negf %488 : vector<2x150xf32>
    %490 = math.exp %489 : vector<2x150xf32>
    %cst_115 = arith.constant 1.000000e+00 : f32
    %491 = vector.broadcast %cst_115 : f32 to vector<2x150xf32>
    %492 = arith.addf %491, %490 : vector<2x150xf32>
    %493 = arith.divf %491, %492 : vector<2x150xf32>
    %494 = vector.extract_strided_slice %456 {offsets = [0, 300], sizes = [2, 150], strides = [1, 1]} : vector<2x600xf32> to vector<2x150xf32>
    %495 = math.tanh %494 : vector<2x150xf32>
    %496 = vector.extract_strided_slice %456 {offsets = [0, 450], sizes = [2, 150], strides = [1, 1]} : vector<2x600xf32> to vector<2x150xf32>
    %497 = arith.negf %496 : vector<2x150xf32>
    %498 = math.exp %497 : vector<2x150xf32>
    %cst_116 = arith.constant 1.000000e+00 : f32
    %499 = vector.broadcast %cst_116 : f32 to vector<2x150xf32>
    %500 = arith.addf %499, %498 : vector<2x150xf32>
    %501 = arith.divf %499, %500 : vector<2x150xf32>
    %502 = arith.mulf %493, %442 : vector<2x150xf32>
    %503 = arith.mulf %487, %495 : vector<2x150xf32>
    %504 = arith.addf %502, %503 : vector<2x150xf32>
    %505 = math.tanh %504 : vector<2x150xf32>
    %506 = arith.mulf %501, %505 : vector<2x150xf32>
    %c7_117 = arith.constant 7 : index
    %c0_118 = arith.constant 0 : index
    %c0_119 = arith.constant 0 : index
    %507 = vector.load %arg13[%c7_117, %c0_118, %c0_119] : memref<8x2x150xf32, #tpu.memory_space<vmem>>, vector<1x2x150xf32>
    %508 = vector.shape_cast %507 : vector<1x2x150xf32> to vector<2x150xf32>
    %509 = vector.shape_cast %481 : vector<2x150xf32> to vector<1x2x150xf32>
    tpu.vector_store %arg13[%c7_117, %c0_118, %c0_119], %509 {strides = array<i32>} : memref<8x2x150xf32, #tpu.memory_space<vmem>>, vector<1x2x150xf32>,
    %c0_120 = arith.constant 0 : index
    %c0_121 = arith.constant 0 : index
    %c0_122 = arith.constant 0 : index
    %510 = vector.load %arg14[%c0_120, %c0_121, %c0_122] : memref<8x2x150xf32, #tpu.memory_space<vmem>>, vector<1x2x150xf32>
    %511 = vector.shape_cast %510 : vector<1x2x150xf32> to vector<2x150xf32>
    %512 = vector.shape_cast %506 : vector<2x150xf32> to vector<1x2x150xf32>
    tpu.vector_store %arg14[%c0_120, %c0_121, %c0_122], %512 {strides = array<i32>} : memref<8x2x150xf32, #tpu.memory_space<vmem>>, vector<1x2x150xf32>,
    %513 = tpu.concatenate %481, %506 in 0 : vector<2x150xf32>, vector<2x150xf32> -> vector<4x150xf32>
    %514 = vector.extract_strided_slice %513 {offsets = [0, 0], sizes = [1, 150], strides = [1, 1]} : vector<4x150xf32> to vector<1x150xf32>
    %515 = vector.extract_strided_slice %513 {offsets = [2, 0], sizes = [1, 150], strides = [1, 1]} : vector<4x150xf32> to vector<1x150xf32>
    %516 = tpu.concatenate %514, %515 in 0 : vector<1x150xf32>, vector<1x150xf32> -> vector<2x150xf32>
    %517 = vector.extract_strided_slice %513 {offsets = [1, 0], sizes = [1, 150], strides = [1, 1]} : vector<4x150xf32> to vector<1x150xf32>
    %518 = vector.extract_strided_slice %513 {offsets = [3, 0], sizes = [1, 150], strides = [1, 1]} : vector<4x150xf32> to vector<1x150xf32>
    %519 = tpu.concatenate %517, %518 in 0 : vector<1x150xf32>, vector<1x150xf32> -> vector<2x150xf32>
    %c0_123 = arith.constant 0 : index
    %c0_124 = arith.constant 0 : index
    %c0_125 = arith.constant 0 : index
    %520 = vector.load %arg13[%c0_123, %c0_124, %c0_125] : memref<8x2x150xf32, #tpu.memory_space<vmem>>, vector<1x2x150xf32>
    %521 = vector.shape_cast %520 : vector<1x2x150xf32> to vector<2x150xf32>
    %c0_126 = arith.constant 0 : index
    %c0_127 = arith.constant 0 : index
    %c0_128 = arith.constant 0 : index
    %522 = vector.load %arg14[%c0_126, %c0_127, %c0_128] : memref<8x2x150xf32, #tpu.memory_space<vmem>>, vector<1x2x150xf32>
    %523 = vector.shape_cast %522 : vector<1x2x150xf32> to vector<2x150xf32>
    %524 = arith.mulf %521, %516 : vector<2x150xf32>
    %cst_129 = arith.constant dense<0.000000e+00> : vector<2xf32>
    %525 = vector.multi_reduction <add>, %524, %cst_129 [1] : vector<2x150xf32> to vector<2xf32>
    %526 = vector.shape_cast %525 : vector<2xf32> to vector<2x1xf32>
    %527 = arith.mulf %523, %519 : vector<2x150xf32>
    %cst_130 = arith.constant dense<0.000000e+00> : vector<2xf32>
    %528 = vector.multi_reduction <add>, %527, %cst_130 [1] : vector<2x150xf32> to vector<2xf32>
    %529 = vector.shape_cast %528 : vector<2xf32> to vector<2x1xf32>
    %530 = arith.addf %526, %529 : vector<2x1xf32>
    %c1_131 = arith.constant 1 : index
    %c0_132 = arith.constant 0 : index
    %c0_133 = arith.constant 0 : index
    %531 = vector.load %arg13[%c1_131, %c0_132, %c0_133] : memref<8x2x150xf32, #tpu.memory_space<vmem>>, vector<1x2x150xf32>
    %532 = vector.shape_cast %531 : vector<1x2x150xf32> to vector<2x150xf32>
    %c1_134 = arith.constant 1 : index
    %c0_135 = arith.constant 0 : index
    %c0_136 = arith.constant 0 : index
    %533 = vector.load %arg14[%c1_134, %c0_135, %c0_136] : memref<8x2x150xf32, #tpu.memory_space<vmem>>, vector<1x2x150xf32>
    %534 = vector.shape_cast %533 : vector<1x2x150xf32> to vector<2x150xf32>
    %535 = arith.mulf %532, %516 : vector<2x150xf32>
    %cst_137 = arith.constant dense<0.000000e+00> : vector<2xf32>
    %536 = vector.multi_reduction <add>, %535, %cst_137 [1] : vector<2x150xf32> to vector<2xf32>
    %537 = vector.shape_cast %536 : vector<2xf32> to vector<2x1xf32>
    %538 = arith.mulf %534, %519 : vector<2x150xf32>
    %cst_138 = arith.constant dense<0.000000e+00> : vector<2xf32>
    %539 = vector.multi_reduction <add>, %538, %cst_138 [1] : vector<2x150xf32> to vector<2xf32>
    %540 = vector.shape_cast %539 : vector<2xf32> to vector<2x1xf32>
    %541 = arith.addf %537, %540 : vector<2x1xf32>
    %c2_139 = arith.constant 2 : index
    %c0_140 = arith.constant 0 : index
    %c0_141 = arith.constant 0 : index
    %542 = vector.load %arg13[%c2_139, %c0_140, %c0_141] : memref<8x2x150xf32, #tpu.memory_space<vmem>>, vector<1x2x150xf32>
    %543 = vector.shape_cast %542 : vector<1x2x150xf32> to vector<2x150xf32>
    %c2_142 = arith.constant 2 : index
    %c0_143 = arith.constant 0 : index
    %c0_144 = arith.constant 0 : index
    %544 = vector.load %arg14[%c2_142, %c0_143, %c0_144] : memref<8x2x150xf32, #tpu.memory_space<vmem>>, vector<1x2x150xf32>
    %545 = vector.shape_cast %544 : vector<1x2x150xf32> to vector<2x150xf32>
    %546 = arith.mulf %543, %516 : vector<2x150xf32>
    %cst_145 = arith.constant dense<0.000000e+00> : vector<2xf32>
    %547 = vector.multi_reduction <add>, %546, %cst_145 [1] : vector<2x150xf32> to vector<2xf32>
    %548 = vector.shape_cast %547 : vector<2xf32> to vector<2x1xf32>
    %549 = arith.mulf %545, %519 : vector<2x150xf32>
    %cst_146 = arith.constant dense<0.000000e+00> : vector<2xf32>
    %550 = vector.multi_reduction <add>, %549, %cst_146 [1] : vector<2x150xf32> to vector<2xf32>
    %551 = vector.shape_cast %550 : vector<2xf32> to vector<2x1xf32>
    %552 = arith.addf %548, %551 : vector<2x1xf32>
    %c3_147 = arith.constant 3 : index
    %c0_148 = arith.constant 0 : index
    %c0_149 = arith.constant 0 : index
    %553 = vector.load %arg13[%c3_147, %c0_148, %c0_149] : memref<8x2x150xf32, #tpu.memory_space<vmem>>, vector<1x2x150xf32>
    %554 = vector.shape_cast %553 : vector<1x2x150xf32> to vector<2x150xf32>
    %c3_150 = arith.constant 3 : index
    %c0_151 = arith.constant 0 : index
    %c0_152 = arith.constant 0 : index
    %555 = vector.load %arg14[%c3_150, %c0_151, %c0_152] : memref<8x2x150xf32, #tpu.memory_space<vmem>>, vector<1x2x150xf32>
    %556 = vector.shape_cast %555 : vector<1x2x150xf32> to vector<2x150xf32>
    %557 = arith.mulf %554, %516 : vector<2x150xf32>
    %cst_153 = arith.constant dense<0.000000e+00> : vector<2xf32>
    %558 = vector.multi_reduction <add>, %557, %cst_153 [1] : vector<2x150xf32> to vector<2xf32>
    %559 = vector.shape_cast %558 : vector<2xf32> to vector<2x1xf32>
    %560 = arith.mulf %556, %519 : vector<2x150xf32>
    %cst_154 = arith.constant dense<0.000000e+00> : vector<2xf32>
    %561 = vector.multi_reduction <add>, %560, %cst_154 [1] : vector<2x150xf32> to vector<2xf32>
    %562 = vector.shape_cast %561 : vector<2xf32> to vector<2x1xf32>
    %563 = arith.addf %559, %562 : vector<2x1xf32>
    %c4_155 = arith.constant 4 : index
    %c0_156 = arith.constant 0 : index
    %c0_157 = arith.constant 0 : index
    %564 = vector.load %arg13[%c4_155, %c0_156, %c0_157] : memref<8x2x150xf32, #tpu.memory_space<vmem>>, vector<1x2x150xf32>
    %565 = vector.shape_cast %564 : vector<1x2x150xf32> to vector<2x150xf32>
    %c4_158 = arith.constant 4 : index
    %c0_159 = arith.constant 0 : index
    %c0_160 = arith.constant 0 : index
    %566 = vector.load %arg14[%c4_158, %c0_159, %c0_160] : memref<8x2x150xf32, #tpu.memory_space<vmem>>, vector<1x2x150xf32>
    %567 = vector.shape_cast %566 : vector<1x2x150xf32> to vector<2x150xf32>
    %568 = arith.mulf %565, %516 : vector<2x150xf32>
    %cst_161 = arith.constant dense<0.000000e+00> : vector<2xf32>
    %569 = vector.multi_reduction <add>, %568, %cst_161 [1] : vector<2x150xf32> to vector<2xf32>
    %570 = vector.shape_cast %569 : vector<2xf32> to vector<2x1xf32>
    %571 = arith.mulf %567, %519 : vector<2x150xf32>
    %cst_162 = arith.constant dense<0.000000e+00> : vector<2xf32>
    %572 = vector.multi_reduction <add>, %571, %cst_162 [1] : vector<2x150xf32> to vector<2xf32>
    %573 = vector.shape_cast %572 : vector<2xf32> to vector<2x1xf32>
    %574 = arith.addf %570, %573 : vector<2x1xf32>
    %c5_163 = arith.constant 5 : index
    %c0_164 = arith.constant 0 : index
    %c0_165 = arith.constant 0 : index
    %575 = vector.load %arg13[%c5_163, %c0_164, %c0_165] : memref<8x2x150xf32, #tpu.memory_space<vmem>>, vector<1x2x150xf32>
    %576 = vector.shape_cast %575 : vector<1x2x150xf32> to vector<2x150xf32>
    %c5_166 = arith.constant 5 : index
    %c0_167 = arith.constant 0 : index
    %c0_168 = arith.constant 0 : index
    %577 = vector.load %arg14[%c5_166, %c0_167, %c0_168] : memref<8x2x150xf32, #tpu.memory_space<vmem>>, vector<1x2x150xf32>
    %578 = vector.shape_cast %577 : vector<1x2x150xf32> to vector<2x150xf32>
    %579 = arith.mulf %576, %516 : vector<2x150xf32>
    %cst_169 = arith.constant dense<0.000000e+00> : vector<2xf32>
    %580 = vector.multi_reduction <add>, %579, %cst_169 [1] : vector<2x150xf32> to vector<2xf32>
    %581 = vector.shape_cast %580 : vector<2xf32> to vector<2x1xf32>
    %582 = arith.mulf %578, %519 : vector<2x150xf32>
    %cst_170 = arith.constant dense<0.000000e+00> : vector<2xf32>
    %583 = vector.multi_reduction <add>, %582, %cst_170 [1] : vector<2x150xf32> to vector<2xf32>
    %584 = vector.shape_cast %583 : vector<2xf32> to vector<2x1xf32>
    %585 = arith.addf %581, %584 : vector<2x1xf32>
    %c6_171 = arith.constant 6 : index
    %c0_172 = arith.constant 0 : index
    %c0_173 = arith.constant 0 : index
    %586 = vector.load %arg13[%c6_171, %c0_172, %c0_173] : memref<8x2x150xf32, #tpu.memory_space<vmem>>, vector<1x2x150xf32>
    %587 = vector.shape_cast %586 : vector<1x2x150xf32> to vector<2x150xf32>
    %c6_174 = arith.constant 6 : index
    %c0_175 = arith.constant 0 : index
    %c0_176 = arith.constant 0 : index
    %588 = vector.load %arg14[%c6_174, %c0_175, %c0_176] : memref<8x2x150xf32, #tpu.memory_space<vmem>>, vector<1x2x150xf32>
    %589 = vector.shape_cast %588 : vector<1x2x150xf32> to vector<2x150xf32>
    %590 = arith.mulf %587, %516 : vector<2x150xf32>
    %cst_177 = arith.constant dense<0.000000e+00> : vector<2xf32>
    %591 = vector.multi_reduction <add>, %590, %cst_177 [1] : vector<2x150xf32> to vector<2xf32>
    %592 = vector.shape_cast %591 : vector<2xf32> to vector<2x1xf32>
    %593 = arith.mulf %589, %519 : vector<2x150xf32>
    %cst_178 = arith.constant dense<0.000000e+00> : vector<2xf32>
    %594 = vector.multi_reduction <add>, %593, %cst_178 [1] : vector<2x150xf32> to vector<2xf32>
    %595 = vector.shape_cast %594 : vector<2xf32> to vector<2x1xf32>
    %596 = arith.addf %592, %595 : vector<2x1xf32>
    %c7_179 = arith.constant 7 : index
    %c0_180 = arith.constant 0 : index
    %c0_181 = arith.constant 0 : index
    %597 = vector.load %arg13[%c7_179, %c0_180, %c0_181] : memref<8x2x150xf32, #tpu.memory_space<vmem>>, vector<1x2x150xf32>
    %598 = vector.shape_cast %597 : vector<1x2x150xf32> to vector<2x150xf32>
    %c7_182 = arith.constant 7 : index
    %c0_183 = arith.constant 0 : index
    %c0_184 = arith.constant 0 : index
    %599 = vector.load %arg14[%c7_182, %c0_183, %c0_184] : memref<8x2x150xf32, #tpu.memory_space<vmem>>, vector<1x2x150xf32>
    %600 = vector.shape_cast %599 : vector<1x2x150xf32> to vector<2x150xf32>
    %601 = arith.mulf %598, %516 : vector<2x150xf32>
    %cst_185 = arith.constant dense<0.000000e+00> : vector<2xf32>
    %602 = vector.multi_reduction <add>, %601, %cst_185 [1] : vector<2x150xf32> to vector<2xf32>
    %603 = vector.shape_cast %602 : vector<2xf32> to vector<2x1xf32>
    %604 = arith.mulf %600, %519 : vector<2x150xf32>
    %cst_186 = arith.constant dense<0.000000e+00> : vector<2xf32>
    %605 = vector.multi_reduction <add>, %604, %cst_186 [1] : vector<2x150xf32> to vector<2xf32>
    %606 = vector.shape_cast %605 : vector<2xf32> to vector<2x1xf32>
    %607 = arith.addf %603, %606 : vector<2x1xf32>
    %608 = tpu.concatenate %530, %541, %552, %563, %574, %585, %596, %607 in 1 : vector<2x1xf32>, vector<2x1xf32>, vector<2x1xf32>, vector<2x1xf32>, vector<2x1xf32>, vector<2x1xf32>, vector<2x1xf32>, vector<2x1xf32> -> vector<2x8xf32>
    %cst_187 = arith.constant dense<0xFF800000> : vector<2xf32>
    %609 = vector.multi_reduction <maximumf>, %608, %cst_187 [1] : vector<2x8xf32> to vector<2xf32>
    %610 = vector.shape_cast %609 : vector<2xf32> to vector<2x1xf32>
    %611 = vector.broadcast %610 : vector<2x1xf32> to vector<2x8xf32>
    %612 = arith.subf %608, %611 : vector<2x8xf32>
    %613 = math.exp %612 : vector<2x8xf32>
    %cst_188 = arith.constant dense<0.000000e+00> : vector<2xf32>
    %614 = vector.multi_reduction <add>, %613, %cst_188 [1] : vector<2x8xf32> to vector<2xf32>
    %615 = vector.shape_cast %614 : vector<2xf32> to vector<2x1xf32>
    %616 = vector.broadcast %615 : vector<2x1xf32> to vector<2x8xf32>
    %617 = arith.divf %613, %616 : vector<2x8xf32>
    %c0_189 = arith.constant 0 : index
    %c0_190 = arith.constant 0 : index
    %618 = vector.load %arg12[%c0_189, %c0_190] : memref<2x8xf32, #tpu.memory_space<vmem>>, vector<2x8xf32>
    tpu.vector_store %arg12[%c0_189, %c0_190], %617 {strides = array<i32>} : memref<2x8xf32, #tpu.memory_space<vmem>>, vector<2x8xf32>,
    %cst_191 = arith.constant 0.000000e+00 : f32
    %619 = vector.broadcast %cst_191 : f32 to vector<2x150xf32>
    %cst_192 = arith.constant 0.000000e+00 : f32
    %620 = vector.broadcast %cst_192 : f32 to vector<2x150xf32>
    %621 = vector.extract_strided_slice %617 {offsets = [0, 0], sizes = [2, 1], strides = [1, 1]} : vector<2x8xf32> to vector<2x1xf32>
    %c0_193 = arith.constant 0 : index
    %c0_194 = arith.constant 0 : index
    %c0_195 = arith.constant 0 : index
    %622 = vector.load %arg13[%c0_193, %c0_194, %c0_195] : memref<8x2x150xf32, #tpu.memory_space<vmem>>, vector<1x2x150xf32>
    %623 = vector.shape_cast %622 : vector<1x2x150xf32> to vector<2x150xf32>
    %624 = vector.broadcast %621 : vector<2x1xf32> to vector<2x150xf32>
    %625 = arith.mulf %624, %623 : vector<2x150xf32>
    %626 = arith.addf %619, %625 : vector<2x150xf32>
    %c0_196 = arith.constant 0 : index
    %c0_197 = arith.constant 0 : index
    %c0_198 = arith.constant 0 : index
    %627 = vector.load %arg14[%c0_196, %c0_197, %c0_198] : memref<8x2x150xf32, #tpu.memory_space<vmem>>, vector<1x2x150xf32>
    %628 = vector.shape_cast %627 : vector<1x2x150xf32> to vector<2x150xf32>
    %629 = vector.broadcast %621 : vector<2x1xf32> to vector<2x150xf32>
    %630 = arith.mulf %629, %628 : vector<2x150xf32>
    %631 = arith.addf %620, %630 : vector<2x150xf32>
    %632 = vector.extract_strided_slice %617 {offsets = [0, 1], sizes = [2, 1], strides = [1, 1]} : vector<2x8xf32> to vector<2x1xf32>
    %c1_199 = arith.constant 1 : index
    %c0_200 = arith.constant 0 : index
    %c0_201 = arith.constant 0 : index
    %633 = vector.load %arg13[%c1_199, %c0_200, %c0_201] : memref<8x2x150xf32, #tpu.memory_space<vmem>>, vector<1x2x150xf32>
    %634 = vector.shape_cast %633 : vector<1x2x150xf32> to vector<2x150xf32>
    %635 = vector.broadcast %632 : vector<2x1xf32> to vector<2x150xf32>
    %636 = arith.mulf %635, %634 : vector<2x150xf32>
    %637 = arith.addf %626, %636 : vector<2x150xf32>
    %c1_202 = arith.constant 1 : index
    %c0_203 = arith.constant 0 : index
    %c0_204 = arith.constant 0 : index
    %638 = vector.load %arg14[%c1_202, %c0_203, %c0_204] : memref<8x2x150xf32, #tpu.memory_space<vmem>>, vector<1x2x150xf32>
    %639 = vector.shape_cast %638 : vector<1x2x150xf32> to vector<2x150xf32>
    %640 = vector.broadcast %632 : vector<2x1xf32> to vector<2x150xf32>
    %641 = arith.mulf %640, %639 : vector<2x150xf32>
    %642 = arith.addf %631, %641 : vector<2x150xf32>
    %643 = vector.extract_strided_slice %617 {offsets = [0, 2], sizes = [2, 1], strides = [1, 1]} : vector<2x8xf32> to vector<2x1xf32>
    %c2_205 = arith.constant 2 : index
    %c0_206 = arith.constant 0 : index
    %c0_207 = arith.constant 0 : index
    %644 = vector.load %arg13[%c2_205, %c0_206, %c0_207] : memref<8x2x150xf32, #tpu.memory_space<vmem>>, vector<1x2x150xf32>
    %645 = vector.shape_cast %644 : vector<1x2x150xf32> to vector<2x150xf32>
    %646 = vector.broadcast %643 : vector<2x1xf32> to vector<2x150xf32>
    %647 = arith.mulf %646, %645 : vector<2x150xf32>
    %648 = arith.addf %637, %647 : vector<2x150xf32>
    %c2_208 = arith.constant 2 : index
    %c0_209 = arith.constant 0 : index
    %c0_210 = arith.constant 0 : index
    %649 = vector.load %arg14[%c2_208, %c0_209, %c0_210] : memref<8x2x150xf32, #tpu.memory_space<vmem>>, vector<1x2x150xf32>
    %650 = vector.shape_cast %649 : vector<1x2x150xf32> to vector<2x150xf32>
    %651 = vector.broadcast %643 : vector<2x1xf32> to vector<2x150xf32>
    %652 = arith.mulf %651, %650 : vector<2x150xf32>
    %653 = arith.addf %642, %652 : vector<2x150xf32>
    %654 = vector.extract_strided_slice %617 {offsets = [0, 3], sizes = [2, 1], strides = [1, 1]} : vector<2x8xf32> to vector<2x1xf32>
    %c3_211 = arith.constant 3 : index
    %c0_212 = arith.constant 0 : index
    %c0_213 = arith.constant 0 : index
    %655 = vector.load %arg13[%c3_211, %c0_212, %c0_213] : memref<8x2x150xf32, #tpu.memory_space<vmem>>, vector<1x2x150xf32>
    %656 = vector.shape_cast %655 : vector<1x2x150xf32> to vector<2x150xf32>
    %657 = vector.broadcast %654 : vector<2x1xf32> to vector<2x150xf32>
    %658 = arith.mulf %657, %656 : vector<2x150xf32>
    %659 = arith.addf %648, %658 : vector<2x150xf32>
    %c3_214 = arith.constant 3 : index
    %c0_215 = arith.constant 0 : index
    %c0_216 = arith.constant 0 : index
    %660 = vector.load %arg14[%c3_214, %c0_215, %c0_216] : memref<8x2x150xf32, #tpu.memory_space<vmem>>, vector<1x2x150xf32>
    %661 = vector.shape_cast %660 : vector<1x2x150xf32> to vector<2x150xf32>
    %662 = vector.broadcast %654 : vector<2x1xf32> to vector<2x150xf32>
    %663 = arith.mulf %662, %661 : vector<2x150xf32>
    %664 = arith.addf %653, %663 : vector<2x150xf32>
    %665 = vector.extract_strided_slice %617 {offsets = [0, 4], sizes = [2, 1], strides = [1, 1]} : vector<2x8xf32> to vector<2x1xf32>
    %c4_217 = arith.constant 4 : index
    %c0_218 = arith.constant 0 : index
    %c0_219 = arith.constant 0 : index
    %666 = vector.load %arg13[%c4_217, %c0_218, %c0_219] : memref<8x2x150xf32, #tpu.memory_space<vmem>>, vector<1x2x150xf32>
    %667 = vector.shape_cast %666 : vector<1x2x150xf32> to vector<2x150xf32>
    %668 = vector.broadcast %665 : vector<2x1xf32> to vector<2x150xf32>
    %669 = arith.mulf %668, %667 : vector<2x150xf32>
    %670 = arith.addf %659, %669 : vector<2x150xf32>
    %c4_220 = arith.constant 4 : index
    %c0_221 = arith.constant 0 : index
    %c0_222 = arith.constant 0 : index
    %671 = vector.load %arg14[%c4_220, %c0_221, %c0_222] : memref<8x2x150xf32, #tpu.memory_space<vmem>>, vector<1x2x150xf32>
    %672 = vector.shape_cast %671 : vector<1x2x150xf32> to vector<2x150xf32>
    %673 = vector.broadcast %665 : vector<2x1xf32> to vector<2x150xf32>
    %674 = arith.mulf %673, %672 : vector<2x150xf32>
    %675 = arith.addf %664, %674 : vector<2x150xf32>
    %676 = vector.extract_strided_slice %617 {offsets = [0, 5], sizes = [2, 1], strides = [1, 1]} : vector<2x8xf32> to vector<2x1xf32>
    %c5_223 = arith.constant 5 : index
    %c0_224 = arith.constant 0 : index
    %c0_225 = arith.constant 0 : index
    %677 = vector.load %arg13[%c5_223, %c0_224, %c0_225] : memref<8x2x150xf32, #tpu.memory_space<vmem>>, vector<1x2x150xf32>
    %678 = vector.shape_cast %677 : vector<1x2x150xf32> to vector<2x150xf32>
    %679 = vector.broadcast %676 : vector<2x1xf32> to vector<2x150xf32>
    %680 = arith.mulf %679, %678 : vector<2x150xf32>
    %681 = arith.addf %670, %680 : vector<2x150xf32>
    %c5_226 = arith.constant 5 : index
    %c0_227 = arith.constant 0 : index
    %c0_228 = arith.constant 0 : index
    %682 = vector.load %arg14[%c5_226, %c0_227, %c0_228] : memref<8x2x150xf32, #tpu.memory_space<vmem>>, vector<1x2x150xf32>
    %683 = vector.shape_cast %682 : vector<1x2x150xf32> to vector<2x150xf32>
    %684 = vector.broadcast %676 : vector<2x1xf32> to vector<2x150xf32>
    %685 = arith.mulf %684, %683 : vector<2x150xf32>
    %686 = arith.addf %675, %685 : vector<2x150xf32>
    %687 = vector.extract_strided_slice %617 {offsets = [0, 6], sizes = [2, 1], strides = [1, 1]} : vector<2x8xf32> to vector<2x1xf32>
    %c6_229 = arith.constant 6 : index
    %c0_230 = arith.constant 0 : index
    %c0_231 = arith.constant 0 : index
    %688 = vector.load %arg13[%c6_229, %c0_230, %c0_231] : memref<8x2x150xf32, #tpu.memory_space<vmem>>, vector<1x2x150xf32>
    %689 = vector.shape_cast %688 : vector<1x2x150xf32> to vector<2x150xf32>
    %690 = vector.broadcast %687 : vector<2x1xf32> to vector<2x150xf32>
    %691 = arith.mulf %690, %689 : vector<2x150xf32>
    %692 = arith.addf %681, %691 : vector<2x150xf32>
    %c6_232 = arith.constant 6 : index
    %c0_233 = arith.constant 0 : index
    %c0_234 = arith.constant 0 : index
    %693 = vector.load %arg14[%c6_232, %c0_233, %c0_234] : memref<8x2x150xf32, #tpu.memory_space<vmem>>, vector<1x2x150xf32>
    %694 = vector.shape_cast %693 : vector<1x2x150xf32> to vector<2x150xf32>
    %695 = vector.broadcast %687 : vector<2x1xf32> to vector<2x150xf32>
    %696 = arith.mulf %695, %694 : vector<2x150xf32>
    %697 = arith.addf %686, %696 : vector<2x150xf32>
    %698 = vector.extract_strided_slice %617 {offsets = [0, 7], sizes = [2, 1], strides = [1, 1]} : vector<2x8xf32> to vector<2x1xf32>
    %c7_235 = arith.constant 7 : index
    %c0_236 = arith.constant 0 : index
    %c0_237 = arith.constant 0 : index
    %699 = vector.load %arg13[%c7_235, %c0_236, %c0_237] : memref<8x2x150xf32, #tpu.memory_space<vmem>>, vector<1x2x150xf32>
    %700 = vector.shape_cast %699 : vector<1x2x150xf32> to vector<2x150xf32>
    %701 = vector.broadcast %698 : vector<2x1xf32> to vector<2x150xf32>
    %702 = arith.mulf %701, %700 : vector<2x150xf32>
    %703 = arith.addf %692, %702 : vector<2x150xf32>
    %c7_238 = arith.constant 7 : index
    %c0_239 = arith.constant 0 : index
    %c0_240 = arith.constant 0 : index
    %704 = vector.load %arg14[%c7_238, %c0_239, %c0_240] : memref<8x2x150xf32, #tpu.memory_space<vmem>>, vector<1x2x150xf32>
    %705 = vector.shape_cast %704 : vector<1x2x150xf32> to vector<2x150xf32>
    %706 = vector.broadcast %698 : vector<2x1xf32> to vector<2x150xf32>
    %707 = arith.mulf %706, %705 : vector<2x150xf32>
    %708 = arith.addf %697, %707 : vector<2x150xf32>
    %c0_241 = arith.constant 0 : index
    %c0_242 = arith.constant 0 : index
    %709 = vector.load %arg8[%c0_241, %c0_242] : memref<150x4xf32, #tpu.memory_space<vmem>>, vector<150x4xf32>
    %cst_243 = arith.constant dense<0.000000e+00> : vector<2x4xf32>
    %710 = tpu.matmul %703, %709, %cst_243 {dimension_numbers = #tpu.dot_dimension_numbers<[1], [0], [0], [1], [0, 0, 1, 1], [], []>} : vector<2x150xf32>, vector<150x4xf32>, vector<2x4xf32> -> vector<2x4xf32>
    %c0_244 = arith.constant 0 : index
    %c0_245 = arith.constant 0 : index
    %711 = vector.load %arg9[%c0_244, %c0_245] : memref<150x4xf32, #tpu.memory_space<vmem>>, vector<150x4xf32>
    %cst_246 = arith.constant dense<0.000000e+00> : vector<2x4xf32>
    %712 = tpu.matmul %708, %711, %cst_246 {dimension_numbers = #tpu.dot_dimension_numbers<[1], [0], [0], [1], [0, 0, 1, 1], [], []>} : vector<2x150xf32>, vector<150x4xf32>, vector<2x4xf32> -> vector<2x4xf32>
    %713 = arith.addf %710, %712 : vector<2x4xf32>
    %c0_247 = arith.constant 0 : index
    %c0_248 = arith.constant 0 : index
    %714 = vector.load %arg10[%c0_247, %c0_248] : memref<1x4xf32, #tpu.memory_space<vmem>>, vector<1x4xf32>
    %715 = vector.broadcast %714 : vector<1x4xf32> to vector<2x4xf32>
    %716 = arith.addf %713, %715 : vector<2x4xf32>
    %c0_249 = arith.constant 0 : index
    %c0_250 = arith.constant 0 : index
    %717 = vector.load %arg11[%c0_249, %c0_250] : memref<2x4xf32, #tpu.memory_space<vmem>>, vector<2x4xf32>
    tpu.vector_store %arg11[%c0_249, %c0_250], %716 {strides = array<i32>} : memref<2x4xf32, #tpu.memory_space<vmem>>, vector<2x4xf32>,
    return
  }
  func.func @transform_0(%arg0: i32) -> (i32, i32) {
    %c0_i32 = arith.constant 0 : i32
    %c0_i32_0 = arith.constant 0 : i32
    %c0_i32_1 = arith.constant 0 : i32
    return %c0_i32, %c0_i32_0 : i32, i32
  }
  func.func @transform_1(%arg0: i32) -> (i32, i32) {
    %c0_i32 = arith.constant 0 : i32
    %c0_i32_0 = arith.constant 0 : i32
    %c0_i32_1 = arith.constant 0 : i32
    return %c0_i32, %c0_i32_0 : i32, i32
  }
  func.func @transform_2(%arg0: i32) -> (i32, i32) {
    %c0_i32 = arith.constant 0 : i32
    %c0_i32_0 = arith.constant 0 : i32
    %c0_i32_1 = arith.constant 0 : i32
    return %c0_i32, %c0_i32_0 : i32, i32
  }
  func.func @transform_3(%arg0: i32) -> (i32, i32) {
    %c0_i32 = arith.constant 0 : i32
    %c0_i32_0 = arith.constant 0 : i32
    %c0_i32_1 = arith.constant 0 : i32
    return %c0_i32, %c0_i32_0 : i32, i32
  }
  func.func @transform_4(%arg0: i32) -> (i32, i32) {
    %c0_i32 = arith.constant 0 : i32
    %c0_i32_0 = arith.constant 0 : i32
    %c0_i32_1 = arith.constant 0 : i32
    return %c0_i32, %c0_i32_0 : i32, i32
  }
  func.func @transform_5(%arg0: i32) -> (i32, i32) {
    %c0_i32 = arith.constant 0 : i32
    %c0_i32_0 = arith.constant 0 : i32
    %c0_i32_1 = arith.constant 0 : i32
    return %c0_i32, %c0_i32_0 : i32, i32
  }
  func.func @transform_6(%arg0: i32) -> (i32, i32) {
    %c0_i32 = arith.constant 0 : i32
    %c0_i32_0 = arith.constant 0 : i32
    %c0_i32_1 = arith.constant 0 : i32
    return %c0_i32, %c0_i32_0 : i32, i32
  }
  func.func @transform_7(%arg0: i32) -> (i32, i32) {
    %c0_i32 = arith.constant 0 : i32
    %c0_i32_0 = arith.constant 0 : i32
    %c0_i32_1 = arith.constant 0 : i32
    return %c0_i32, %c0_i32_0 : i32, i32
  }
  func.func @transform_8(%arg0: i32) -> (i32, i32) {
    %c0_i32 = arith.constant 0 : i32
    %c0_i32_0 = arith.constant 0 : i32
    %c0_i32_1 = arith.constant 0 : i32
    return %c0_i32, %c0_i32_0 : i32, i32
  }
  func.func @transform_9(%arg0: i32) -> (i32, i32) {
    %c0_i32 = arith.constant 0 : i32
    %c0_i32_0 = arith.constant 0 : i32
    %c0_i32_1 = arith.constant 0 : i32
    return %c0_i32, %c0_i32_0 : i32, i32
  }
  func.func @transform_10(%arg0: i32) -> (i32, i32) {
    %c0_i32 = arith.constant 0 : i32
    %c0_i32_0 = arith.constant 0 : i32
    %c0_i32_1 = arith.constant 0 : i32
    return %c0_i32, %c0_i32_0 : i32, i32
  }
  func.func @transform_11(%arg0: i32) -> (i32, i32) {
    %c0_i32 = arith.constant 0 : i32
    %c0_i32_0 = arith.constant 0 : i32
    %c0_i32_1 = arith.constant 0 : i32
    return %c0_i32, %c0_i32_0 : i32, i32
  }
}

</mosaic_0001>

<bundles_post_ra>
// kernel: bilstm_attn_forward.1
= control target key start
LH: loop header
LB: loop body
LE: loop exit
PB: predicated region body
PF: predicated region fallthrough
CT: control target
= control target key end

     0   :  { %17 = vsyncpa [#allocation5], 0  ;;  %s12303_s0 = inlined_call_operand.vmem [shape: f32[16,32], index: 0, kind: input, shape index: {}]   ;;  %s12304_s1 = inlined_call_operand.vmem [shape: f32[32,600], index: 1, kind: input, shape index: {}]   ;;  %s12305_s2 = inlined_call_operand.vmem [shape: f32[1,600], index: 2, kind: input, shape index: {}]   ;;  %s12306_s3 = inlined_call_operand.vmem [shape: f32[32,600], index: 3, kind: input, shape index: {}]   ;;  %s12307_s4 = inlined_call_operand.vmem [shape: f32[1,600], index: 4, kind: input, shape index: {}]   ;;  %s12308_s5 = inlined_call_operand.hbm [shape: f32[150,600], index: 5, kind: input, shape index: {}]   ;;  %s12309_s6 = inlined_call_operand.hbm [shape: f32[150,600], index: 6, kind: input, shape index: {}]   ;;  %s12310_s7 = inlined_call_operand.vmem [shape: f32[150,4], index: 7, kind: input, shape index: {}]   ;;  %s12311_s8 = inlined_call_operand.vmem [shape: f32[150,4], index: 8, kind: input, shape index: {}]   ;;  %s12312_s9 = inlined_call_operand.vmem [shape: f32[1,4], index: 9, kind: input, shape index: {}]   ;;  %s12313_s10 = inlined_call_operand.hbm [shape: f32[2,4], index: 10, kind: output, shape index: {0}]   ;;  %s12314_s11 = inlined_call_operand.hbm [shape: f32[2,8], index: 11, kind: output, shape index: {1}]  }
   0x1   :  { %18 = vsyncpa [#allocation8], 0 }
   0x2   :  { %19 = vsyncpa [#allocation6], 0 }
   0x3   :  { %20 = vsyncpa [#allocation11], 0  ;;  %s9572_s17 = smov [#allocation4]   ;;  %s9476_s21 = scalar_lea.hbm %s12308_s5, 12160 }
   0x4   :  { %s36_s18 = sshll.u32 %s9572_s17, 4  ;;  %p9477_p0 = scmp.ne.s32.totalorder %s12308_s5, %s9476_s21  ;;  %s37_s18 = int_to_ptr.vmem [resolvable:$true] %s36_s18 }
   0x5   :  { %p9480_p1 = scmp.lt.u32.totalorder %s9476_s21, %s12308_s5 }
   0x7   :  { %p9482_p2 = pnand %p9480_p1, %p9477_p0 }
   0x9   :  { %9485 = shalt.err (!%p9482_p2)
}
   0xa   :  { %s9486_s26 = scalar_lea.vmem %s37_s18, 12160  ;;  %p9491_p4 = scmp.lt.s32.totalorder %s37_s18, %s37_s18 }
   0xb   :  { %p9487_p3 = scmp.ne.s32.totalorder %s37_s18, %s9486_s26  ;;  %p9492_p5 = scmp.lt.s32.totalorder %s9486_s26, %s9486_s26 }
   0xd   :  { %p9493_p6 = por %p9492_p5, %p9491_p4 }
   0xf   :  { %p9494_p7 = pnand %p9493_p6, %p9487_p3 }
  0x11   :  { %9497 = shalt.err (!%p9494_p7)
}
  0x12   :  { %s9573_s27 = smov 640   ;;  %s9574_s28 = smov 40  }
  0x13   :  { %42 = dma.hbm_to_vmem [thread:$0]  %s12308_s5, 12160, %s37_s18, [#allocation5], %s9573_s27, %s9573_s27, %s9574_s28  }
  0x14   :  { %s9575_s12 = smov [#allocation7]   ;;  %s9498_s16 = scalar_lea.hbm %s12309_s6, 12160 }
  0x15   :  { %s48_s13 = sshll.u32 %s9575_s12, 4  ;;  %p9499_p8 = scmp.ne.s32.totalorder %s12309_s6, %s9498_s16  ;;  %s49_s13 = int_to_ptr.vmem [resolvable:$true] %s48_s13 }
  0x16   :  { %p9502_p9 = scmp.lt.u32.totalorder %s9498_s16, %s12309_s6 }
  0x18   :  { %p9504_p10 = pnand %p9502_p9, %p9499_p8 }
  0x1a   :  { %9507 = shalt.err (!%p9504_p10)
}
  0x1b   :  { %s9508_s22 = scalar_lea.vmem %s49_s13, 12160  ;;  %p9513_p12 = scmp.lt.s32.totalorder %s49_s13, %s49_s13 }
  0x1c   :  { %p9509_p11 = scmp.ne.s32.totalorder %s49_s13, %s9508_s22  ;;  %p9514_p13 = scmp.lt.s32.totalorder %s9508_s22, %s9508_s22 }
  0x1e   :  { %p9515_p0 = por %p9514_p13, %p9513_p12 }
  0x20   :  { %p9516_p1 = pnand %p9515_p0, %p9509_p11 }
  0x22   :  { %9519 = shalt.err (!%p9516_p1)
}
  0x23   :  { %54 = dma.hbm_to_vmem [thread:$0]  %s12309_s6, 12160, %s49_s13, [#allocation8], %s9573_s27, %s9573_s27, %s9574_s28  }
  0x24   :  { %9564 = dma.done.wait [#allocation5], 12160  }
  0x25   :  { %9565 = vsyncadd [#allocation5], 4294955136 }
  0x26   :  { %9566 = dma.done.wait [#allocation8], 12160  }
  0x27   :  { %9567 = vsyncadd [#allocation8], 4294955136  ;;  %v12315_v0 = vmov 0.0   ;;  %v70_v1 = vld [vmem:[%s12304_s1 + $0x8] sm:$0xff]  ;;  %v75_v2 = vld [vmem:[%s12304_s1 + $0x30] sm:$0xff]  ;;  %vm116_vm0 = vcmask 261120  }
  0x28   :  { %264 = vmatprep.mubr.f32.mxu1 %v12315_v0  ;;  %187 = vmatprep.mubr.f32.mxu0 %v12315_v0  ;;  %v72_v3 = vld [vmem:[%s12304_s1 + $0x18] sm:$0xff]  ;;  %v7278_v4 = vpack.c.bf16 %v75_v2, %v70_v1  ;;  %v77_v5 = vld [vmem:[%s12304_s1 + $0x40] sm:$0xff]  ;;  %v74_v7 = vld [vmem:[%s12304_s1 + $0x28] sm:$0xff]  ;;  %vm822_vm1 = vcmask 1045504   ;;  %vm1342_vm2 = vcmask 687104   ;;  %vm818_vm3 = vcmask 179200  }
  0x29   :  { %v69_v6 = vld [vmem:[%s12304_s1] sm:$0xff]  ;;  %v7286_v8 = vpack.c.bf16 %v77_v5, %v72_v3  ;;  %v71_v10 = vld [vmem:[%s12304_s1 + $0x10] sm:$0xff]  ;;  %v76_v11 = vld [vmem:[%s12304_s1 + $0x38] sm:$0xff]  ;;  %s9580_s23 = smov 44   ;;  %s9581_s24 = smov 62   ;;  %vm1367_vm4 = vcmask 359424  }
  0x2a   :  { %v7280_v9 = vpack.c.bf16 %v74_v7, %v69_v6  ;;  %v80_v12 = vld [vmem:[%s12304_s1 + $0x58] sm:$0xff]  ;;  %7279 = vmatprep.subr.bf16.mxu0 %v7278_v4  ;;  %v7288_v13 = vpack.c.bf16 %v76_v11, %v71_v10  ;;  %v85_v14 = vld [vmem:[%s12304_s1 + $0x80] sm:$0xff]  ;;  %v82_v15 = vld [vmem:[%s12304_s1 + $0x68] sm:$0xff]  ;;  %vm1455_vm5 = vcmask 506880   ;;  %vm1458_vm6 = vcmask 1041408  }
  0x2b   :  { %v87_v16 = vld [vmem:[%s12304_s1 + $0x90] sm:$0xff]  ;;  %7287 = vmatprep.subr.bf16.mxu1 %v7286_v8  ;;  %v7282_v17 = vpack.c.bf16 %v85_v14, %v80_v12  ;;  %v84_v20 = vld [vmem:[%s12304_s1 + $0x78] sm:$0xff]  ;;  %v81_v21 = vld [vmem:[%s12304_s1 + $0x60] sm:$0xff]  ;;  %vm1459_vm7 = vcmask 175106   ;;  %vm6127_vm9 = vcmask 1040384   ;;  %vm6166_vm10 = vcmask 173056  }
  0x2c   :  { %7281 = vmatpush1.bf16.msra.mxu0 %v7280_v9  ;;  %v7290_v18 = vpack.c.bf16 %v87_v16, %v82_v15  ;;  %v79_v19 = vld [vmem:[%s12304_s1 + $0x50] sm:$0xff]  ;;  %7289 = vmatpush1.bf16.msra.mxu1 %v7288_v13  ;;  %v86_v23 = vld [vmem:[%s12304_s1 + $0x88] sm:$0xff]  ;;  %v73_v24 = vld [vmem:[%s12304_s1 + $0x20] sm:$0xff]  ;;  %vm6463_vm11 = vcmask 7168   ;;  %vm6465_vm12 = vcmask 15360   ;;  %vm6467_vm13 = vcmask 23552  }
  0x2d   :  { %v7284_v22 = vpack.c.bf16 %v84_v20, %v79_v19  ;;  %7283 = vmatprep.subr.bf16.mxu0 %v7282_v17  ;;  %v7292_v25 = vpack.c.bf16 %v86_v23, %v81_v21  ;;  %v78_v26 = vld [vmem:[%s12304_s1 + $0x48] sm:$0xff]  ;;  %v358_v28 = vld [vmem:[%s12306_s3 + $0x30] sm:$0xff]  ;;  %v9742_v29 = vld [vmem:[%s12303_s0] sm:$0xff]  ;;  %vm6469_vm14 = vcmask 31744   ;;  %vm6471_vm15 = vcmask 39936  }
  0x2e   :  { %7291 = vmatprep.subr.bf16.mxu1 %v7290_v18  ;;  %v353_v27 = vld [vmem:[%s12306_s3 + $0x8] sm:$0xff]  ;;  %v7294_v30 = vpack.c.bf16 %v78_v26, %v73_v24  ;;  %v352_v32 = vld [vmem:[%s12306_s3] sm:$0xff]  ;;  %v83_v34 = vld [vmem:[%s12304_s1 + $0x70] sm:$0xff] }
  0x2f   :  { %v7302_v31 = vpack.c.bf16 %v358_v28, %v353_v27  ;;  %v357_v33 = vld [vmem:[%s12306_s3 + $0x28] sm:$0xff]  ;;  %v88_v35 = vld [vmem:[%s12304_s1 + $0x98] sm:$0xff]  ;;  %v368_v38 = vld [vmem:[%s12306_s3 + $0x80] sm:$0xff] }
  0x30   :  { %7285 = vmatpush1.bf16.msra.mxu0 %v7284_v22  ;;  %v363_v36 = vld [vmem:[%s12306_s3 + $0x58] sm:$0xff]  ;;  %7293 = vmatpush1.bf16.msra.mxu1 %v7292_v25  ;;  %v7304_v37 = vpack.c.bf16 %v357_v33, %v352_v32  ;;  %v7298_v39 = vpack.c.bf16 %v88_v35, %v83_v34  ;;  %v362_v40 = vld [vmem:[%s12306_s3 + $0x50] sm:$0xff]  ;;  %v360_v44 = vld [vmem:[%s12306_s3 + $0x40] sm:$0xff] }
  0x31   :  { %7295 = vmatprep.subr.bf16.mxu0 %v7294_v30  ;;  %7303 = vmatprep.subr.bf16.mxu1 %v7302_v31  ;;  %v367_v41 = vld [vmem:[%s12306_s3 + $0x78] sm:$0xff]  ;;  %v7306_v42 = vpack.c.bf16 %v368_v38, %v363_v36  ;;  %v9781_v45 = vld [vmem:[%s12303_s0 + $0x8] sm:$0xff]  ;;  %v356_v46 = vld [vmem:[%s12306_s3 + $0x20] sm:$0xff] }
  0x32   :  { %v355_v43 = vld [vmem:[%s12306_s3 + $0x18] sm:$0xff]  ;;  %v361_v47 = vld [vmem:[%s12306_s3 + $0x48] sm:$0xff]  ;;  %v7308_v48 = vpack.c.bf16 %v367_v41, %v362_v40  ;;  %v354_v49 = vld [vmem:[%s12306_s3 + $0x10] sm:$0xff] }
  0x33   :  { %7009 = vmatmul.mubr.msk.f32.vlgmr.msra.gmra.mrb[0].mxu0 %vm116_vm0, %v9742_v29  ;;  %7011 = vmatmul.mubr.msk.f32.vlgmr.msra.gmra.mrb[0].mxu1 %vm116_vm0, %v9742_v29  ;;  %v359_v50 = vld [vmem:[%s12306_s3 + $0x38] sm:$0xff]  ;;  %v7310_v51 = vpack.c.bf16 %v360_v44, %v355_v43  ;;  %v365_v52 = vld [vmem:[%s12306_s3 + $0x68] sm:$0xff]  ;;  %v7318_v53 = vpack.c.bf16 %v361_v47, %v356_v46  ;;  %v370_v54 = vld [vmem:[%s12306_s3 + $0x90] sm:$0xff] }
  0x34   :  { %7297 = vmatpush3.bf16.msra.mxu0 %v7294_v30  ;;  %7305 = vmatpush1.bf16.msra.mxu1 %v7304_v37  ;;  %v366_v55 = vld [vmem:[%s12306_s3 + $0x70] sm:$0xff]  ;;  %v371_v56 = vld [vmem:[%s12306_s3 + $0x98] sm:$0xff]  ;;  %v7312_v57 = vpack.c.bf16 %v359_v50, %v354_v49  ;;  %v364_v58 = vld [vmem:[%s12306_s3 + $0x60] sm:$0xff]  ;;  %v7314_v60 = vpack.c.bf16 %v370_v54, %v365_v52 }
  0x35   :  { %270 = vmatprep.mubr.f32.mxu1 %v12315_v0  ;;  %193 = vmatprep.mubr.f32.mxu0 %v12315_v0  ;;  %v369_v59 = vld [vmem:[%s12306_s3 + $0x88] sm:$0xff]  ;;  %v7322_v61 = vpack.c.bf16 %v371_v56, %v366_v55  ;;  %v634_v63 = vld [vmem:[#allocation4 + $0x30] sm:$0xff]  ;;  %v631_v1 = vld [vmem:[#allocation4 + $0x18] sm:$0xff] }
  0x36   :  { %7299 = vmatprep.subr.bf16.mxu0 %v7298_v39  ;;  %7307 = vmatprep.subr.bf16.mxu1 %v7306_v42  ;;  %v629_v62 = vld [vmem:[#allocation4 + $0x8] sm:$0xff]  ;;  %v636_v2 = vld [vmem:[#allocation4 + $0x40] sm:$0xff]  ;;  %v7316_v3 = vpack.c.bf16 %v369_v59, %v364_v58  ;;  %v630_v6 = vld [vmem:[#allocation4 + $0x10] sm:$0xff] }
  0x37   :  { %7010 = vmatmul.mubr.msk.f32.gmra.mrb[2].mxu0 %vm116_vm0, %v9781_v45  ;;  %7012 = vmatmul.mubr.msk.f32.gmra.mrb[2].mxu1 %vm116_vm0, %v9781_v45  ;;  %v628_v4 = vld [vmem:[#allocation4] sm:$0xff]  ;;  %v633_v5 = vld [vmem:[#allocation4 + $0x28] sm:$0xff]  ;;  %v9827_v7 = vpack.c.bf16 %v634_v63, %v629_v62  ;;  %v9829_v8 = vpack.c.bf16 %v636_v2, %v631_v1  ;;  %v635_v9 = vld [vmem:[#allocation4 + $0x38] sm:$0xff] }
  0x38   :  { %7301 = vmatpush3.bf16.msra.mxu0 %v7298_v39  ;;  %7309 = vmatpush1.bf16.msra.mxu1 %v7308_v48  ;;  %v639_v10 = vld [vmem:[#allocation4 + $0x58] sm:$0xff]  ;;  %v644_v11 = vld [vmem:[#allocation4 + $0x80] sm:$0xff]  ;;  %v641_v12 = vld [vmem:[#allocation4 + $0x68] sm:$0xff]  ;;  %v9834_v14 = vpack.c.bf16 %v633_v5, %v628_v4  ;;  %v9838_v15 = vpack.c.bf16 %v635_v9, %v630_v6 }
  0x39   :  { %463 = vmatprep.mubr.f32.mxu1 %v12315_v0  ;;  %7264 = vmatprep.mubr.msk.f32.mxu0 %vm116_vm0, %v9742_v29  ;;  %12578 = vst [vmem:[#allocation16_spill] sm:$0xff] %v9827_v7  ;;  %12579 = vst [vmem:[#allocation17_spill] sm:$0xff] %v9829_v8  ;;  %v646_v13 = vld [vmem:[#allocation4 + $0x90] sm:$0xff]  ;;  %v9840_v16 = vpack.c.bf16 %v644_v11, %v639_v10  ;;  %v643_v18 = vld [vmem:[#allocation4 + $0x78] sm:$0xff] }
  0x3a   :  { %7311 = vmatprep.subr.bf16.mxu0 %v7310_v51  ;;  %7319 = vmatprep.subr.bf16.mxu1 %v7318_v53  ;;  %12580 = vst [vmem:[#allocation18_spill] sm:$0xff] %v9834_v14  ;;  %12581 = vst [vmem:[#allocation19_spill] sm:$0xff] %v9838_v15  ;;  %v638_v17 = vld [vmem:[#allocation4 + $0x50] sm:$0xff]  ;;  %v640_v19 = vld [vmem:[#allocation4 + $0x60] sm:$0xff]  ;;  %v9844_v20 = vpack.c.bf16 %v646_v13, %v641_v12 }
  0x3b   :  { %7265 = vmatmul.mubr.msk.f32.vlgmr.msra.gmra.mrb[4].mxu0 %vm116_vm0, %v9781_v45  ;;  %7015 = vmatmul.mubr.msk.f32.vlgmr.msra.gmra.mrb[4].mxu1 %vm116_vm0, %v9742_v29  ;;  %12582 = vst [vmem:[#allocation20_spill] sm:$0xff] %v9840_v16  ;;  %v645_v21 = vld [vmem:[#allocation4 + $0x88] sm:$0xff]  ;;  %v654_v23 = vld [vmem:[#allocation4 + $0xd0] sm:$0xff]  ;;  %v651_v24 = vld [vmem:[#allocation4 + $0xb8] sm:$0xff]  ;;  %v9851_v26 = vpack.c.bf16 %v643_v18, %v638_v17 }
  0x3c   :  { %7313 = vmatpush1.bf16.msra.mxu0 %v7312_v57  ;;  %7321 = vmatpush3.bf16.msra.mxu1 %v7318_v53  ;;  %12583 = vst [vmem:[#allocation21_spill] sm:$0xff] %v9844_v20  ;;  %v649_v22 = vld [vmem:[#allocation4 + $0xa8] sm:$0xff]  ;;  %v656_v25 = vld [vmem:[#allocation4 + $0xe0] sm:$0xff]  ;;  %v9855_v27 = vpack.c.bf16 %v645_v21, %v640_v19  ;;  %v655_v33 = vld [vmem:[#allocation4 + $0xd8] sm:$0xff] }
  0x3d   :  { %469 = vmatprep.mubr.f32.mxu1 %v12315_v0  ;;  %7315 = vmatprep.subr.bf16.mxu0 %v7314_v60  ;;  %12584 = vst [vmem:[#allocation22_spill] sm:$0xff] %v9851_v26  ;;  %v9857_v28 = vpack.c.bf16 %v654_v23, %v649_v22  ;;  %v648_v30 = vld [vmem:[#allocation4 + $0xa0] sm:$0xff]  ;;  %v653_v31 = vld [vmem:[#allocation4 + $0xc8] sm:$0xff]  ;;  %v9860_v32 = vpack.c.bf16 %v656_v25, %v651_v24  ;;  %v659_v34 = vld [vmem:[#allocation4 + $0xf8] sm:$0xff] }
  0x3e   :  { %7323 = vmatprep.subr.bf16.mxu1 %v7322_v61  ;;  %540 = vmatprep.mubr.f32.mxu0 %v12315_v0  ;;  %12585 = vst [vmem:[#allocation23_spill] sm:$0xff] %v9855_v27  ;;  %v664_v35 = vld [vmem:[#allocation4 + $0x120] sm:$0xff]  ;;  %v661_v36 = vld [vmem:[#allocation4 + $0x108] sm:$0xff]  ;;  %v666_v37 = vld [vmem:[#allocation4 + $0x130] sm:$0xff]  ;;  %v9867_v38 = vpack.c.bf16 %v653_v31, %v648_v30 }
  0x3f   :  { %7016 = vmatmul.mubr.msk.f32.gmra.mrb[6].mxu1 %vm116_vm0, %v9781_v45  ;;  %12586 = vst [vmem:[#allocation24_spill] sm:$0xff] %v9857_v28  ;;  %12587 = vst [vmem:[#allocation25_spill] sm:$0xff] %v9860_v32  ;;  %v9874_v40 = vpack.c.bf16 %v664_v35, %v659_v34  ;;  %v658_v41 = vld [vmem:[#allocation4 + $0xf0] sm:$0xff]  ;;  %v663_v42 = vld [vmem:[#allocation4 + $0x118] sm:$0xff]  ;;  %v9877_v44 = vpack.c.bf16 %v666_v37, %v661_v36 }
  0x40   :  { %7317 = vmatpush1.bf16.msra.mxu0 %v7316_v3  ;;  %7325 = vmatpush3.bf16.msra.mxu1 %v7322_v61  ;;  %12588 = vst [vmem:[#allocation26_spill] sm:$0xff] %v9867_v38  ;;  %v660_v43 = vld [vmem:[#allocation4 + $0x100] sm:$0xff]  ;;  %v669_v46 = vld [vmem:[#allocation4 + $0x148] sm:$0xff]  ;;  %v674_v47 = vld [vmem:[#allocation4 + $0x170] sm:$0xff]  ;;  %v9880_v50 = vpack.c.bf16 %v663_v42, %v658_v41 }
  0x41   :  { %7275 = vmatprep.mubr.msk.f32.mxu1 %vm116_vm0, %v9742_v29  ;;  %7327 = vmatprep.subr.bf16.mxu0 %v9827_v7  ;;  %12590 = vst [vmem:[#allocation28_spill] sm:$0xff] %v9874_v40  ;;  %12591 = vst [vmem:[#allocation29_spill] sm:$0xff] %v9877_v44  ;;  %v671_v48 = vld [vmem:[#allocation4 + $0x158] sm:$0xff]  ;;  %v676_v49 = vld [vmem:[#allocation4 + $0x180] sm:$0xff]  ;;  %v9886_v52 = vpack.c.bf16 %v674_v47, %v669_v46 }
  0x42   :  { %7363 = vmatprep.subr.bf16.mxu1 %v9829_v8  ;;  %12592 = vst [vmem:[#allocation30_spill] sm:$0xff] %v9880_v50  ;;  %v668_v53 = vld [vmem:[#allocation4 + $0x140] sm:$0xff]  ;;  %v673_v54 = vld [vmem:[#allocation4 + $0x168] sm:$0xff]  ;;  %v670_v55 = vld [vmem:[#allocation4 + $0x150] sm:$0xff]  ;;  %v9889_v56 = vpack.c.bf16 %v676_v49, %v671_v48 }
  0x43   :  { %7017 = vmatmul.mubr.msk.f32.vlgmr.msra.gmra.mrb[6].mxu0 %vm116_vm0, %v9742_v29  ;;  %7276 = vmatmul.mubr.msk.f32.vlgmr.msra.gmra.mrb[8].mxu1 %vm116_vm0, %v9781_v45  ;;  %v650_v29 = vld [vmem:[#allocation4 + $0xb0] sm:$0xff]  ;;  %12594 = vst [vmem:[#allocation32_spill] sm:$0xff] %v9886_v52  ;;  %v675_v57 = vld [vmem:[#allocation4 + $0x178] sm:$0xff]  ;;  %v684_v59 = vld [vmem:[#allocation4 + $0x1c0] sm:$0xff]  ;;  %v9892_v62 = vpack.c.bf16 %v673_v54, %v668_v53 }
  0x44   :  { %7329 = vmatpush1.bf16.msra.mxu0 %v9834_v14  ;;  %7365 = vmatpush1.bf16.msra.mxu1 %v9838_v15  ;;  %v9872_v39 = vpack.c.bf16 %v655_v33, %v650_v29  ;;  %12595 = vst [vmem:[#allocation33_spill] sm:$0xff] %v9889_v56  ;;  %v679_v58 = vld [vmem:[#allocation4 + $0x198] sm:$0xff]  ;;  %v681_v60 = vld [vmem:[#allocation4 + $0x1a8] sm:$0xff]  ;;  %v686_v61 = vld [vmem:[#allocation4 + $0x1d0] sm:$0xff]  ;;  %v9896_v63 = vpack.c.bf16 %v675_v57, %v670_v55 }
  0x45   :  { %7331 = vmatprep.subr.bf16.mxu0 %v9840_v16  ;;  %7367 = vmatprep.subr.bf16.mxu1 %v9844_v20  ;;  %12596 = vst [vmem:[#allocation34_spill] sm:$0xff] %v9892_v62  ;;  %v9898_v1 = vpack.c.bf16 %v684_v59, %v679_v58  ;;  %v678_v2 = vld [vmem:[#allocation4 + $0x190] sm:$0xff]  ;;  %v683_v3 = vld [vmem:[#allocation4 + $0x1b8] sm:$0xff]  ;;  %v680_v4 = vld [vmem:[#allocation4 + $0x1a0] sm:$0xff]  ;;  %v9901_v5 = vpack.c.bf16 %v686_v61, %v681_v60 }
  0x46   :  { %546 = vmatprep.mubr.f32.mxu0 %v12315_v0  ;;  %973 = vmatprep.mubr.f32.mxu1 %v12315_v0  ;;  %12589 = vst [vmem:[#allocation27_spill] sm:$0xff] %v9872_v39  ;;  %12597 = vst [vmem:[#allocation35_spill] sm:$0xff] %v9896_v63  ;;  %v685_v6 = vld [vmem:[#allocation4 + $0x1c8] sm:$0xff]  ;;  %v694_v10 = vld [vmem:[#allocation4 + $0x210] sm:$0xff]  ;;  %v9904_v13 = vpack.c.bf16 %v683_v3, %v678_v2 }
  0x47   :  { %7018 = vmatmul.mubr.msk.f32.gmra.mrb[8].mxu0 %vm116_vm0, %v9781_v45  ;;  %v665_v45 = vld [vmem:[#allocation4 + $0x128] sm:$0xff]  ;;  %12598 = vst [vmem:[#allocation36_spill] sm:$0xff] %v9898_v1  ;;  %12599 = vst [vmem:[#allocation37_spill] sm:$0xff] %v9901_v5  ;;  %v691_v11 = vld [vmem:[#allocation4 + $0x1f8] sm:$0xff]  ;;  %v9908_v17 = vpack.c.bf16 %v685_v6, %v680_v4  ;;  %vm6473_vm0 = vcmask 48128  }
  0x48   :  { %7333 = vmatpush1.bf16.msra.mxu0 %v9851_v26  ;;  %902 = vmatprep.mubr.f32.mxu0 %v12315_v0  ;;  %v9884_v51 = vpack.c.bf16 %v665_v45, %v660_v43  ;;  %v689_v9 = vld [vmem:[#allocation4 + $0x1e8] sm:$0xff]  ;;  %v696_v12 = vld [vmem:[#allocation4 + $0x220] sm:$0xff]  ;;  %12600 = vst [vmem:[#allocation38_spill] sm:$0xff] %v9904_v13  ;;  %v690_v22 = vld [vmem:[#allocation4 + $0x1f0] sm:$0xff] }
  0x49   :  { %7369 = vmatpush1.bf16.msra.mxu1 %v9855_v27  ;;  %7335 = vmatprep.subr.bf16.mxu0 %v9857_v28  ;;  %12601 = vst [vmem:[#allocation39_spill] sm:$0xff] %v9908_v17  ;;  %v9910_v18 = vpack.c.bf16 %v694_v10, %v689_v9  ;;  %v688_v19 = vld [vmem:[#allocation4 + $0x1e0] sm:$0xff]  ;;  %v693_v21 = vld [vmem:[#allocation4 + $0x208] sm:$0xff]  ;;  %v9913_v23 = vpack.c.bf16 %v696_v12, %v691_v11  ;;  %v695_v24 = vld [vmem:[#allocation4 + $0x218] sm:$0xff] }
  0x4a   :  { %7371 = vmatprep.subr.bf16.mxu1 %v9860_v32  ;;  %12593 = vst [vmem:[#allocation31_spill] sm:$0xff] %v9884_v51  ;;  %v699_v25 = vld [vmem:[#allocation4 + $0x238] sm:$0xff]  ;;  %v704_v30 = vld [vmem:[#allocation4 + $0x260] sm:$0xff]  ;;  %v701_v31 = vld [vmem:[#allocation4 + $0x248] sm:$0xff]  ;;  %v9916_v33 = vpack.c.bf16 %v693_v21, %v688_v19  ;;  %v9920_v34 = vpack.c.bf16 %v695_v24, %v690_v22 }
  0x4b   :  { %12602 = vst [vmem:[#allocation40_spill] sm:$0xff] %v9910_v18  ;;  %12603 = vst [vmem:[#allocation41_spill] sm:$0xff] %v9913_v23  ;;  %v706_v29 = vld [vmem:[#allocation4 + $0x270] sm:$0xff]  ;;  %v9922_v35 = vpack.c.bf16 %v704_v30, %v699_v25  ;;  %v703_v37 = vld [vmem:[#allocation4 + $0x258] sm:$0xff] }
  0x4c   :  { %7337 = vmatpush1.bf16.msra.mxu0 %v9867_v38  ;;  %12604 = vst [vmem:[#allocation42_spill] sm:$0xff] %v9916_v33  ;;  %12605 = vst [vmem:[#allocation43_spill] sm:$0xff] %v9920_v34  ;;  %v698_v36 = vld [vmem:[#allocation4 + $0x230] sm:$0xff]  ;;  %v700_v41 = vld [vmem:[#allocation4 + $0x240] sm:$0xff]  ;;  %v9925_v42 = vpack.c.bf16 %v706_v29, %v701_v31 }
  0x4d   :  { %7373 = vmatpush1.bf16.msra.mxu1 %v9872_v39  ;;  %7339 = vmatprep.subr.bf16.mxu0 %v9874_v40  ;;  %12606 = vst [vmem:[#allocation44_spill] sm:$0xff] %v9922_v35  ;;  %v705_v43 = vld [vmem:[#allocation4 + $0x268] sm:$0xff]  ;;  %v714_v46 = vld [vmem:[#allocation4 + $0x2b0] sm:$0xff]  ;;  %v711_v47 = vld [vmem:[#allocation4 + $0x298] sm:$0xff]  ;;  %v9928_v49 = vpack.c.bf16 %v703_v37, %v698_v36 }
  0x4e   :  { %7375 = vmatprep.subr.bf16.mxu1 %v9877_v44  ;;  %12607 = vst [vmem:[#allocation45_spill] sm:$0xff] %v9925_v42  ;;  %v709_v45 = vld [vmem:[#allocation4 + $0x288] sm:$0xff]  ;;  %v716_v48 = vld [vmem:[#allocation4 + $0x2c0] sm:$0xff]  ;;  %v9932_v53 = vpack.c.bf16 %v705_v43, %v700_v41  ;;  %v710_v59 = vld [vmem:[#allocation4 + $0x290] sm:$0xff] }
  0x4f   :  { %12608 = vst [vmem:[#allocation46_spill] sm:$0xff] %v9928_v49  ;;  %v9934_v54 = vpack.c.bf16 %v714_v46, %v709_v45  ;;  %v708_v55 = vld [vmem:[#allocation4 + $0x280] sm:$0xff]  ;;  %v713_v57 = vld [vmem:[#allocation4 + $0x2a8] sm:$0xff]  ;;  %v9937_v58 = vpack.c.bf16 %v716_v48, %v711_v47  ;;  %v715_v60 = vld [vmem:[#allocation4 + $0x2b8] sm:$0xff]  ;;  %v12345_v45 = vmov 0.0|0.0  }
  0x50   :  { %7341 = vmatpush1.bf16.msra.mxu0 %v9880_v50  ;;  %12609 = vst [vmem:[#allocation47_spill] sm:$0xff] %v9932_v53  ;;  %v9940_v61 = vpack.c.bf16 %v713_v57, %v708_v55  ;;  %v9944_v2 = vpack.c.bf16 %v715_v60, %v710_v59  ;;  %v9947_v3 = vld [vmem:[#allocation4 + $0x2d8] sm:$0x3f]  ;;  %v9949_v4 = vld [vmem:[#allocation4 + $0x2e8] sm:$0x3f]  ;;  %v724_v9 = vld [vmem:[#allocation7 + $0x8] sm:$0xff] }
  0x51   :  { %7377 = vmatpush1.bf16.msra.mxu1 %v9884_v51  ;;  %7343 = vmatprep.subr.bf16.mxu0 %v9886_v52  ;;  %12610 = vst [vmem:[#allocation48_spill] sm:$0xff] %v9934_v54  ;;  %12611 = vst [vmem:[#allocation49_spill] sm:$0xff] %v9937_v58  ;;  %v9951_v6 = vld [vmem:[#allocation4 + $0x2d0] sm:$0x3f]  ;;  %v729_v10 = vld [vmem:[#allocation7 + $0x30] sm:$0xff] }
  0x52   :  { %7379 = vmatprep.subr.bf16.mxu1 %v9889_v56  ;;  %12612 = vst [vmem:[#allocation50_spill] sm:$0xff] %v9940_v61  ;;  %12613 = vst [vmem:[#allocation51_spill] sm:$0xff] %v9944_v2  ;;  %v632_v11 = vld [vmem:[#allocation4 + $0x20] sm:$0xff]  ;;  %v723_v12 = vld [vmem:[#allocation7] sm:$0xff]  ;;  %v9961_v30 = vpack.c.bf16 %v729_v10, %v724_v9 }
  0x53   :  { %v728_v19 = vld [vmem:[#allocation7 + $0x28] sm:$0xff]  ;;  %v637_v21 = vld [vmem:[#allocation4 + $0x48] sm:$0xff]  ;;  %v734_v22 = vld [vmem:[#allocation7 + $0x58] sm:$0xff] }
  0x54   :  { %7345 = vmatpush1.bf16.msra.mxu0 %v9892_v62  ;;  %v739_v24 = vld [vmem:[#allocation7 + $0x80] sm:$0xff]  ;;  %v9959_v25 = vld [vmem:[#allocation4 + $0x2e0] sm:$0x3f]  ;;  %12614 = vst [vmem:[#allocation52_spill] sm:$0xff] %v9961_v30  ;;  %v9963_v31 = vpack.c.bf16 %v728_v19, %v723_v12  ;;  %v9967_v29 = vpack.c.bf16 %v637_v21, %v632_v11  ;;  %v642_v37 = vld [vmem:[#allocation4 + $0x70] sm:$0xff] }
  0x55   :  { %7381 = vmatpush1.bf16.msra.mxu1 %v9896_v63  ;;  %7347 = vmatprep.subr.bf16.mxu0 %v9898_v1  ;;  %v9969_v36 = vpack.c.bf16 %v739_v24, %v734_v22  ;;  %v733_v41 = vld [vmem:[#allocation7 + $0x50] sm:$0xff]  ;;  %v738_v43 = vld [vmem:[#allocation7 + $0x78] sm:$0xff]  ;;  %v647_v46 = vld [vmem:[#allocation4 + $0x98] sm:$0xff] }
  0x56   :  { %7383 = vmatprep.subr.bf16.mxu1 %v9901_v5  ;;  %v744_v47 = vld [vmem:[#allocation7 + $0xa8] sm:$0xff]  ;;  %v749_v48 = vld [vmem:[#allocation7 + $0xd0] sm:$0xff]  ;;  %v9978_v55 = vpack.c.bf16 %v738_v43, %v733_v41  ;;  %v9982_v57 = vpack.c.bf16 %v647_v46, %v642_v37  ;;  %v743_v9 = vld [vmem:[#allocation7 + $0xa0] sm:$0xff] }
  0x57   :  { %v9984_v59 = vpack.c.bf16 %v749_v48, %v744_v47  ;;  %v652_v60 = vld [vmem:[#allocation4 + $0xc0] sm:$0xff]  ;;  %v657_v11 = vld [vmem:[#allocation4 + $0xe8] sm:$0xff]  ;;  %v754_v12 = vld [vmem:[#allocation7 + $0xf8] sm:$0xff] }
  0x58   :  { %7349 = vmatpush1.bf16.msra.mxu0 %v9904_v13  ;;  %12615 = vst [vmem:[#allocation53_spill] sm:$0xff] %v9978_v55  ;;  %12616 = vst [vmem:[#allocation54_spill] sm:$0xff] %v9982_v57  ;;  %v748_v10 = vld [vmem:[#allocation7 + $0xc8] sm:$0xff]  ;;  %v759_v19 = vld [vmem:[#allocation7 + $0x120] sm:$0xff]  ;;  %v9994_v22 = vpack.c.bf16 %v657_v11, %v652_v60 }
  0x59   :  { %7385 = vmatpush1.bf16.msra.mxu1 %v9908_v17  ;;  %7351 = vmatprep.subr.bf16.mxu0 %v9910_v18  ;;  %12617 = vst [vmem:[#allocation55_spill] sm:$0xff] %v9984_v59  ;;  %v9990_v21 = vpack.c.bf16 %v748_v10, %v743_v9  ;;  %v9996_v24 = vpack.c.bf16 %v759_v19, %v754_v12  ;;  %v662_v37 = vld [vmem:[#allocation4 + $0x110] sm:$0xff]  ;;  %v753_v41 = vld [vmem:[#allocation7 + $0xf0] sm:$0xff]  ;;  %v667_v46 = vld [vmem:[#allocation4 + $0x138] sm:$0xff] }
  0x5a   :  { %7387 = vmatprep.subr.bf16.mxu1 %v9913_v23  ;;  %12619 = vst [vmem:[#allocation57_spill] sm:$0xff] %v9994_v22  ;;  %v758_v43 = vld [vmem:[#allocation7 + $0x118] sm:$0xff]  ;;  %v764_v47 = vld [vmem:[#allocation7 + $0x148] sm:$0xff]  ;;  %v769_v48 = vld [vmem:[#allocation7 + $0x170] sm:$0xff]  ;;  %v10004_v60 = vpack.c.bf16 %v667_v46, %v662_v37 }
  0x5b   :  { %12618 = vst [vmem:[#allocation56_spill] sm:$0xff] %v9990_v21  ;;  %12620 = vst [vmem:[#allocation58_spill] sm:$0xff] %v9996_v24  ;;  %v10000_v9 = vpack.c.bf16 %v758_v43, %v753_v41  ;;  %v10006_v10 = vpack.c.bf16 %v769_v48, %v764_v47  ;;  %v672_v11 = vld [vmem:[#allocation4 + $0x160] sm:$0xff]  ;;  %v763_v12 = vld [vmem:[#allocation7 + $0x140] sm:$0xff] }
  0x5c   :  { %7353 = vmatpush1.bf16.msra.mxu0 %v9916_v33  ;;  %12622 = vst [vmem:[#allocation60_spill] sm:$0xff] %v10004_v60  ;;  %v768_v19 = vld [vmem:[#allocation7 + $0x168] sm:$0xff]  ;;  %v682_v46 = vld [vmem:[#allocation4 + $0x1b0] sm:$0xff]  ;;  %v773_v47 = vld [vmem:[#allocation7 + $0x190] sm:$0xff] }
  0x5d   :  { %7389 = vmatpush1.bf16.msra.mxu1 %v9920_v34  ;;  %7355 = vmatprep.subr.bf16.mxu0 %v9922_v35  ;;  %12621 = vst [vmem:[#allocation59_spill] sm:$0xff] %v10000_v9  ;;  %12623 = vst [vmem:[#allocation61_spill] sm:$0xff] %v10006_v10  ;;  %v10010_v41 = vpack.c.bf16 %v768_v19, %v763_v12  ;;  %v778_v48 = vld [vmem:[#allocation7 + $0x1b8] sm:$0xff]  ;;  %v788_v19 = vld [vmem:[#allocation7 + $0x208] sm:$0xff] }
  0x5e   :  { %7391 = vmatprep.subr.bf16.mxu1 %v9925_v42  ;;  %v10020_v12 = vpack.c.bf16 %v778_v48, %v773_v47  ;;  %v798_v48 = vld [vmem:[#allocation7 + $0x258] sm:$0xff]  ;;  %vm11990_vm8 = vmor %vm1459_vm7, %vm1458_vm6 }
  0x5f   :  { %12624 = vst [vmem:[#allocation62_spill] sm:$0xff] %v10010_v41 }
  0x60   :  { %7357 = vmatpush1.bf16.msra.mxu0 %v9928_v49  ;;  %12627 = vst [vmem:[#allocation65_spill] sm:$0xff] %v10020_v12 }
  0x61   :  { %7393 = vmatpush1.bf16.msra.mxu1 %v9932_v53  ;;  %7359 = vmatprep.subr.bf16.mxu0 %v9934_v54 }
  0x62   :  { %7395 = vmatprep.subr.bf16.mxu1 %v9937_v58 }
  0x64   :  { %7361 = vmatpush1.bf16.msra.mxu0 %v9940_v61 }
  0x65   :  { %7397 = vmatpush1.bf16.msra.mxu1 %v9944_v2  ;;  %7021 = vmatprep.subr.msk.mxu0 %vm822_vm1, %v9947_v3 }
  0x66   :  { %7023 = vmatprep.subr.msk.mxu1 %vm822_vm1, %v9949_v4 }
  0x68   :  { %7022 = vmatpush1.msk.msra.mxu0 %vm822_vm1, %v9951_v6 }
  0x69   :  { %7024 = vmatpush1.msk.msra.mxu1 %vm822_vm1, %v9959_v25  ;;  %7398 = vmatprep.subr.bf16.mxu0 %v12345_v45 }
  0x6a   :  { %974 = vmatmul.mubr.f32.vlgmr.msra.gmra.mrb[10].mxu1 %v12315_v0  ;;  %7426 = vmatprep.subr.bf16.mxu1 %v9961_v30 }
  0x6b   :  { %903 = vmatmul.mubr.f32.vlgmr.msra.gmra.mrb[10].mxu0 %v12315_v0  ;;  %7428 = vmatpush1.bf16.msra.mxu1 %v9963_v31 }
  0x6c   :  { %7400 = vmatpush1.bf16.msra.mxu0 %v9967_v29  ;;  %7430 = vmatprep.subr.bf16.mxu1 %v9969_v36 }
  0x6d   :  { %7401 = vmatprep.subr.bf16.mxu0 %v12345_v45  ;;  %1044 = vmatprep.mubr.f32.mxu0 %v12315_v0 }
  0x6e   :  { %1134 = vmatprep.mubr.f32.mxu1 %v12315_v0  ;;  %v677_v0 = vld [vmem:[#allocation4 + $0x188] sm:$0xff] }
  0x6f   :  { %7432 = vmatpush1.bf16.msra.mxu1 %v9978_v55  ;;  %v779_v55 = vld [vmem:[#allocation7 + $0x1c0] sm:$0xff]  ;;  %v10014_v37 = vpack.c.bf16 %v677_v0, %v672_v11 }
  0x70   :  { %7403 = vmatpush1.bf16.msra.mxu0 %v9982_v57  ;;  %7434 = vmatprep.subr.bf16.mxu1 %v9984_v59  ;;  %v774_v59 = vld [vmem:[#allocation7 + $0x198] sm:$0xff]  ;;  %v783_v11 = vld [vmem:[#allocation7 + $0x1e0] sm:$0xff]  ;;  %v761_v57 = vld [vmem:[#allocation7 + $0x130] sm:$0xff] }
  0x71   :  { %7404 = vmatprep.subr.bf16.mxu0 %v12345_v45  ;;  %12625 = vst [vmem:[#allocation63_spill] sm:$0xff] %v10014_v37  ;;  %v10016_v43 = vpack.c.bf16 %v779_v55, %v774_v59  ;;  %v692_v59 = vld [vmem:[#allocation4 + $0x200] sm:$0xff]  ;;  %v10030_v47 = vpack.c.bf16 %v788_v19, %v783_v11 }
  0x72   :  { %v712_v19 = vld [vmem:[#allocation4 + $0x2a0] sm:$0xff] }
  0x73   :  { %7436 = vmatpush1.bf16.msra.mxu1 %v9990_v21  ;;  %12626 = vst [vmem:[#allocation64_spill] sm:$0xff] %v10016_v43  ;;  %v784_v21 = vld [vmem:[#allocation7 + $0x1e8] sm:$0xff]  ;;  %12630 = vst [vmem:[#allocation68_spill] sm:$0xff] %v10030_v47 }
  0x74   :  { %7406 = vmatpush1.bf16.msra.mxu0 %v9994_v22  ;;  %7438 = vmatprep.subr.bf16.mxu1 %v9996_v24  ;;  %v687_v24 = vld [vmem:[#allocation4 + $0x1d8] sm:$0xff]  ;;  %v789_v22 = vld [vmem:[#allocation7 + $0x210] sm:$0xff] }
  0x75   :  { %7407 = vmatprep.subr.bf16.mxu0 %v12345_v45  ;;  %v10024_v0 = vpack.c.bf16 %v687_v24, %v682_v46  ;;  %v10026_v55 = vpack.c.bf16 %v789_v22, %v784_v21  ;;  %v702_v22 = vld [vmem:[#allocation4 + $0x250] sm:$0xff]  ;;  %v793_v46 = vld [vmem:[#allocation7 + $0x230] sm:$0xff] }
  0x76   :  { %v10040_v11 = vpack.c.bf16 %v798_v48, %v793_v46  ;;  %v725_v48 = vld [vmem:[#allocation7 + $0x10] sm:$0xff] }
  0x77   :  { %7440 = vmatpush1.bf16.msra.mxu1 %v10000_v9  ;;  %12628 = vst [vmem:[#allocation66_spill] sm:$0xff] %v10024_v0  ;;  %12629 = vst [vmem:[#allocation67_spill] sm:$0xff] %v10026_v55  ;;  %v794_v9 = vld [vmem:[#allocation7 + $0x238] sm:$0xff] }
  0x78   :  { %7409 = vmatpush1.bf16.msra.mxu0 %v10004_v60  ;;  %7442 = vmatprep.subr.bf16.mxu1 %v10006_v10  ;;  %v697_v10 = vld [vmem:[#allocation4 + $0x228] sm:$0xff]  ;;  %v799_v60 = vld [vmem:[#allocation7 + $0x260] sm:$0xff]  ;;  %12633 = vst [vmem:[#allocation71_spill] sm:$0xff] %v10040_v11 }
  0x79   :  { %7410 = vmatprep.subr.bf16.mxu0 %v12345_v45  ;;  %v10034_v24 = vpack.c.bf16 %v697_v10, %v692_v59  ;;  %v10036_v21 = vpack.c.bf16 %v799_v60, %v794_v9  ;;  %v803_v60 = vld [vmem:[#allocation7 + $0x280] sm:$0xff]  ;;  %v808_v59 = vld [vmem:[#allocation7 + $0x2a8] sm:$0xff] }
  0x7b   :  { %7444 = vmatpush1.bf16.msra.mxu1 %v10010_v41  ;;  %12631 = vst [vmem:[#allocation69_spill] sm:$0xff] %v10034_v24  ;;  %12632 = vst [vmem:[#allocation70_spill] sm:$0xff] %v10036_v21  ;;  %v804_v41 = vld [vmem:[#allocation7 + $0x288] sm:$0xff] }
  0x7c   :  { %7412 = vmatpush1.bf16.msra.mxu0 %v10014_v37  ;;  %7446 = vmatprep.subr.bf16.mxu1 %v10016_v43  ;;  %v707_v43 = vld [vmem:[#allocation4 + $0x278] sm:$0xff]  ;;  %v809_v37 = vld [vmem:[#allocation7 + $0x2b0] sm:$0xff] }
  0x7d   :  { %7413 = vmatprep.subr.bf16.mxu0 %v12345_v45  ;;  %v10044_v10 = vpack.c.bf16 %v707_v43, %v702_v22  ;;  %v10046_v9 = vpack.c.bf16 %v809_v37, %v804_v41  ;;  %v10057_v41 = vld [vmem:[#allocation7 + $0x2d8] sm:$0x3f]  ;;  %v10059_v37 = vld [vmem:[#allocation7 + $0x2d0] sm:$0x3f]  ;;  %v731_v22 = vld [vmem:[#allocation7 + $0x40] sm:$0xff] }
  0x7e   :  { %12638 = vst [vmem:[#allocation76_spill] sm:$0xff] %v10057_v41  ;;  %12639 = vst [vmem:[#allocation77_spill] sm:$0xff] %v10059_v37  ;;  %v726_v43 = vld [vmem:[#allocation7 + $0x18] sm:$0xff] }
  0x7f   :  { %7448 = vmatpush1.bf16.msra.mxu1 %v10020_v12  ;;  %12634 = vst [vmem:[#allocation72_spill] sm:$0xff] %v10044_v10  ;;  %12635 = vst [vmem:[#allocation73_spill] sm:$0xff] %v10046_v9  ;;  %v10050_v12 = vpack.c.bf16 %v808_v59, %v803_v60  ;;  %v727_v60 = vld [vmem:[#allocation7 + $0x20] sm:$0xff]  ;;  %v736_v59 = vld [vmem:[#allocation7 + $0x68] sm:$0xff] }
  0x80   :  { %7415 = vmatpush1.bf16.msra.mxu0 %v10024_v0  ;;  %7450 = vmatprep.subr.bf16.mxu1 %v10026_v55  ;;  %v717_v55 = vld [vmem:[#allocation4 + $0x2c8] sm:$0xff]  ;;  %v742_v0 = vld [vmem:[#allocation7 + $0x98] sm:$0xff] }
  0x81   :  { %7416 = vmatprep.subr.bf16.mxu0 %v12345_v45  ;;  %12636 = vst [vmem:[#allocation74_spill] sm:$0xff] %v10050_v12  ;;  %v10054_v46 = vpack.c.bf16 %v717_v55, %v712_v19  ;;  %v732_v55 = vld [vmem:[#allocation7 + $0x48] sm:$0xff]  ;;  %v741_v19 = vld [vmem:[#allocation7 + $0x90] sm:$0xff] }
  0x83   :  { %7452 = vmatpush1.bf16.msra.mxu1 %v10030_v47  ;;  %12637 = vst [vmem:[#allocation75_spill] sm:$0xff] %v10054_v46  ;;  %v735_v47 = vld [vmem:[#allocation7 + $0x60] sm:$0xff] }
  0x84   :  { %7418 = vmatpush1.bf16.msra.mxu0 %v10034_v24  ;;  %7454 = vmatprep.subr.bf16.mxu1 %v10036_v21  ;;  %v737_v24 = vld [vmem:[#allocation7 + $0x70] sm:$0xff] }
  0x85   :  { %7419 = vmatprep.subr.bf16.mxu0 %v12345_v45 }
  0x87   :  { %7456 = vmatpush1.bf16.msra.mxu1 %v10040_v11  ;;  %v730_v11 = vld [vmem:[#allocation7 + $0x38] sm:$0xff] }
  0x88   :  { %7421 = vmatpush1.bf16.msra.mxu0 %v10044_v10  ;;  %7458 = vmatprep.subr.bf16.mxu1 %v10046_v9  ;;  %v10066_v9 = vld [vmem:[#allocation4 + $0x2f0] sm:$0x3f]  ;;  %v10068_v10 = vpack.c.bf16 %v731_v22, %v726_v43  ;;  %v10070_v21 = vpack.c.bf16 %v730_v11, %v725_v48  ;;  %v751_v22 = vld [vmem:[#allocation7 + $0xe0] sm:$0xff]  ;;  %v12646_v11 = vmov 0.0|0.0  }
  0x89   :  { %7422 = vmatprep.subr.bf16.mxu0 %v12345_v45  ;;  %v12640_v45 = vmov 0.0   ;;  %12641 = vst [vmem:[#allocation78_spill] sm:$0xff] %v10066_v9  ;;  %v746_v43 = vld [vmem:[#allocation7 + $0xb8] sm:$0xff] }
  0x8a   :  { %12642 = vst [vmem:[#allocation79_spill] sm:$0xff] %v10068_v10  ;;  %12643 = vst [vmem:[#allocation80_spill] sm:$0xff] %v10070_v21 }
  0x8b   :  { %7460 = vmatpush1.bf16.msra.mxu1 %v10050_v12  ;;  %v10074_v12 = vpack.c.bf16 %v732_v55, %v727_v60  ;;  %v10089_v60 = vpack.c.bf16 %v742_v0, %v737_v24  ;;  %v10091_v55 = vpack.c.bf16 %v751_v22, %v746_v43  ;;  %v760_v43 = vld [vmem:[#allocation7 + $0x128] sm:$0xff]  ;;  %v757_v22 = vld [vmem:[#allocation7 + $0x110] sm:$0xff] }
  0x8c   :  { %7424 = vmatpush1.bf16.msra.mxu0 %v10054_v46  ;;  %7026 = vmatprep.subr.msk.mxu1 %vm822_vm1, %v10057_v41  ;;  %v10076_v46 = vpack.c.bf16 %v741_v19, %v736_v59  ;;  %v740_v41 = vld [vmem:[#allocation7 + $0x88] sm:$0xff]  ;;  %v745_v59 = vld [vmem:[#allocation7 + $0xb0] sm:$0xff]  ;;  %v750_v19 = vld [vmem:[#allocation7 + $0xd8] sm:$0xff] }
  0x8d   :  { %1016 = vmatprep.subr.mxu0 %v12640_v45  ;;  %12644 = vst [vmem:[#allocation81_spill] sm:$0xff] %v10074_v12  ;;  %v10085_v48 = vpack.c.bf16 %v740_v41, %v735_v47  ;;  %12648 = vst [vmem:[#allocation84_spill] sm:$0xff] %v10089_v60  ;;  %v10097_v47 = vpack.c.bf16 %v750_v19, %v745_v59  ;;  %v755_v41 = vld [vmem:[#allocation7 + $0x100] sm:$0xff] }
  0x8e   :  { %12645 = vst [vmem:[#allocation82_spill] sm:$0xff] %v10076_v46  ;;  %12649 = vst [vmem:[#allocation85_spill] sm:$0xff] %v10091_v55  ;;  %v10107_v59 = vpack.c.bf16 %v760_v43, %v755_v41  ;;  %v767_v19 = vld [vmem:[#allocation7 + $0x160] sm:$0xff]  ;;  %v780_v43 = vld [vmem:[#allocation7 + $0x1c8] sm:$0xff] }
  0x8f   :  { %7027 = vmatpush1.msk.msra.mxu1 %vm822_vm1, %v10059_v37  ;;  %12647 = vst [vmem:[#allocation83_spill] sm:$0xff] %v10085_v48  ;;  %v747_v37 = vld [vmem:[#allocation7 + $0xc0] sm:$0xff]  ;;  %12650 = vst [vmem:[#allocation86_spill] sm:$0xff] %v10097_v47 }
  0x90   :  { %7025 = vmatpush1.msk.msra.mxu0 %vm822_vm1, %v10066_v9  ;;  %1135 = vmatmul.mubr.f32.vlgmr.msra.gmra.mrb[12].mxu1 %v12640_v45  ;;  %v756_v9 = vld [vmem:[#allocation7 + $0x108] sm:$0xff]  ;;  %12653 = vst [vmem:[#allocation89_spill] sm:$0xff] %v10107_v59 }
  0x91   :  { %1045 = vmatmul.mubr.f32.vlgmr.msra.gmra.mrb[12].mxu0 %v12640_v45  ;;  %7462 = vmatprep.subr.bf16.mxu0 %v10068_v10  ;;  %v752_v10 = vld [vmem:[#allocation7 + $0xe8] sm:$0xff]  ;;  %v10103_v24 = vpack.c.bf16 %v761_v57, %v756_v9  ;;  %v765_v9 = vld [vmem:[#allocation7 + $0x150] sm:$0xff] }
  0x92   :  { %7497 = vmatprep.subr.bf16.mxu1 %v12646_v11  ;;  %7464 = vmatpush1.bf16.msra.mxu0 %v10070_v21  ;;  %v10101_v0 = vpack.c.bf16 %v752_v10, %v747_v37  ;;  %v771_v21 = vld [vmem:[#allocation7 + $0x180] sm:$0xff]  ;;  %v770_v37 = vld [vmem:[#allocation7 + $0x178] sm:$0xff] }
  0x93   :  { %7499 = vmatpush1.bf16.msra.mxu1 %v10074_v12  ;;  %7466 = vmatprep.subr.bf16.mxu0 %v10076_v46  ;;  %12652 = vst [vmem:[#allocation88_spill] sm:$0xff] %v10103_v24  ;;  %v762_v12 = vld [vmem:[#allocation7 + $0x138] sm:$0xff]  ;;  %v10117_v41 = vpack.c.bf16 %v770_v37, %v765_v9 }
  0x94   :  { %7500 = vmatprep.subr.bf16.mxu1 %v12646_v11  ;;  %1205 = vmatprep.mubr.f32.mxu0 %v12640_v45  ;;  %12651 = vst [vmem:[#allocation87_spill] sm:$0xff] %v10101_v0  ;;  %v766_v46 = vld [vmem:[#allocation7 + $0x158] sm:$0xff]  ;;  %v10111_v10 = vpack.c.bf16 %v762_v12, %v757_v22  ;;  %v777_v22 = vld [vmem:[#allocation7 + $0x1b0] sm:$0xff] }
  0x95   :  { %1276 = vmatprep.mubr.f32.mxu1 %v12640_v45  ;;  %v10113_v57 = vpack.c.bf16 %v771_v21, %v766_v46  ;;  %12656 = vst [vmem:[#allocation92_spill] sm:$0xff] %v10117_v41  ;;  %v775_v46 = vld [vmem:[#allocation7 + $0x1a0] sm:$0xff]  ;;  %v790_v37 = vld [vmem:[#allocation7 + $0x218] sm:$0xff] }
  0x96   :  { %7468 = vmatpush1.bf16.msra.mxu0 %v10085_v48  ;;  %12654 = vst [vmem:[#allocation90_spill] sm:$0xff] %v10111_v10  ;;  %v781_v48 = vld [vmem:[#allocation7 + $0x1d0] sm:$0xff]  ;;  %v10127_v9 = vpack.c.bf16 %v780_v43, %v775_v46  ;;  %v800_v43 = vld [vmem:[#allocation7 + $0x268] sm:$0xff] }
  0x97   :  { %7502 = vmatpush1.bf16.msra.mxu1 %v10089_v60  ;;  %7470 = vmatprep.subr.bf16.mxu0 %v10091_v55  ;;  %12655 = vst [vmem:[#allocation91_spill] sm:$0xff] %v10113_v57  ;;  %v772_v60 = vld [vmem:[#allocation7 + $0x188] sm:$0xff] }
  0x98   :  { %7503 = vmatprep.subr.bf16.mxu1 %v12646_v11  ;;  %v776_v55 = vld [vmem:[#allocation7 + $0x1a8] sm:$0xff]  ;;  %v10121_v12 = vpack.c.bf16 %v772_v60, %v767_v19  ;;  %12659 = vst [vmem:[#allocation95_spill] sm:$0xff] %v10127_v9  ;;  %v787_v19 = vld [vmem:[#allocation7 + $0x200] sm:$0xff] }
  0x99   :  { %v10123_v21 = vpack.c.bf16 %v781_v48, %v776_v55  ;;  %v785_v55 = vld [vmem:[#allocation7 + $0x1f0] sm:$0xff] }
  0x9a   :  { %7472 = vmatpush1.bf16.msra.mxu0 %v10097_v47  ;;  %12657 = vst [vmem:[#allocation93_spill] sm:$0xff] %v10121_v12  ;;  %v791_v47 = vld [vmem:[#allocation7 + $0x220] sm:$0xff]  ;;  %v10137_v46 = vpack.c.bf16 %v790_v37, %v785_v55  ;;  %v810_v37 = vld [vmem:[#allocation7 + $0x2b8] sm:$0xff] }
  0x9b   :  { %7505 = vmatpush1.bf16.msra.mxu1 %v10101_v0  ;;  %7474 = vmatprep.subr.bf16.mxu0 %v10103_v24  ;;  %12658 = vst [vmem:[#allocation94_spill] sm:$0xff] %v10123_v21  ;;  %v782_v0 = vld [vmem:[#allocation7 + $0x1d8] sm:$0xff] }
  0x9c   :  { %7506 = vmatprep.subr.bf16.mxu1 %v12646_v11  ;;  %v786_v24 = vld [vmem:[#allocation7 + $0x1f8] sm:$0xff]  ;;  %v10131_v60 = vpack.c.bf16 %v782_v0, %v777_v22  ;;  %12662 = vst [vmem:[#allocation98_spill] sm:$0xff] %v10137_v46  ;;  %v797_v22 = vld [vmem:[#allocation7 + $0x250] sm:$0xff] }
  0x9d   :  { %v10133_v48 = vpack.c.bf16 %v791_v47, %v786_v24  ;;  %v795_v24 = vld [vmem:[#allocation7 + $0x240] sm:$0xff] }
  0x9e   :  { %7476 = vmatpush1.bf16.msra.mxu0 %v10107_v59  ;;  %12660 = vst [vmem:[#allocation96_spill] sm:$0xff] %v10131_v60  ;;  %v801_v59 = vld [vmem:[#allocation7 + $0x270] sm:$0xff]  ;;  %v10147_v55 = vpack.c.bf16 %v800_v43, %v795_v24 }
  0x9f   :  { %7508 = vmatpush1.bf16.msra.mxu1 %v10111_v10  ;;  %7478 = vmatprep.subr.bf16.mxu0 %v10113_v57  ;;  %12661 = vst [vmem:[#allocation97_spill] sm:$0xff] %v10133_v48  ;;  %v792_v10 = vld [vmem:[#allocation7 + $0x228] sm:$0xff] }
  0xa0   :  { %7509 = vmatprep.subr.bf16.mxu1 %v12646_v11  ;;  %v796_v57 = vld [vmem:[#allocation7 + $0x248] sm:$0xff]  ;;  %v10141_v0 = vpack.c.bf16 %v792_v10, %v787_v19  ;;  %12665 = vst [vmem:[#allocation101_spill] sm:$0xff] %v10147_v55  ;;  %v807_v19 = vld [vmem:[#allocation7 + $0x2a0] sm:$0xff] }
  0xa1   :  { %v10143_v47 = vpack.c.bf16 %v801_v59, %v796_v57  ;;  %v805_v57 = vld [vmem:[#allocation7 + $0x290] sm:$0xff] }
  0xa2   :  { %7480 = vmatpush1.bf16.msra.mxu0 %v10117_v41  ;;  %12663 = vst [vmem:[#allocation99_spill] sm:$0xff] %v10141_v0  ;;  %v811_v41 = vld [vmem:[#allocation7 + $0x2c0] sm:$0xff] }
  0xa3   :  { %7511 = vmatpush1.bf16.msra.mxu1 %v10121_v12  ;;  %7482 = vmatprep.subr.bf16.mxu0 %v10123_v21  ;;  %12664 = vst [vmem:[#allocation100_spill] sm:$0xff] %v10143_v47  ;;  %v802_v12 = vld [vmem:[#allocation7 + $0x278] sm:$0xff] }
  0xa4   :  { %7512 = vmatprep.subr.bf16.mxu1 %v12646_v11  ;;  %v806_v21 = vld [vmem:[#allocation7 + $0x298] sm:$0xff]  ;;  %v10151_v10 = vpack.c.bf16 %v802_v12, %v797_v22  ;;  %v10170_v12 = vld [vmem:[#allocation7 + $0x2e0] sm:$0x3f] }
  0xa5   :  { %v10153_v59 = vpack.c.bf16 %v811_v41, %v806_v21  ;;  %v10164_v41 = vld [vmem:[#allocation7 + $0x2e8] sm:$0x3f]  ;;  %v10173_v21 = vld [vmem:[#allocation7 + $0x2f0] sm:$0x3f] }
  0xa6   :  { %7484 = vmatpush1.bf16.msra.mxu0 %v10127_v9  ;;  %12666 = vst [vmem:[#allocation102_spill] sm:$0xff] %v10151_v10  ;;  %12670 = vst [vmem:[#allocation106_spill] sm:$0xff] %v10173_v21 }
  0xa7   :  { %7514 = vmatpush1.bf16.msra.mxu1 %v10131_v60  ;;  %7486 = vmatprep.subr.bf16.mxu0 %v10133_v48  ;;  %12667 = vst [vmem:[#allocation103_spill] sm:$0xff] %v10153_v59  ;;  %v812_v60 = vld [vmem:[#allocation7 + $0x2c8] sm:$0xff]  ;;  %v10157_v48 = vpack.c.bf16 %v810_v37, %v805_v57 }
  0xa8   :  { %7515 = vmatprep.subr.bf16.mxu1 %v12646_v11  ;;  %v10161_v24 = vpack.c.bf16 %v812_v60, %v807_v19  ;;  %v91_v60 = vlaneseq }
  0xa9   :  { %12668 = vst [vmem:[#allocation104_spill] sm:$0xff] %v10157_v48 }
  0xaa   :  { %7488 = vmatpush1.bf16.msra.mxu0 %v10137_v46  ;;  %12669 = vst [vmem:[#allocation105_spill] sm:$0xff] %v10161_v24  ;;  %v10227_v43 = vshrl.u32 %v91_v60, 7  ;;  %v372_v60 = vld [vmem:[%s12307_s4] sm:$0x1f]  ;;  %s9579_s4 = smov 22  }
  0xab   :  { %7517 = vmatpush1.bf16.msra.mxu1 %v10141_v0  ;;  %7490 = vmatprep.subr.bf16.mxu0 %v10143_v47 }
  0xac   :  { %7518 = vmatprep.subr.bf16.mxu1 %v12646_v11  ;;  %12671 = vst [vmem:[#allocation107_spill] sm:$0xff] %v10227_v43  ;;  %v101_v22 = vsub.s32 2, %v10227_v43 }
  0xae   :  { %7492 = vmatpush1.bf16.msra.mxu0 %v10147_v55 }
  0xaf   :  { %7520 = vmatpush1.bf16.msra.mxu1 %v10151_v10  ;;  %7494 = vmatprep.subr.bf16.mxu0 %v10153_v59 }
  0xb0   :  { %7521 = vmatprep.subr.bf16.mxu1 %v12646_v11 }
  0xb2   :  { %7496 = vmatpush1.bf16.msra.mxu0 %v10157_v48 }
  0xb3   :  { %7523 = vmatpush1.bf16.msra.mxu1 %v10161_v24  ;;  %7028 = vmatprep.subr.msk.mxu0 %vm822_vm1, %v10164_v41 }
  0xb4   :  { %1248 = vmatprep.subr.mxu1 %v12640_v45 }
  0xb6   :  { %7029 = vmatpush1.msk.msra.mxu0 %vm822_vm1, %v10170_v12 }
  0xb7   :  { %7030 = vmatpush1.msk.msra.mxu1 %vm822_vm1, %v10173_v21  ;;  %1206 = vmatmul.mubr.f32.vlgmr.msra.gmra.mrb[14].mxu0 %v12640_v45 }
  0xb8   :  { %1277 = vmatmul.mubr.f32.vlgmr.msra.gmra.mrb[14].mxu1 %v12640_v45  ;;  %7525 = vmatprep.subr.bf16.mxu0 %v9827_v7 }
  0xb9   :  { %7527 = vmatpush1.bf16.msra.mxu0 %v9834_v14  ;;  %7561 = vmatprep.subr.bf16.mxu1 %v9829_v8 }
  0xba   :  { %7563 = vmatpush1.bf16.msra.mxu1 %v9838_v15  ;;  %7529 = vmatprep.subr.bf16.mxu0 %v9840_v16 }
  0xbb   :  { %7565 = vmatprep.subr.bf16.mxu1 %v9844_v20 }
  0xbd   :  { %7531 = vmatpush1.bf16.msra.mxu0 %v9851_v26 }
  0xbe   :  { %7567 = vmatpush1.bf16.msra.mxu1 %v9855_v27  ;;  %7533 = vmatprep.subr.bf16.mxu0 %v9857_v28 }
  0xbf   :  { %7569 = vmatprep.subr.bf16.mxu1 %v9860_v32 }
  0xc1   :  { %7535 = vmatpush1.bf16.msra.mxu0 %v9867_v38 }
  0xc2   :  { %7571 = vmatpush1.bf16.msra.mxu1 %v9872_v39  ;;  %7537 = vmatprep.subr.bf16.mxu0 %v9874_v40 }
  0xc3   :  { %7573 = vmatprep.subr.bf16.mxu1 %v9877_v44 }
  0xc5   :  { %7539 = vmatpush1.bf16.msra.mxu0 %v9880_v50 }
  0xc6   :  { %7575 = vmatpush1.bf16.msra.mxu1 %v9884_v51  ;;  %7541 = vmatprep.subr.bf16.mxu0 %v9886_v52 }
  0xc7   :  { %7577 = vmatprep.subr.bf16.mxu1 %v9889_v56 }
  0xc9   :  { %7543 = vmatpush1.bf16.msra.mxu0 %v9892_v62 }
  0xca   :  { %7579 = vmatpush1.bf16.msra.mxu1 %v9896_v63  ;;  %7545 = vmatprep.subr.bf16.mxu0 %v9898_v1 }
  0xcb   :  { %7581 = vmatprep.subr.bf16.mxu1 %v9901_v5 }
  0xcd   :  { %7547 = vmatpush1.bf16.msra.mxu0 %v9904_v13 }
  0xce   :  { %7583 = vmatpush1.bf16.msra.mxu1 %v9908_v17  ;;  %7549 = vmatprep.subr.bf16.mxu0 %v9910_v18 }
  0xcf   :  { %7585 = vmatprep.subr.bf16.mxu1 %v9913_v23 }
  0xd1   :  { %7551 = vmatpush1.bf16.msra.mxu0 %v9916_v33 }
  0xd2   :  { %7587 = vmatpush1.bf16.msra.mxu1 %v9920_v34  ;;  %7553 = vmatprep.subr.bf16.mxu0 %v9922_v35 }
  0xd3   :  { %7589 = vmatprep.subr.bf16.mxu1 %v9925_v42 }
  0xd5   :  { %7555 = vmatpush1.bf16.msra.mxu0 %v9928_v49 }
  0xd6   :  { %7591 = vmatpush1.bf16.msra.mxu1 %v9932_v53  ;;  %7557 = vmatprep.subr.bf16.mxu0 %v9934_v54 }
  0xd7   :  { %7593 = vmatprep.subr.bf16.mxu1 %v9937_v58 }
  0xd9   :  { %7559 = vmatpush1.bf16.msra.mxu0 %v9940_v61 }
  0xda   :  { %7595 = vmatpush1.bf16.msra.mxu1 %v9944_v2  ;;  %7041 = vmatprep.subr.msk.mxu0 %vm822_vm1, %v9947_v3  ;;  %v89_v3 = vld [vmem:[%s12305_s2] sm:$0x1f]  ;;  %v109_v2 = vsub.s32 4, %v10227_v43  ;;  %s9578_s2 = smov 84  }
  0xdb   :  { %7044 = vmatprep.subr.msk.mxu1 %vm822_vm1, %v9949_v4  ;;  %v102_v53 = vrot.slane %v89_v3, %v101_v22 }
  0xdc   :  { %v10251_v56 = vrot.slane %v89_v3, %v109_v2 }
  0xdd   :  { %7042 = vmatpush1.msk.msra.mxu0 %vm822_vm1, %v9951_v6  ;;  %v105_v6 = vsub.s32 3, %v10227_v43 }
  0xde   :  { %7045 = vmatpush1.msk.msra.mxu1 %vm822_vm1, %v9959_v25  ;;  %7596 = vmatprep.subr.bf16.mxu0 %v12646_v11  ;;  %v93_v25 = vsub.s32 0, %v10227_v43 }
  0xdf   :  { %7624 = vmatprep.subr.bf16.mxu1 %v9961_v30  ;;  %v97_v30 = vsub.s32 1, %v10227_v43  ;;  %v106_v23 = vrot.slane %v89_v3, %v105_v6 }
  0xe0   :  { %v10244_v58 = vrot.slane %v89_v3, %v93_v25  ;;  %v377_v39 = vrot.slane %v372_v60, %v93_v25  ;;  %v385_v25 = vrot.slane %v372_v60, %v101_v22 }
  0xe1   :  { %v10246_v42 = vrot.slane %v89_v3, %v97_v30  ;;  %v381_v27 = vrot.slane %v372_v60, %v97_v30 }
 0x106   :  { %v10230_v57 = vpop.f32.mrb[0].mxu0  ;;  %v266_v4 = vpop.f32.mrb[0].mxu1 }
 0x107   :  { %v10237_v37 = vpop.f32.mrb[1].mxu0  ;;  %v268_v19 = vpop.f32.mrb[1].mxu1 }
 0x10a   :  { %v195_v34 = vpop.f32.mrb[2].mxu0  ;;  %v272_v17 = vpop.f32.mrb[2].mxu1 }
 0x10b   :  { %v10249_v5 = vadd.f32 %v195_v34, %v10244_v58  ;;  %v197_v63 = vpop.f32.mrb[3].mxu0  ;;  %v10253_v51 = vadd.f32 %v272_v17, %v102_v53  ;;  %v274_v44 = vpop.f32.mrb[3].mxu1 }
 0x10c   :  { %v10256_v43 = vadd.f32 %v197_v63, %v10246_v42  ;;  %v10258_v32 = vadd.f32 %v274_v44, %v106_v23  ;;  %v393_v44 = vrot.slane %v372_v60, %v109_v2 }
 0x10d   :  { %12672 = vst [vmem:[#allocation108_spill] sm:$0xff] %v10249_v5  ;;  %12673 = vst [vmem:[#allocation109_spill] sm:$0xff] %v10253_v51 }
 0x10e   :  { %12674 = vst [vmem:[#allocation110_spill] sm:$0xff] %v10256_v43  ;;  %12675 = vst [vmem:[#allocation111_spill] sm:$0xff] %v10258_v32  ;;  %v7266_v20 = vpop.f32.mrb[4].mxu0  ;;  %v465_v15 = vpop.f32.mrb[4].mxu1  ;;  %v389_v43 = vrot.slane %v372_v60, %v105_v6  ;;  %v10283_v6 = vadd.f32 %v268_v19, %v106_v23 }
 0x10f   :  { %v10261_v8 = vadd.f32 %v7266_v20, %v10251_v56  ;;  %v10263_v34 = vpop.f32.mrb[5].mxu0  ;;  %v10265_v5 = vadd.f32 %v465_v15, %v377_v39  ;;  %v467_v3 = vpop.f32.mrb[5].mxu1 }
 0x110   :  { %v10267_v17 = vadd.f32 %v467_v3, %v381_v27  ;;  %12683 = vst [vmem:[#allocation119_spill] sm:$0xff] %v10283_v6 }
 0x111   :  { %12676 = vst [vmem:[#allocation112_spill] sm:$0xff] %v10261_v8  ;;  %12677 = vst [vmem:[#allocation113_spill] sm:$0xff] %v10265_v5 }
 0x112   :  { %12678 = vst [vmem:[#allocation114_spill] sm:$0xff] %v10267_v17  ;;  %v471_v51 = vpop.f32.mrb[6].mxu1 }
 0x113   :  { %v10269_v21 = vadd.f32 %v471_v51, %v377_v39  ;;  %v473_v63 = vpop.f32.mrb[7].mxu1  ;;  %v10281_v51 = vadd.f32 %v266_v4, %v102_v53 }
 0x114   :  { %v10271_v30 = vadd.f32 %v473_v63, %v381_v27 }
 0x115   :  { %12682 = vst [vmem:[#allocation118_spill] sm:$0xff] %v10281_v51 }
 0x116   :  { %v542_v32 = vpop.f32.mrb[6].mxu0  ;;  %v7277_v61 = vpop.f32.mrb[8].mxu1 }
 0x117   :  { %v10273_v20 = vadd.f32 %v542_v32, %v385_v25  ;;  %v544_v8 = vpop.f32.mrb[7].mxu0  ;;  %v10275_v24 = vadd.f32 %v7277_v61, %v393_v44  ;;  %v619_v15 = vpop.f32.mrb[9].mxu1 }
 0x118   :  { %v10277_v5 = vadd.f32 %v544_v8, %v389_v43  ;;  %v10279_v3 = vadd.f32 %v619_v15, %v393_v44 }
 0x119   :  { %12679 = vst [vmem:[#allocation115_spill] sm:$0xff] %v10273_v20 }
 0x11a   :  { %12680 = vst [vmem:[#allocation116_spill] sm:$0xff] %v10277_v5  ;;  %12681 = vst [vmem:[#allocation117_spill] sm:$0xff] %v10279_v3  ;;  %v548_v22 = vpop.f32.mrb[8].mxu0 }
 0x11b   :  { %v550_v39 = vpop.f32.mrb[9].mxu0 }
 0x13d   :  { %v975_v2 = vpop.f32.mrb[10].mxu1 }
 0x13e   :  { %v1052_v27 = vadd.f32 %v975_v2, %v10281_v51  ;;  %v977_v60 = vpop.f32.mrb[11].mxu1  ;;  %v904_v32 = vpop.f32.mrb[10].mxu0  ;;  %v10294_v2 = vadd.f32 %v548_v22, %v385_v25  ;;  %v10309_v25 = vadd.f32 %v10237_v37, %v10246_v42 }
 0x13f   :  { %v906_v63 = vpop.f32.mrb[11].mxu0  ;;  %v10287_v61 = vadd.f32 %v977_v60, %v10283_v6 }
 0x140   :  { %8994 = vtanh.f32 %v1052_v27  ;;  %12684 = vst [vmem:[#allocation120_spill] sm:$0xff] %v10294_v2  ;;  %12686 = vst [vmem:[#allocation122_spill] sm:$0xff] %v10309_v25 }
 0x141   :  { %8996 = vtanh.f32 %v10287_v61 }
 0x14a   :  { %v8995_v8 = vpop.eup %8994 }
 0x14b   :  { %1338 = vrot.lane.b32.xlu0 %v8995_v8, %s9578_s2  ;;  %v8997_v53 = vpop.eup %8996 }
 0x14f   :  { %1340 = vrot.lane.b32.xlu0 %v8997_v53, %s9578_s2  ;;  %v10305_v53 = vadd.f32 %v10230_v57, %v10244_v58  ;;  %v10313_v58 = vadd.f32 %v550_v39, %v389_v43  ;;  %v7033_v39 = vmul.f32 -1.442695, %v1052_v27 }
 0x151   :  { %12685 = vst [vmem:[#allocation121_spill] sm:$0xff] %v10305_v53  ;;  %v1050_v22 = vadd.f32 %v904_v32, %v10305_v53  ;;  %12687 = vst [vmem:[#allocation123_spill] sm:$0xff] %v10313_v58 }
 0x163   :  { %v1136_v23 = vpop.f32.mrb[12].mxu1 }
 0x164   :  { %v10292_v4 = vpop.f32.mrb[12].mxu0  ;;  %v1138_v19 = vpop.f32.mrb[13].mxu1 }
 0x165   :  { %v1048_v44 = vpop.f32.mrb[13].mxu0 }
 0x166   :  { %v7031_v44 = vmul.f32 -1.442695, %v1050_v22 }
 0x18a   :  { %v1207_v15 = vpop.f32.mrb[14].mxu0 }
 0x18b   :  { %v1289_v3 = vrot.slane %v1207_v15, 2  ;;  %v10296_v60 = vpop.f32.mrb[14].mxu1  ;;  %v1209_v17 = vpop.f32.mrb[15].mxu0 }
 0x18c   :  { %v1280_v5 = vpop.f32.mrb[15].mxu1  ;;  %v1290_v51 = vrot.slane %v1209_v17, 2 }
 0x18d   :  { %v10299_v20 = vadd.f32 %v1289_v3, %v10294_v2  ;;  %v1051_v5 = vadd.f32 %v906_v63, %v10309_v25 }
 0x18e   :  { %v10316_v42 = vadd.f32 %v1290_v51, %v10313_v58  ;;  %v1287_v51 = vrot.slane %v1136_v23, 2 }
 0x18f   :  { %8998 = vtanh.f32 %v10299_v20  ;;  %v7032_v3 = vmul.f32 -1.442695, %v1051_v5 }
 0x190   :  { %9000 = vpow2.f32 %v7031_v44  ;;  %v1288_v44 = vrot.slane %v1138_v19, 2 }
 0x191   :  { %9002 = vpow2.f32 %v7032_v3 }
 0x199   :  { %v8999_v8 = vpop.eup %8998 }
 0x19a   :  { %1409 = vrot.lane.b32.xlu0 %v8999_v8, %s9578_s2  ;;  %v9001_v15 = vpop.eup %9000 }
 0x19b   :  { %v1308_v2 = vadd.f32 1.0, %v9001_v15  ;;  %v9003_v6 = vpop.eup %9002  ;;  %v1298_v15 = vadd.f32 %v1288_v44, %v10271_v30 }
 0x19c   :  { %v1309_v8 = vadd.f32 1.0, %v9003_v6 }
 0x19d   :  { %9004 = vrcp.f32 %v1308_v2  ;;  %v1297_v2 = vadd.f32 %v1287_v51, %v10269_v21 }
 0x19e   :  { %9006 = vrcp.f32 %v1309_v8 }
 0x19f   :  { %9008 = vtanh.f32 %v10316_v42  ;;  %v7036_v3 = vmul.f32 -1.442695, %v1297_v2 }
 0x1a0   :  { %9010 = vpow2.f32 %v7033_v39 }
 0x1a1   :  { %9012 = vpow2.f32 %v7036_v3 }
 0x1a7   :  { %v9005_v32 = vpop.eup %9004 }
 0x1a8   :  { %v9007_v6 = vpop.eup %9006 }
 0x1a9   :  { %v9009_v43 = vpop.eup %9008 }
 0x1aa   :  { %v9011_v5 = vpop.eup %9010 }
 0x1ab   :  { %v1317_v8 = vadd.f32 1.0, %v9011_v5 }
 0x1ad   :  { %9014 = vrcp.f32 %v1317_v8 }
 0x1bd   :  { %v1339_v57 = vpop.permute.xlu0 %1338 }
 0x1c1   :  { %v1341_v37 = vpop.permute.xlu0 %1340 }
 0x1c2   :  { %v1343_v63 = vsel %vm1342_vm2, %v1339_v57, %v1341_v37  ;;  %v1347_v17 = vmul.f32 %v9007_v6, %v1341_v37  ;;  %v7037_v57 = vmul.f32 -1.442695, %v1298_v15  ;;  %v9013_v37 = vpop.eup %9012 }
 0x1c3   :  { %v1346_v22 = vmul.f32 %v9005_v32, %v1343_v63  ;;  %v1334_v32 = vmul.f32 0.0, %v9007_v6 }
 0x1c4   :  { %9016 = vpow2.f32 %v7037_v57 }
 0x1c5   :  { %1350 = vrot.lane.b32.xlu1 %v1346_v22, %s9579_s4  ;;  %v9015_v22 = vpop.eup %9014 }
 0x1c6   :  { %v1335_v19 = vmul.f32 0.0, %v9015_v22  ;;  %v7034_v22 = vmul.f32 -1.442695, %v10287_v61 }
 0x1c9   :  { %1352 = vrot.lane.b32.xlu1 %v1347_v17, %s9579_s4  ;;  %v1379_v17 = vadd.f32 1.0, %v9013_v37 }
 0x1cd   :  { %1411 = vrot.lane.b32.xlu1 %v9009_v43, %s9578_s2 }
 0x1ce   :  { %v9017_v23 = vpop.eup %9016 }
 0x1cf   :  { %v1380_v51 = vadd.f32 1.0, %v9017_v23 }
 0x20c   :  { %v1410_v44 = vpop.permute.xlu0 %1409 }
 0x237   :  { %v1351_v63 = vpop.permute.xlu1 %1350 }
 0x238   :  { %v10325_v27 = vadd.f32 %v1351_v63, %v1334_v32 }
 0x23a   :  { %9018 = vtanh.f32 %v10325_v27 }
 0x23b   :  { %v1353_v43 = vpop.permute.xlu1 %1352  ;;  %9020 = vrcp.f32 %v1379_v17 }
 0x23c   :  { %v1354_v39 = vsel %vm818_vm3, %v1351_v63, %v1353_v43  ;;  %v10339_v63 = vadd.f32 %v10263_v34, %v10251_v56 }
 0x23d   :  { %v10329_v2 = vadd.f32 %v1354_v39, %v1335_v19  ;;  %v7038_v19 = vmul.f32 -1.442695, %v10299_v20 }
 0x23e   :  { %v1054_v17 = vadd.f32 %v10292_v4, %v10339_v63 }
 0x23f   :  { %9022 = vtanh.f32 %v10329_v2  ;;  %v1412_v6 = vpop.permute.xlu1 %1411 }
 0x240   :  { %9024 = vrcp.f32 %v1380_v51  ;;  %v1413_v3 = vsel %vm1342_vm2, %v1410_v44, %v1412_v6  ;;  %v7035_v23 = vmul.f32 -1.442695, %v1054_v17  ;;  %v12701_v17 = vld [vmem:[#allocation63_spill] sm:$0xff] }
 0x241   :  { %9026 = vpow2.f32 %v7034_v22 }
 0x242   :  { %9028 = vpow2.f32 %v7035_v23 }
 0x243   :  { %9030 = vpow2.f32 %v7038_v19 }
 0x244   :  { %v9019_v5 = vpop.eup %9018 }
 0x245   :  { %1363 = vrot.lane.b32.xlu0 %v9019_v5, %s9580_s23  ;;  %v9021_v15 = vpop.eup %9020 }
 0x246   :  { %v1416_v8 = vmul.f32 %v9021_v15, %v1413_v3 }
 0x249   :  { %v9023_v57 = vpop.eup %9022  ;;  %1420 = vrot.lane.b32.xlu0 %v1416_v8, %s9579_s4 }
 0x24a   :  { %1365 = vrot.lane.b32.xlu1 %v9023_v57, %s9580_s23  ;;  %v9025_v37 = vpop.eup %9024 }
 0x24b   :  { %v1417_v32 = vmul.f32 %v9025_v37, %v1412_v6  ;;  %v9027_v43 = vpop.eup %9026  ;;  %v1405_v20 = vmul.f32 0.0, %v9025_v37 }
 0x24c   :  { %v1328_v39 = vadd.f32 1.0, %v9027_v43  ;;  %v9029_v51 = vpop.eup %9028 }
 0x24d   :  { %v9031_v6 = vpop.eup %9030  ;;  %v1329_v44 = vadd.f32 1.0, %v9029_v51 }
 0x24e   :  { %1422 = vrot.lane.b32.xlu1 %v1417_v32, %s9579_s4  ;;  %9032 = vrcp.f32 %v1328_v39  ;;  %v1388_v5 = vadd.f32 1.0, %v9031_v6  ;;  %v1291_v6 = vrot.slane %v10296_v60, 2 }
 0x24f   :  { %9034 = vrcp.f32 %v1329_v44  ;;  %v7039_v44 = vmul.f32 -1.442695, %v10316_v42  ;;  %v12690_v42 = vld [vmem:[#allocation54_spill] sm:$0xff] }
 0x250   :  { %9036 = vrcp.f32 %v1388_v5  ;;  %v1301_v5 = vadd.f32 %v1291_v6, %v10275_v24 }
 0x258   :  { %v9033_v56 = vpop.eup %9032 }
 0x259   :  { %v9035_v3 = vpop.eup %9034 }
 0x25a   :  { %v9037_v57 = vpop.eup %9036 }
 0x25b   :  { %v1406_v37 = vmul.f32 0.0, %v9037_v57 }
 0x2b7   :  { %v1364_v34 = vpop.permute.xlu0 %1363 }
 0x2b8   :  { %v10345_v61 = vmul.f32 %v9033_v56, %v1364_v34  ;;  %v7040_v56 = vmul.f32 -1.442695, %v1301_v5  ;;  %v12696_v5 = vld [vmem:[#allocation58_spill] sm:$0xff] }
 0x2ba   :  { %12688 = vst [vmem:[#allocation124_spill] sm:$0xff] %v10345_v61  ;;  %1480 = vrot.lane.b32.xlu0 %v10345_v61, %s9581_s24  ;;  %v12710_v61 = vld [vmem:[#allocation72_spill] sm:$0xff] }
 0x2bb   :  { %v1421_v4 = vpop.permute.xlu0 %1420 }
 0x2bc   :  { %v10349_v15 = vadd.f32 %v1421_v4, %v1405_v20  ;;  %v1366_v8 = vpop.permute.xlu1 %1365 }
 0x2bd   :  { %v1368_v32 = vsel %vm1367_vm4, %v1364_v34, %v1366_v8 }
 0x2be   :  { %9038 = vtanh.f32 %v10349_v15  ;;  %v10353_v22 = vmul.f32 %v9035_v3, %v1368_v32  ;;  %v12691_v32 = vld [vmem:[#allocation53_spill] sm:$0xff] }
 0x2c0   :  { %12689 = vst [vmem:[#allocation125_spill] sm:$0xff] %v10353_v22  ;;  %1482 = vrot.lane.b32.xlu1 %v10353_v22, %s9581_s24  ;;  %v1423_v23 = vpop.permute.xlu1 %1422  ;;  %v12702_v22 = vld [vmem:[#allocation62_spill] sm:$0xff] }
 0x2c1   :  { %v1424_v19 = vsel %vm818_vm3, %v1421_v4, %v1423_v23 }
 0x2c2   :  { %v10360_v43 = vadd.f32 %v1424_v19, %v1406_v37  ;;  %v12692_v19 = vld [vmem:[#allocation55_spill] sm:$0xff] }
 0x2c4   :  { %9040 = vtanh.f32 %v10360_v43 }
 0x2c5   :  { %9042 = vpow2.f32 %v7039_v44  ;;  %v12695_v44 = vld [vmem:[#allocation56_spill] sm:$0xff] }
 0x2c6   :  { %9044 = vpow2.f32 %v7040_v56  ;;  %v12697_v56 = vld [vmem:[#allocation60_spill] sm:$0xff] }
 0x2c8   :  { %v9039_v39 = vpop.eup %9038 }
 0x2c9   :  { %1433 = vrot.lane.b32.xlu0 %v9039_v39, %s9580_s23 }
 0x2ce   :  { %v9041_v51 = vpop.eup %9040 }
 0x2cf   :  { %1435 = vrot.lane.b32.xlu1 %v9041_v51, %s9580_s23  ;;  %v9043_v34 = vpop.eup %9042  ;;  %v12694_v51 = vld [vmem:[#allocation57_spill] sm:$0xff] }
 0x2d0   :  { %v1399_v20 = vadd.f32 1.0, %v9043_v34  ;;  %v9045_v4 = vpop.eup %9044 }
 0x2d1   :  { %v1400_v57 = vadd.f32 1.0, %v9045_v4 }
 0x2d2   :  { %9046 = vrcp.f32 %v1399_v20 }
 0x2d3   :  { %9048 = vrcp.f32 %v1400_v57  ;;  %v12700_v57 = vld [vmem:[#allocation61_spill] sm:$0xff] }
 0x2dc   :  { %v9047_v37 = vpop.eup %9046 }
 0x2dd   :  { %v9049_v20 = vpop.eup %9048 }
 0x32c   :  { %v1481_v3 = vpop.permute.xlu0 %1480 }
 0x332   :  { %v1483_v8 = vpop.permute.xlu1 %1482 }
 0x333   :  { %7043 = vmatprep.mubr.msk.f32.mxu0 %vm818_vm3, %v1483_v8  ;;  %7046 = vmatprep.mubr.msk.f32.mxu1 %vm818_vm3, %v1483_v8  ;;  %v1484_v60 = vsel %vm1455_vm5, %v1481_v3, %v1483_v8  ;;  %v12698_v3 = vld [vmem:[#allocation59_spill] sm:$0xff] }
 0x334   :  { %1553 = vmatmul.mubr.f32.vlgmr.msra.gmra.mrb[16].mxu0 %v1484_v60  ;;  %1624 = vmatmul.mubr.f32.vlgmr.msra.gmra.mrb[16].mxu1 %v1484_v60 }
 0x335   :  { %7598 = vmatpush1.bf16.msra.mxu0 %v9967_v29  ;;  %7048 = vmatprep.mubr.msk.f32.mxu0 %vm818_vm3, %v1483_v8 }
 0x336   :  { %7599 = vmatprep.subr.bf16.mxu0 %v12646_v11  ;;  %7626 = vmatpush1.bf16.msra.mxu1 %v9963_v31 }
 0x337   :  { %7628 = vmatprep.subr.bf16.mxu1 %v9969_v36 }
 0x339   :  { %7601 = vmatpush1.bf16.msra.mxu0 %v12690_v42 }
 0x33a   :  { %7602 = vmatprep.subr.bf16.mxu0 %v12646_v11  ;;  %7630 = vmatpush1.bf16.msra.mxu1 %v12691_v32 }
 0x33b   :  { %v1434_v23 = vpop.permute.xlu0 %1433  ;;  %7632 = vmatprep.subr.bf16.mxu1 %v12692_v19 }
 0x33c   :  { %v10380_v39 = vmul.f32 %v9047_v37, %v1434_v23  ;;  %v12707_v37 = vld [vmem:[#allocation69_spill] sm:$0xff] }
 0x33d   :  { %7604 = vmatpush1.bf16.msra.mxu0 %v12694_v51 }
 0x33e   :  { %12693 = vst [vmem:[#allocation54_spill] sm:$0xff] %v10380_v39  ;;  %7605 = vmatprep.subr.bf16.mxu0 %v12646_v11  ;;  %v1720_v6 = vrot.slane %v10380_v39, 6  ;;  %7634 = vmatpush1.bf16.msra.mxu1 %v12695_v44  ;;  %v12709_v39 = vld [vmem:[#allocation70_spill] sm:$0xff] }
 0x33f   :  { %7636 = vmatprep.subr.bf16.mxu1 %v12696_v5 }
 0x340   :  { %1722 = vrot.lane.b32.xlu0 %v1720_v6, %s9581_s24 }
 0x341   :  { %7607 = vmatpush1.bf16.msra.mxu0 %v12697_v56  ;;  %v1436_v34 = vpop.permute.xlu1 %1435 }
 0x342   :  { %v1437_v4 = vsel %vm1367_vm4, %v1434_v23, %v1436_v34  ;;  %7608 = vmatprep.subr.bf16.mxu0 %v12646_v11  ;;  %7638 = vmatpush1.bf16.msra.mxu1 %v12698_v3  ;;  %v12703_v23 = vld [vmem:[#allocation64_spill] sm:$0xff]  ;;  %v12704_v34 = vld [vmem:[#allocation66_spill] sm:$0xff] }
 0x343   :  { %v10392_v8 = vmul.f32 %v9049_v20, %v1437_v4  ;;  %7640 = vmatprep.subr.bf16.mxu1 %v12700_v57  ;;  %v12705_v20 = vld [vmem:[#allocation65_spill] sm:$0xff]  ;;  %v12706_v4 = vld [vmem:[#allocation67_spill] sm:$0xff] }
 0x345   :  { %12699 = vst [vmem:[#allocation53_spill] sm:$0xff] %v10392_v8  ;;  %7610 = vmatpush1.bf16.msra.mxu0 %v12701_v17  ;;  %v1721_v6 = vrot.slane %v10392_v8, 6  ;;  %v12708_v8 = vld [vmem:[#allocation68_spill] sm:$0xff] }
 0x346   :  { %7611 = vmatprep.subr.bf16.mxu0 %v12646_v11  ;;  %7642 = vmatpush1.bf16.msra.mxu1 %v12702_v22 }
 0x347   :  { %1724 = vrot.lane.b32.xlu1 %v1721_v6, %s9581_s24  ;;  %7644 = vmatprep.subr.bf16.mxu1 %v12703_v23  ;;  %v12711_v6 = vld [vmem:[#allocation71_spill] sm:$0xff] }
 0x348   :  { %v12713_v23 = vld [vmem:[#allocation75_spill] sm:$0xff] }
 0x349   :  { %7613 = vmatpush1.bf16.msra.mxu0 %v12704_v34  ;;  %v12712_v34 = vld [vmem:[#allocation73_spill] sm:$0xff] }
 0x34a   :  { %7614 = vmatprep.subr.bf16.mxu0 %v12646_v11  ;;  %7646 = vmatpush1.bf16.msra.mxu1 %v12705_v20  ;;  %v12724_v20 = vld [vmem:[#allocation88_spill] sm:$0xff] }
 0x34b   :  { %7648 = vmatprep.subr.bf16.mxu1 %v12706_v4  ;;  %v12714_v4 = vld [vmem:[#allocation74_spill] sm:$0xff] }
 0x34d   :  { %7616 = vmatpush1.bf16.msra.mxu0 %v12707_v37  ;;  %v12715_v37 = vld [vmem:[#allocation76_spill] sm:$0xff] }
 0x34e   :  { %7617 = vmatprep.subr.bf16.mxu0 %v12646_v11  ;;  %7650 = vmatpush1.bf16.msra.mxu1 %v12708_v8  ;;  %v12716_v8 = vld [vmem:[#allocation78_spill] sm:$0xff] }
 0x34f   :  { %7652 = vmatprep.subr.bf16.mxu1 %v12709_v39  ;;  %v12718_v39 = vld [vmem:[#allocation80_spill] sm:$0xff] }
 0x351   :  { %7619 = vmatpush1.bf16.msra.mxu0 %v12710_v61  ;;  %v12717_v61 = vld [vmem:[#allocation79_spill] sm:$0xff] }
 0x352   :  { %7620 = vmatprep.subr.bf16.mxu0 %v12646_v11  ;;  %7654 = vmatpush1.bf16.msra.mxu1 %v12711_v6  ;;  %v12719_v6 = vld [vmem:[#allocation77_spill] sm:$0xff] }
 0x353   :  { %7656 = vmatprep.subr.bf16.mxu1 %v12712_v34  ;;  %v12720_v34 = vld [vmem:[#allocation82_spill] sm:$0xff] }
 0x355   :  { %7622 = vmatpush1.bf16.msra.mxu0 %v12713_v23  ;;  %v12721_v23 = vld [vmem:[#allocation83_spill] sm:$0xff] }
 0x356   :  { %1666 = vmatprep.subr.mxu0 %v12640_v45  ;;  %7658 = vmatpush1.bf16.msra.mxu1 %v12714_v4  ;;  %v12722_v4 = vld [vmem:[#allocation85_spill] sm:$0xff] }
 0x357   :  { %7049 = vmatprep.subr.msk.mxu1 %vm822_vm1, %v12715_v37  ;;  %v12723_v37 = vld [vmem:[#allocation86_spill] sm:$0xff] }
 0x359   :  { %7047 = vmatpush1.msk.msra.mxu0 %vm822_vm1, %v12716_v8  ;;  %v12726_v8 = vld [vmem:[#allocation91_spill] sm:$0xff] }
 0x35a   :  { %1695 = vmatmul.mubr.f32.vlgmr.msra.gmra.mrb[18].mxu0 %v1484_v60  ;;  %7660 = vmatprep.subr.bf16.mxu0 %v12717_v61  ;;  %v12725_v60 = vld [vmem:[#allocation89_spill] sm:$0xff]  ;;  %v12728_v61 = vld [vmem:[#allocation94_spill] sm:$0xff] }
 0x35b   :  { %7662 = vmatpush1.bf16.msra.mxu0 %v12718_v39  ;;  %7050 = vmatpush1.msk.msra.mxu1 %vm822_vm1, %v12719_v6  ;;  %v12727_v39 = vld [vmem:[#allocation92_spill] sm:$0xff]  ;;  %v12729_v6 = vld [vmem:[#allocation97_spill] sm:$0xff] }
 0x35c   :  { %7664 = vmatprep.subr.bf16.mxu0 %v12720_v34  ;;  %7695 = vmatprep.subr.bf16.mxu1 %v12646_v11 }
 0x35f   :  { %7666 = vmatpush1.bf16.msra.mxu0 %v12721_v23 }
 0x360   :  { %7668 = vmatprep.subr.bf16.mxu0 %v12722_v4 }
 0x363   :  { %7670 = vmatpush1.bf16.msra.mxu0 %v12723_v37 }
 0x364   :  { %7672 = vmatprep.subr.bf16.mxu0 %v12724_v20 }
 0x367   :  { %7674 = vmatpush1.bf16.msra.mxu0 %v12725_v60 }
 0x368   :  { %7676 = vmatprep.subr.bf16.mxu0 %v12726_v8 }
 0x36b   :  { %7678 = vmatpush1.bf16.msra.mxu0 %v12727_v39 }
 0x36c   :  { %7680 = vmatprep.subr.bf16.mxu0 %v12728_v61 }
 0x36f   :  { %7682 = vmatpush1.bf16.msra.mxu0 %v10127_v9 }
 0x370   :  { %7684 = vmatprep.subr.bf16.mxu0 %v12729_v6 }
 0x373   :  { %7686 = vmatpush1.bf16.msra.mxu0 %v10137_v46 }
 0x374   :  { %7688 = vmatprep.subr.bf16.mxu0 %v10143_v47 }
 0x377   :  { %7690 = vmatpush1.bf16.msra.mxu0 %v10147_v55 }
 0x378   :  { %7692 = vmatprep.subr.bf16.mxu0 %v10153_v59  ;;  %v12730_v59 = vld [vmem:[#allocation81_spill] sm:$0xff] }
 0x37b   :  { %7694 = vmatpush1.bf16.msra.mxu0 %v10157_v48 }
 0x37c   :  { %7052 = vmatprep.subr.msk.mxu0 %vm822_vm1, %v10164_v41  ;;  %v12731_v41 = vld [vmem:[#allocation84_spill] sm:$0xff] }
 0x37f   :  { %7053 = vmatpush1.msk.msra.mxu0 %vm822_vm1, %v10170_v12  ;;  %v12733_v12 = vld [vmem:[#allocation90_spill] sm:$0xff] }
 0x380   :  { %7723 = vmatprep.subr.bf16.mxu0 %v9827_v7 }
 0x3b2   :  { %v1723_v9 = vpop.permute.xlu0 %1722 }
 0x3b9   :  { %v1725_v6 = vpop.permute.xlu1 %1724 }
 0x3ba   :  { %7051 = vmatprep.mubr.msk.f32.mxu1 %vm818_vm3, %v1725_v6  ;;  %7054 = vmatprep.mubr.msk.f32.mxu0 %vm818_vm3, %v1725_v6  ;;  %v1726_v55 = vsel %vm1455_vm5, %v1723_v9, %v1725_v6  ;;  %v12732_v9 = vld [vmem:[#allocation87_spill] sm:$0xff] }
 0x3bb   :  { %1795 = vmatmul.mubr.f32.vlgmr.msra.gmra.mrb[18].mxu1 %v1726_v55  ;;  %1866 = vmatmul.mubr.f32.vlgmr.msra.gmra.mrb[20].mxu0 %v1726_v55 }
 0x3bc   :  { %7697 = vmatpush1.bf16.msra.mxu1 %v12730_v59  ;;  %7056 = vmatprep.mubr.msk.f32.mxu1 %vm818_vm3, %v1725_v6  ;;  %v12734_v6 = vld [vmem:[#allocation93_spill] sm:$0xff] }
 0x3bd   :  { %7698 = vmatprep.subr.bf16.mxu1 %v12646_v11  ;;  %7725 = vmatpush1.bf16.msra.mxu0 %v9834_v14 }
 0x3be   :  { %7727 = vmatprep.subr.bf16.mxu0 %v9840_v16 }
 0x3c0   :  { %7700 = vmatpush1.bf16.msra.mxu1 %v12731_v41 }
 0x3c1   :  { %7701 = vmatprep.subr.bf16.mxu1 %v12646_v11  ;;  %7729 = vmatpush1.bf16.msra.mxu0 %v9851_v26 }
 0x3c2   :  { %7731 = vmatprep.subr.bf16.mxu0 %v9857_v28 }
 0x3c4   :  { %7703 = vmatpush1.bf16.msra.mxu1 %v12732_v9  ;;  %v12735_v9 = vld [vmem:[#allocation96_spill] sm:$0xff] }
 0x3c5   :  { %7704 = vmatprep.subr.bf16.mxu1 %v12646_v11  ;;  %7733 = vmatpush1.bf16.msra.mxu0 %v9867_v38 }
 0x3c6   :  { %7735 = vmatprep.subr.bf16.mxu0 %v9874_v40 }
 0x3c8   :  { %7706 = vmatpush1.bf16.msra.mxu1 %v12733_v12 }
 0x3c9   :  { %7707 = vmatprep.subr.bf16.mxu1 %v12646_v11  ;;  %7737 = vmatpush1.bf16.msra.mxu0 %v9880_v50 }
 0x3ca   :  { %7739 = vmatprep.subr.bf16.mxu0 %v9886_v52 }
 0x3cc   :  { %7709 = vmatpush1.bf16.msra.mxu1 %v12734_v6 }
 0x3cd   :  { %7710 = vmatprep.subr.bf16.mxu1 %v12646_v11  ;;  %7741 = vmatpush1.bf16.msra.mxu0 %v9892_v62  ;;  %v12763_v62 = vld [vmem:[#allocation119_spill] sm:$0xff] }
 0x3ce   :  { %7743 = vmatprep.subr.bf16.mxu0 %v9898_v1  ;;  %v12754_v1 = vld [vmem:[#allocation43_spill] sm:$0xff] }
 0x3d0   :  { %7712 = vmatpush1.bf16.msra.mxu1 %v12735_v9  ;;  %v12736_v9 = vld [vmem:[#allocation105_spill] sm:$0xff] }
 0x3d1   :  { %7713 = vmatprep.subr.bf16.mxu1 %v12646_v11  ;;  %7745 = vmatpush1.bf16.msra.mxu0 %v9904_v13  ;;  %v12751_v13 = vld [vmem:[#allocation37_spill] sm:$0xff] }
 0x3d2   :  { %7747 = vmatprep.subr.bf16.mxu0 %v9910_v18  ;;  %v12737_v18 = vld [vmem:[#allocation50_spill] sm:$0xff] }
 0x3d4   :  { %7715 = vmatpush1.bf16.msra.mxu1 %v10141_v0  ;;  %v10487_v0 = vld [vmem:[#allocation4 + $0x2d8] sm:$0x3f] }
 0x3d5   :  { %7716 = vmatprep.subr.bf16.mxu1 %v12646_v11  ;;  %7749 = vmatpush1.bf16.msra.mxu0 %v9916_v33  ;;  %12738 = vst [vmem:[#allocation55_spill] sm:$0xff] %v10487_v0  ;;  %v12746_v33 = vld [vmem:[#allocation27_spill] sm:$0xff] }
 0x3d6   :  { %7751 = vmatprep.subr.bf16.mxu0 %v9922_v35  ;;  %v12739_v35 = vld [vmem:[#allocation106_spill] sm:$0xff] }
 0x3d8   :  { %7718 = vmatpush1.bf16.msra.mxu1 %v10151_v10  ;;  %v12740_v10 = vld [vmem:[#allocation17_spill] sm:$0xff] }
 0x3d9   :  { %7719 = vmatprep.subr.bf16.mxu1 %v12646_v11  ;;  %7753 = vmatpush1.bf16.msra.mxu0 %v9928_v49  ;;  %v12741_v49 = vld [vmem:[#allocation19_spill] sm:$0xff] }
 0x3da   :  { %7755 = vmatprep.subr.bf16.mxu0 %v9934_v54  ;;  %v10495_v54 = vld [vmem:[#allocation4 + $0x2d0] sm:$0x3f] }
 0x3db   :  { %12742 = vst [vmem:[#allocation57_spill] sm:$0xff] %v10495_v54 }
 0x3dc   :  { %7721 = vmatpush1.bf16.msra.mxu1 %v12736_v9  ;;  %v12743_v9 = vld [vmem:[#allocation21_spill] sm:$0xff] }
 0x3dd   :  { %1908 = vmatprep.subr.mxu1 %v12640_v45  ;;  %7757 = vmatpush1.bf16.msra.mxu0 %v12737_v18  ;;  %v12744_v18 = vld [vmem:[#allocation23_spill] sm:$0xff] }
 0x3de   :  { %7067 = vmatprep.subr.msk.mxu0 %vm822_vm1, %v10487_v0  ;;  %v12745_v0 = vld [vmem:[#allocation25_spill] sm:$0xff] }
 0x3e0   :  { %7055 = vmatpush1.msk.msra.mxu1 %vm822_vm1, %v12739_v35  ;;  %v12747_v35 = vld [vmem:[#allocation29_spill] sm:$0xff] }
 0x3e1   :  { %1937 = vmatmul.mubr.f32.vlgmr.msra.gmra.mrb[20].mxu1 %v1726_v55  ;;  %7759 = vmatprep.subr.bf16.mxu1 %v12740_v10  ;;  %v12748_v55 = vld [vmem:[#allocation31_spill] sm:$0xff] }
 0x3e2   :  { %7761 = vmatpush1.bf16.msra.mxu1 %v12741_v49  ;;  %7068 = vmatpush1.msk.msra.mxu0 %vm822_vm1, %v10495_v54  ;;  %v12749_v49 = vld [vmem:[#allocation33_spill] sm:$0xff]  ;;  %v12750_v10 = vld [vmem:[#allocation35_spill] sm:$0xff] }
 0x3e3   :  { %7763 = vmatprep.subr.bf16.mxu1 %v12743_v9  ;;  %7794 = vmatprep.subr.bf16.mxu0 %v12646_v11  ;;  %v12752_v54 = vld [vmem:[#allocation39_spill] sm:$0xff]  ;;  %v12753_v9 = vld [vmem:[#allocation41_spill] sm:$0xff] }
 0x3e6   :  { %7765 = vmatpush1.bf16.msra.mxu1 %v12744_v18  ;;  %v12755_v18 = vld [vmem:[#allocation45_spill] sm:$0xff] }
 0x3e7   :  { %7767 = vmatprep.subr.bf16.mxu1 %v12745_v0  ;;  %v12756_v0 = vld [vmem:[#allocation47_spill] sm:$0xff] }
 0x3ea   :  { %7769 = vmatpush1.bf16.msra.mxu1 %v12746_v33  ;;  %v12757_v33 = vld [vmem:[#allocation49_spill] sm:$0xff] }
 0x3eb   :  { %7771 = vmatprep.subr.bf16.mxu1 %v12747_v35  ;;  %v12758_v35 = vld [vmem:[#allocation51_spill] sm:$0xff] }
 0x3ee   :  { %7773 = vmatpush1.bf16.msra.mxu1 %v12748_v55  ;;  %v10516_v55 = vld [vmem:[#allocation4 + $0x2e8] sm:$0x3f] }
 0x3ef   :  { %7775 = vmatprep.subr.bf16.mxu1 %v12749_v49  ;;  %12759 = vst [vmem:[#allocation56_spill] sm:$0xff] %v10516_v55  ;;  %v12762_v49 = vld [vmem:[#allocation118_spill] sm:$0xff] }
 0x3f2   :  { %7777 = vmatpush1.bf16.msra.mxu1 %v12750_v10 }
 0x3f3   :  { %7779 = vmatprep.subr.bf16.mxu1 %v12751_v13  ;;  %v10520_v13 = vld [vmem:[#allocation4 + $0x2e0] sm:$0x3f] }
 0x3f4   :  { %12760 = vst [vmem:[#allocation58_spill] sm:$0xff] %v10520_v13 }
 0x3f6   :  { %7781 = vmatpush1.bf16.msra.mxu1 %v12752_v54  ;;  %v12761_v54 = vld [vmem:[#allocation52_spill] sm:$0xff] }
 0x3f7   :  { %7783 = vmatprep.subr.bf16.mxu1 %v12753_v9 }
 0x3fa   :  { %7785 = vmatpush1.bf16.msra.mxu1 %v12754_v1 }
 0x3fb   :  { %7787 = vmatprep.subr.bf16.mxu1 %v12755_v18 }
 0x3fe   :  { %7789 = vmatpush1.bf16.msra.mxu1 %v12756_v0 }
 0x3ff   :  { %7791 = vmatprep.subr.bf16.mxu1 %v12757_v33 }
 0x402   :  { %7793 = vmatpush1.bf16.msra.mxu1 %v12758_v35 }
 0x403   :  { %7070 = vmatprep.subr.msk.mxu1 %vm822_vm1, %v10516_v55 }
 0x406   :  { %7071 = vmatpush1.msk.msra.mxu1 %vm822_vm1, %v10520_v13 }
 0x407   :  { %v1554_v9 = vpop.f32.mrb[16].mxu0  ;;  %v1625_v1 = vpop.f32.mrb[16].mxu1  ;;  %7822 = vmatprep.subr.bf16.mxu1 %v12761_v54 }
 0x408   :  { %v1707_v18 = vrot.slane %v1625_v1, 6  ;;  %v1556_v0 = vpop.f32.mrb[17].mxu0  ;;  %v1627_v10 = vpop.f32.mrb[17].mxu1  ;;  %v1705_v50 = vrot.slane %v1554_v9, 6 }
 0x409   :  { %v1708_v33 = vrot.slane %v1627_v10, 6  ;;  %v1997_v10 = vrot.slane %v10329_v2, 6 }
 0x40a   :  { %v1717_v35 = vadd.f32 %v1707_v18, %v12762_v49  ;;  %v1715_v12 = vadd.f32 %v1705_v50, %v10305_v53 }
 0x40b   :  { %v10527_v6 = vadd.f32 %v1708_v33, %v12763_v62  ;;  %v1706_v62 = vrot.slane %v1556_v0, 6 }
 0x40c   :  { %v7059_v52 = vmul.f32 -1.442695, %v1717_v35  ;;  %9050 = vtanh.f32 %v1717_v35  ;;  %v7057_v40 = vmul.f32 -1.442695, %v1715_v12 }
 0x40d   :  { %9052 = vtanh.f32 %v10527_v6 }
 0x40e   :  { %9054 = vpow2.f32 %v7059_v52  ;;  %v1716_v52 = vadd.f32 %v1706_v62, %v10309_v25 }
 0x416   :  { %v9051_v55 = vpop.eup %9050 }
 0x417   :  { %v9053_v13 = vpop.eup %9052  ;;  %2004 = vrot.lane.b32.xlu0 %v9051_v55, %s9578_s2  ;;  %v7058_v55 = vmul.f32 -1.442695, %v1716_v52 }
 0x418   :  { %2006 = vrot.lane.b32.xlu1 %v9053_v13, %s9578_s2  ;;  %v9055_v1 = vpop.eup %9054 }
 0x419   :  { %v1977_v54 = vadd.f32 1.0, %v9055_v1 }
 0x41b   :  { %9056 = vrcp.f32 %v1977_v54 }
 0x41c   :  { %9058 = vpow2.f32 %v7058_v55 }
 0x41d   :  { %9060 = vpow2.f32 %v7057_v40 }
 0x425   :  { %v9057_v18 = vpop.eup %9056 }
 0x426   :  { %v10533_v49 = vmul.f32 %v9057_v18, %v1997_v10  ;;  %v9059_v13 = vpop.eup %9058 }
 0x427   :  { %v9061_v54 = vpop.eup %9060  ;;  %v1969_v1 = vadd.f32 1.0, %v9059_v13 }
 0x428   :  { %v1968_v2 = vadd.f32 1.0, %v9061_v54  ;;  %v12764_v54 = vld [vmem:[#allocation120_spill] sm:$0xff] }
 0x429   :  { %9062 = vrcp.f32 %v1969_v1 }
 0x42a   :  { %9064 = vrcp.f32 %v1968_v2 }
 0x42d   :  { %v10535_v33 = vpop.f32.mrb[18].mxu0 }
 0x42e   :  { %v1698_v35 = vpop.f32.mrb[19].mxu0 }
 0x433   :  { %v9063_v18 = vpop.eup %9062 }
 0x434   :  { %v9065_v35 = vpop.eup %9064 }
 0x489   :  { %v2005_v10 = vpop.permute.xlu0 %2004 }
 0x48a   :  { %v2007_v38 = vpop.permute.xlu1 %2006 }
 0x48b   :  { %v2008_v0 = vsel %vm1342_vm2, %v2005_v10, %v2007_v38  ;;  %v2012_v9 = vmul.f32 %v9063_v18, %v2007_v38 }
 0x48c   :  { %v2011_v62 = vmul.f32 %v9065_v35, %v2008_v0 }
 0x48d   :  { %2017 = vrot.lane.b32.xlu1 %v2012_v9, %s9579_s4  ;;  %v2072_v9 = vrot.slane %v10360_v43, 2 }
 0x48e   :  { %v1796_v50 = vpop.f32.mrb[18].mxu1  ;;  %v1867_v12 = vpop.f32.mrb[20].mxu0  ;;  %2015 = vrot.lane.b32.xlu0 %v2011_v62, %s9579_s4 }
 0x48f   :  { %v1949_v40 = vrot.slane %v1867_v12, 4  ;;  %v1798_v52 = vpop.f32.mrb[19].mxu1  ;;  %v1869_v55 = vpop.f32.mrb[21].mxu0 }
 0x490   :  { %v1950_v13 = vrot.slane %v1869_v55, 4 }
 0x491   :  { %v1959_v1 = vadd.f32 %v1949_v40, %v12764_v54 }
 0x492   :  { %v10544_v2 = vadd.f32 %v1950_v13, %v10313_v58  ;;  %v1948_v13 = vrot.slane %v1798_v52, 4 }
 0x493   :  { %v7064_v53 = vmul.f32 -1.442695, %v1959_v1  ;;  %9066 = vtanh.f32 %v1959_v1  ;;  %v1947_v1 = vrot.slane %v1796_v50, 4 }
 0x494   :  { %9068 = vtanh.f32 %v10544_v2 }
 0x495   :  { %9070 = vpow2.f32 %v7064_v53  ;;  %v1958_v53 = vadd.f32 %v1948_v13, %v10271_v30  ;;  %v1957_v58 = vadd.f32 %v1947_v1, %v10269_v21 }
 0x497   :  { %v7062_v54 = vmul.f32 -1.442695, %v1957_v58 }
 0x49d   :  { %v9067_v38 = vpop.eup %9066 }
 0x49e   :  { %v9069_v10 = vpop.eup %9068  ;;  %2079 = vrot.lane.b32.xlu0 %v9067_v38, %s9578_s2  ;;  %v7063_v38 = vmul.f32 -1.442695, %v1958_v53 }
 0x49f   :  { %2081 = vrot.lane.b32.xlu1 %v9069_v10, %s9578_s2  ;;  %v9071_v35 = vpop.eup %9070  ;;  %v1996_v10 = vrot.slane %v10325_v27, 6 }
 0x4a0   :  { %v2052_v0 = vadd.f32 1.0, %v9071_v35 }
 0x4a1   :  { %v2000_v43 = vmul.f32 %v9063_v18, %v1996_v10  ;;  %v1709_v10 = vrot.slane %v10535_v33, 6 }
 0x4a2   :  { %9072 = vrcp.f32 %v2052_v0 }
 0x4a3   :  { %9074 = vpow2.f32 %v7063_v38 }
 0x4a4   :  { %9076 = vpow2.f32 %v7062_v54 }
 0x4ac   :  { %v9073_v62 = vpop.eup %9072 }
 0x4ad   :  { %v10550_v12 = vmul.f32 %v9073_v62, %v2072_v9  ;;  %v9075_v0 = vpop.eup %9074 }
 0x4ae   :  { %v9077_v62 = vpop.eup %9076  ;;  %v2044_v52 = vadd.f32 1.0, %v9075_v0 }
 0x4af   :  { %v2043_v58 = vadd.f32 1.0, %v9077_v62 }
 0x4b4   :  { %v10552_v40 = vpop.f32.mrb[20].mxu1 }
 0x4b5   :  { %v1940_v55 = vpop.f32.mrb[21].mxu1 }
 0x4ff   :  { %v2018_v35 = vpop.permute.xlu1 %2017 }
 0x500   :  { %v2016_v9 = vpop.permute.xlu0 %2015 }
 0x501   :  { %v2019_v25 = vsel %vm818_vm3, %v2016_v9, %v2018_v35  ;;  %v10558_v55 = vadd.f32 %v2016_v9, %v2000_v43  ;;  %v1719_v35 = vadd.f32 %v1709_v10, %v10339_v63  ;;  %v7060_v43 = vmul.f32 -1.442695, %v10527_v6 }
 0x502   :  { %v10561_v50 = vadd.f32 %v2019_v25, %v10533_v49 }
 0x503   :  { %9078 = vtanh.f32 %v10558_v55  ;;  %v7061_v0 = vmul.f32 -1.442695, %v1719_v35 }
 0x504   :  { %9080 = vtanh.f32 %v10561_v50 }
 0x505   :  { %9082 = vrcp.f32 %v2044_v52 }
 0x506   :  { %9084 = vrcp.f32 %v2043_v58 }
 0x507   :  { %9086 = vpow2.f32 %v7060_v43 }
 0x508   :  { %9088 = vpow2.f32 %v7061_v0 }
 0x50d   :  { %v9079_v27 = vpop.eup %9078 }
 0x50e   :  { %v9081_v18 = vpop.eup %9080  ;;  %2028 = vrot.lane.b32.xlu0 %v9079_v27, %s9580_s23 }
 0x50f   :  { %2030 = vrot.lane.b32.xlu1 %v9081_v18, %s9580_s23  ;;  %v9083_v13 = vpop.eup %9082 }
 0x510   :  { %v2080_v54 = vpop.permute.xlu0 %2079  ;;  %v9085_v53 = vpop.eup %9084 }
 0x511   :  { %v2082_v1 = vpop.permute.xlu1 %2081  ;;  %v9087_v9 = vpop.eup %9086 }
 0x512   :  { %v2083_v49 = vsel %vm1342_vm2, %v2080_v54, %v2082_v1  ;;  %v2087_v25 = vmul.f32 %v9083_v13, %v2082_v1  ;;  %v9089_v62 = vpop.eup %9088  ;;  %v1988_v52 = vadd.f32 1.0, %v9087_v9 }
 0x513   :  { %v2086_v38 = vmul.f32 %v9085_v53, %v2083_v49  ;;  %v1989_v58 = vadd.f32 1.0, %v9089_v62 }
 0x514   :  { %2092 = vrot.lane.b32.xlu1 %v2087_v25, %s9579_s4  ;;  %9090 = vrcp.f32 %v1988_v52  ;;  %v2071_v25 = vrot.slane %v10349_v15, 2 }
 0x515   :  { %2090 = vrot.lane.b32.xlu0 %v2086_v38, %s9579_s4  ;;  %9092 = vrcp.f32 %v1989_v58  ;;  %v12782_v38 = vld [vmem:[#allocation80_spill] sm:$0xff] }
 0x516   :  { %v2075_v43 = vmul.f32 %v9083_v13, %v2071_v25  ;;  %v1951_v13 = vrot.slane %v10552_v40, 4 }
 0x51e   :  { %v9091_v27 = vpop.eup %9090 }
 0x51f   :  { %v9093_v53 = vpop.eup %9092 }
 0x580   :  { %v2029_v18 = vpop.permute.xlu0 %2028 }
 0x581   :  { %v10573_v54 = vmul.f32 %v9091_v27, %v2029_v18  ;;  %v2031_v1 = vpop.permute.xlu1 %2030  ;;  %v1961_v27 = vadd.f32 %v1951_v13, %v10275_v24 }
 0x582   :  { %v2032_v33 = vsel %vm1367_vm4, %v2029_v18, %v2031_v1  ;;  %v7065_v18 = vmul.f32 -1.442695, %v10544_v2 }
 0x583   :  { %12765 = vst [vmem:[#allocation60_spill] sm:$0xff] %v10573_v54  ;;  %v10576_v49 = vmul.f32 %v9093_v53, %v2032_v33  ;;  %v2147_v6 = vrot.slane %v10573_v54, 2  ;;  %v7066_v1 = vmul.f32 -1.442695, %v1961_v27  ;;  %v12781_v27 = vld [vmem:[#allocation79_spill] sm:$0xff] }
 0x584   :  { %v12786_v54 = vld [vmem:[#allocation103_spill] sm:$0xff] }
 0x585   :  { %12766 = vst [vmem:[#allocation59_spill] sm:$0xff] %v10576_v49  ;;  %2149 = vrot.lane.b32.xlu0 %v2147_v6, %s9581_s24  ;;  %v2148_v10 = vrot.slane %v10576_v49, 2  ;;  %v12785_v49 = vld [vmem:[#allocation101_spill] sm:$0xff] }
 0x586   :  { %v2093_v35 = vpop.permute.xlu1 %2092 }
 0x587   :  { %2151 = vrot.lane.b32.xlu1 %v2148_v10, %s9581_s24  ;;  %v2091_v0 = vpop.permute.xlu0 %2090 }
 0x588   :  { %v2094_v9 = vsel %vm818_vm3, %v2091_v0, %v2093_v35  ;;  %v10586_v62 = vadd.f32 %v2091_v0, %v2075_v43 }
 0x589   :  { %v10589_v52 = vadd.f32 %v2094_v9, %v10550_v12 }
 0x58a   :  { %9094 = vtanh.f32 %v10586_v62 }
 0x58b   :  { %9096 = vtanh.f32 %v10589_v52 }
 0x58c   :  { %9098 = vpow2.f32 %v7065_v18 }
 0x58d   :  { %9100 = vpow2.f32 %v7066_v1  ;;  %v12769_v1 = vld [vmem:[#allocation64_spill] sm:$0xff] }
 0x594   :  { %v9095_v15 = vpop.eup %9094 }
 0x595   :  { %v9097_v58 = vpop.eup %9096  ;;  %2103 = vrot.lane.b32.xlu0 %v9095_v15, %s9580_s23 }
 0x596   :  { %2105 = vrot.lane.b32.xlu1 %v9097_v58, %s9580_s23  ;;  %v9099_v12 = vpop.eup %9098 }
 0x597   :  { %v9101_v53 = vpop.eup %9100  ;;  %v2063_v33 = vadd.f32 1.0, %v9099_v12  ;;  %v12770_v12 = vld [vmem:[#allocation66_spill] sm:$0xff] }
 0x598   :  { %v2064_v35 = vadd.f32 1.0, %v9101_v53  ;;  %v12771_v53 = vld [vmem:[#allocation65_spill] sm:$0xff] }
 0x599   :  { %9102 = vrcp.f32 %v2063_v33  ;;  %v12772_v33 = vld [vmem:[#allocation67_spill] sm:$0xff] }
 0x59a   :  { %9104 = vrcp.f32 %v2064_v35  ;;  %v12775_v35 = vld [vmem:[#allocation70_spill] sm:$0xff] }
 0x5a3   :  { %v9103_v2 = vpop.eup %9102 }
 0x5a4   :  { %v9105_v9 = vpop.eup %9104 }
 0x5f7   :  { %v2150_v6 = vpop.permute.xlu0 %2149 }
 0x5f9   :  { %v2152_v25 = vpop.permute.xlu1 %2151 }
 0x5fa   :  { %7069 = vmatprep.mubr.msk.f32.mxu0 %vm818_vm3, %v2152_v25  ;;  %7072 = vmatprep.mubr.msk.f32.mxu1 %vm818_vm3, %v2152_v25  ;;  %v2153_v10 = vsel %vm1455_vm5, %v2150_v6, %v2152_v25  ;;  %v12773_v6 = vld [vmem:[#allocation69_spill] sm:$0xff] }
 0x5fb   :  { %2222 = vmatmul.mubr.f32.vlgmr.msra.gmra.mrb[22].mxu0 %v2153_v10  ;;  %2293 = vmatmul.mubr.f32.vlgmr.msra.gmra.mrb[22].mxu1 %v2153_v10 }
 0x5fc   :  { %7796 = vmatpush1.bf16.msra.mxu0 %v9967_v29  ;;  %7074 = vmatprep.mubr.msk.f32.mxu0 %vm818_vm3, %v2152_v25  ;;  %v12774_v25 = vld [vmem:[#allocation68_spill] sm:$0xff] }
 0x5fd   :  { %7797 = vmatprep.subr.bf16.mxu0 %v12646_v11  ;;  %7824 = vmatpush1.bf16.msra.mxu1 %v9963_v31 }
 0x5fe   :  { %7826 = vmatprep.subr.bf16.mxu1 %v9969_v36 }
 0x600   :  { %7799 = vmatpush1.bf16.msra.mxu0 %v12690_v42 }
 0x601   :  { %7800 = vmatprep.subr.bf16.mxu0 %v12646_v11  ;;  %7828 = vmatpush1.bf16.msra.mxu1 %v12691_v32 }
 0x602   :  { %7830 = vmatprep.subr.bf16.mxu1 %v12692_v19 }
 0x604   :  { %7802 = vmatpush1.bf16.msra.mxu0 %v12694_v51 }
 0x605   :  { %7803 = vmatprep.subr.bf16.mxu0 %v12646_v11  ;;  %7832 = vmatpush1.bf16.msra.mxu1 %v12695_v44 }
 0x606   :  { %7834 = vmatprep.subr.bf16.mxu1 %v12696_v5 }
 0x607   :  { %v2104_v40 = vpop.permute.xlu0 %2103 }
 0x608   :  { %7805 = vmatpush1.bf16.msra.mxu0 %v12697_v56  ;;  %v10615_v43 = vmul.f32 %v9103_v2, %v2104_v40  ;;  %v2106_v0 = vpop.permute.xlu1 %2105  ;;  %v12776_v2 = vld [vmem:[#allocation72_spill] sm:$0xff] }
 0x609   :  { %v2107_v15 = vsel %vm1367_vm4, %v2104_v40, %v2106_v0  ;;  %7806 = vmatprep.subr.bf16.mxu0 %v12646_v11  ;;  %7836 = vmatpush1.bf16.msra.mxu1 %v12698_v3  ;;  %v12777_v40 = vld [vmem:[#allocation71_spill] sm:$0xff]  ;;  %v12778_v0 = vld [vmem:[#allocation73_spill] sm:$0xff] }
 0x60a   :  { %12767 = vst [vmem:[#allocation61_spill] sm:$0xff] %v10615_v43  ;;  %v10620_v58 = vmul.f32 %v9105_v9, %v2107_v15  ;;  %v2389_v13 = vrot.slane %v10615_v43, 4  ;;  %7838 = vmatprep.subr.bf16.mxu1 %v12700_v57  ;;  %v12779_v9 = vld [vmem:[#allocation75_spill] sm:$0xff]  ;;  %v12780_v15 = vld [vmem:[#allocation74_spill] sm:$0xff]  ;;  %v12784_v43 = vld [vmem:[#allocation97_spill] sm:$0xff] }
 0x60c   :  { %12768 = vst [vmem:[#allocation63_spill] sm:$0xff] %v10620_v58  ;;  %7808 = vmatpush1.bf16.msra.mxu0 %v12701_v17  ;;  %2391 = vrot.lane.b32.xlu0 %v2389_v13, %s9581_s24  ;;  %v2390_v18 = vrot.slane %v10620_v58, 4  ;;  %v10648_v13 = vld [vmem:[#allocation7 + $0x2d8] sm:$0x3f]  ;;  %v10658_v58 = vld [vmem:[#allocation7 + $0x2d0] sm:$0x3f] }
 0x60d   :  { %7809 = vmatprep.subr.bf16.mxu0 %v12646_v11  ;;  %7840 = vmatpush1.bf16.msra.mxu1 %v12702_v22 }
 0x60e   :  { %2393 = vrot.lane.b32.xlu1 %v2390_v18, %s9581_s24  ;;  %7842 = vmatprep.subr.bf16.mxu1 %v12769_v1  ;;  %v10652_v18 = vld [vmem:[#allocation4 + $0x2f0] sm:$0x3f] }
 0x610   :  { %7811 = vmatpush1.bf16.msra.mxu0 %v12770_v12 }
 0x611   :  { %7812 = vmatprep.subr.bf16.mxu0 %v12646_v11  ;;  %7844 = vmatpush1.bf16.msra.mxu1 %v12771_v53 }
 0x612   :  { %7846 = vmatprep.subr.bf16.mxu1 %v12772_v33 }
 0x614   :  { %7814 = vmatpush1.bf16.msra.mxu0 %v12773_v6 }
 0x615   :  { %7815 = vmatprep.subr.bf16.mxu0 %v12646_v11  ;;  %7848 = vmatpush1.bf16.msra.mxu1 %v12774_v25 }
 0x616   :  { %7850 = vmatprep.subr.bf16.mxu1 %v12775_v35 }
 0x618   :  { %7817 = vmatpush1.bf16.msra.mxu0 %v12776_v2 }
 0x619   :  { %7818 = vmatprep.subr.bf16.mxu0 %v12646_v11  ;;  %7852 = vmatpush1.bf16.msra.mxu1 %v12777_v40 }
 0x61a   :  { %7854 = vmatprep.subr.bf16.mxu1 %v12778_v0 }
 0x61c   :  { %7820 = vmatpush1.bf16.msra.mxu0 %v12779_v9 }
 0x61d   :  { %2335 = vmatprep.subr.mxu0 %v12640_v45  ;;  %7856 = vmatpush1.bf16.msra.mxu1 %v12780_v15 }
 0x61e   :  { %7075 = vmatprep.subr.msk.mxu1 %vm822_vm1, %v10648_v13 }
 0x620   :  { %7073 = vmatpush1.msk.msra.mxu0 %vm822_vm1, %v10652_v18 }
 0x621   :  { %2364 = vmatmul.mubr.f32.vlgmr.msra.gmra.mrb[24].mxu0 %v2153_v10  ;;  %7858 = vmatprep.subr.bf16.mxu0 %v12781_v27  ;;  %v12783_v10 = vld [vmem:[#allocation95_spill] sm:$0xff] }
 0x622   :  { %7860 = vmatpush1.bf16.msra.mxu0 %v12782_v38  ;;  %7076 = vmatpush1.msk.msra.mxu1 %vm822_vm1, %v10658_v58 }
 0x623   :  { %7862 = vmatprep.subr.bf16.mxu0 %v12720_v34  ;;  %7893 = vmatprep.subr.bf16.mxu1 %v12646_v11 }
 0x626   :  { %7864 = vmatpush1.bf16.msra.mxu0 %v12721_v23 }
 0x627   :  { %7866 = vmatprep.subr.bf16.mxu0 %v12722_v4 }
 0x62a   :  { %7868 = vmatpush1.bf16.msra.mxu0 %v12723_v37 }
 0x62b   :  { %7870 = vmatprep.subr.bf16.mxu0 %v12724_v20 }
 0x62e   :  { %7872 = vmatpush1.bf16.msra.mxu0 %v12725_v60  ;;  %v10679_v60 = vld [vmem:[#allocation7 + $0x2e8] sm:$0x3f] }
 0x62f   :  { %7874 = vmatprep.subr.bf16.mxu0 %v12726_v8  ;;  %12787 = vst [vmem:[#allocation62_spill] sm:$0xff] %v10679_v60 }
 0x632   :  { %7876 = vmatpush1.bf16.msra.mxu0 %v12727_v39  ;;  %v12836_v39 = vld [vmem:[#allocation121_spill] sm:$0xff] }
 0x633   :  { %7878 = vmatprep.subr.bf16.mxu0 %v12728_v61  ;;  %v10683_v61 = vld [vmem:[#allocation7 + $0x2e0] sm:$0x3f] }
 0x634   :  { %12788 = vst [vmem:[#allocation76_spill] sm:$0xff] %v10683_v61 }
 0x636   :  { %7880 = vmatpush1.bf16.msra.mxu0 %v12783_v10 }
 0x637   :  { %7882 = vmatprep.subr.bf16.mxu0 %v12784_v43 }
 0x63a   :  { %7884 = vmatpush1.bf16.msra.mxu0 %v10137_v46 }
 0x63b   :  { %7886 = vmatprep.subr.bf16.mxu0 %v10143_v47 }
 0x63e   :  { %7888 = vmatpush1.bf16.msra.mxu0 %v12785_v49  ;;  %v12834_v49 = vld [vmem:[#allocation119_spill] sm:$0xff] }
 0x63f   :  { %7890 = vmatprep.subr.bf16.mxu0 %v12786_v54  ;;  %v12833_v54 = vld [vmem:[#allocation118_spill] sm:$0xff] }
 0x642   :  { %7892 = vmatpush1.bf16.msra.mxu0 %v10157_v48 }
 0x643   :  { %7078 = vmatprep.subr.msk.mxu0 %vm822_vm1, %v10679_v60 }
 0x646   :  { %7079 = vmatpush1.msk.msra.mxu0 %vm822_vm1, %v10683_v61  ;;  %v12825_v61 = vld [vmem:[#allocation43_spill] sm:$0xff] }
 0x647   :  { %7921 = vmatprep.subr.bf16.mxu0 %v9827_v7  ;;  %v12792_v7 = vld [vmem:[#allocation90_spill] sm:$0xff] }
 0x67e   :  { %v2392_v46 = vpop.permute.xlu0 %2391 }
 0x680   :  { %v2394_v47 = vpop.permute.xlu1 %2393 }
 0x681   :  { %7077 = vmatprep.mubr.msk.f32.mxu1 %vm818_vm3, %v2394_v47  ;;  %7080 = vmatprep.mubr.msk.f32.mxu0 %vm818_vm3, %v2394_v47  ;;  %v2395_v48 = vsel %vm1455_vm5, %v2392_v46, %v2394_v47  ;;  %v12789_v46 = vld [vmem:[#allocation87_spill] sm:$0xff] }
 0x682   :  { %2464 = vmatmul.mubr.f32.vlgmr.msra.gmra.mrb[24].mxu1 %v2395_v48  ;;  %2535 = vmatmul.mubr.f32.vlgmr.msra.gmra.mrb[26].mxu0 %v2395_v48 }
 0x683   :  { %7895 = vmatpush1.bf16.msra.mxu1 %v12730_v59  ;;  %7082 = vmatprep.mubr.msk.f32.mxu1 %vm818_vm3, %v2394_v47  ;;  %v12790_v59 = vld [vmem:[#allocation26_spill] sm:$0xff]  ;;  %v12791_v47 = vld [vmem:[#allocation28_spill] sm:$0xff] }
 0x684   :  { %7896 = vmatprep.subr.bf16.mxu1 %v12646_v11  ;;  %7923 = vmatpush1.bf16.msra.mxu0 %v9834_v14  ;;  %v12795_v14 = vld [vmem:[#allocation93_spill] sm:$0xff] }
 0x685   :  { %7925 = vmatprep.subr.bf16.mxu0 %v9840_v16  ;;  %v12793_v16 = vld [vmem:[#allocation30_spill] sm:$0xff] }
 0x687   :  { %7898 = vmatpush1.bf16.msra.mxu1 %v12731_v41  ;;  %v12794_v41 = vld [vmem:[#allocation32_spill] sm:$0xff] }
 0x688   :  { %7899 = vmatprep.subr.bf16.mxu1 %v12646_v11  ;;  %7927 = vmatpush1.bf16.msra.mxu0 %v9851_v26  ;;  %v12798_v26 = vld [vmem:[#allocation96_spill] sm:$0xff] }
 0x689   :  { %7929 = vmatprep.subr.bf16.mxu0 %v9857_v28  ;;  %v12796_v28 = vld [vmem:[#allocation34_spill] sm:$0xff] }
 0x68b   :  { %7901 = vmatpush1.bf16.msra.mxu1 %v12789_v46  ;;  %v12797_v46 = vld [vmem:[#allocation36_spill] sm:$0xff] }
 0x68c   :  { %7902 = vmatprep.subr.bf16.mxu1 %v12646_v11  ;;  %7931 = vmatpush1.bf16.msra.mxu0 %v12790_v59  ;;  %v12801_v59 = vld [vmem:[#allocation99_spill] sm:$0xff] }
 0x68d   :  { %7933 = vmatprep.subr.bf16.mxu0 %v12791_v47  ;;  %v12799_v47 = vld [vmem:[#allocation38_spill] sm:$0xff] }
 0x68f   :  { %7904 = vmatpush1.bf16.msra.mxu1 %v12792_v7  ;;  %v12800_v7 = vld [vmem:[#allocation40_spill] sm:$0xff] }
 0x690   :  { %7905 = vmatprep.subr.bf16.mxu1 %v12646_v11  ;;  %7935 = vmatpush1.bf16.msra.mxu0 %v12793_v16  ;;  %v12804_v16 = vld [vmem:[#allocation102_spill] sm:$0xff] }
 0x691   :  { %7937 = vmatprep.subr.bf16.mxu0 %v12794_v41  ;;  %v12802_v41 = vld [vmem:[#allocation42_spill] sm:$0xff] }
 0x693   :  { %7907 = vmatpush1.bf16.msra.mxu1 %v12795_v14  ;;  %v12803_v14 = vld [vmem:[#allocation44_spill] sm:$0xff] }
 0x694   :  { %7908 = vmatprep.subr.bf16.mxu1 %v12646_v11  ;;  %7939 = vmatpush1.bf16.msra.mxu0 %v12796_v28  ;;  %v12807_v28 = vld [vmem:[#allocation105_spill] sm:$0xff] }
 0x695   :  { %7941 = vmatprep.subr.bf16.mxu0 %v12797_v46  ;;  %v12805_v46 = vld [vmem:[#allocation46_spill] sm:$0xff] }
 0x697   :  { %7910 = vmatpush1.bf16.msra.mxu1 %v12798_v26  ;;  %v12806_v26 = vld [vmem:[#allocation48_spill] sm:$0xff] }
 0x698   :  { %7911 = vmatprep.subr.bf16.mxu1 %v12646_v11  ;;  %7943 = vmatpush1.bf16.msra.mxu0 %v12799_v47  ;;  %v12818_v47 = vld [vmem:[#allocation29_spill] sm:$0xff] }
 0x699   :  { %7945 = vmatprep.subr.bf16.mxu0 %v12800_v7  ;;  %v12808_v7 = vld [vmem:[#allocation50_spill] sm:$0xff] }
 0x69b   :  { %7913 = vmatpush1.bf16.msra.mxu1 %v12801_v59  ;;  %v12809_v59 = vld [vmem:[#allocation55_spill] sm:$0xff] }
 0x69c   :  { %7914 = vmatprep.subr.bf16.mxu1 %v12646_v11  ;;  %7947 = vmatpush1.bf16.msra.mxu0 %v12802_v41  ;;  %v10729_v41 = vld [vmem:[#allocation7 + $0x2f0] sm:$0x3f] }
 0x69d   :  { %7949 = vmatprep.subr.bf16.mxu0 %v12803_v14  ;;  %12810 = vst [vmem:[#allocation78_spill] sm:$0xff] %v10729_v41  ;;  %v12817_v14 = vld [vmem:[#allocation27_spill] sm:$0xff] }
 0x69f   :  { %7916 = vmatpush1.bf16.msra.mxu1 %v12804_v16  ;;  %v12811_v16 = vld [vmem:[#allocation17_spill] sm:$0xff] }
 0x6a0   :  { %7917 = vmatprep.subr.bf16.mxu1 %v12646_v11  ;;  %7951 = vmatpush1.bf16.msra.mxu0 %v12805_v46  ;;  %v12812_v46 = vld [vmem:[#allocation19_spill] sm:$0xff] }
 0x6a1   :  { %7953 = vmatprep.subr.bf16.mxu0 %v12806_v26  ;;  %v12813_v26 = vld [vmem:[#allocation57_spill] sm:$0xff] }
 0x6a3   :  { %7919 = vmatpush1.bf16.msra.mxu1 %v12807_v28  ;;  %v12814_v28 = vld [vmem:[#allocation21_spill] sm:$0xff] }
 0x6a4   :  { %2577 = vmatprep.subr.mxu1 %v12640_v45  ;;  %7955 = vmatpush1.bf16.msra.mxu0 %v12808_v7  ;;  %v12815_v7 = vld [vmem:[#allocation23_spill] sm:$0xff] }
 0x6a5   :  { %7093 = vmatprep.subr.msk.mxu0 %vm822_vm1, %v12809_v59  ;;  %v12816_v59 = vld [vmem:[#allocation25_spill] sm:$0xff] }
 0x6a7   :  { %7081 = vmatpush1.msk.msra.mxu1 %vm822_vm1, %v10729_v41  ;;  %v12822_v41 = vld [vmem:[#allocation37_spill] sm:$0xff] }
 0x6a8   :  { %2606 = vmatmul.mubr.f32.vlgmr.msra.gmra.mrb[26].mxu1 %v2395_v48  ;;  %7957 = vmatprep.subr.bf16.mxu1 %v12811_v16  ;;  %v12819_v48 = vld [vmem:[#allocation31_spill] sm:$0xff]  ;;  %v12820_v16 = vld [vmem:[#allocation33_spill] sm:$0xff] }
 0x6a9   :  { %7959 = vmatpush1.bf16.msra.mxu1 %v12812_v46  ;;  %7094 = vmatpush1.msk.msra.mxu0 %vm822_vm1, %v12813_v26  ;;  %v12821_v46 = vld [vmem:[#allocation35_spill] sm:$0xff] }
 0x6aa   :  { %7961 = vmatprep.subr.bf16.mxu1 %v12814_v28  ;;  %7992 = vmatprep.subr.bf16.mxu0 %v12646_v11  ;;  %v12823_v26 = vld [vmem:[#allocation39_spill] sm:$0xff]  ;;  %v12824_v28 = vld [vmem:[#allocation41_spill] sm:$0xff] }
 0x6ad   :  { %7963 = vmatpush1.bf16.msra.mxu1 %v12815_v7  ;;  %v12826_v7 = vld [vmem:[#allocation45_spill] sm:$0xff] }
 0x6ae   :  { %7965 = vmatprep.subr.bf16.mxu1 %v12816_v59  ;;  %v12827_v59 = vld [vmem:[#allocation47_spill] sm:$0xff] }
 0x6b1   :  { %7967 = vmatpush1.bf16.msra.mxu1 %v12817_v14  ;;  %v12828_v14 = vld [vmem:[#allocation49_spill] sm:$0xff] }
 0x6b2   :  { %7969 = vmatprep.subr.bf16.mxu1 %v12818_v47  ;;  %v12829_v47 = vld [vmem:[#allocation51_spill] sm:$0xff] }
 0x6b5   :  { %7971 = vmatpush1.bf16.msra.mxu1 %v12819_v48  ;;  %v12830_v48 = vld [vmem:[#allocation56_spill] sm:$0xff] }
 0x6b6   :  { %7973 = vmatprep.subr.bf16.mxu1 %v12820_v16  ;;  %v12832_v16 = vld [vmem:[#allocation52_spill] sm:$0xff] }
 0x6b9   :  { %7975 = vmatpush1.bf16.msra.mxu1 %v12821_v46  ;;  %v12831_v46 = vld [vmem:[#allocation58_spill] sm:$0xff] }
 0x6ba   :  { %7977 = vmatprep.subr.bf16.mxu1 %v12822_v41 }
 0x6bd   :  { %7979 = vmatpush1.bf16.msra.mxu1 %v12823_v26 }
 0x6be   :  { %7981 = vmatprep.subr.bf16.mxu1 %v12824_v28 }
 0x6c1   :  { %7983 = vmatpush1.bf16.msra.mxu1 %v12825_v61 }
 0x6c2   :  { %7985 = vmatprep.subr.bf16.mxu1 %v12826_v7 }
 0x6c5   :  { %7987 = vmatpush1.bf16.msra.mxu1 %v12827_v59 }
 0x6c6   :  { %7989 = vmatprep.subr.bf16.mxu1 %v12828_v14 }
 0x6c9   :  { %7991 = vmatpush1.bf16.msra.mxu1 %v12829_v47 }
 0x6ca   :  { %7096 = vmatprep.subr.msk.mxu1 %vm822_vm1, %v12830_v48 }
 0x6cd   :  { %7097 = vmatpush1.msk.msra.mxu1 %vm822_vm1, %v12831_v46 }
 0x6ce   :  { %v2223_v41 = vpop.f32.mrb[22].mxu0  ;;  %v2294_v26 = vpop.f32.mrb[22].mxu1  ;;  %8020 = vmatprep.subr.bf16.mxu1 %v12832_v16 }
 0x6cf   :  { %v2376_v28 = vrot.slane %v2294_v26, 4  ;;  %v2225_v61 = vpop.f32.mrb[23].mxu0  ;;  %v2296_v60 = vpop.f32.mrb[23].mxu1  ;;  %v2374_v43 = vrot.slane %v2223_v41, 4 }
 0x6d0   :  { %v2377_v7 = vrot.slane %v2296_v60, 4  ;;  %v2666_v60 = vrot.slane %v10561_v50, 6 }
 0x6d1   :  { %v2386_v59 = vadd.f32 %v2376_v28, %v12833_v54  ;;  %v2384_v8 = vadd.f32 %v2374_v43, %v12836_v39 }
 0x6d2   :  { %v10761_v14 = vadd.f32 %v2377_v7, %v12834_v49  ;;  %v2375_v49 = vrot.slane %v2225_v61, 4 }
 0x6d3   :  { %v7085_v47 = vmul.f32 -1.442695, %v2386_v59  ;;  %9106 = vtanh.f32 %v2386_v59  ;;  %v7083_v20 = vmul.f32 -1.442695, %v2384_v8 }
 0x6d4   :  { %9108 = vtanh.f32 %v10761_v14 }
 0x6d5   :  { %9110 = vpow2.f32 %v7085_v47  ;;  %v12835_v47 = vld [vmem:[#allocation122_spill] sm:$0xff] }
 0x6d6   :  { %v2385_v10 = vadd.f32 %v2375_v49, %v12835_v47 }
 0x6dd   :  { %v9107_v48 = vpop.eup %9106 }
 0x6de   :  { %v9109_v46 = vpop.eup %9108  ;;  %2673 = vrot.lane.b32.xlu0 %v9107_v48, %s9578_s2  ;;  %v7084_v48 = vmul.f32 -1.442695, %v2385_v10 }
 0x6df   :  { %2675 = vrot.lane.b32.xlu1 %v9109_v46, %s9578_s2  ;;  %v9111_v26 = vpop.eup %9110 }
 0x6e0   :  { %v2646_v16 = vadd.f32 1.0, %v9111_v26 }
 0x6e2   :  { %9112 = vrcp.f32 %v2646_v16 }
 0x6e3   :  { %9114 = vpow2.f32 %v7084_v48 }
 0x6e4   :  { %9116 = vpow2.f32 %v7083_v20 }
 0x6ec   :  { %v9113_v28 = vpop.eup %9112 }
 0x6ed   :  { %v10767_v54 = vmul.f32 %v9113_v28, %v2666_v60  ;;  %v9115_v46 = vpop.eup %9114 }
 0x6ee   :  { %v9117_v16 = vpop.eup %9116  ;;  %v2638_v26 = vadd.f32 1.0, %v9115_v46 }
 0x6ef   :  { %v2637_v50 = vadd.f32 1.0, %v9117_v16  ;;  %v12837_v16 = vld [vmem:[#allocation120_spill] sm:$0xff] }
 0x6f0   :  { %9118 = vrcp.f32 %v2638_v26 }
 0x6f1   :  { %9120 = vrcp.f32 %v2637_v50  ;;  %v12838_v50 = vld [vmem:[#allocation123_spill] sm:$0xff] }
 0x6f4   :  { %v10769_v7 = vpop.f32.mrb[24].mxu0 }
 0x6f5   :  { %v2367_v59 = vpop.f32.mrb[25].mxu0 }
 0x6fa   :  { %v9119_v28 = vpop.eup %9118 }
 0x6fb   :  { %v9121_v59 = vpop.eup %9120 }
 0x750   :  { %v2674_v60 = vpop.permute.xlu0 %2673 }
 0x751   :  { %v2676_v37 = vpop.permute.xlu1 %2675 }
 0x752   :  { %v2677_v61 = vsel %vm1342_vm2, %v2674_v60, %v2676_v37  ;;  %v2681_v41 = vmul.f32 %v9119_v28, %v2676_v37 }
 0x753   :  { %v2680_v49 = vmul.f32 %v9121_v59, %v2677_v61 }
 0x754   :  { %2686 = vrot.lane.b32.xlu1 %v2681_v41, %s9579_s4  ;;  %v2741_v41 = vrot.slane %v10589_v52, 2 }
 0x755   :  { %v2465_v43 = vpop.f32.mrb[24].mxu1  ;;  %v2536_v8 = vpop.f32.mrb[26].mxu0  ;;  %2684 = vrot.lane.b32.xlu0 %v2680_v49, %s9579_s4 }
 0x756   :  { %v2618_v20 = vrot.slane %v2536_v8, 6  ;;  %v2467_v10 = vpop.f32.mrb[25].mxu1  ;;  %v2538_v48 = vpop.f32.mrb[27].mxu0 }
 0x757   :  { %v2619_v46 = vrot.slane %v2538_v48, 6 }
 0x758   :  { %v2628_v26 = vadd.f32 %v2618_v20, %v12837_v16 }
 0x759   :  { %v10778_v39 = vadd.f32 %v2619_v46, %v12838_v50  ;;  %v2617_v46 = vrot.slane %v2467_v10, 6 }
 0x75a   :  { %v7090_v47 = vmul.f32 -1.442695, %v2628_v26  ;;  %9122 = vtanh.f32 %v2628_v26  ;;  %v2616_v26 = vrot.slane %v2465_v43, 6 }
 0x75b   :  { %9124 = vtanh.f32 %v10778_v39 }
 0x75c   :  { %9126 = vpow2.f32 %v7090_v47  ;;  %v2627_v47 = vadd.f32 %v2617_v46, %v10271_v30  ;;  %v2626_v50 = vadd.f32 %v2616_v26, %v10269_v21 }
 0x75e   :  { %v7088_v16 = vmul.f32 -1.442695, %v2626_v50 }
 0x764   :  { %v9123_v37 = vpop.eup %9122 }
 0x765   :  { %v9125_v60 = vpop.eup %9124  ;;  %2748 = vrot.lane.b32.xlu0 %v9123_v37, %s9578_s2  ;;  %v7089_v37 = vmul.f32 -1.442695, %v2627_v47 }
 0x766   :  { %2750 = vrot.lane.b32.xlu1 %v9125_v60, %s9578_s2  ;;  %v9127_v59 = vpop.eup %9126  ;;  %v2665_v60 = vrot.slane %v10558_v55, 6 }
 0x767   :  { %v2721_v61 = vadd.f32 1.0, %v9127_v59 }
 0x768   :  { %v2669_v52 = vmul.f32 %v9119_v28, %v2665_v60  ;;  %v2378_v60 = vrot.slane %v10769_v7, 4 }
 0x769   :  { %9128 = vrcp.f32 %v2721_v61 }
 0x76a   :  { %9130 = vpow2.f32 %v7089_v37 }
 0x76b   :  { %9132 = vpow2.f32 %v7088_v16 }
 0x773   :  { %v9129_v49 = vpop.eup %9128 }
 0x774   :  { %v10784_v8 = vmul.f32 %v9129_v49, %v2741_v41  ;;  %v9131_v61 = vpop.eup %9130 }
 0x775   :  { %v9133_v49 = vpop.eup %9132  ;;  %v2713_v10 = vadd.f32 1.0, %v9131_v61 }
 0x776   :  { %v2712_v50 = vadd.f32 1.0, %v9133_v49 }
 0x77b   :  { %v10786_v20 = vpop.f32.mrb[26].mxu1 }
 0x77c   :  { %v2609_v48 = vpop.f32.mrb[27].mxu1 }
 0x7c6   :  { %v2687_v59 = vpop.permute.xlu1 %2686 }
 0x7c7   :  { %v2685_v41 = vpop.permute.xlu0 %2684 }
 0x7c8   :  { %v2688_v4 = vsel %vm818_vm3, %v2685_v41, %v2687_v59  ;;  %v10792_v48 = vadd.f32 %v2685_v41, %v2669_v52  ;;  %v2388_v59 = vadd.f32 %v2378_v60, %v10339_v63  ;;  %v7086_v52 = vmul.f32 -1.442695, %v10761_v14 }
 0x7c9   :  { %v10795_v43 = vadd.f32 %v2688_v4, %v10767_v54 }
 0x7ca   :  { %9134 = vtanh.f32 %v10792_v48  ;;  %v7087_v61 = vmul.f32 -1.442695, %v2388_v59 }
 0x7cb   :  { %9136 = vtanh.f32 %v10795_v43 }
 0x7cc   :  { %9138 = vrcp.f32 %v2713_v10 }
 0x7cd   :  { %9140 = vrcp.f32 %v2712_v50 }
 0x7ce   :  { %9142 = vpow2.f32 %v7086_v52 }
 0x7cf   :  { %9144 = vpow2.f32 %v7087_v61 }
 0x7d4   :  { %v9135_v55 = vpop.eup %9134 }
 0x7d5   :  { %v9137_v28 = vpop.eup %9136  ;;  %2697 = vrot.lane.b32.xlu0 %v9135_v55, %s9580_s23 }
 0x7d6   :  { %2699 = vrot.lane.b32.xlu1 %v9137_v28, %s9580_s23  ;;  %v9139_v46 = vpop.eup %9138 }
 0x7d7   :  { %v2749_v16 = vpop.permute.xlu0 %2748  ;;  %v9141_v47 = vpop.eup %9140 }
 0x7d8   :  { %v2751_v26 = vpop.permute.xlu1 %2750  ;;  %v9143_v41 = vpop.eup %9142 }
 0x7d9   :  { %v2752_v4 = vsel %vm1342_vm2, %v2749_v16, %v2751_v26  ;;  %v2756_v54 = vmul.f32 %v9139_v46, %v2751_v26  ;;  %v9145_v49 = vpop.eup %9144  ;;  %v2657_v10 = vadd.f32 1.0, %v9143_v41 }
 0x7da   :  { %v2755_v37 = vmul.f32 %v9141_v47, %v2752_v4  ;;  %v2658_v50 = vadd.f32 1.0, %v9145_v49 }
 0x7db   :  { %2761 = vrot.lane.b32.xlu1 %v2756_v54, %s9579_s4  ;;  %9146 = vrcp.f32 %v2657_v10  ;;  %v2740_v54 = vrot.slane %v10586_v62, 2 }
 0x7dc   :  { %2759 = vrot.lane.b32.xlu0 %v2755_v37, %s9579_s4  ;;  %9148 = vrcp.f32 %v2658_v50 }
 0x7dd   :  { %v2744_v52 = vmul.f32 %v9139_v46, %v2740_v54  ;;  %v2620_v46 = vrot.slane %v10786_v20, 6 }
 0x7e5   :  { %v9147_v55 = vpop.eup %9146 }
 0x7e6   :  { %v9149_v47 = vpop.eup %9148 }
 0x847   :  { %v2698_v28 = vpop.permute.xlu0 %2697 }
 0x848   :  { %v10807_v16 = vmul.f32 %v9147_v55, %v2698_v28  ;;  %v2700_v26 = vpop.permute.xlu1 %2699  ;;  %v2630_v55 = vadd.f32 %v2620_v46, %v10275_v24 }
 0x849   :  { %v2701_v7 = vsel %vm1367_vm4, %v2698_v28, %v2700_v26  ;;  %v7091_v28 = vmul.f32 -1.442695, %v10778_v39 }
 0x84a   :  { %12839 = vst [vmem:[#allocation77_spill] sm:$0xff] %v10807_v16  ;;  %v10810_v4 = vmul.f32 %v9149_v47, %v2701_v7  ;;  %v2816_v14 = vrot.slane %v10807_v16, 4  ;;  %v7092_v26 = vmul.f32 -1.442695, %v2630_v55  ;;  %v12865_v16 = vld [vmem:[#allocation24_spill] sm:$0xff] }
 0x84c   :  { %12840 = vst [vmem:[#allocation82_spill] sm:$0xff] %v10810_v4  ;;  %2818 = vrot.lane.b32.xlu0 %v2816_v14, %s9581_s24  ;;  %v2817_v60 = vrot.slane %v10810_v4, 4  ;;  %v12864_v4 = vld [vmem:[#allocation22_spill] sm:$0xff] }
 0x84d   :  { %v2762_v59 = vpop.permute.xlu1 %2761 }
 0x84e   :  { %2820 = vrot.lane.b32.xlu1 %v2817_v60, %s9581_s24  ;;  %v2760_v61 = vpop.permute.xlu0 %2759 }
 0x84f   :  { %v2763_v41 = vsel %vm818_vm3, %v2760_v61, %v2762_v59  ;;  %v10820_v49 = vadd.f32 %v2760_v61, %v2744_v52 }
 0x850   :  { %v10823_v10 = vadd.f32 %v2763_v41, %v10784_v8 }
 0x851   :  { %9150 = vtanh.f32 %v10820_v49 }
 0x852   :  { %9152 = vtanh.f32 %v10823_v10 }
 0x853   :  { %9154 = vpow2.f32 %v7091_v28 }
 0x854   :  { %9156 = vpow2.f32 %v7092_v26  ;;  %v12843_v26 = vld [vmem:[#allocation85_spill] sm:$0xff] }
 0x85b   :  { %v9151_v62 = vpop.eup %9150 }
 0x85c   :  { %v9153_v50 = vpop.eup %9152  ;;  %2772 = vrot.lane.b32.xlu0 %v9151_v62, %s9580_s23 }
 0x85d   :  { %2774 = vrot.lane.b32.xlu1 %v9153_v50, %s9580_s23  ;;  %v9155_v8 = vpop.eup %9154 }
 0x85e   :  { %v9157_v47 = vpop.eup %9156  ;;  %v2732_v7 = vadd.f32 1.0, %v9155_v8  ;;  %v12845_v8 = vld [vmem:[#allocation88_spill] sm:$0xff] }
 0x85f   :  { %v2733_v59 = vadd.f32 1.0, %v9157_v47  ;;  %v12847_v47 = vld [vmem:[#allocation91_spill] sm:$0xff] }
 0x860   :  { %9158 = vrcp.f32 %v2732_v7  ;;  %v12848_v7 = vld [vmem:[#allocation92_spill] sm:$0xff] }
 0x861   :  { %9160 = vrcp.f32 %v2733_v59  ;;  %v12853_v59 = vld [vmem:[#allocation100_spill] sm:$0xff] }
 0x86a   :  { %v9159_v39 = vpop.eup %9158 }
 0x86b   :  { %v9161_v41 = vpop.eup %9160 }
 0x8be   :  { %v2819_v14 = vpop.permute.xlu0 %2818 }
 0x8c0   :  { %v2821_v54 = vpop.permute.xlu1 %2820 }
 0x8c1   :  { %7095 = vmatprep.mubr.msk.f32.mxu0 %vm818_vm3, %v2821_v54  ;;  %7098 = vmatprep.mubr.msk.f32.mxu1 %vm818_vm3, %v2821_v54  ;;  %v2822_v60 = vsel %vm1455_vm5, %v2819_v14, %v2821_v54  ;;  %v12849_v14 = vld [vmem:[#allocation94_spill] sm:$0xff] }
 0x8c2   :  { %2891 = vmatmul.mubr.f32.vlgmr.msra.gmra.mrb[28].mxu0 %v2822_v60  ;;  %2962 = vmatmul.mubr.f32.vlgmr.msra.gmra.mrb[28].mxu1 %v2822_v60 }
 0x8c3   :  { %7994 = vmatpush1.bf16.msra.mxu0 %v9967_v29  ;;  %7100 = vmatprep.mubr.msk.f32.mxu0 %vm818_vm3, %v2821_v54  ;;  %v12851_v54 = vld [vmem:[#allocation97_spill] sm:$0xff] }
 0x8c4   :  { %7995 = vmatprep.subr.bf16.mxu0 %v12646_v11  ;;  %8022 = vmatpush1.bf16.msra.mxu1 %v9963_v31 }
 0x8c5   :  { %8024 = vmatprep.subr.bf16.mxu1 %v9969_v36 }
 0x8c7   :  { %7997 = vmatpush1.bf16.msra.mxu0 %v12690_v42 }
 0x8c8   :  { %7998 = vmatprep.subr.bf16.mxu0 %v12646_v11  ;;  %8026 = vmatpush1.bf16.msra.mxu1 %v12691_v32 }
 0x8c9   :  { %8028 = vmatprep.subr.bf16.mxu1 %v12692_v19 }
 0x8cb   :  { %8000 = vmatpush1.bf16.msra.mxu0 %v12694_v51 }
 0x8cc   :  { %8001 = vmatprep.subr.bf16.mxu0 %v12646_v11  ;;  %8030 = vmatpush1.bf16.msra.mxu1 %v12695_v44 }
 0x8cd   :  { %8032 = vmatprep.subr.bf16.mxu1 %v12696_v5 }
 0x8ce   :  { %v2773_v20 = vpop.permute.xlu0 %2772 }
 0x8cf   :  { %8003 = vmatpush1.bf16.msra.mxu0 %v12697_v56  ;;  %v10849_v52 = vmul.f32 %v9159_v39, %v2773_v20  ;;  %v2775_v61 = vpop.permute.xlu1 %2774  ;;  %v12854_v39 = vld [vmem:[#allocation101_spill] sm:$0xff] }
 0x8d0   :  { %v2776_v62 = vsel %vm1367_vm4, %v2773_v20, %v2775_v61  ;;  %8004 = vmatprep.subr.bf16.mxu0 %v12646_v11  ;;  %8034 = vmatpush1.bf16.msra.mxu1 %v12698_v3  ;;  %v12855_v20 = vld [vmem:[#allocation103_spill] sm:$0xff]  ;;  %v12856_v61 = vld [vmem:[#allocation104_spill] sm:$0xff] }
 0x8d1   :  { %12841 = vst [vmem:[#allocation83_spill] sm:$0xff] %v10849_v52  ;;  %v10854_v50 = vmul.f32 %v9161_v41, %v2776_v62  ;;  %v3058_v46 = vrot.slane %v10849_v52, 2  ;;  %8036 = vmatprep.subr.bf16.mxu1 %v12700_v57  ;;  %v12857_v41 = vld [vmem:[#allocation62_spill] sm:$0xff]  ;;  %v12858_v62 = vld [vmem:[#allocation76_spill] sm:$0xff] }
 0x8d2   :  { %v12863_v52 = vld [vmem:[#allocation84_spill] sm:$0xff] }
 0x8d3   :  { %12842 = vst [vmem:[#allocation106_spill] sm:$0xff] %v10854_v50  ;;  %8006 = vmatpush1.bf16.msra.mxu0 %v12701_v17  ;;  %3060 = vrot.lane.b32.xlu0 %v3058_v46, %s9581_s24  ;;  %v3059_v28 = vrot.slane %v10854_v50, 2  ;;  %v12859_v46 = vld [vmem:[#allocation16_spill] sm:$0xff]  ;;  %v12860_v50 = vld [vmem:[#allocation81_spill] sm:$0xff] }
 0x8d4   :  { %8007 = vmatprep.subr.bf16.mxu0 %v12646_v11  ;;  %8038 = vmatpush1.bf16.msra.mxu1 %v12702_v22 }
 0x8d5   :  { %3062 = vrot.lane.b32.xlu1 %v3059_v28, %s9581_s24  ;;  %8040 = vmatprep.subr.bf16.mxu1 %v12769_v1 }
 0x8d7   :  { %8009 = vmatpush1.bf16.msra.mxu0 %v12770_v12 }
 0x8d8   :  { %8010 = vmatprep.subr.bf16.mxu0 %v12646_v11  ;;  %8042 = vmatpush1.bf16.msra.mxu1 %v12771_v53 }
 0x8d9   :  { %8044 = vmatprep.subr.bf16.mxu1 %v12772_v33 }
 0x8db   :  { %8012 = vmatpush1.bf16.msra.mxu0 %v12773_v6 }
 0x8dc   :  { %8013 = vmatprep.subr.bf16.mxu0 %v12646_v11  ;;  %8046 = vmatpush1.bf16.msra.mxu1 %v12774_v25 }
 0x8dd   :  { %8048 = vmatprep.subr.bf16.mxu1 %v12775_v35 }
 0x8df   :  { %8015 = vmatpush1.bf16.msra.mxu0 %v12776_v2 }
 0x8e0   :  { %8016 = vmatprep.subr.bf16.mxu0 %v12646_v11  ;;  %8050 = vmatpush1.bf16.msra.mxu1 %v12777_v40 }
 0x8e1   :  { %8052 = vmatprep.subr.bf16.mxu1 %v12778_v0 }
 0x8e3   :  { %8018 = vmatpush1.bf16.msra.mxu0 %v12779_v9 }
 0x8e4   :  { %3004 = vmatprep.subr.mxu0 %v12640_v45  ;;  %8054 = vmatpush1.bf16.msra.mxu1 %v12780_v15 }
 0x8e5   :  { %7101 = vmatprep.subr.msk.mxu1 %vm822_vm1, %v10648_v13  ;;  %v12844_v13 = vld [vmem:[#allocation86_spill] sm:$0xff] }
 0x8e7   :  { %7099 = vmatpush1.msk.msra.mxu0 %vm822_vm1, %v10652_v18  ;;  %v12846_v18 = vld [vmem:[#allocation89_spill] sm:$0xff] }
 0x8e8   :  { %3033 = vmatmul.mubr.f32.vlgmr.msra.gmra.mrb[30].mxu0 %v2822_v60  ;;  %8056 = vmatprep.subr.bf16.mxu0 %v12781_v27  ;;  %v12852_v60 = vld [vmem:[#allocation98_spill] sm:$0xff] }
 0x8e9   :  { %8058 = vmatpush1.bf16.msra.mxu0 %v12782_v38  ;;  %7102 = vmatpush1.msk.msra.mxu1 %vm822_vm1, %v10658_v58  ;;  %v12850_v58 = vld [vmem:[#allocation95_spill] sm:$0xff] }
 0x8ea   :  { %8060 = vmatprep.subr.bf16.mxu0 %v12720_v34  ;;  %8091 = vmatprep.subr.bf16.mxu1 %v12646_v11 }
 0x8ed   :  { %8062 = vmatpush1.bf16.msra.mxu0 %v12721_v23 }
 0x8ee   :  { %8064 = vmatprep.subr.bf16.mxu0 %v12843_v26 }
 0x8f1   :  { %8066 = vmatpush1.bf16.msra.mxu0 %v12844_v13 }
 0x8f2   :  { %8068 = vmatprep.subr.bf16.mxu0 %v12845_v8 }
 0x8f5   :  { %8070 = vmatpush1.bf16.msra.mxu0 %v12846_v18 }
 0x8f6   :  { %8072 = vmatprep.subr.bf16.mxu0 %v12847_v47 }
 0x8f9   :  { %8074 = vmatpush1.bf16.msra.mxu0 %v12848_v7 }
 0x8fa   :  { %8076 = vmatprep.subr.bf16.mxu0 %v12849_v14 }
 0x8fd   :  { %8078 = vmatpush1.bf16.msra.mxu0 %v12850_v58  ;;  %v12913_v58 = vld [vmem:[#allocation121_spill] sm:$0xff] }
 0x8fe   :  { %8080 = vmatprep.subr.bf16.mxu0 %v12851_v54 }
 0x901   :  { %8082 = vmatpush1.bf16.msra.mxu0 %v12852_v60 }
 0x902   :  { %8084 = vmatprep.subr.bf16.mxu0 %v12853_v59 }
 0x905   :  { %8086 = vmatpush1.bf16.msra.mxu0 %v12854_v39 }
 0x906   :  { %8088 = vmatprep.subr.bf16.mxu0 %v12855_v20  ;;  %v12911_v20 = vld [vmem:[#allocation119_spill] sm:$0xff] }
 0x909   :  { %8090 = vmatpush1.bf16.msra.mxu0 %v12856_v61  ;;  %v12902_v61 = vld [vmem:[#allocation43_spill] sm:$0xff] }
 0x90a   :  { %7104 = vmatprep.subr.msk.mxu0 %vm822_vm1, %v12857_v41  ;;  %v12861_v41 = vld [vmem:[#allocation18_spill] sm:$0xff] }
 0x90d   :  { %7105 = vmatpush1.msk.msra.mxu0 %vm822_vm1, %v12858_v62  ;;  %v12862_v62 = vld [vmem:[#allocation20_spill] sm:$0xff] }
 0x90e   :  { %8119 = vmatprep.subr.bf16.mxu0 %v12859_v46  ;;  %v12869_v46 = vld [vmem:[#allocation90_spill] sm:$0xff] }
 0x945   :  { %v3061_v28 = vpop.permute.xlu0 %3060 }
 0x947   :  { %v3063_v55 = vpop.permute.xlu1 %3062 }
 0x948   :  { %7103 = vmatprep.mubr.msk.f32.mxu1 %vm818_vm3, %v3063_v55  ;;  %7106 = vmatprep.mubr.msk.f32.mxu0 %vm818_vm3, %v3063_v55  ;;  %v3064_v37 = vsel %vm1455_vm5, %v3061_v28, %v3063_v55  ;;  %v12866_v28 = vld [vmem:[#allocation87_spill] sm:$0xff] }
 0x949   :  { %3133 = vmatmul.mubr.f32.vlgmr.msra.gmra.mrb[30].mxu1 %v3064_v37  ;;  %3204 = vmatmul.mubr.f32.vlgmr.msra.gmra.mrb[32].mxu0 %v3064_v37 }
 0x94a   :  { %8093 = vmatpush1.bf16.msra.mxu1 %v12860_v50  ;;  %7108 = vmatprep.mubr.msk.f32.mxu1 %vm818_vm3, %v3063_v55  ;;  %v12867_v50 = vld [vmem:[#allocation26_spill] sm:$0xff]  ;;  %v12868_v55 = vld [vmem:[#allocation28_spill] sm:$0xff] }
 0x94b   :  { %8094 = vmatprep.subr.bf16.mxu1 %v12646_v11  ;;  %8121 = vmatpush1.bf16.msra.mxu0 %v12861_v41  ;;  %v12872_v41 = vld [vmem:[#allocation93_spill] sm:$0xff] }
 0x94c   :  { %8123 = vmatprep.subr.bf16.mxu0 %v12862_v62  ;;  %v12870_v62 = vld [vmem:[#allocation30_spill] sm:$0xff] }
 0x94e   :  { %8096 = vmatpush1.bf16.msra.mxu1 %v12863_v52  ;;  %v12871_v52 = vld [vmem:[#allocation32_spill] sm:$0xff] }
 0x94f   :  { %8097 = vmatprep.subr.bf16.mxu1 %v12646_v11  ;;  %8125 = vmatpush1.bf16.msra.mxu0 %v12864_v4  ;;  %v12875_v4 = vld [vmem:[#allocation96_spill] sm:$0xff] }
 0x950   :  { %8127 = vmatprep.subr.bf16.mxu0 %v12865_v16  ;;  %v12873_v16 = vld [vmem:[#allocation34_spill] sm:$0xff] }
 0x952   :  { %8099 = vmatpush1.bf16.msra.mxu1 %v12866_v28  ;;  %v12874_v28 = vld [vmem:[#allocation36_spill] sm:$0xff] }
 0x953   :  { %8100 = vmatprep.subr.bf16.mxu1 %v12646_v11  ;;  %8129 = vmatpush1.bf16.msra.mxu0 %v12867_v50  ;;  %v12878_v50 = vld [vmem:[#allocation99_spill] sm:$0xff] }
 0x954   :  { %8131 = vmatprep.subr.bf16.mxu0 %v12868_v55  ;;  %v12876_v55 = vld [vmem:[#allocation38_spill] sm:$0xff] }
 0x956   :  { %8102 = vmatpush1.bf16.msra.mxu1 %v12869_v46  ;;  %v12877_v46 = vld [vmem:[#allocation40_spill] sm:$0xff] }
 0x957   :  { %8103 = vmatprep.subr.bf16.mxu1 %v12646_v11  ;;  %8133 = vmatpush1.bf16.msra.mxu0 %v12870_v62  ;;  %v12881_v62 = vld [vmem:[#allocation102_spill] sm:$0xff] }
 0x958   :  { %8135 = vmatprep.subr.bf16.mxu0 %v12871_v52  ;;  %v12879_v52 = vld [vmem:[#allocation42_spill] sm:$0xff] }
 0x95a   :  { %8105 = vmatpush1.bf16.msra.mxu1 %v12872_v41  ;;  %v12880_v41 = vld [vmem:[#allocation44_spill] sm:$0xff] }
 0x95b   :  { %8106 = vmatprep.subr.bf16.mxu1 %v12646_v11  ;;  %8137 = vmatpush1.bf16.msra.mxu0 %v12873_v16  ;;  %v12884_v16 = vld [vmem:[#allocation105_spill] sm:$0xff] }
 0x95c   :  { %8139 = vmatprep.subr.bf16.mxu0 %v12874_v28  ;;  %v12882_v28 = vld [vmem:[#allocation46_spill] sm:$0xff] }
 0x95e   :  { %8108 = vmatpush1.bf16.msra.mxu1 %v12875_v4  ;;  %v12883_v4 = vld [vmem:[#allocation48_spill] sm:$0xff] }
 0x95f   :  { %8109 = vmatprep.subr.bf16.mxu1 %v12646_v11  ;;  %8141 = vmatpush1.bf16.msra.mxu0 %v12876_v55  ;;  %v12899_v55 = vld [vmem:[#allocation37_spill] sm:$0xff] }
 0x960   :  { %8143 = vmatprep.subr.bf16.mxu0 %v12877_v46  ;;  %v12885_v46 = vld [vmem:[#allocation50_spill] sm:$0xff] }
 0x962   :  { %8111 = vmatpush1.bf16.msra.mxu1 %v12878_v50  ;;  %v10951_v50 = vld [vmem:[#allocation4 + $0x2d8] sm:$0x3f] }
 0x963   :  { %8112 = vmatprep.subr.bf16.mxu1 %v12646_v11  ;;  %8145 = vmatpush1.bf16.msra.mxu0 %v12879_v52  ;;  %12886 = vst [vmem:[#allocation64_spill] sm:$0xff] %v10951_v50  ;;  %v12894_v52 = vld [vmem:[#allocation27_spill] sm:$0xff] }
 0x964   :  { %8147 = vmatprep.subr.bf16.mxu0 %v12880_v41  ;;  %v12887_v41 = vld [vmem:[#allocation78_spill] sm:$0xff] }
 0x966   :  { %8114 = vmatpush1.bf16.msra.mxu1 %v12881_v62  ;;  %v12888_v62 = vld [vmem:[#allocation17_spill] sm:$0xff] }
 0x967   :  { %8115 = vmatprep.subr.bf16.mxu1 %v12646_v11  ;;  %8149 = vmatpush1.bf16.msra.mxu0 %v12882_v28  ;;  %v12889_v28 = vld [vmem:[#allocation19_spill] sm:$0xff] }
 0x968   :  { %8151 = vmatprep.subr.bf16.mxu0 %v12883_v4  ;;  %v10959_v4 = vld [vmem:[#allocation4 + $0x2d0] sm:$0x3f] }
 0x969   :  { %12890 = vst [vmem:[#allocation66_spill] sm:$0xff] %v10959_v4 }
 0x96a   :  { %8117 = vmatpush1.bf16.msra.mxu1 %v12884_v16  ;;  %v12891_v16 = vld [vmem:[#allocation21_spill] sm:$0xff] }
 0x96b   :  { %3246 = vmatprep.subr.mxu1 %v12640_v45  ;;  %8153 = vmatpush1.bf16.msra.mxu0 %v12885_v46  ;;  %v12892_v46 = vld [vmem:[#allocation23_spill] sm:$0xff] }
 0x96c   :  { %7119 = vmatprep.subr.msk.mxu0 %vm822_vm1, %v10951_v50  ;;  %v12893_v50 = vld [vmem:[#allocation25_spill] sm:$0xff] }
 0x96e   :  { %7107 = vmatpush1.msk.msra.mxu1 %vm822_vm1, %v12887_v41  ;;  %v12896_v41 = vld [vmem:[#allocation31_spill] sm:$0xff] }
 0x96f   :  { %3275 = vmatmul.mubr.f32.vlgmr.msra.gmra.mrb[32].mxu1 %v3064_v37  ;;  %8155 = vmatprep.subr.bf16.mxu1 %v12888_v62  ;;  %v12895_v37 = vld [vmem:[#allocation29_spill] sm:$0xff]  ;;  %v12898_v62 = vld [vmem:[#allocation35_spill] sm:$0xff] }
 0x970   :  { %8157 = vmatpush1.bf16.msra.mxu1 %v12889_v28  ;;  %7120 = vmatpush1.msk.msra.mxu0 %vm822_vm1, %v10959_v4  ;;  %v12897_v28 = vld [vmem:[#allocation33_spill] sm:$0xff]  ;;  %v12900_v4 = vld [vmem:[#allocation39_spill] sm:$0xff] }
 0x971   :  { %8159 = vmatprep.subr.bf16.mxu1 %v12891_v16  ;;  %8190 = vmatprep.subr.bf16.mxu0 %v12646_v11  ;;  %v12901_v16 = vld [vmem:[#allocation41_spill] sm:$0xff] }
 0x974   :  { %8161 = vmatpush1.bf16.msra.mxu1 %v12892_v46  ;;  %v12903_v46 = vld [vmem:[#allocation45_spill] sm:$0xff] }
 0x975   :  { %8163 = vmatprep.subr.bf16.mxu1 %v12893_v50  ;;  %v12904_v50 = vld [vmem:[#allocation47_spill] sm:$0xff] }
 0x978   :  { %8165 = vmatpush1.bf16.msra.mxu1 %v12894_v52  ;;  %v12905_v52 = vld [vmem:[#allocation49_spill] sm:$0xff] }
 0x979   :  { %8167 = vmatprep.subr.bf16.mxu1 %v12895_v37  ;;  %v12906_v37 = vld [vmem:[#allocation51_spill] sm:$0xff] }
 0x97c   :  { %8169 = vmatpush1.bf16.msra.mxu1 %v12896_v41  ;;  %v10980_v41 = vld [vmem:[#allocation4 + $0x2e8] sm:$0x3f] }
 0x97d   :  { %8171 = vmatprep.subr.bf16.mxu1 %v12897_v28  ;;  %12907 = vst [vmem:[#allocation65_spill] sm:$0xff] %v10980_v41  ;;  %v12910_v28 = vld [vmem:[#allocation118_spill] sm:$0xff] }
 0x980   :  { %8173 = vmatpush1.bf16.msra.mxu1 %v12898_v62 }
 0x981   :  { %8175 = vmatprep.subr.bf16.mxu1 %v12899_v55  ;;  %v10984_v55 = vld [vmem:[#allocation4 + $0x2e0] sm:$0x3f] }
 0x982   :  { %12908 = vst [vmem:[#allocation67_spill] sm:$0xff] %v10984_v55 }
 0x984   :  { %8177 = vmatpush1.bf16.msra.mxu1 %v12900_v4  ;;  %v12909_v4 = vld [vmem:[#allocation52_spill] sm:$0xff] }
 0x985   :  { %8179 = vmatprep.subr.bf16.mxu1 %v12901_v16 }
 0x988   :  { %8181 = vmatpush1.bf16.msra.mxu1 %v12902_v61 }
 0x989   :  { %8183 = vmatprep.subr.bf16.mxu1 %v12903_v46 }
 0x98c   :  { %8185 = vmatpush1.bf16.msra.mxu1 %v12904_v50 }
 0x98d   :  { %8187 = vmatprep.subr.bf16.mxu1 %v12905_v52 }
 0x990   :  { %8189 = vmatpush1.bf16.msra.mxu1 %v12906_v37 }
 0x991   :  { %7122 = vmatprep.subr.msk.mxu1 %vm822_vm1, %v10980_v41 }
 0x994   :  { %7123 = vmatpush1.msk.msra.mxu1 %vm822_vm1, %v10984_v55 }
 0x995   :  { %v2892_v16 = vpop.f32.mrb[28].mxu0  ;;  %v2963_v61 = vpop.f32.mrb[28].mxu1  ;;  %8218 = vmatprep.subr.bf16.mxu1 %v12909_v4 }
 0x996   :  { %v3045_v46 = vrot.slane %v2963_v61, 2  ;;  %v2894_v50 = vpop.f32.mrb[29].mxu0  ;;  %v2965_v62 = vpop.f32.mrb[29].mxu1  ;;  %v3043_v60 = vrot.slane %v2892_v16, 2 }
 0x997   :  { %v3046_v52 = vrot.slane %v2965_v62, 2  ;;  %v3320_v62 = vrot.slane %v10795_v43, 6 }
 0x998   :  { %v3055_v37 = vadd.f32 %v3045_v46, %v12910_v28  ;;  %v3053_v14 = vadd.f32 %v3043_v60, %v12913_v58 }
 0x999   :  { %v10991_v39 = vadd.f32 %v3046_v52, %v12911_v20 }
 0x99a   :  { %v7111_v59 = vmul.f32 -1.442695, %v3055_v37  ;;  %9162 = vtanh.f32 %v3055_v37  ;;  %v3044_v37 = vrot.slane %v2894_v50, 2  ;;  %v7109_v7 = vmul.f32 -1.442695, %v3053_v14 }
 0x99b   :  { %9164 = vtanh.f32 %v10991_v39 }
 0x99c   :  { %9166 = vpow2.f32 %v7111_v59  ;;  %v12912_v59 = vld [vmem:[#allocation122_spill] sm:$0xff] }
 0x99d   :  { %v3054_v54 = vadd.f32 %v3044_v37, %v12912_v59 }
 0x9a4   :  { %v9163_v41 = vpop.eup %9162 }
 0x9a5   :  { %v9165_v55 = vpop.eup %9164  ;;  %3327 = vrot.lane.b32.xlu0 %v9163_v41, %s9578_s2  ;;  %v7110_v41 = vmul.f32 -1.442695, %v3054_v54 }
 0x9a6   :  { %3329 = vrot.lane.b32.xlu1 %v9165_v55, %s9578_s2  ;;  %v9167_v61 = vpop.eup %9166 }
 0x9a7   :  { %v3300_v4 = vadd.f32 1.0, %v9167_v61 }
 0x9a9   :  { %9168 = vrcp.f32 %v3300_v4 }
 0x9aa   :  { %9170 = vpow2.f32 %v7110_v41  ;;  %v12915_v41 = vld [vmem:[#allocation123_spill] sm:$0xff] }
 0x9ab   :  { %9172 = vpow2.f32 %v7109_v7  ;;  %v12914_v7 = vld [vmem:[#allocation120_spill] sm:$0xff] }
 0x9b3   :  { %v9169_v46 = vpop.eup %9168 }
 0x9b4   :  { %v10997_v28 = vmul.f32 %v9169_v46, %v3320_v62  ;;  %v9171_v55 = vpop.eup %9170 }
 0x9b5   :  { %v9173_v4 = vpop.eup %9172  ;;  %v3292_v61 = vadd.f32 1.0, %v9171_v55 }
 0x9b6   :  { %v3291_v43 = vadd.f32 1.0, %v9173_v4 }
 0x9b7   :  { %9174 = vrcp.f32 %v3292_v61 }
 0x9b8   :  { %9176 = vrcp.f32 %v3291_v43 }
 0x9bb   :  { %v10999_v52 = vpop.f32.mrb[30].mxu0 }
 0x9bc   :  { %v3036_v20 = vpop.f32.mrb[31].mxu0 }
 0x9c1   :  { %v9175_v46 = vpop.eup %9174 }
 0x9c2   :  { %v9177_v20 = vpop.eup %9176 }
 0xa17   :  { %v3328_v62 = vpop.permute.xlu0 %3327 }
 0xa18   :  { %v3330_v47 = vpop.permute.xlu1 %3329 }
 0xa19   :  { %v3331_v16 = vsel %vm1342_vm2, %v3328_v62, %v3330_v47  ;;  %v3335_v50 = vmul.f32 %v9175_v46, %v3330_v47 }
 0xa1a   :  { %v3334_v37 = vmul.f32 %v9177_v20, %v3331_v16  ;;  %v3395_v20 = vrot.slane %v10823_v10, 2 }
 0xa1b   :  { %3340 = vrot.lane.b32.xlu1 %v3335_v50, %s9579_s4 }
 0xa1c   :  { %v3134_v58 = vpop.f32.mrb[30].mxu1  ;;  %v3205_v14 = vpop.f32.mrb[32].mxu0  ;;  %3338 = vrot.lane.b32.xlu0 %v3334_v37, %s9579_s4 }
 0xa1d   :  { %v3282_v54 = vadd.f32 %v3205_v14, %v12914_v7  ;;  %v3136_v60 = vpop.f32.mrb[31].mxu1  ;;  %v3207_v59 = vpop.f32.mrb[33].mxu0 }
 0xa1e   :  { %v11008_v55 = vadd.f32 %v3207_v59, %v12915_v41  ;;  %v3281_v7 = vadd.f32 %v3136_v60, %v10271_v30 }
 0xa1f   :  { %v7116_v4 = vmul.f32 -1.442695, %v3282_v54  ;;  %9178 = vtanh.f32 %v3282_v54  ;;  %v3280_v54 = vadd.f32 %v3134_v58, %v10269_v21 }
 0xa20   :  { %9180 = vtanh.f32 %v11008_v55  ;;  %v7115_v59 = vmul.f32 -1.442695, %v3281_v7 }
 0xa21   :  { %9182 = vpow2.f32 %v7116_v4  ;;  %v7114_v41 = vmul.f32 -1.442695, %v3280_v54  ;;  %v3319_v4 = vrot.slane %v10792_v48, 6 }
 0xa23   :  { %v3323_v10 = vmul.f32 %v9175_v46, %v3319_v4 }
 0xa29   :  { %v9179_v47 = vpop.eup %9178 }
 0xa2a   :  { %v9181_v61 = vpop.eup %9180  ;;  %3402 = vrot.lane.b32.xlu0 %v9179_v47, %s9578_s2 }
 0xa2b   :  { %3404 = vrot.lane.b32.xlu1 %v9181_v61, %s9578_s2  ;;  %v9183_v43 = vpop.eup %9182 }
 0xa2c   :  { %v3375_v62 = vadd.f32 1.0, %v9183_v43 }
 0xa2e   :  { %9184 = vrcp.f32 %v3375_v62 }
 0xa2f   :  { %9186 = vpow2.f32 %v7115_v59 }
 0xa30   :  { %9188 = vpow2.f32 %v7114_v41  ;;  %v3047_v41 = vrot.slane %v10999_v52, 2  ;;  %v3394_v52 = vrot.slane %v10820_v49, 2 }
 0xa32   :  { %v3057_v4 = vadd.f32 %v3047_v41, %v10339_v63 }
 0xa38   :  { %v9185_v16 = vpop.eup %9184 }
 0xa39   :  { %v11014_v50 = vmul.f32 %v9185_v16, %v3395_v20  ;;  %v9187_v47 = vpop.eup %9186 }
 0xa3a   :  { %v9189_v61 = vpop.eup %9188  ;;  %v3367_v20 = vadd.f32 1.0, %v9187_v47  ;;  %v7112_v47 = vmul.f32 -1.442695, %v10991_v39 }
 0xa42   :  { %v11016_v37 = vpop.f32.mrb[32].mxu1 }
 0xa43   :  { %v3278_v14 = vpop.f32.mrb[33].mxu1 }
 0xa44   :  { %v3366_v14 = vadd.f32 1.0, %v9189_v61  ;;  %v7113_v61 = vmul.f32 -1.442695, %v3057_v4 }
 0xa8d   :  { %v3341_v43 = vpop.permute.xlu1 %3340 }
 0xa8e   :  { %v3339_v62 = vpop.permute.xlu0 %3338 }
 0xa8f   :  { %v3342_v16 = vsel %vm818_vm3, %v3339_v62, %v3341_v43  ;;  %v11022_v18 = vadd.f32 %v3339_v62, %v3323_v10 }
 0xa90   :  { %v11025_v30 = vadd.f32 %v3342_v16, %v10997_v28 }
 0xa91   :  { %9190 = vtanh.f32 %v11022_v18 }
 0xa92   :  { %9192 = vtanh.f32 %v11025_v30 }
 0xa93   :  { %9194 = vrcp.f32 %v3367_v20 }
 0xa94   :  { %9196 = vrcp.f32 %v3366_v14 }
 0xa95   :  { %9198 = vpow2.f32 %v7112_v47 }
 0xa96   :  { %9200 = vpow2.f32 %v7113_v61 }
 0xa9b   :  { %v9191_v21 = vpop.eup %9190 }
 0xa9c   :  { %v9193_v48 = vpop.eup %9192  ;;  %3351 = vrot.lane.b32.xlu0 %v9191_v21, %s9580_s23  ;;  %v3403_v46 = vpop.permute.xlu0 %3402 }
 0xa9d   :  { %v9195_v58 = vpop.eup %9194  ;;  %v3405_v60 = vpop.permute.xlu1 %3404  ;;  %3353 = vrot.lane.b32.xlu1 %v9193_v48, %s9580_s23 }
 0xa9e   :  { %v9197_v7 = vpop.eup %9196  ;;  %v3406_v54 = vsel %vm1342_vm2, %v3403_v46, %v3405_v60  ;;  %v3410_v28 = vmul.f32 %v9195_v58, %v3405_v60 }
 0xa9f   :  { %v3409_v59 = vmul.f32 %v9197_v7, %v3406_v54  ;;  %v9199_v43 = vpop.eup %9198  ;;  %v3398_v7 = vmul.f32 %v9195_v58, %v3394_v52  ;;  %v12934_v54 = vld [vmem:[#allocation81_spill] sm:$0xff] }
 0xaa0   :  { %v9201_v10 = vpop.eup %9200  ;;  %v3311_v62 = vadd.f32 1.0, %v9199_v43  ;;  %v3284_v43 = vadd.f32 %v11016_v37, %v10275_v24 }
 0xaa1   :  { %3415 = vrot.lane.b32.xlu1 %v3410_v28, %s9579_s4  ;;  %3413 = vrot.lane.b32.xlu0 %v3409_v59, %s9579_s4  ;;  %v3312_v20 = vadd.f32 1.0, %v9201_v10  ;;  %v7117_v10 = vmul.f32 -1.442695, %v11008_v55 }
 0xaa2   :  { %9202 = vrcp.f32 %v3311_v62  ;;  %v7118_v62 = vmul.f32 -1.442695, %v3284_v43  ;;  %v12921_v43 = vld [vmem:[#allocation91_spill] sm:$0xff] }
 0xaa3   :  { %9204 = vrcp.f32 %v3312_v20 }
 0xaac   :  { %v9203_v16 = vpop.eup %9202 }
 0xaad   :  { %v9205_v46 = vpop.eup %9204 }
 0xb0e   :  { %v3352_v14 = vpop.permute.xlu0 %3351 }
 0xb0f   :  { %v11037_v21 = vmul.f32 %v9203_v16, %v3352_v14  ;;  %v3354_v48 = vpop.permute.xlu1 %3353 }
 0xb10   :  { %v3355_v63 = vsel %vm1367_vm4, %v3352_v14, %v3354_v48 }
 0xb11   :  { %12916 = vst [vmem:[#allocation69_spill] sm:$0xff] %v11037_v21  ;;  %v11041_v39 = vmul.f32 %v9205_v46, %v3355_v63  ;;  %v3470_v60 = vrot.slane %v11037_v21, 6  ;;  %v12938_v21 = vld [vmem:[#allocation22_spill] sm:$0xff] }
 0xb13   :  { %12917 = vst [vmem:[#allocation68_spill] sm:$0xff] %v11041_v39  ;;  %v3416_v28 = vpop.permute.xlu1 %3415  ;;  %3472 = vrot.lane.b32.xlu0 %v3470_v60, %s9581_s24  ;;  %v3414_v59 = vpop.permute.xlu0 %3413  ;;  %v3471_v41 = vrot.slane %v11041_v39, 6  ;;  %v12937_v39 = vld [vmem:[#allocation84_spill] sm:$0xff] }
 0xb14   :  { %v3417_v4 = vsel %vm818_vm3, %v3414_v59, %v3416_v28  ;;  %v11049_v47 = vadd.f32 %v3414_v59, %v3398_v7 }
 0xb15   :  { %v11052_v49 = vadd.f32 %v3417_v4, %v11014_v50  ;;  %3474 = vrot.lane.b32.xlu1 %v3471_v41, %s9581_s24  ;;  %v11112_v41 = vld [vmem:[#allocation7 + $0x2d8] sm:$0x3f] }
 0xb16   :  { %9206 = vtanh.f32 %v11049_v47  ;;  %v11116_v4 = vld [vmem:[#allocation4 + $0x2f0] sm:$0x3f] }
 0xb17   :  { %9208 = vtanh.f32 %v11052_v49 }
 0xb18   :  { %9210 = vpow2.f32 %v7117_v10  ;;  %v12922_v10 = vld [vmem:[#allocation92_spill] sm:$0xff] }
 0xb19   :  { %9212 = vpow2.f32 %v7118_v62  ;;  %v12923_v62 = vld [vmem:[#allocation94_spill] sm:$0xff] }
 0xb20   :  { %v9207_v58 = vpop.eup %9206 }
 0xb21   :  { %v9209_v61 = vpop.eup %9208  ;;  %3426 = vrot.lane.b32.xlu0 %v9207_v58, %s9580_s23  ;;  %v11122_v58 = vld [vmem:[#allocation7 + $0x2d0] sm:$0x3f] }
 0xb22   :  { %3428 = vrot.lane.b32.xlu1 %v9209_v61, %s9580_s23  ;;  %v9211_v50 = vpop.eup %9210  ;;  %v12920_v61 = vld [vmem:[#allocation89_spill] sm:$0xff] }
 0xb23   :  { %v9213_v20 = vpop.eup %9212  ;;  %v3386_v16 = vadd.f32 1.0, %v9211_v50  ;;  %v12924_v50 = vld [vmem:[#allocation95_spill] sm:$0xff] }
 0xb24   :  { %v3387_v14 = vadd.f32 1.0, %v9213_v20  ;;  %v12925_v20 = vld [vmem:[#allocation97_spill] sm:$0xff] }
 0xb25   :  { %9214 = vrcp.f32 %v3386_v16  ;;  %v12926_v16 = vld [vmem:[#allocation98_spill] sm:$0xff] }
 0xb26   :  { %9216 = vrcp.f32 %v3387_v14  ;;  %v12927_v14 = vld [vmem:[#allocation100_spill] sm:$0xff] }
 0xb2f   :  { %v9215_v24 = vpop.eup %9214 }
 0xb30   :  { %v9217_v60 = vpop.eup %9216 }
 0xb85   :  { %v3473_v48 = vpop.permute.xlu0 %3472 }
 0xb87   :  { %v3475_v46 = vpop.permute.xlu1 %3474 }
 0xb88   :  { %7121 = vmatprep.mubr.msk.f32.mxu0 %vm818_vm3, %v3475_v46  ;;  %7124 = vmatprep.mubr.msk.f32.mxu1 %vm818_vm3, %v3475_v46  ;;  %v3476_v52 = vsel %vm1455_vm5, %v3473_v48, %v3475_v46  ;;  %v12928_v48 = vld [vmem:[#allocation101_spill] sm:$0xff] }
 0xb89   :  { %3545 = vmatmul.mubr.f32.vlgmr.msra.gmra.mrb[34].mxu0 %v3476_v52  ;;  %3616 = vmatmul.mubr.f32.vlgmr.msra.gmra.mrb[34].mxu1 %v3476_v52 }
 0xb8a   :  { %8192 = vmatpush1.bf16.msra.mxu0 %v9967_v29  ;;  %7126 = vmatprep.mubr.msk.f32.mxu0 %vm818_vm3, %v3475_v46  ;;  %v12929_v46 = vld [vmem:[#allocation103_spill] sm:$0xff] }
 0xb8b   :  { %8193 = vmatprep.subr.bf16.mxu0 %v12646_v11  ;;  %8220 = vmatpush1.bf16.msra.mxu1 %v9963_v31 }
 0xb8c   :  { %8222 = vmatprep.subr.bf16.mxu1 %v9969_v36 }
 0xb8e   :  { %8195 = vmatpush1.bf16.msra.mxu0 %v12690_v42 }
 0xb8f   :  { %8196 = vmatprep.subr.bf16.mxu0 %v12646_v11  ;;  %8224 = vmatpush1.bf16.msra.mxu1 %v12691_v32 }
 0xb90   :  { %8226 = vmatprep.subr.bf16.mxu1 %v12692_v19 }
 0xb92   :  { %8198 = vmatpush1.bf16.msra.mxu0 %v12694_v51 }
 0xb93   :  { %v3427_v55 = vpop.permute.xlu0 %3426  ;;  %8199 = vmatprep.subr.bf16.mxu0 %v12646_v11  ;;  %8228 = vmatpush1.bf16.msra.mxu1 %v12695_v44 }
 0xb94   :  { %v11077_v37 = vmul.f32 %v9215_v24, %v3427_v55  ;;  %v3429_v63 = vpop.permute.xlu1 %3428  ;;  %8230 = vmatprep.subr.bf16.mxu1 %v12696_v5  ;;  %v11143_v24 = vld [vmem:[#allocation7 + $0x2e8] sm:$0x3f] }
 0xb95   :  { %v3430_v7 = vsel %vm1367_vm4, %v3427_v55, %v3429_v63  ;;  %12931 = vst [vmem:[#allocation71_spill] sm:$0xff] %v11143_v24  ;;  %v11147_v55 = vld [vmem:[#allocation7 + $0x2e0] sm:$0x3f] }
 0xb96   :  { %12918 = vst [vmem:[#allocation70_spill] sm:$0xff] %v11077_v37  ;;  %v11081_v28 = vmul.f32 %v9217_v60, %v3430_v7  ;;  %8201 = vmatpush1.bf16.msra.mxu0 %v12697_v56  ;;  %3697 = vrot.lane.b32.xlu0 %v11077_v37, %s9581_s24  ;;  %12932 = vst [vmem:[#allocation73_spill] sm:$0xff] %v11147_v55  ;;  %v12933_v63 = vld [vmem:[#allocation16_spill] sm:$0xff] }
 0xb97   :  { %8202 = vmatprep.subr.bf16.mxu0 %v12646_v11  ;;  %8232 = vmatpush1.bf16.msra.mxu1 %v12698_v3  ;;  %v12936_v37 = vld [vmem:[#allocation20_spill] sm:$0xff] }
 0xb98   :  { %12919 = vst [vmem:[#allocation72_spill] sm:$0xff] %v11081_v28  ;;  %3699 = vrot.lane.b32.xlu1 %v11081_v28, %s9581_s24  ;;  %8234 = vmatprep.subr.bf16.mxu1 %v12700_v57  ;;  %v12935_v28 = vld [vmem:[#allocation18_spill] sm:$0xff] }
 0xb9a   :  { %8204 = vmatpush1.bf16.msra.mxu0 %v12701_v17 }
 0xb9b   :  { %8205 = vmatprep.subr.bf16.mxu0 %v12646_v11  ;;  %8236 = vmatpush1.bf16.msra.mxu1 %v12702_v22 }
 0xb9c   :  { %8238 = vmatprep.subr.bf16.mxu1 %v12769_v1 }
 0xb9e   :  { %8207 = vmatpush1.bf16.msra.mxu0 %v12770_v12 }
 0xb9f   :  { %8208 = vmatprep.subr.bf16.mxu0 %v12646_v11  ;;  %8240 = vmatpush1.bf16.msra.mxu1 %v12771_v53 }
 0xba0   :  { %8242 = vmatprep.subr.bf16.mxu1 %v12772_v33 }
 0xba2   :  { %8210 = vmatpush1.bf16.msra.mxu0 %v12773_v6 }
 0xba3   :  { %8211 = vmatprep.subr.bf16.mxu0 %v12646_v11  ;;  %8244 = vmatpush1.bf16.msra.mxu1 %v12774_v25 }
 0xba4   :  { %8246 = vmatprep.subr.bf16.mxu1 %v12775_v35 }
 0xba6   :  { %8213 = vmatpush1.bf16.msra.mxu0 %v12776_v2 }
 0xba7   :  { %8214 = vmatprep.subr.bf16.mxu0 %v12646_v11  ;;  %8248 = vmatpush1.bf16.msra.mxu1 %v12777_v40 }
 0xba8   :  { %8250 = vmatprep.subr.bf16.mxu1 %v12778_v0 }
 0xbaa   :  { %8216 = vmatpush1.bf16.msra.mxu0 %v12779_v9 }
 0xbab   :  { %3658 = vmatprep.subr.mxu0 %v12640_v45  ;;  %8252 = vmatpush1.bf16.msra.mxu1 %v12780_v15 }
 0xbac   :  { %7127 = vmatprep.subr.msk.mxu1 %vm822_vm1, %v11112_v41 }
 0xbae   :  { %7125 = vmatpush1.msk.msra.mxu0 %vm822_vm1, %v11116_v4 }
 0xbaf   :  { %3687 = vmatmul.mubr.f32.vlgmr.msra.gmra.mrb[36].mxu0 %v3476_v52  ;;  %8254 = vmatprep.subr.bf16.mxu0 %v12781_v27  ;;  %v12930_v52 = vld [vmem:[#allocation104_spill] sm:$0xff] }
 0xbb0   :  { %8256 = vmatpush1.bf16.msra.mxu0 %v12782_v38  ;;  %7128 = vmatpush1.msk.msra.mxu1 %vm822_vm1, %v11122_v58 }
 0xbb1   :  { %8258 = vmatprep.subr.bf16.mxu0 %v12720_v34  ;;  %8289 = vmatprep.subr.bf16.mxu1 %v12646_v11 }
 0xbb4   :  { %8260 = vmatpush1.bf16.msra.mxu0 %v12721_v23 }
 0xbb5   :  { %8262 = vmatprep.subr.bf16.mxu0 %v12843_v26 }
 0xbb8   :  { %8264 = vmatpush1.bf16.msra.mxu0 %v12844_v13 }
 0xbb9   :  { %8266 = vmatprep.subr.bf16.mxu0 %v12845_v8 }
 0xbbc   :  { %8268 = vmatpush1.bf16.msra.mxu0 %v12920_v61 }
 0xbbd   :  { %8270 = vmatprep.subr.bf16.mxu0 %v12921_v43 }
 0xbc0   :  { %8272 = vmatpush1.bf16.msra.mxu0 %v12922_v10 }
 0xbc1   :  { %8274 = vmatprep.subr.bf16.mxu0 %v12923_v62 }
 0xbc4   :  { %8276 = vmatpush1.bf16.msra.mxu0 %v12924_v50 }
 0xbc5   :  { %8278 = vmatprep.subr.bf16.mxu0 %v12925_v20 }
 0xbc8   :  { %8280 = vmatpush1.bf16.msra.mxu0 %v12926_v16 }
 0xbc9   :  { %8282 = vmatprep.subr.bf16.mxu0 %v12927_v14 }
 0xbcc   :  { %8284 = vmatpush1.bf16.msra.mxu0 %v12928_v48 }
 0xbcd   :  { %8286 = vmatprep.subr.bf16.mxu0 %v12929_v46  ;;  %v12985_v46 = vld [vmem:[#allocation111_spill] sm:$0xff] }
 0xbd0   :  { %8288 = vmatpush1.bf16.msra.mxu0 %v12930_v52 }
 0xbd1   :  { %7130 = vmatprep.subr.msk.mxu0 %vm822_vm1, %v11143_v24  ;;  %v12976_v24 = vld [vmem:[#allocation43_spill] sm:$0xff] }
 0xbd4   :  { %7131 = vmatpush1.msk.msra.mxu0 %vm822_vm1, %v11147_v55  ;;  %v12943_v55 = vld [vmem:[#allocation90_spill] sm:$0xff] }
 0xbd5   :  { %8317 = vmatprep.subr.bf16.mxu0 %v12933_v63  ;;  %v12939_v63 = vld [vmem:[#allocation24_spill] sm:$0xff] }
 0xc08   :  { %v3698_v60 = vpop.permute.xlu0 %3697 }
 0xc0a   :  { %v3700_v7 = vpop.permute.xlu1 %3699 }
 0xc0b   :  { %7129 = vmatprep.mubr.msk.f32.mxu1 %vm818_vm3, %v3700_v7  ;;  %7132 = vmatprep.mubr.msk.f32.mxu0 %vm818_vm3, %v3700_v7  ;;  %v3701_v59 = vsel %vm1455_vm5, %v3698_v60, %v3700_v7  ;;  %v12940_v60 = vld [vmem:[#allocation87_spill] sm:$0xff] }
 0xc0c   :  { %3770 = vmatmul.mubr.f32.vlgmr.msra.gmra.mrb[36].mxu1 %v3701_v59  ;;  %3841 = vmatmul.mubr.f32.vlgmr.msra.gmra.mrb[38].mxu0 %v3701_v59 }
 0xc0d   :  { %8291 = vmatpush1.bf16.msra.mxu1 %v12934_v54  ;;  %7134 = vmatprep.mubr.msk.f32.mxu1 %vm818_vm3, %v3700_v7  ;;  %v12941_v54 = vld [vmem:[#allocation26_spill] sm:$0xff]  ;;  %v12942_v7 = vld [vmem:[#allocation28_spill] sm:$0xff] }
 0xc0e   :  { %8292 = vmatprep.subr.bf16.mxu1 %v12646_v11  ;;  %8319 = vmatpush1.bf16.msra.mxu0 %v12935_v28  ;;  %v12946_v28 = vld [vmem:[#allocation93_spill] sm:$0xff] }
 0xc0f   :  { %8321 = vmatprep.subr.bf16.mxu0 %v12936_v37  ;;  %v12944_v37 = vld [vmem:[#allocation30_spill] sm:$0xff] }
 0xc11   :  { %8294 = vmatpush1.bf16.msra.mxu1 %v12937_v39  ;;  %v12945_v39 = vld [vmem:[#allocation32_spill] sm:$0xff] }
 0xc12   :  { %8295 = vmatprep.subr.bf16.mxu1 %v12646_v11  ;;  %8323 = vmatpush1.bf16.msra.mxu0 %v12938_v21  ;;  %v12949_v21 = vld [vmem:[#allocation96_spill] sm:$0xff] }
 0xc13   :  { %8325 = vmatprep.subr.bf16.mxu0 %v12939_v63  ;;  %v12947_v63 = vld [vmem:[#allocation34_spill] sm:$0xff] }
 0xc15   :  { %8297 = vmatpush1.bf16.msra.mxu1 %v12940_v60  ;;  %v12948_v60 = vld [vmem:[#allocation36_spill] sm:$0xff] }
 0xc16   :  { %8298 = vmatprep.subr.bf16.mxu1 %v12646_v11  ;;  %8327 = vmatpush1.bf16.msra.mxu0 %v12941_v54  ;;  %v12952_v54 = vld [vmem:[#allocation99_spill] sm:$0xff] }
 0xc17   :  { %8329 = vmatprep.subr.bf16.mxu0 %v12942_v7  ;;  %v12950_v7 = vld [vmem:[#allocation38_spill] sm:$0xff] }
 0xc19   :  { %8300 = vmatpush1.bf16.msra.mxu1 %v12943_v55  ;;  %v12951_v55 = vld [vmem:[#allocation40_spill] sm:$0xff] }
 0xc1a   :  { %8301 = vmatprep.subr.bf16.mxu1 %v12646_v11  ;;  %8331 = vmatpush1.bf16.msra.mxu0 %v12944_v37  ;;  %v12955_v37 = vld [vmem:[#allocation102_spill] sm:$0xff] }
 0xc1b   :  { %8333 = vmatprep.subr.bf16.mxu0 %v12945_v39  ;;  %v12953_v39 = vld [vmem:[#allocation42_spill] sm:$0xff] }
 0xc1d   :  { %8303 = vmatpush1.bf16.msra.mxu1 %v12946_v28  ;;  %v12954_v28 = vld [vmem:[#allocation44_spill] sm:$0xff] }
 0xc1e   :  { %8304 = vmatprep.subr.bf16.mxu1 %v12646_v11  ;;  %8335 = vmatpush1.bf16.msra.mxu0 %v12947_v63  ;;  %v12958_v63 = vld [vmem:[#allocation105_spill] sm:$0xff] }
 0xc1f   :  { %8337 = vmatprep.subr.bf16.mxu0 %v12948_v60  ;;  %v12956_v60 = vld [vmem:[#allocation46_spill] sm:$0xff] }
 0xc21   :  { %8306 = vmatpush1.bf16.msra.mxu1 %v12949_v21  ;;  %v12957_v21 = vld [vmem:[#allocation48_spill] sm:$0xff] }
 0xc22   :  { %8307 = vmatprep.subr.bf16.mxu1 %v12646_v11  ;;  %8339 = vmatpush1.bf16.msra.mxu0 %v12950_v7  ;;  %v12969_v7 = vld [vmem:[#allocation29_spill] sm:$0xff] }
 0xc23   :  { %8341 = vmatprep.subr.bf16.mxu0 %v12951_v55  ;;  %v12959_v55 = vld [vmem:[#allocation50_spill] sm:$0xff] }
 0xc25   :  { %8309 = vmatpush1.bf16.msra.mxu1 %v12952_v54  ;;  %v12960_v54 = vld [vmem:[#allocation64_spill] sm:$0xff] }
 0xc26   :  { %8310 = vmatprep.subr.bf16.mxu1 %v12646_v11  ;;  %8343 = vmatpush1.bf16.msra.mxu0 %v12953_v39  ;;  %v11193_v39 = vld [vmem:[#allocation7 + $0x2f0] sm:$0x3f] }
 0xc27   :  { %8345 = vmatprep.subr.bf16.mxu0 %v12954_v28  ;;  %12961 = vst [vmem:[#allocation75_spill] sm:$0xff] %v11193_v39  ;;  %v12968_v28 = vld [vmem:[#allocation27_spill] sm:$0xff] }
 0xc29   :  { %8312 = vmatpush1.bf16.msra.mxu1 %v12955_v37  ;;  %v12962_v37 = vld [vmem:[#allocation17_spill] sm:$0xff] }
 0xc2a   :  { %8313 = vmatprep.subr.bf16.mxu1 %v12646_v11  ;;  %8347 = vmatpush1.bf16.msra.mxu0 %v12956_v60  ;;  %v12963_v60 = vld [vmem:[#allocation19_spill] sm:$0xff] }
 0xc2b   :  { %8349 = vmatprep.subr.bf16.mxu0 %v12957_v21  ;;  %v12964_v21 = vld [vmem:[#allocation66_spill] sm:$0xff] }
 0xc2d   :  { %8315 = vmatpush1.bf16.msra.mxu1 %v12958_v63  ;;  %v12965_v63 = vld [vmem:[#allocation21_spill] sm:$0xff] }
 0xc2e   :  { %3883 = vmatprep.subr.mxu1 %v12640_v45  ;;  %8351 = vmatpush1.bf16.msra.mxu0 %v12959_v55  ;;  %v12966_v55 = vld [vmem:[#allocation23_spill] sm:$0xff] }
 0xc2f   :  { %7145 = vmatprep.subr.msk.mxu0 %vm822_vm1, %v12960_v54  ;;  %v12967_v54 = vld [vmem:[#allocation25_spill] sm:$0xff] }
 0xc31   :  { %7133 = vmatpush1.msk.msra.mxu1 %vm822_vm1, %v11193_v39  ;;  %v12973_v39 = vld [vmem:[#allocation37_spill] sm:$0xff] }
 0xc32   :  { %3912 = vmatmul.mubr.f32.vlgmr.msra.gmra.mrb[38].mxu1 %v3701_v59  ;;  %8353 = vmatprep.subr.bf16.mxu1 %v12962_v37  ;;  %v12970_v59 = vld [vmem:[#allocation31_spill] sm:$0xff]  ;;  %v12971_v37 = vld [vmem:[#allocation33_spill] sm:$0xff] }
 0xc33   :  { %8355 = vmatpush1.bf16.msra.mxu1 %v12963_v60  ;;  %7146 = vmatpush1.msk.msra.mxu0 %vm822_vm1, %v12964_v21  ;;  %v12972_v60 = vld [vmem:[#allocation35_spill] sm:$0xff] }
 0xc34   :  { %8357 = vmatprep.subr.bf16.mxu1 %v12965_v63  ;;  %8388 = vmatprep.subr.bf16.mxu0 %v12646_v11  ;;  %v12974_v21 = vld [vmem:[#allocation39_spill] sm:$0xff]  ;;  %v12975_v63 = vld [vmem:[#allocation41_spill] sm:$0xff] }
 0xc37   :  { %8359 = vmatpush1.bf16.msra.mxu1 %v12966_v55  ;;  %v12977_v55 = vld [vmem:[#allocation45_spill] sm:$0xff] }
 0xc38   :  { %8361 = vmatprep.subr.bf16.mxu1 %v12967_v54  ;;  %v12978_v54 = vld [vmem:[#allocation47_spill] sm:$0xff] }
 0xc3b   :  { %8363 = vmatpush1.bf16.msra.mxu1 %v12968_v28  ;;  %v12979_v28 = vld [vmem:[#allocation49_spill] sm:$0xff] }
 0xc3c   :  { %8365 = vmatprep.subr.bf16.mxu1 %v12969_v7  ;;  %v12980_v7 = vld [vmem:[#allocation51_spill] sm:$0xff] }
 0xc3f   :  { %8367 = vmatpush1.bf16.msra.mxu1 %v12970_v59  ;;  %v12981_v59 = vld [vmem:[#allocation65_spill] sm:$0xff] }
 0xc40   :  { %8369 = vmatprep.subr.bf16.mxu1 %v12971_v37  ;;  %v12984_v37 = vld [vmem:[#allocation109_spill] sm:$0xff] }
 0xc43   :  { %8371 = vmatpush1.bf16.msra.mxu1 %v12972_v60  ;;  %v12982_v60 = vld [vmem:[#allocation67_spill] sm:$0xff] }
 0xc44   :  { %8373 = vmatprep.subr.bf16.mxu1 %v12973_v39  ;;  %v12983_v39 = vld [vmem:[#allocation52_spill] sm:$0xff] }
 0xc47   :  { %8375 = vmatpush1.bf16.msra.mxu1 %v12974_v21 }
 0xc48   :  { %8377 = vmatprep.subr.bf16.mxu1 %v12975_v63 }
 0xc4b   :  { %8379 = vmatpush1.bf16.msra.mxu1 %v12976_v24 }
 0xc4c   :  { %8381 = vmatprep.subr.bf16.mxu1 %v12977_v55 }
 0xc4f   :  { %8383 = vmatpush1.bf16.msra.mxu1 %v12978_v54 }
 0xc50   :  { %8385 = vmatprep.subr.bf16.mxu1 %v12979_v28 }
 0xc53   :  { %8387 = vmatpush1.bf16.msra.mxu1 %v12980_v7 }
 0xc54   :  { %7148 = vmatprep.subr.msk.mxu1 %vm822_vm1, %v12981_v59 }
 0xc57   :  { %7149 = vmatpush1.msk.msra.mxu1 %vm822_vm1, %v12982_v60 }
 0xc58   :  { %8416 = vmatprep.subr.bf16.mxu1 %v12983_v39 }
 0xc5c   :  { %v3546_v21 = vpop.f32.mrb[34].mxu0  ;;  %v3617_v63 = vpop.f32.mrb[34].mxu1 }
 0xc5d   :  { %v3694_v24 = vadd.f32 %v3617_v63, %v12984_v37  ;;  %v3548_v52 = vpop.f32.mrb[35].mxu0  ;;  %v3619_v55 = vpop.f32.mrb[35].mxu1  ;;  %v3972_v63 = vrot.slane %v11025_v30, 6 }
 0xc5e   :  { %v11225_v54 = vadd.f32 %v3619_v55, %v12985_v46  ;;  %v12986_v46 = vld [vmem:[#allocation110_spill] sm:$0xff] }
 0xc5f   :  { %v7137_v28 = vmul.f32 -1.442695, %v3694_v24  ;;  %9218 = vtanh.f32 %v3694_v24  ;;  %v3693_v14 = vadd.f32 %v3548_v52, %v12986_v46 }
 0xc60   :  { %9220 = vtanh.f32 %v11225_v54 }
 0xc61   :  { %9222 = vpow2.f32 %v7137_v28  ;;  %v12987_v28 = vld [vmem:[#allocation108_spill] sm:$0xff]  ;;  %v7136_v20 = vmul.f32 -1.442695, %v3693_v14 }
 0xc62   :  { %v3692_v16 = vadd.f32 %v3546_v21, %v12987_v28 }
 0xc64   :  { %v7135_v50 = vmul.f32 -1.442695, %v3692_v16 }
 0xc69   :  { %v9219_v59 = vpop.eup %9218 }
 0xc6a   :  { %v9221_v7 = vpop.eup %9220  ;;  %3979 = vrot.lane.b32.xlu0 %v9219_v59, %s9578_s2 }
 0xc6b   :  { %3981 = vrot.lane.b32.xlu1 %v9221_v7, %s9578_s2  ;;  %v9223_v60 = vpop.eup %9222 }
 0xc6c   :  { %v3952_v39 = vadd.f32 1.0, %v9223_v60 }
 0xc6e   :  { %9224 = vrcp.f32 %v3952_v39 }
 0xc6f   :  { %9226 = vpow2.f32 %v7136_v20 }
 0xc70   :  { %9228 = vpow2.f32 %v7135_v50 }
 0xc78   :  { %v9225_v37 = vpop.eup %9224 }
 0xc79   :  { %v11231_v48 = vmul.f32 %v9225_v37, %v3972_v63  ;;  %v9227_v7 = vpop.eup %9226 }
 0xc7a   :  { %v9229_v59 = vpop.eup %9228  ;;  %v3944_v60 = vadd.f32 1.0, %v9227_v7  ;;  %v12988_v7 = vld [vmem:[#allocation115_spill] sm:$0xff] }
 0xc7b   :  { %v3943_v39 = vadd.f32 1.0, %v9229_v59 }
 0xc7c   :  { %9230 = vrcp.f32 %v3944_v60  ;;  %v12989_v60 = vld [vmem:[#allocation116_spill] sm:$0xff] }
 0xc7d   :  { %9232 = vrcp.f32 %v3943_v39 }
 0xc82   :  { %v11233_v55 = vpop.f32.mrb[36].mxu0 }
 0xc83   :  { %v3690_v24 = vpop.f32.mrb[37].mxu0 }
 0xc86   :  { %v9231_v37 = vpop.eup %9230 }
 0xc87   :  { %v9233_v62 = vpop.eup %9232 }
 0xcdc   :  { %v3980_v30 = vpop.permute.xlu0 %3979 }
 0xcdd   :  { %v3982_v63 = vpop.permute.xlu1 %3981 }
 0xcde   :  { %v3983_v24 = vsel %vm1342_vm2, %v3980_v30, %v3982_v63  ;;  %v3987_v10 = vmul.f32 %v9231_v37, %v3982_v63  ;;  %v4047_v63 = vrot.slane %v11052_v49, 2 }
 0xcdf   :  { %v3771_v52 = vpop.f32.mrb[36].mxu1  ;;  %v3842_v46 = vpop.f32.mrb[38].mxu0  ;;  %v3986_v21 = vmul.f32 %v9233_v62, %v3983_v24 }
 0xce0   :  { %v3924_v14 = vrot.slane %v3842_v46, 2  ;;  %v3773_v16 = vpop.f32.mrb[37].mxu1  ;;  %v3844_v20 = vpop.f32.mrb[39].mxu0  ;;  %3992 = vrot.lane.b32.xlu1 %v3987_v10, %s9579_s4 }
 0xce1   :  { %v3925_v50 = vrot.slane %v3844_v20, 2  ;;  %3990 = vrot.lane.b32.xlu0 %v3986_v21, %s9579_s4 }
 0xce2   :  { %v3934_v59 = vadd.f32 %v3924_v14, %v12988_v7  ;;  %v12991_v7 = vld [vmem:[#allocation113_spill] sm:$0xff] }
 0xce3   :  { %v11242_v39 = vadd.f32 %v3925_v50, %v12989_v60  ;;  %v3923_v50 = vrot.slane %v3773_v16, 2 }
 0xce4   :  { %v7142_v28 = vmul.f32 -1.442695, %v3934_v59  ;;  %9234 = vtanh.f32 %v3934_v59  ;;  %v3922_v59 = vrot.slane %v3771_v52, 2 }
 0xce5   :  { %9236 = vtanh.f32 %v11242_v39 }
 0xce6   :  { %9238 = vpow2.f32 %v7142_v28  ;;  %v12990_v28 = vld [vmem:[#allocation114_spill] sm:$0xff]  ;;  %v3932_v43 = vadd.f32 %v3922_v59, %v12991_v7 }
 0xce7   :  { %v3933_v60 = vadd.f32 %v3923_v50, %v12990_v28 }
 0xce8   :  { %v7140_v61 = vmul.f32 -1.442695, %v3932_v43 }
 0xcee   :  { %v9235_v30 = vpop.eup %9234 }
 0xcef   :  { %v9237_v62 = vpop.eup %9236  ;;  %4054 = vrot.lane.b32.xlu0 %v9235_v30, %s9578_s2  ;;  %v7141_v30 = vmul.f32 -1.442695, %v3933_v60 }
 0xcf0   :  { %4056 = vrot.lane.b32.xlu1 %v9237_v62, %s9578_s2  ;;  %v9239_v10 = vpop.eup %9238  ;;  %v3971_v62 = vrot.slane %v11022_v18, 6 }
 0xcf1   :  { %v4027_v46 = vadd.f32 1.0, %v9239_v10 }
 0xcf3   :  { %9240 = vrcp.f32 %v4027_v46 }
 0xcf4   :  { %9242 = vpow2.f32 %v7141_v30 }
 0xcf5   :  { %9244 = vpow2.f32 %v7140_v61 }
 0xcfd   :  { %v9241_v24 = vpop.eup %9240 }
 0xcfe   :  { %v11248_v21 = vmul.f32 %v9241_v24, %v4047_v63  ;;  %v9243_v10 = vpop.eup %9242  ;;  %v3975_v63 = vmul.f32 %v9231_v37, %v3971_v62 }
 0xcff   :  { %v9245_v49 = vpop.eup %9244  ;;  %v4019_v8 = vadd.f32 1.0, %v9243_v10 }
 0xd00   :  { %v4018_v52 = vadd.f32 1.0, %v9245_v49  ;;  %v7138_v49 = vmul.f32 -1.442695, %v11225_v54 }
 0xd05   :  { %v11250_v14 = vpop.f32.mrb[38].mxu1 }
 0xd06   :  { %v3915_v20 = vpop.f32.mrb[39].mxu1 }
 0xd52   :  { %v3993_v46 = vpop.permute.xlu1 %3992 }
 0xd53   :  { %v3991_v24 = vpop.permute.xlu0 %3990 }
 0xd54   :  { %v3994_v20 = vsel %vm818_vm3, %v3991_v24, %v3993_v46  ;;  %v11256_v16 = vadd.f32 %v3991_v24, %v3975_v63 }
 0xd55   :  { %v11259_v50 = vadd.f32 %v3994_v20, %v11231_v48 }
 0xd56   :  { %9246 = vtanh.f32 %v11256_v16 }
 0xd57   :  { %9248 = vtanh.f32 %v11259_v50 }
 0xd58   :  { %9250 = vrcp.f32 %v4019_v8  ;;  %v12992_v8 = vld [vmem:[#allocation112_spill] sm:$0xff] }
 0xd59   :  { %9252 = vrcp.f32 %v4018_v52  ;;  %v3696_v10 = vadd.f32 %v11233_v55, %v12992_v8 }
 0xd5a   :  { %9254 = vpow2.f32 %v7138_v49 }
 0xd5b   :  { %v7139_v46 = vmul.f32 -1.442695, %v3696_v10 }
 0xd5d   :  { %9256 = vpow2.f32 %v7139_v46 }
 0xd60   :  { %v9247_v18 = vpop.eup %9246 }
 0xd61   :  { %v9249_v61 = vpop.eup %9248  ;;  %4003 = vrot.lane.b32.xlu0 %v9247_v18, %s9580_s23  ;;  %v4055_v43 = vpop.permute.xlu0 %4054 }
 0xd62   :  { %v9251_v37 = vpop.eup %9250  ;;  %v4057_v60 = vpop.permute.xlu1 %4056  ;;  %4005 = vrot.lane.b32.xlu1 %v9249_v61, %s9580_s23 }
 0xd63   :  { %v9253_v59 = vpop.eup %9252  ;;  %v4058_v30 = vsel %vm1342_vm2, %v4055_v43, %v4057_v60  ;;  %v4062_v48 = vmul.f32 %v9251_v37, %v4057_v60 }
 0xd64   :  { %v4061_v62 = vmul.f32 %v9253_v59, %v4058_v30  ;;  %v9255_v63 = vpop.eup %9254  ;;  %v4046_v30 = vrot.slane %v11049_v47, 2 }
 0xd65   :  { %v3963_v20 = vadd.f32 1.0, %v9255_v63 }
 0xd66   :  { %4067 = vrot.lane.b32.xlu1 %v4062_v48, %s9579_s4  ;;  %4065 = vrot.lane.b32.xlu0 %v4061_v62, %s9579_s4  ;;  %v4050_v48 = vmul.f32 %v9251_v37, %v4046_v30 }
 0xd67   :  { %v9257_v24 = vpop.eup %9256  ;;  %9258 = vrcp.f32 %v3963_v20  ;;  %v3926_v20 = vrot.slane %v11250_v14, 2 }
 0xd68   :  { %v3964_v52 = vadd.f32 1.0, %v9257_v24 }
 0xd6a   :  { %9260 = vrcp.f32 %v3964_v52  ;;  %v12995_v52 = vld [vmem:[#allocation117_spill] sm:$0xff] }
 0xd71   :  { %v9259_v18 = vpop.eup %9258 }
 0xd74   :  { %v9261_v59 = vpop.eup %9260 }
 0xdd3   :  { %v4004_v61 = vpop.permute.xlu0 %4003 }
 0xdd4   :  { %v11271_v43 = vmul.f32 %v9259_v18, %v4004_v61  ;;  %v4006_v60 = vpop.permute.xlu1 %4005  ;;  %v3936_v18 = vadd.f32 %v3926_v20, %v12995_v52 }
 0xdd5   :  { %v4007_v55 = vsel %vm1367_vm4, %v4004_v61, %v4006_v60  ;;  %v7143_v61 = vmul.f32 -1.442695, %v11242_v39 }
 0xdd6   :  { %12993 = vst [vmem:[#allocation74_spill] sm:$0xff] %v11271_v43  ;;  %v11275_v54 = vmul.f32 %v9261_v59, %v4007_v55  ;;  %4122 = vrot.lane.b32.xlu0 %v11271_v43, %s9581_s24  ;;  %v7144_v60 = vmul.f32 -1.442695, %v3936_v18  ;;  %v13016_v43 = vld [vmem:[#allocation84_spill] sm:$0xff] }
 0xdd8   :  { %12994 = vst [vmem:[#allocation79_spill] sm:$0xff] %v11275_v54  ;;  %v4068_v10 = vpop.permute.xlu1 %4067  ;;  %4124 = vrot.lane.b32.xlu1 %v11275_v54, %s9581_s24  ;;  %v4066_v49 = vpop.permute.xlu0 %4065  ;;  %v13013_v54 = vld [vmem:[#allocation81_spill] sm:$0xff] }
 0xdd9   :  { %v4069_v46 = vsel %vm818_vm3, %v4066_v49, %v4068_v10  ;;  %v11284_v63 = vadd.f32 %v4066_v49, %v4050_v48 }
 0xdda   :  { %v11287_v47 = vadd.f32 %v4069_v46, %v11248_v21 }
 0xddb   :  { %9262 = vtanh.f32 %v11284_v63 }
 0xddc   :  { %9264 = vtanh.f32 %v11287_v47 }
 0xddd   :  { %9266 = vpow2.f32 %v7143_v61 }
 0xdde   :  { %9268 = vpow2.f32 %v7144_v60 }
 0xde5   :  { %v9263_v37 = vpop.eup %9262 }
 0xde6   :  { %v9265_v24 = vpop.eup %9264  ;;  %4078 = vrot.lane.b32.xlu0 %v9263_v37, %s9580_s23 }
 0xde7   :  { %4080 = vrot.lane.b32.xlu1 %v9265_v24, %s9580_s23  ;;  %v9267_v21 = vpop.eup %9266 }
 0xde8   :  { %v9269_v59 = vpop.eup %9268  ;;  %v4038_v30 = vadd.f32 1.0, %v9267_v21 }
 0xde9   :  { %v4039_v49 = vadd.f32 1.0, %v9269_v59  ;;  %v13000_v59 = vld [vmem:[#allocation91_spill] sm:$0xff] }
 0xdea   :  { %9270 = vrcp.f32 %v4038_v30  ;;  %v13001_v30 = vld [vmem:[#allocation92_spill] sm:$0xff] }
 0xdeb   :  { %9272 = vrcp.f32 %v4039_v49  ;;  %v13006_v49 = vld [vmem:[#allocation100_spill] sm:$0xff] }
 0xdf4   :  { %v9271_v39 = vpop.eup %9270 }
 0xdf5   :  { %v9273_v24 = vpop.eup %9272 }
 0xe48   :  { %v4123_v55 = vpop.permute.xlu0 %4122 }
 0xe4a   :  { %v4125_v48 = vpop.permute.xlu1 %4124 }
 0xe4b   :  { %7147 = vmatprep.mubr.msk.f32.mxu0 %vm818_vm3, %v4125_v48  ;;  %7150 = vmatprep.mubr.msk.f32.mxu1 %vm818_vm3, %v4125_v48  ;;  %v4126_v10 = vsel %vm1455_vm5, %v4123_v55, %v4125_v48  ;;  %v13002_v55 = vld [vmem:[#allocation94_spill] sm:$0xff] }
 0xe4c   :  { %4195 = vmatmul.mubr.f32.vlgmr.msra.gmra.mrb[40].mxu0 %v4126_v10  ;;  %4266 = vmatmul.mubr.f32.vlgmr.msra.gmra.mrb[40].mxu1 %v4126_v10 }
 0xe4d   :  { %8390 = vmatpush1.bf16.msra.mxu0 %v9967_v29  ;;  %7152 = vmatprep.mubr.msk.f32.mxu0 %vm818_vm3, %v4125_v48  ;;  %v13004_v48 = vld [vmem:[#allocation97_spill] sm:$0xff] }
 0xe4e   :  { %8391 = vmatprep.subr.bf16.mxu0 %v12646_v11  ;;  %8418 = vmatpush1.bf16.msra.mxu1 %v9963_v31 }
 0xe4f   :  { %8420 = vmatprep.subr.bf16.mxu1 %v9969_v36 }
 0xe51   :  { %8393 = vmatpush1.bf16.msra.mxu0 %v12690_v42 }
 0xe52   :  { %8394 = vmatprep.subr.bf16.mxu0 %v12646_v11  ;;  %8422 = vmatpush1.bf16.msra.mxu1 %v12691_v32 }
 0xe53   :  { %8424 = vmatprep.subr.bf16.mxu1 %v12692_v19 }
 0xe55   :  { %8396 = vmatpush1.bf16.msra.mxu0 %v12694_v51 }
 0xe56   :  { %8397 = vmatprep.subr.bf16.mxu0 %v12646_v11  ;;  %8426 = vmatpush1.bf16.msra.mxu1 %v12695_v44 }
 0xe57   :  { %8428 = vmatprep.subr.bf16.mxu1 %v12696_v5 }
 0xe58   :  { %v4079_v14 = vpop.permute.xlu0 %4078 }
 0xe59   :  { %8399 = vmatpush1.bf16.msra.mxu0 %v12697_v56  ;;  %v11313_v46 = vmul.f32 %v9271_v39, %v4079_v14  ;;  %v4081_v37 = vpop.permute.xlu1 %4080  ;;  %v13007_v39 = vld [vmem:[#allocation101_spill] sm:$0xff] }
 0xe5a   :  { %v4082_v20 = vsel %vm1367_vm4, %v4079_v14, %v4081_v37  ;;  %8400 = vmatprep.subr.bf16.mxu0 %v12646_v11  ;;  %8430 = vmatpush1.bf16.msra.mxu1 %v12698_v3  ;;  %v13008_v14 = vld [vmem:[#allocation103_spill] sm:$0xff]  ;;  %v13009_v37 = vld [vmem:[#allocation104_spill] sm:$0xff] }
 0xe5b   :  { %12996 = vst [vmem:[#allocation80_spill] sm:$0xff] %v11313_v46  ;;  %v4362_v18 = vrot.slane %v11313_v46, 6  ;;  %v11319_v61 = vmul.f32 %v9273_v24, %v4082_v20  ;;  %8432 = vmatprep.subr.bf16.mxu1 %v12700_v57  ;;  %v13010_v24 = vld [vmem:[#allocation71_spill] sm:$0xff]  ;;  %v13011_v20 = vld [vmem:[#allocation73_spill] sm:$0xff]  ;;  %v13018_v46 = vld [vmem:[#allocation24_spill] sm:$0xff] }
 0xe5d   :  { %12997 = vst [vmem:[#allocation55_spill] sm:$0xff] %v11319_v61  ;;  %8402 = vmatpush1.bf16.msra.mxu0 %v12701_v17  ;;  %4364 = vrot.lane.b32.xlu0 %v4362_v18, %s9581_s24  ;;  %v4363_v21 = vrot.slane %v11319_v61, 6  ;;  %v13012_v18 = vld [vmem:[#allocation16_spill] sm:$0xff]  ;;  %v13017_v61 = vld [vmem:[#allocation22_spill] sm:$0xff] }
 0xe5e   :  { %8403 = vmatprep.subr.bf16.mxu0 %v12646_v11  ;;  %8434 = vmatpush1.bf16.msra.mxu1 %v12702_v22 }
 0xe5f   :  { %4366 = vrot.lane.b32.xlu1 %v4363_v21, %s9581_s24  ;;  %8436 = vmatprep.subr.bf16.mxu1 %v12769_v1 }
 0xe61   :  { %8405 = vmatpush1.bf16.msra.mxu0 %v12770_v12 }
 0xe62   :  { %8406 = vmatprep.subr.bf16.mxu0 %v12646_v11  ;;  %8438 = vmatpush1.bf16.msra.mxu1 %v12771_v53 }
 0xe63   :  { %8440 = vmatprep.subr.bf16.mxu1 %v12772_v33 }
 0xe65   :  { %8408 = vmatpush1.bf16.msra.mxu0 %v12773_v6 }
 0xe66   :  { %8409 = vmatprep.subr.bf16.mxu0 %v12646_v11  ;;  %8442 = vmatpush1.bf16.msra.mxu1 %v12774_v25 }
 0xe67   :  { %8444 = vmatprep.subr.bf16.mxu1 %v12775_v35 }
 0xe69   :  { %8411 = vmatpush1.bf16.msra.mxu0 %v12776_v2 }
 0xe6a   :  { %8412 = vmatprep.subr.bf16.mxu0 %v12646_v11  ;;  %8446 = vmatpush1.bf16.msra.mxu1 %v12777_v40 }
 0xe6b   :  { %8448 = vmatprep.subr.bf16.mxu1 %v12778_v0 }
 0xe6d   :  { %8414 = vmatpush1.bf16.msra.mxu0 %v12779_v9 }
 0xe6e   :  { %4308 = vmatprep.subr.mxu0 %v12640_v45  ;;  %8450 = vmatpush1.bf16.msra.mxu1 %v12780_v15 }
 0xe6f   :  { %7153 = vmatprep.subr.msk.mxu1 %vm822_vm1, %v11112_v41  ;;  %v12998_v41 = vld [vmem:[#allocation88_spill] sm:$0xff] }
 0xe71   :  { %7151 = vmatpush1.msk.msra.mxu0 %vm822_vm1, %v11116_v4  ;;  %v12999_v4 = vld [vmem:[#allocation89_spill] sm:$0xff] }
 0xe72   :  { %4337 = vmatmul.mubr.f32.vlgmr.msra.gmra.mrb[42].mxu0 %v4126_v10  ;;  %8452 = vmatprep.subr.bf16.mxu0 %v12781_v27  ;;  %v13005_v10 = vld [vmem:[#allocation98_spill] sm:$0xff] }
 0xe73   :  { %8454 = vmatpush1.bf16.msra.mxu0 %v12782_v38  ;;  %7154 = vmatpush1.msk.msra.mxu1 %vm822_vm1, %v11122_v58  ;;  %v13003_v58 = vld [vmem:[#allocation95_spill] sm:$0xff] }
 0xe74   :  { %8456 = vmatprep.subr.bf16.mxu0 %v12720_v34  ;;  %8487 = vmatprep.subr.bf16.mxu1 %v12646_v11 }
 0xe77   :  { %8458 = vmatpush1.bf16.msra.mxu0 %v12721_v23 }
 0xe78   :  { %8460 = vmatprep.subr.bf16.mxu0 %v12843_v26 }
 0xe7b   :  { %8462 = vmatpush1.bf16.msra.mxu0 %v12844_v13 }
 0xe7c   :  { %8464 = vmatprep.subr.bf16.mxu0 %v12998_v41 }
 0xe7f   :  { %8466 = vmatpush1.bf16.msra.mxu0 %v12999_v4 }
 0xe80   :  { %8468 = vmatprep.subr.bf16.mxu0 %v13000_v59 }
 0xe83   :  { %8470 = vmatpush1.bf16.msra.mxu0 %v13001_v30 }
 0xe84   :  { %8472 = vmatprep.subr.bf16.mxu0 %v13002_v55 }
 0xe87   :  { %8474 = vmatpush1.bf16.msra.mxu0 %v13003_v58  ;;  %v13066_v58 = vld [vmem:[#allocation108_spill] sm:$0xff] }
 0xe88   :  { %8476 = vmatprep.subr.bf16.mxu0 %v13004_v48 }
 0xe8b   :  { %8478 = vmatpush1.bf16.msra.mxu0 %v13005_v10 }
 0xe8c   :  { %8480 = vmatprep.subr.bf16.mxu0 %v13006_v49 }
 0xe8f   :  { %8482 = vmatpush1.bf16.msra.mxu0 %v13007_v39 }
 0xe90   :  { %8484 = vmatprep.subr.bf16.mxu0 %v13008_v14  ;;  %v13064_v14 = vld [vmem:[#allocation111_spill] sm:$0xff] }
 0xe93   :  { %8486 = vmatpush1.bf16.msra.mxu0 %v13009_v37  ;;  %v13055_v37 = vld [vmem:[#allocation43_spill] sm:$0xff] }
 0xe94   :  { %7156 = vmatprep.subr.msk.mxu0 %vm822_vm1, %v13010_v24  ;;  %v13014_v24 = vld [vmem:[#allocation18_spill] sm:$0xff] }
 0xe97   :  { %7157 = vmatpush1.msk.msra.mxu0 %vm822_vm1, %v13011_v20  ;;  %v13015_v20 = vld [vmem:[#allocation20_spill] sm:$0xff] }
 0xe98   :  { %8515 = vmatprep.subr.bf16.mxu0 %v13012_v18  ;;  %v13022_v18 = vld [vmem:[#allocation90_spill] sm:$0xff] }
 0xecf   :  { %v4365_v21 = vpop.permute.xlu0 %4364 }
 0xed1   :  { %v4367_v62 = vpop.permute.xlu1 %4366 }
 0xed2   :  { %7155 = vmatprep.mubr.msk.f32.mxu1 %vm818_vm3, %v4367_v62  ;;  %7158 = vmatprep.mubr.msk.f32.mxu0 %vm818_vm3, %v4367_v62  ;;  %v4368_v60 = vsel %vm1455_vm5, %v4365_v21, %v4367_v62  ;;  %v13019_v21 = vld [vmem:[#allocation87_spill] sm:$0xff] }
 0xed3   :  { %4437 = vmatmul.mubr.f32.vlgmr.msra.gmra.mrb[42].mxu1 %v4368_v60  ;;  %4508 = vmatmul.mubr.f32.vlgmr.msra.gmra.mrb[44].mxu0 %v4368_v60 }
 0xed4   :  { %8489 = vmatpush1.bf16.msra.mxu1 %v13013_v54  ;;  %7160 = vmatprep.mubr.msk.f32.mxu1 %vm818_vm3, %v4367_v62  ;;  %v13020_v54 = vld [vmem:[#allocation26_spill] sm:$0xff]  ;;  %v13021_v62 = vld [vmem:[#allocation28_spill] sm:$0xff] }
 0xed5   :  { %8490 = vmatprep.subr.bf16.mxu1 %v12646_v11  ;;  %8517 = vmatpush1.bf16.msra.mxu0 %v13014_v24  ;;  %v13025_v24 = vld [vmem:[#allocation93_spill] sm:$0xff] }
 0xed6   :  { %8519 = vmatprep.subr.bf16.mxu0 %v13015_v20  ;;  %v13023_v20 = vld [vmem:[#allocation30_spill] sm:$0xff] }
 0xed8   :  { %8492 = vmatpush1.bf16.msra.mxu1 %v13016_v43  ;;  %v13024_v43 = vld [vmem:[#allocation32_spill] sm:$0xff] }
 0xed9   :  { %8493 = vmatprep.subr.bf16.mxu1 %v12646_v11  ;;  %8521 = vmatpush1.bf16.msra.mxu0 %v13017_v61  ;;  %v13028_v61 = vld [vmem:[#allocation96_spill] sm:$0xff] }
 0xeda   :  { %8523 = vmatprep.subr.bf16.mxu0 %v13018_v46  ;;  %v13026_v46 = vld [vmem:[#allocation34_spill] sm:$0xff] }
 0xedc   :  { %8495 = vmatpush1.bf16.msra.mxu1 %v13019_v21  ;;  %v13027_v21 = vld [vmem:[#allocation36_spill] sm:$0xff] }
 0xedd   :  { %8496 = vmatprep.subr.bf16.mxu1 %v12646_v11  ;;  %8525 = vmatpush1.bf16.msra.mxu0 %v13020_v54  ;;  %v13031_v54 = vld [vmem:[#allocation99_spill] sm:$0xff] }
 0xede   :  { %8527 = vmatprep.subr.bf16.mxu0 %v13021_v62  ;;  %v13029_v62 = vld [vmem:[#allocation38_spill] sm:$0xff] }
 0xee0   :  { %8498 = vmatpush1.bf16.msra.mxu1 %v13022_v18  ;;  %v13030_v18 = vld [vmem:[#allocation40_spill] sm:$0xff] }
 0xee1   :  { %8499 = vmatprep.subr.bf16.mxu1 %v12646_v11  ;;  %8529 = vmatpush1.bf16.msra.mxu0 %v13023_v20  ;;  %v13034_v20 = vld [vmem:[#allocation102_spill] sm:$0xff] }
 0xee2   :  { %8531 = vmatprep.subr.bf16.mxu0 %v13024_v43  ;;  %v13032_v43 = vld [vmem:[#allocation42_spill] sm:$0xff] }
 0xee4   :  { %8501 = vmatpush1.bf16.msra.mxu1 %v13025_v24  ;;  %v13033_v24 = vld [vmem:[#allocation44_spill] sm:$0xff] }
 0xee5   :  { %8502 = vmatprep.subr.bf16.mxu1 %v12646_v11  ;;  %8533 = vmatpush1.bf16.msra.mxu0 %v13026_v46  ;;  %v13037_v46 = vld [vmem:[#allocation105_spill] sm:$0xff] }
 0xee6   :  { %8535 = vmatprep.subr.bf16.mxu0 %v13027_v21  ;;  %v13035_v21 = vld [vmem:[#allocation46_spill] sm:$0xff] }
 0xee8   :  { %8504 = vmatpush1.bf16.msra.mxu1 %v13028_v61  ;;  %v13036_v61 = vld [vmem:[#allocation48_spill] sm:$0xff] }
 0xee9   :  { %8505 = vmatprep.subr.bf16.mxu1 %v12646_v11  ;;  %8537 = vmatpush1.bf16.msra.mxu0 %v13029_v62  ;;  %v13052_v62 = vld [vmem:[#allocation37_spill] sm:$0xff] }
 0xeea   :  { %8539 = vmatprep.subr.bf16.mxu0 %v13030_v18  ;;  %v13038_v18 = vld [vmem:[#allocation50_spill] sm:$0xff] }
 0xeec   :  { %8507 = vmatpush1.bf16.msra.mxu1 %v13031_v54  ;;  %v11415_v54 = vld [vmem:[#allocation4 + $0x2d8] sm:$0x3f] }
 0xeed   :  { %8508 = vmatprep.subr.bf16.mxu1 %v12646_v11  ;;  %8541 = vmatpush1.bf16.msra.mxu0 %v13032_v43  ;;  %13039 = vst [vmem:[#allocation57_spill] sm:$0xff] %v11415_v54  ;;  %v13047_v43 = vld [vmem:[#allocation27_spill] sm:$0xff] }
 0xeee   :  { %8543 = vmatprep.subr.bf16.mxu0 %v13033_v24  ;;  %v13040_v24 = vld [vmem:[#allocation75_spill] sm:$0xff] }
 0xef0   :  { %8510 = vmatpush1.bf16.msra.mxu1 %v13034_v20  ;;  %v13041_v20 = vld [vmem:[#allocation17_spill] sm:$0xff] }
 0xef1   :  { %8511 = vmatprep.subr.bf16.mxu1 %v12646_v11  ;;  %8545 = vmatpush1.bf16.msra.mxu0 %v13035_v21  ;;  %v13042_v21 = vld [vmem:[#allocation19_spill] sm:$0xff] }
 0xef2   :  { %8547 = vmatprep.subr.bf16.mxu0 %v13036_v61  ;;  %v11423_v61 = vld [vmem:[#allocation4 + $0x2d0] sm:$0x3f] }
 0xef3   :  { %13043 = vst [vmem:[#allocation56_spill] sm:$0xff] %v11423_v61 }
 0xef4   :  { %8513 = vmatpush1.bf16.msra.mxu1 %v13037_v46  ;;  %v13044_v46 = vld [vmem:[#allocation21_spill] sm:$0xff] }
 0xef5   :  { %4550 = vmatprep.subr.mxu1 %v12640_v45  ;;  %8549 = vmatpush1.bf16.msra.mxu0 %v13038_v18  ;;  %v13045_v18 = vld [vmem:[#allocation23_spill] sm:$0xff] }
 0xef6   :  { %7171 = vmatprep.subr.msk.mxu0 %vm822_vm1, %v11415_v54  ;;  %v13046_v54 = vld [vmem:[#allocation25_spill] sm:$0xff] }
 0xef8   :  { %7159 = vmatpush1.msk.msra.mxu1 %vm822_vm1, %v13040_v24  ;;  %v13049_v24 = vld [vmem:[#allocation31_spill] sm:$0xff] }
 0xef9   :  { %4579 = vmatmul.mubr.f32.vlgmr.msra.gmra.mrb[44].mxu1 %v4368_v60  ;;  %8551 = vmatprep.subr.bf16.mxu1 %v13041_v20  ;;  %v13048_v60 = vld [vmem:[#allocation29_spill] sm:$0xff]  ;;  %v13051_v20 = vld [vmem:[#allocation35_spill] sm:$0xff] }
 0xefa   :  { %8553 = vmatpush1.bf16.msra.mxu1 %v13042_v21  ;;  %7172 = vmatpush1.msk.msra.mxu0 %vm822_vm1, %v11423_v61  ;;  %v13050_v21 = vld [vmem:[#allocation33_spill] sm:$0xff]  ;;  %v13053_v61 = vld [vmem:[#allocation39_spill] sm:$0xff] }
 0xefb   :  { %8555 = vmatprep.subr.bf16.mxu1 %v13044_v46  ;;  %8586 = vmatprep.subr.bf16.mxu0 %v12646_v11  ;;  %v13054_v46 = vld [vmem:[#allocation41_spill] sm:$0xff] }
 0xefe   :  { %8557 = vmatpush1.bf16.msra.mxu1 %v13045_v18  ;;  %v13056_v18 = vld [vmem:[#allocation45_spill] sm:$0xff] }
 0xeff   :  { %8559 = vmatprep.subr.bf16.mxu1 %v13046_v54  ;;  %v13057_v54 = vld [vmem:[#allocation47_spill] sm:$0xff] }
 0xf02   :  { %8561 = vmatpush1.bf16.msra.mxu1 %v13047_v43  ;;  %v13058_v43 = vld [vmem:[#allocation49_spill] sm:$0xff] }
 0xf03   :  { %8563 = vmatprep.subr.bf16.mxu1 %v13048_v60  ;;  %v13059_v60 = vld [vmem:[#allocation51_spill] sm:$0xff] }
 0xf06   :  { %8565 = vmatpush1.bf16.msra.mxu1 %v13049_v24  ;;  %v11444_v24 = vld [vmem:[#allocation4 + $0x2e8] sm:$0x3f] }
 0xf07   :  { %8567 = vmatprep.subr.bf16.mxu1 %v13050_v21  ;;  %13060 = vst [vmem:[#allocation58_spill] sm:$0xff] %v11444_v24  ;;  %v13063_v21 = vld [vmem:[#allocation109_spill] sm:$0xff] }
 0xf0a   :  { %8569 = vmatpush1.bf16.msra.mxu1 %v13051_v20 }
 0xf0b   :  { %8571 = vmatprep.subr.bf16.mxu1 %v13052_v62  ;;  %v11448_v62 = vld [vmem:[#allocation4 + $0x2e0] sm:$0x3f] }
 0xf0c   :  { %13061 = vst [vmem:[#allocation62_spill] sm:$0xff] %v11448_v62 }
 0xf0e   :  { %8573 = vmatpush1.bf16.msra.mxu1 %v13053_v61  ;;  %v13062_v61 = vld [vmem:[#allocation52_spill] sm:$0xff] }
 0xf0f   :  { %8575 = vmatprep.subr.bf16.mxu1 %v13054_v46 }
 0xf12   :  { %8577 = vmatpush1.bf16.msra.mxu1 %v13055_v37 }
 0xf13   :  { %8579 = vmatprep.subr.bf16.mxu1 %v13056_v18 }
 0xf16   :  { %8581 = vmatpush1.bf16.msra.mxu1 %v13057_v54 }
 0xf17   :  { %8583 = vmatprep.subr.bf16.mxu1 %v13058_v43 }
 0xf1a   :  { %8585 = vmatpush1.bf16.msra.mxu1 %v13059_v60 }
 0xf1b   :  { %7174 = vmatprep.subr.msk.mxu1 %vm822_vm1, %v11444_v24 }
 0xf1e   :  { %7175 = vmatpush1.msk.msra.mxu1 %vm822_vm1, %v11448_v62 }
 0xf1f   :  { %v4196_v46 = vpop.f32.mrb[40].mxu0  ;;  %v4267_v37 = vpop.f32.mrb[40].mxu1  ;;  %8614 = vmatprep.subr.bf16.mxu1 %v13062_v61 }
 0xf20   :  { %v4349_v18 = vrot.slane %v4267_v37, 6  ;;  %v4198_v54 = vpop.f32.mrb[41].mxu0  ;;  %v4269_v20 = vpop.f32.mrb[41].mxu1  ;;  %v4347_v10 = vrot.slane %v4196_v46, 6 }
 0xf21   :  { %v4350_v43 = vrot.slane %v4269_v20, 6  ;;  %v4639_v20 = vrot.slane %v11259_v50, 6 }
 0xf22   :  { %v4359_v60 = vadd.f32 %v4349_v18, %v13063_v21  ;;  %v4357_v55 = vadd.f32 %v4347_v10, %v13066_v58 }
 0xf23   :  { %v11455_v39 = vadd.f32 %v4350_v43, %v13064_v14  ;;  %v4348_v14 = vrot.slane %v4198_v54, 6 }
 0xf24   :  { %v7163_v49 = vmul.f32 -1.442695, %v4359_v60  ;;  %9274 = vtanh.f32 %v4359_v60  ;;  %v7161_v30 = vmul.f32 -1.442695, %v4357_v55 }
 0xf25   :  { %9276 = vtanh.f32 %v11455_v39 }
 0xf26   :  { %9278 = vpow2.f32 %v7163_v49  ;;  %v13065_v49 = vld [vmem:[#allocation110_spill] sm:$0xff] }
 0xf27   :  { %v4358_v48 = vadd.f32 %v4348_v14, %v13065_v49 }
 0xf2e   :  { %v9275_v24 = vpop.eup %9274 }
 0xf2f   :  { %v9277_v62 = vpop.eup %9276  ;;  %4646 = vrot.lane.b32.xlu0 %v9275_v24, %s9578_s2  ;;  %v7162_v24 = vmul.f32 -1.442695, %v4358_v48 }
 0xf30   :  { %4648 = vrot.lane.b32.xlu1 %v9277_v62, %s9578_s2  ;;  %v9279_v37 = vpop.eup %9278 }
 0xf31   :  { %v4619_v61 = vadd.f32 1.0, %v9279_v37 }
 0xf33   :  { %9280 = vrcp.f32 %v4619_v61 }
 0xf34   :  { %9282 = vpow2.f32 %v7162_v24 }
 0xf35   :  { %9284 = vpow2.f32 %v7161_v30 }
 0xf3d   :  { %v9281_v18 = vpop.eup %9280 }
 0xf3e   :  { %v11461_v21 = vmul.f32 %v9281_v18, %v4639_v20  ;;  %v9283_v62 = vpop.eup %9282 }
 0xf3f   :  { %v9285_v61 = vpop.eup %9284  ;;  %v4611_v37 = vadd.f32 1.0, %v9283_v62 }
 0xf40   :  { %v4610_v50 = vadd.f32 1.0, %v9285_v61  ;;  %v13067_v61 = vld [vmem:[#allocation115_spill] sm:$0xff] }
 0xf41   :  { %9286 = vrcp.f32 %v4611_v37 }
 0xf42   :  { %9288 = vrcp.f32 %v4610_v50  ;;  %v13068_v50 = vld [vmem:[#allocation116_spill] sm:$0xff] }
 0xf45   :  { %v11463_v43 = vpop.f32.mrb[42].mxu0 }
 0xf46   :  { %v4340_v60 = vpop.f32.mrb[43].mxu0 }
 0xf4b   :  { %v9287_v18 = vpop.eup %9286 }
 0xf4c   :  { %v9289_v60 = vpop.eup %9288 }
 0xfa1   :  { %v4647_v20 = vpop.permute.xlu0 %4646 }
 0xfa2   :  { %v4649_v59 = vpop.permute.xlu1 %4648 }
 0xfa3   :  { %v4650_v54 = vsel %vm1342_vm2, %v4647_v20, %v4649_v59  ;;  %v4654_v46 = vmul.f32 %v9287_v18, %v4649_v59 }
 0xfa4   :  { %v4653_v14 = vmul.f32 %v9289_v60, %v4650_v54 }
 0xfa5   :  { %4659 = vrot.lane.b32.xlu1 %v4654_v46, %s9579_s4  ;;  %v4714_v46 = vrot.slane %v11287_v47, 2 }
 0xfa6   :  { %v4438_v48 = vpop.f32.mrb[42].mxu1  ;;  %v4509_v55 = vpop.f32.mrb[44].mxu0  ;;  %4657 = vrot.lane.b32.xlu0 %v4653_v14, %s9579_s4 }
 0xfa7   :  { %v4591_v30 = vrot.slane %v4509_v55, 4  ;;  %v4440_v10 = vpop.f32.mrb[43].mxu1  ;;  %v4511_v24 = vpop.f32.mrb[45].mxu0 }
 0xfa8   :  { %v4592_v62 = vrot.slane %v4511_v24, 4 }
 0xfa9   :  { %v4601_v37 = vadd.f32 %v4591_v30, %v13067_v61 }
 0xfaa   :  { %v11472_v58 = vadd.f32 %v4592_v62, %v13068_v50  ;;  %v4590_v62 = vrot.slane %v4440_v10, 4 }
 0xfab   :  { %v7168_v49 = vmul.f32 -1.442695, %v4601_v37  ;;  %9290 = vtanh.f32 %v4601_v37  ;;  %v4589_v37 = vrot.slane %v4438_v48, 4 }
 0xfac   :  { %9292 = vtanh.f32 %v11472_v58 }
 0xfad   :  { %9294 = vpow2.f32 %v7168_v49  ;;  %v4600_v49 = vadd.f32 %v4590_v62, %v12990_v28  ;;  %v4599_v50 = vadd.f32 %v4589_v37, %v12991_v7 }
 0xfaf   :  { %v7166_v61 = vmul.f32 -1.442695, %v4599_v50 }
 0xfb5   :  { %v9291_v59 = vpop.eup %9290 }
 0xfb6   :  { %v9293_v20 = vpop.eup %9292  ;;  %4721 = vrot.lane.b32.xlu0 %v9291_v59, %s9578_s2  ;;  %v7167_v59 = vmul.f32 -1.442695, %v4600_v49 }
 0xfb7   :  { %4723 = vrot.lane.b32.xlu1 %v9293_v20, %s9578_s2  ;;  %v9295_v60 = vpop.eup %9294  ;;  %v4638_v20 = vrot.slane %v11256_v16, 6 }
 0xfb8   :  { %v4694_v54 = vadd.f32 1.0, %v9295_v60 }
 0xfb9   :  { %v4642_v47 = vmul.f32 %v9287_v18, %v4638_v20  ;;  %v4351_v20 = vrot.slane %v11463_v43, 6 }
 0xfba   :  { %9296 = vrcp.f32 %v4694_v54 }
 0xfbb   :  { %9298 = vpow2.f32 %v7167_v59 }
 0xfbc   :  { %9300 = vpow2.f32 %v7166_v61 }
 0xfc4   :  { %v9297_v14 = vpop.eup %9296 }
 0xfc5   :  { %v11478_v55 = vmul.f32 %v9297_v14, %v4714_v46  ;;  %v9299_v54 = vpop.eup %9298 }
 0xfc6   :  { %v9301_v14 = vpop.eup %9300  ;;  %v4686_v10 = vadd.f32 1.0, %v9299_v54 }
 0xfc7   :  { %v4685_v50 = vadd.f32 1.0, %v9301_v14 }
 0xfcc   :  { %v11480_v30 = vpop.f32.mrb[44].mxu1 }
 0xfcd   :  { %v4582_v24 = vpop.f32.mrb[45].mxu1 }
0x1017   :  { %v4660_v60 = vpop.permute.xlu1 %4659 }
0x1018   :  { %v4658_v46 = vpop.permute.xlu0 %4657 }
0x1019   :  { %v4661_v4 = vsel %vm818_vm3, %v4658_v46, %v4660_v60  ;;  %v11486_v24 = vadd.f32 %v4658_v46, %v4642_v47  ;;  %v4361_v60 = vadd.f32 %v4351_v20, %v12992_v8  ;;  %v7164_v47 = vmul.f32 -1.442695, %v11455_v39 }
0x101a   :  { %v11489_v48 = vadd.f32 %v4661_v4, %v11461_v21 }
0x101b   :  { %9302 = vtanh.f32 %v11486_v24  ;;  %v7165_v54 = vmul.f32 -1.442695, %v4361_v60 }
0x101c   :  { %9304 = vtanh.f32 %v11489_v48 }
0x101d   :  { %9306 = vrcp.f32 %v4686_v10 }
0x101e   :  { %9308 = vrcp.f32 %v4685_v50 }
0x101f   :  { %9310 = vpow2.f32 %v7164_v47 }
0x1020   :  { %9312 = vpow2.f32 %v7165_v54 }
0x1025   :  { %v9303_v16 = vpop.eup %9302 }
0x1026   :  { %v9305_v18 = vpop.eup %9304  ;;  %4670 = vrot.lane.b32.xlu0 %v9303_v16, %s9580_s23 }
0x1027   :  { %4672 = vrot.lane.b32.xlu1 %v9305_v18, %s9580_s23  ;;  %v9307_v62 = vpop.eup %9306 }
0x1028   :  { %v4722_v61 = vpop.permute.xlu0 %4721  ;;  %v9309_v49 = vpop.eup %9308 }
0x1029   :  { %v4724_v37 = vpop.permute.xlu1 %4723  ;;  %v9311_v46 = vpop.eup %9310 }
0x102a   :  { %v4725_v4 = vsel %vm1342_vm2, %v4722_v61, %v4724_v37  ;;  %v4729_v21 = vmul.f32 %v9307_v62, %v4724_v37  ;;  %v9313_v14 = vpop.eup %9312  ;;  %v4630_v10 = vadd.f32 1.0, %v9311_v46 }
0x102b   :  { %v4728_v59 = vmul.f32 %v9309_v49, %v4725_v4  ;;  %v4631_v50 = vadd.f32 1.0, %v9313_v14 }
0x102c   :  { %4734 = vrot.lane.b32.xlu1 %v4729_v21, %s9579_s4  ;;  %9314 = vrcp.f32 %v4630_v10  ;;  %v4713_v21 = vrot.slane %v11284_v63, 2 }
0x102d   :  { %4732 = vrot.lane.b32.xlu0 %v4728_v59, %s9579_s4  ;;  %9316 = vrcp.f32 %v4631_v50  ;;  %v11611_v59 = vld [vmem:[#allocation7 + $0x2e0] sm:$0x3f] }
0x102e   :  { %v4717_v47 = vmul.f32 %v9307_v62, %v4713_v21  ;;  %v4593_v62 = vrot.slane %v11480_v30, 4  ;;  %13085 = vst [vmem:[#allocation121_spill] sm:$0xff] %v11611_v59 }
0x1036   :  { %v9315_v16 = vpop.eup %9314 }
0x1037   :  { %v9317_v49 = vpop.eup %9316 }
0x1098   :  { %v4671_v18 = vpop.permute.xlu0 %4670 }
0x1099   :  { %v11501_v61 = vmul.f32 %v9315_v16, %v4671_v18  ;;  %v4673_v37 = vpop.permute.xlu1 %4672  ;;  %v4603_v16 = vadd.f32 %v4593_v62, %v12995_v52 }
0x109a   :  { %v4674_v43 = vsel %vm1367_vm4, %v4671_v18, %v4673_v37  ;;  %v7169_v18 = vmul.f32 -1.442695, %v11472_v58 }
0x109b   :  { %13069 = vst [vmem:[#allocation76_spill] sm:$0xff] %v11501_v61  ;;  %v4789_v4 = vrot.slane %v11501_v61, 2  ;;  %v11505_v39 = vmul.f32 %v9317_v49, %v4674_v43  ;;  %v7170_v37 = vmul.f32 -1.442695, %v4603_v16  ;;  %v13086_v16 = vld [vmem:[#allocation16_spill] sm:$0xff] }
0x109d   :  { %13070 = vst [vmem:[#allocation78_spill] sm:$0xff] %v11505_v39  ;;  %4791 = vrot.lane.b32.xlu0 %v4789_v4, %s9581_s24  ;;  %v4790_v20 = vrot.slane %v11505_v39, 2 }
0x109e   :  { %v4735_v60 = vpop.permute.xlu1 %4734 }
0x109f   :  { %4793 = vrot.lane.b32.xlu1 %v4790_v20, %s9581_s24  ;;  %v4733_v54 = vpop.permute.xlu0 %4732 }
0x10a0   :  { %v4736_v46 = vsel %vm818_vm3, %v4733_v54, %v4735_v60  ;;  %v11514_v14 = vadd.f32 %v4733_v54, %v4717_v47 }
0x10a1   :  { %v11517_v10 = vadd.f32 %v4736_v46, %v11478_v55 }
0x10a2   :  { %9318 = vtanh.f32 %v11514_v14 }
0x10a3   :  { %9320 = vtanh.f32 %v11517_v10 }
0x10a4   :  { %9322 = vpow2.f32 %v7169_v18 }
0x10a5   :  { %9324 = vpow2.f32 %v7170_v37  ;;  %v11576_v37 = vld [vmem:[#allocation7 + $0x2d8] sm:$0x3f] }
0x10ac   :  { %v9319_v63 = vpop.eup %9318 }
0x10ad   :  { %v9321_v50 = vpop.eup %9320  ;;  %4745 = vrot.lane.b32.xlu0 %v9319_v63, %s9580_s23 }
0x10ae   :  { %4747 = vrot.lane.b32.xlu1 %v9321_v50, %s9580_s23  ;;  %v9323_v55 = vpop.eup %9322 }
0x10af   :  { %v9325_v49 = vpop.eup %9324  ;;  %v4705_v43 = vadd.f32 1.0, %v9323_v55  ;;  %v11580_v55 = vld [vmem:[#allocation4 + $0x2f0] sm:$0x3f] }
0x10b0   :  { %v4706_v60 = vadd.f32 1.0, %v9325_v49  ;;  %v11586_v49 = vld [vmem:[#allocation7 + $0x2d0] sm:$0x3f] }
0x10b1   :  { %9326 = vrcp.f32 %v4705_v43  ;;  %v13073_v43 = vld [vmem:[#allocation89_spill] sm:$0xff] }
0x10b2   :  { %9328 = vrcp.f32 %v4706_v60  ;;  %v13077_v60 = vld [vmem:[#allocation95_spill] sm:$0xff] }
0x10bb   :  { %v9327_v58 = vpop.eup %9326 }
0x10bc   :  { %v9329_v46 = vpop.eup %9328 }
0x110f   :  { %v4792_v4 = vpop.permute.xlu0 %4791 }
0x1111   :  { %v4794_v21 = vpop.permute.xlu1 %4793 }
0x1112   :  { %7173 = vmatprep.mubr.msk.f32.mxu0 %vm818_vm3, %v4794_v21  ;;  %7176 = vmatprep.mubr.msk.f32.mxu1 %vm818_vm3, %v4794_v21  ;;  %v4795_v20 = vsel %vm1455_vm5, %v4792_v4, %v4794_v21  ;;  %v13074_v4 = vld [vmem:[#allocation91_spill] sm:$0xff] }
0x1113   :  { %4864 = vmatmul.mubr.f32.vlgmr.msra.gmra.mrb[46].mxu0 %v4795_v20  ;;  %4935 = vmatmul.mubr.f32.vlgmr.msra.gmra.mrb[46].mxu1 %v4795_v20 }
0x1114   :  { %8588 = vmatpush1.bf16.msra.mxu0 %v9967_v29  ;;  %7178 = vmatprep.mubr.msk.f32.mxu0 %vm818_vm3, %v4794_v21  ;;  %v13075_v21 = vld [vmem:[#allocation92_spill] sm:$0xff] }
0x1115   :  { %8589 = vmatprep.subr.bf16.mxu0 %v12646_v11  ;;  %8616 = vmatpush1.bf16.msra.mxu1 %v9963_v31 }
0x1116   :  { %8618 = vmatprep.subr.bf16.mxu1 %v9969_v36 }
0x1118   :  { %8591 = vmatpush1.bf16.msra.mxu0 %v12690_v42 }
0x1119   :  { %8592 = vmatprep.subr.bf16.mxu0 %v12646_v11  ;;  %8620 = vmatpush1.bf16.msra.mxu1 %v12691_v32 }
0x111a   :  { %8622 = vmatprep.subr.bf16.mxu1 %v12692_v19 }
0x111c   :  { %8594 = vmatpush1.bf16.msra.mxu0 %v12694_v51 }
0x111d   :  { %8595 = vmatprep.subr.bf16.mxu0 %v12646_v11  ;;  %8624 = vmatpush1.bf16.msra.mxu1 %v12695_v44 }
0x111e   :  { %8626 = vmatprep.subr.bf16.mxu1 %v12696_v5 }
0x111f   :  { %v4746_v30 = vpop.permute.xlu0 %4745 }
0x1120   :  { %8597 = vmatpush1.bf16.msra.mxu0 %v12697_v56  ;;  %v11543_v47 = vmul.f32 %v9327_v58, %v4746_v30  ;;  %v4748_v54 = vpop.permute.xlu1 %4747  ;;  %v13078_v58 = vld [vmem:[#allocation97_spill] sm:$0xff] }
0x1121   :  { %v4749_v63 = vsel %vm1367_vm4, %v4746_v30, %v4748_v54  ;;  %8598 = vmatprep.subr.bf16.mxu0 %v12646_v11  ;;  %8628 = vmatpush1.bf16.msra.mxu1 %v12698_v3  ;;  %v13079_v30 = vld [vmem:[#allocation98_spill] sm:$0xff]  ;;  %v13080_v54 = vld [vmem:[#allocation100_spill] sm:$0xff] }
0x1122   :  { %13071 = vst [vmem:[#allocation118_spill] sm:$0xff] %v11543_v47  ;;  %v5031_v50 = vrot.slane %v11543_v47, 4  ;;  %v11549_v62 = vmul.f32 %v9329_v46, %v4749_v63  ;;  %8630 = vmatprep.subr.bf16.mxu1 %v12700_v57  ;;  %v13081_v46 = vld [vmem:[#allocation101_spill] sm:$0xff]  ;;  %v13082_v63 = vld [vmem:[#allocation103_spill] sm:$0xff] }
0x1123   :  { %v13087_v47 = vld [vmem:[#allocation81_spill] sm:$0xff] }
0x1124   :  { %13072 = vst [vmem:[#allocation119_spill] sm:$0xff] %v11549_v62  ;;  %8600 = vmatpush1.bf16.msra.mxu0 %v12701_v17  ;;  %5033 = vrot.lane.b32.xlu0 %v5031_v50, %s9581_s24  ;;  %v5032_v18 = vrot.slane %v11549_v62, 4  ;;  %v13083_v50 = vld [vmem:[#allocation104_spill] sm:$0xff] }
0x1125   :  { %8601 = vmatprep.subr.bf16.mxu0 %v12646_v11  ;;  %8632 = vmatpush1.bf16.msra.mxu1 %v12702_v22 }
0x1126   :  { %5035 = vrot.lane.b32.xlu1 %v5032_v18, %s9581_s24  ;;  %8634 = vmatprep.subr.bf16.mxu1 %v12769_v1  ;;  %v11607_v18 = vld [vmem:[#allocation7 + $0x2e8] sm:$0x3f] }
0x1127   :  { %13084 = vst [vmem:[#allocation122_spill] sm:$0xff] %v11607_v18 }
0x1128   :  { %8603 = vmatpush1.bf16.msra.mxu0 %v12770_v12 }
0x1129   :  { %8604 = vmatprep.subr.bf16.mxu0 %v12646_v11  ;;  %8636 = vmatpush1.bf16.msra.mxu1 %v12771_v53 }
0x112a   :  { %8638 = vmatprep.subr.bf16.mxu1 %v12772_v33 }
0x112c   :  { %8606 = vmatpush1.bf16.msra.mxu0 %v12773_v6 }
0x112d   :  { %8607 = vmatprep.subr.bf16.mxu0 %v12646_v11  ;;  %8640 = vmatpush1.bf16.msra.mxu1 %v12774_v25 }
0x112e   :  { %8642 = vmatprep.subr.bf16.mxu1 %v12775_v35 }
0x1130   :  { %8609 = vmatpush1.bf16.msra.mxu0 %v12776_v2 }
0x1131   :  { %8610 = vmatprep.subr.bf16.mxu0 %v12646_v11  ;;  %8644 = vmatpush1.bf16.msra.mxu1 %v12777_v40 }
0x1132   :  { %8646 = vmatprep.subr.bf16.mxu1 %v12778_v0 }
0x1134   :  { %8612 = vmatpush1.bf16.msra.mxu0 %v12779_v9 }
0x1135   :  { %4977 = vmatprep.subr.mxu0 %v12640_v45  ;;  %8648 = vmatpush1.bf16.msra.mxu1 %v12780_v15 }
0x1136   :  { %7179 = vmatprep.subr.msk.mxu1 %vm822_vm1, %v11576_v37 }
0x1138   :  { %7177 = vmatpush1.msk.msra.mxu0 %vm822_vm1, %v11580_v55 }
0x1139   :  { %5006 = vmatmul.mubr.f32.vlgmr.msra.gmra.mrb[48].mxu0 %v4795_v20  ;;  %8650 = vmatprep.subr.bf16.mxu0 %v12781_v27  ;;  %v13076_v20 = vld [vmem:[#allocation94_spill] sm:$0xff] }
0x113a   :  { %8652 = vmatpush1.bf16.msra.mxu0 %v12782_v38  ;;  %7180 = vmatpush1.msk.msra.mxu1 %vm822_vm1, %v11586_v49 }
0x113b   :  { %8654 = vmatprep.subr.bf16.mxu0 %v12720_v34  ;;  %8685 = vmatprep.subr.bf16.mxu1 %v12646_v11 }
0x113e   :  { %8656 = vmatpush1.bf16.msra.mxu0 %v12721_v23 }
0x113f   :  { %8658 = vmatprep.subr.bf16.mxu0 %v12843_v26 }
0x1142   :  { %8660 = vmatpush1.bf16.msra.mxu0 %v12844_v13 }
0x1143   :  { %8662 = vmatprep.subr.bf16.mxu0 %v12998_v41 }
0x1146   :  { %8664 = vmatpush1.bf16.msra.mxu0 %v13073_v43 }
0x1147   :  { %8666 = vmatprep.subr.bf16.mxu0 %v13074_v4  ;;  %v13140_v4 = vld [vmem:[#allocation108_spill] sm:$0xff] }
0x114a   :  { %8668 = vmatpush1.bf16.msra.mxu0 %v13075_v21 }
0x114b   :  { %8670 = vmatprep.subr.bf16.mxu0 %v13076_v20 }
0x114e   :  { %8672 = vmatpush1.bf16.msra.mxu0 %v13077_v60  ;;  %v13138_v60 = vld [vmem:[#allocation111_spill] sm:$0xff] }
0x114f   :  { %8674 = vmatprep.subr.bf16.mxu0 %v13078_v58  ;;  %v13137_v58 = vld [vmem:[#allocation109_spill] sm:$0xff] }
0x1152   :  { %8676 = vmatpush1.bf16.msra.mxu0 %v13079_v30 }
0x1153   :  { %8678 = vmatprep.subr.bf16.mxu0 %v13080_v54  ;;  %v13129_v54 = vld [vmem:[#allocation43_spill] sm:$0xff] }
0x1156   :  { %8680 = vmatpush1.bf16.msra.mxu0 %v13081_v46  ;;  %v13096_v46 = vld [vmem:[#allocation90_spill] sm:$0xff] }
0x1157   :  { %8682 = vmatprep.subr.bf16.mxu0 %v13082_v63  ;;  %v13092_v63 = vld [vmem:[#allocation24_spill] sm:$0xff] }
0x115a   :  { %8684 = vmatpush1.bf16.msra.mxu0 %v13083_v50  ;;  %v13091_v50 = vld [vmem:[#allocation22_spill] sm:$0xff] }
0x115b   :  { %7182 = vmatprep.subr.msk.mxu0 %vm822_vm1, %v11607_v18  ;;  %v13088_v18 = vld [vmem:[#allocation18_spill] sm:$0xff] }
0x115e   :  { %7183 = vmatpush1.msk.msra.mxu0 %vm822_vm1, %v11611_v59  ;;  %v13089_v59 = vld [vmem:[#allocation20_spill] sm:$0xff] }
0x115f   :  { %8713 = vmatprep.subr.bf16.mxu0 %v13086_v16  ;;  %v13090_v16 = vld [vmem:[#allocation84_spill] sm:$0xff] }
0x1196   :  { %v5034_v39 = vpop.permute.xlu0 %5033 }
0x1198   :  { %v5036_v61 = vpop.permute.xlu1 %5035 }
0x1199   :  { %7181 = vmatprep.mubr.msk.f32.mxu1 %vm818_vm3, %v5036_v61  ;;  %7184 = vmatprep.mubr.msk.f32.mxu0 %vm818_vm3, %v5036_v61  ;;  %v5037_v62 = vsel %vm1455_vm5, %v5034_v39, %v5036_v61  ;;  %v13093_v39 = vld [vmem:[#allocation87_spill] sm:$0xff] }
0x119a   :  { %5106 = vmatmul.mubr.f32.vlgmr.msra.gmra.mrb[48].mxu1 %v5037_v62  ;;  %5177 = vmatmul.mubr.f32.vlgmr.msra.gmra.mrb[50].mxu0 %v5037_v62 }
0x119b   :  { %8687 = vmatpush1.bf16.msra.mxu1 %v13087_v47  ;;  %7186 = vmatprep.mubr.msk.f32.mxu1 %vm818_vm3, %v5036_v61  ;;  %v13094_v47 = vld [vmem:[#allocation26_spill] sm:$0xff]  ;;  %v13095_v61 = vld [vmem:[#allocation28_spill] sm:$0xff] }
0x119c   :  { %8688 = vmatprep.subr.bf16.mxu1 %v12646_v11  ;;  %8715 = vmatpush1.bf16.msra.mxu0 %v13088_v18  ;;  %v13098_v18 = vld [vmem:[#allocation32_spill] sm:$0xff] }
0x119d   :  { %8717 = vmatprep.subr.bf16.mxu0 %v13089_v59  ;;  %v13097_v59 = vld [vmem:[#allocation30_spill] sm:$0xff] }
0x119f   :  { %8690 = vmatpush1.bf16.msra.mxu1 %v13090_v16  ;;  %v13099_v16 = vld [vmem:[#allocation93_spill] sm:$0xff] }
0x11a0   :  { %8691 = vmatprep.subr.bf16.mxu1 %v12646_v11  ;;  %8719 = vmatpush1.bf16.msra.mxu0 %v13091_v50  ;;  %v13101_v50 = vld [vmem:[#allocation36_spill] sm:$0xff] }
0x11a1   :  { %8721 = vmatprep.subr.bf16.mxu0 %v13092_v63  ;;  %v13100_v63 = vld [vmem:[#allocation34_spill] sm:$0xff] }
0x11a3   :  { %8693 = vmatpush1.bf16.msra.mxu1 %v13093_v39  ;;  %v13102_v39 = vld [vmem:[#allocation96_spill] sm:$0xff] }
0x11a4   :  { %8694 = vmatprep.subr.bf16.mxu1 %v12646_v11  ;;  %8723 = vmatpush1.bf16.msra.mxu0 %v13094_v47  ;;  %v13103_v47 = vld [vmem:[#allocation38_spill] sm:$0xff] }
0x11a5   :  { %8725 = vmatprep.subr.bf16.mxu0 %v13095_v61  ;;  %v13104_v61 = vld [vmem:[#allocation40_spill] sm:$0xff] }
0x11a7   :  { %8696 = vmatpush1.bf16.msra.mxu1 %v13096_v46  ;;  %v13105_v46 = vld [vmem:[#allocation99_spill] sm:$0xff] }
0x11a8   :  { %8697 = vmatprep.subr.bf16.mxu1 %v12646_v11  ;;  %8727 = vmatpush1.bf16.msra.mxu0 %v13097_v59  ;;  %v13106_v59 = vld [vmem:[#allocation42_spill] sm:$0xff] }
0x11a9   :  { %8729 = vmatprep.subr.bf16.mxu0 %v13098_v18  ;;  %v13107_v18 = vld [vmem:[#allocation44_spill] sm:$0xff] }
0x11ab   :  { %8699 = vmatpush1.bf16.msra.mxu1 %v13099_v16  ;;  %v13108_v16 = vld [vmem:[#allocation102_spill] sm:$0xff] }
0x11ac   :  { %8700 = vmatprep.subr.bf16.mxu1 %v12646_v11  ;;  %8731 = vmatpush1.bf16.msra.mxu0 %v13100_v63  ;;  %v13109_v63 = vld [vmem:[#allocation46_spill] sm:$0xff] }
0x11ad   :  { %8733 = vmatprep.subr.bf16.mxu0 %v13101_v50  ;;  %v13110_v50 = vld [vmem:[#allocation48_spill] sm:$0xff] }
0x11af   :  { %8702 = vmatpush1.bf16.msra.mxu1 %v13102_v39  ;;  %v13111_v39 = vld [vmem:[#allocation105_spill] sm:$0xff] }
0x11b0   :  { %8703 = vmatprep.subr.bf16.mxu1 %v12646_v11  ;;  %8735 = vmatpush1.bf16.msra.mxu0 %v13103_v47  ;;  %v13112_v47 = vld [vmem:[#allocation50_spill] sm:$0xff] }
0x11b1   :  { %8737 = vmatprep.subr.bf16.mxu0 %v13104_v61  ;;  %v13113_v61 = vld [vmem:[#allocation57_spill] sm:$0xff] }
0x11b3   :  { %8705 = vmatpush1.bf16.msra.mxu1 %v13105_v46  ;;  %v13122_v46 = vld [vmem:[#allocation29_spill] sm:$0xff] }
0x11b4   :  { %8706 = vmatprep.subr.bf16.mxu1 %v12646_v11  ;;  %8739 = vmatpush1.bf16.msra.mxu0 %v13106_v59  ;;  %v11657_v59 = vld [vmem:[#allocation7 + $0x2f0] sm:$0x3f] }
0x11b5   :  { %8741 = vmatprep.subr.bf16.mxu0 %v13107_v18  ;;  %13114 = vst [vmem:[#allocation120_spill] sm:$0xff] %v11657_v59  ;;  %v13115_v18 = vld [vmem:[#allocation17_spill] sm:$0xff] }
0x11b7   :  { %8708 = vmatpush1.bf16.msra.mxu1 %v13108_v16  ;;  %v13121_v16 = vld [vmem:[#allocation27_spill] sm:$0xff] }
0x11b8   :  { %8709 = vmatprep.subr.bf16.mxu1 %v12646_v11  ;;  %8743 = vmatpush1.bf16.msra.mxu0 %v13109_v63  ;;  %v13116_v63 = vld [vmem:[#allocation19_spill] sm:$0xff] }
0x11b9   :  { %8745 = vmatprep.subr.bf16.mxu0 %v13110_v50  ;;  %v13117_v50 = vld [vmem:[#allocation56_spill] sm:$0xff] }
0x11bb   :  { %8711 = vmatpush1.bf16.msra.mxu1 %v13111_v39  ;;  %v13118_v39 = vld [vmem:[#allocation21_spill] sm:$0xff] }
0x11bc   :  { %5219 = vmatprep.subr.mxu1 %v12640_v45  ;;  %8747 = vmatpush1.bf16.msra.mxu0 %v13112_v47  ;;  %v13119_v47 = vld [vmem:[#allocation23_spill] sm:$0xff] }
0x11bd   :  { %7197 = vmatprep.subr.msk.mxu0 %vm822_vm1, %v13113_v61  ;;  %v13120_v61 = vld [vmem:[#allocation25_spill] sm:$0xff] }
0x11bf   :  { %7185 = vmatpush1.msk.msra.mxu1 %vm822_vm1, %v11657_v59  ;;  %v13126_v59 = vld [vmem:[#allocation37_spill] sm:$0xff] }
0x11c0   :  { %5248 = vmatmul.mubr.f32.vlgmr.msra.gmra.mrb[50].mxu1 %v5037_v62  ;;  %8749 = vmatprep.subr.bf16.mxu1 %v13115_v18  ;;  %v13123_v62 = vld [vmem:[#allocation31_spill] sm:$0xff]  ;;  %v13124_v18 = vld [vmem:[#allocation33_spill] sm:$0xff] }
0x11c1   :  { %8751 = vmatpush1.bf16.msra.mxu1 %v13116_v63  ;;  %7198 = vmatpush1.msk.msra.mxu0 %vm822_vm1, %v13117_v50  ;;  %v13125_v63 = vld [vmem:[#allocation35_spill] sm:$0xff] }
0x11c2   :  { %8753 = vmatprep.subr.bf16.mxu1 %v13118_v39  ;;  %8784 = vmatprep.subr.bf16.mxu0 %v12646_v11  ;;  %v13127_v50 = vld [vmem:[#allocation39_spill] sm:$0xff]  ;;  %v13128_v39 = vld [vmem:[#allocation41_spill] sm:$0xff] }
0x11c5   :  { %8755 = vmatpush1.bf16.msra.mxu1 %v13119_v47  ;;  %v13130_v47 = vld [vmem:[#allocation45_spill] sm:$0xff] }
0x11c6   :  { %8757 = vmatprep.subr.bf16.mxu1 %v13120_v61  ;;  %v13131_v61 = vld [vmem:[#allocation47_spill] sm:$0xff] }
0x11c9   :  { %8759 = vmatpush1.bf16.msra.mxu1 %v13121_v16  ;;  %v13132_v16 = vld [vmem:[#allocation49_spill] sm:$0xff] }
0x11ca   :  { %8761 = vmatprep.subr.bf16.mxu1 %v13122_v46  ;;  %v13133_v46 = vld [vmem:[#allocation51_spill] sm:$0xff] }
0x11cd   :  { %8763 = vmatpush1.bf16.msra.mxu1 %v13123_v62  ;;  %v13134_v62 = vld [vmem:[#allocation58_spill] sm:$0xff] }
0x11ce   :  { %8765 = vmatprep.subr.bf16.mxu1 %v13124_v18  ;;  %v13135_v18 = vld [vmem:[#allocation62_spill] sm:$0xff] }
0x11d1   :  { %8767 = vmatpush1.bf16.msra.mxu1 %v13125_v63 }
0x11d2   :  { %8769 = vmatprep.subr.bf16.mxu1 %v13126_v59 }
0x11d5   :  { %8771 = vmatpush1.bf16.msra.mxu1 %v13127_v50  ;;  %v13136_v50 = vld [vmem:[#allocation52_spill] sm:$0xff] }
0x11d6   :  { %8773 = vmatprep.subr.bf16.mxu1 %v13128_v39 }
0x11d9   :  { %8775 = vmatpush1.bf16.msra.mxu1 %v13129_v54 }
0x11da   :  { %8777 = vmatprep.subr.bf16.mxu1 %v13130_v47 }
0x11dd   :  { %8779 = vmatpush1.bf16.msra.mxu1 %v13131_v61 }
0x11de   :  { %8781 = vmatprep.subr.bf16.mxu1 %v13132_v16 }
0x11e1   :  { %8783 = vmatpush1.bf16.msra.mxu1 %v13133_v46 }
0x11e2   :  { %7200 = vmatprep.subr.msk.mxu1 %vm822_vm1, %v13134_v62 }
0x11e5   :  { %7201 = vmatpush1.msk.msra.mxu1 %vm822_vm1, %v13135_v18 }
0x11e6   :  { %v4865_v59 = vpop.f32.mrb[46].mxu0  ;;  %v4936_v63 = vpop.f32.mrb[46].mxu1  ;;  %8812 = vmatprep.subr.bf16.mxu1 %v13136_v50 }
0x11e7   :  { %v5018_v39 = vrot.slane %v4936_v63, 4  ;;  %v4867_v54 = vpop.f32.mrb[47].mxu0  ;;  %v4938_v30 = vpop.f32.mrb[47].mxu1  ;;  %v5016_v20 = vrot.slane %v4865_v59, 4 }
0x11e8   :  { %v5019_v47 = vrot.slane %v4938_v30, 4  ;;  %v5308_v30 = vrot.slane %v11489_v48, 6 }
0x11e9   :  { %v5028_v61 = vadd.f32 %v5018_v39, %v13137_v58  ;;  %v5026_v43 = vadd.f32 %v5016_v20, %v13140_v4 }
0x11ea   :  { %v11689_v16 = vadd.f32 %v5019_v47, %v13138_v60  ;;  %v5017_v60 = vrot.slane %v4867_v54, 4 }
0x11eb   :  { %v7189_v46 = vmul.f32 -1.442695, %v5028_v61  ;;  %9330 = vtanh.f32 %v5028_v61  ;;  %v7187_v41 = vmul.f32 -1.442695, %v5026_v43 }
0x11ec   :  { %9332 = vtanh.f32 %v11689_v16 }
0x11ed   :  { %9334 = vpow2.f32 %v7189_v46  ;;  %v13139_v46 = vld [vmem:[#allocation110_spill] sm:$0xff] }
0x11ee   :  { %v5027_v21 = vadd.f32 %v5017_v60, %v13139_v46 }
0x11f5   :  { %v9331_v62 = vpop.eup %9330 }
0x11f6   :  { %v9333_v18 = vpop.eup %9332  ;;  %5315 = vrot.lane.b32.xlu0 %v9331_v62, %s9578_s2  ;;  %v7188_v62 = vmul.f32 -1.442695, %v5027_v21 }
0x11f7   :  { %5317 = vrot.lane.b32.xlu1 %v9333_v18, %s9578_s2  ;;  %v9335_v63 = vpop.eup %9334 }
0x11f8   :  { %v5288_v50 = vadd.f32 1.0, %v9335_v63 }
0x11fa   :  { %9336 = vrcp.f32 %v5288_v50 }
0x11fb   :  { %9338 = vpow2.f32 %v7188_v62 }
0x11fc   :  { %9340 = vpow2.f32 %v7187_v41 }
0x1204   :  { %v9337_v39 = vpop.eup %9336 }
0x1205   :  { %v11695_v58 = vmul.f32 %v9337_v39, %v5308_v30  ;;  %v9339_v18 = vpop.eup %9338 }
0x1206   :  { %v9341_v63 = vpop.eup %9340  ;;  %v5280_v50 = vadd.f32 1.0, %v9339_v18 }
0x1207   :  { %v5279_v48 = vadd.f32 1.0, %v9341_v63  ;;  %v13141_v63 = vld [vmem:[#allocation115_spill] sm:$0xff] }
0x1208   :  { %9342 = vrcp.f32 %v5280_v50 }
0x1209   :  { %9344 = vrcp.f32 %v5279_v48  ;;  %v13142_v48 = vld [vmem:[#allocation116_spill] sm:$0xff] }
0x120c   :  { %v11697_v47 = vpop.f32.mrb[48].mxu0 }
0x120d   :  { %v5009_v61 = vpop.f32.mrb[49].mxu0 }
0x1212   :  { %v9343_v39 = vpop.eup %9342 }
0x1213   :  { %v9345_v61 = vpop.eup %9344 }
0x1268   :  { %v5316_v30 = vpop.permute.xlu0 %5315 }
0x1269   :  { %v5318_v13 = vpop.permute.xlu1 %5317 }
0x126a   :  { %v5319_v59 = vsel %vm1342_vm2, %v5316_v30, %v5318_v13  ;;  %v5323_v54 = vmul.f32 %v9343_v39, %v5318_v13 }
0x126b   :  { %v5322_v60 = vmul.f32 %v9345_v61, %v5319_v59 }
0x126c   :  { %5328 = vrot.lane.b32.xlu1 %v5323_v54, %s9579_s4  ;;  %v5383_v54 = vrot.slane %v11517_v10, 2 }
0x126d   :  { %v5107_v21 = vpop.f32.mrb[48].mxu1  ;;  %v5178_v43 = vpop.f32.mrb[50].mxu0  ;;  %5326 = vrot.lane.b32.xlu0 %v5322_v60, %s9579_s4 }
0x126e   :  { %v5260_v41 = vrot.slane %v5178_v43, 6  ;;  %v5109_v20 = vpop.f32.mrb[49].mxu1  ;;  %v5180_v62 = vpop.f32.mrb[51].mxu0 }
0x126f   :  { %v5261_v18 = vrot.slane %v5180_v62, 6 }
0x1270   :  { %v5270_v50 = vadd.f32 %v5260_v41, %v13141_v63 }
0x1271   :  { %v11706_v4 = vadd.f32 %v5261_v18, %v13142_v48  ;;  %v5259_v18 = vrot.slane %v5109_v20, 6 }
0x1272   :  { %v7194_v46 = vmul.f32 -1.442695, %v5270_v50  ;;  %9346 = vtanh.f32 %v5270_v50  ;;  %v5258_v50 = vrot.slane %v5107_v21, 6 }
0x1273   :  { %9348 = vtanh.f32 %v11706_v4 }
0x1274   :  { %9350 = vpow2.f32 %v7194_v46  ;;  %v5269_v46 = vadd.f32 %v5259_v18, %v12990_v28  ;;  %v5268_v48 = vadd.f32 %v5258_v50, %v12991_v7 }
0x1276   :  { %v7192_v63 = vmul.f32 -1.442695, %v5268_v48 }
0x127c   :  { %v9347_v13 = vpop.eup %9346 }
0x127d   :  { %v9349_v30 = vpop.eup %9348  ;;  %5390 = vrot.lane.b32.xlu0 %v9347_v13, %s9578_s2  ;;  %v7193_v13 = vmul.f32 -1.442695, %v5269_v46 }
0x127e   :  { %5392 = vrot.lane.b32.xlu1 %v9349_v30, %s9578_s2  ;;  %v9351_v61 = vpop.eup %9350  ;;  %v5307_v30 = vrot.slane %v11486_v24, 6 }
0x127f   :  { %v5363_v59 = vadd.f32 1.0, %v9351_v61 }
0x1280   :  { %v5311_v10 = vmul.f32 %v9343_v39, %v5307_v30  ;;  %v5020_v30 = vrot.slane %v11697_v47, 4 }
0x1281   :  { %9352 = vrcp.f32 %v5363_v59 }
0x1282   :  { %9354 = vpow2.f32 %v7193_v13 }
0x1283   :  { %9356 = vpow2.f32 %v7192_v63 }
0x128b   :  { %v9353_v60 = vpop.eup %9352 }
0x128c   :  { %v11712_v43 = vmul.f32 %v9353_v60, %v5383_v54  ;;  %v9355_v59 = vpop.eup %9354 }
0x128d   :  { %v9357_v60 = vpop.eup %9356  ;;  %v5355_v20 = vadd.f32 1.0, %v9355_v59 }
0x128e   :  { %v5354_v48 = vadd.f32 1.0, %v9357_v60 }
0x1293   :  { %v11714_v41 = vpop.f32.mrb[50].mxu1 }
0x1294   :  { %v5251_v62 = vpop.f32.mrb[51].mxu1 }
0x12de   :  { %v5329_v61 = vpop.permute.xlu1 %5328 }
0x12df   :  { %v5327_v54 = vpop.permute.xlu0 %5326 }
0x12e0   :  { %v5330_v26 = vsel %vm818_vm3, %v5327_v54, %v5329_v61  ;;  %v11720_v62 = vadd.f32 %v5327_v54, %v5311_v10  ;;  %v5030_v61 = vadd.f32 %v5020_v30, %v12992_v8  ;;  %v7190_v10 = vmul.f32 -1.442695, %v11689_v16 }
0x12e1   :  { %v11723_v21 = vadd.f32 %v5330_v26, %v11695_v58 }
0x12e2   :  { %9358 = vtanh.f32 %v11720_v62  ;;  %v7191_v59 = vmul.f32 -1.442695, %v5030_v61 }
0x12e3   :  { %9360 = vtanh.f32 %v11723_v21 }
0x12e4   :  { %9362 = vrcp.f32 %v5355_v20 }
0x12e5   :  { %9364 = vrcp.f32 %v5354_v48 }
0x12e6   :  { %9366 = vpow2.f32 %v7190_v10 }
0x12e7   :  { %9368 = vpow2.f32 %v7191_v59 }
0x12ec   :  { %v9359_v24 = vpop.eup %9358 }
0x12ed   :  { %v9361_v39 = vpop.eup %9360  ;;  %5339 = vrot.lane.b32.xlu0 %v9359_v24, %s9580_s23 }
0x12ee   :  { %5341 = vrot.lane.b32.xlu1 %v9361_v39, %s9580_s23  ;;  %v9363_v18 = vpop.eup %9362 }
0x12ef   :  { %v5391_v63 = vpop.permute.xlu0 %5390  ;;  %v9365_v46 = vpop.eup %9364 }
0x12f0   :  { %v5393_v50 = vpop.permute.xlu1 %5392  ;;  %v9367_v54 = vpop.eup %9366 }
0x12f1   :  { %v5394_v26 = vsel %vm1342_vm2, %v5391_v63, %v5393_v50  ;;  %v5398_v58 = vmul.f32 %v9363_v18, %v5393_v50  ;;  %v9369_v60 = vpop.eup %9368  ;;  %v5299_v20 = vadd.f32 1.0, %v9367_v54 }
0x12f2   :  { %v5397_v13 = vmul.f32 %v9365_v46, %v5394_v26  ;;  %v5300_v48 = vadd.f32 1.0, %v9369_v60 }
0x12f3   :  { %5403 = vrot.lane.b32.xlu1 %v5398_v58, %s9579_s4  ;;  %9370 = vrcp.f32 %v5299_v20  ;;  %v5382_v58 = vrot.slane %v11514_v14, 2 }
0x12f4   :  { %5401 = vrot.lane.b32.xlu0 %v5397_v13, %s9579_s4  ;;  %9372 = vrcp.f32 %v5300_v48 }
0x12f5   :  { %v5386_v10 = vmul.f32 %v9363_v18, %v5382_v58  ;;  %v5262_v18 = vrot.slane %v11714_v41, 6  ;;  %v13164_v41 = vld [vmem:[#allocation96_spill] sm:$0xff] }
0x12fd   :  { %v9371_v24 = vpop.eup %9370 }
0x12fe   :  { %v9373_v46 = vpop.eup %9372 }
0x135f   :  { %v5340_v39 = vpop.permute.xlu0 %5339 }
0x1360   :  { %v11735_v63 = vmul.f32 %v9371_v24, %v5340_v39  ;;  %v5342_v50 = vpop.permute.xlu1 %5341  ;;  %v5272_v24 = vadd.f32 %v5262_v18, %v12995_v52 }
0x1361   :  { %v5343_v47 = vsel %vm1367_vm4, %v5340_v39, %v5342_v50  ;;  %v7195_v39 = vmul.f32 -1.442695, %v11706_v4 }
0x1362   :  { %v5458_v26 = vrot.slane %v11735_v63, 4  ;;  %v11739_v16 = vmul.f32 %v9373_v46, %v5343_v47  ;;  %v7196_v50 = vmul.f32 -1.442695, %v5272_v24 }
0x1364   :  { %v5425_v13 = vcombine.high %v11735_v63, %v11739_v16  ;;  %v5459_v30 = vrot.slane %v11739_v16, 4  ;;  %5460 = vrot.lane.b32.xlu0 %v5458_v26, %s9581_s24 }
0x1365   :  { %v5404_v61 = vpop.permute.xlu1 %5403 }
0x1366   :  { %5462 = vrot.lane.b32.xlu1 %v5459_v30, %s9581_s24  ;;  %v5402_v59 = vpop.permute.xlu0 %5401 }
0x1367   :  { %v5405_v54 = vsel %vm818_vm3, %v5402_v59, %v5404_v61  ;;  %v11748_v60 = vadd.f32 %v5402_v59, %v5386_v10  ;;  %v13165_v10 = vld [vmem:[#allocation99_spill] sm:$0xff]  ;;  %v13166_v59 = vld [vmem:[#allocation102_spill] sm:$0xff] }
0x1368   :  { %v11751_v20 = vadd.f32 %v5405_v54, %v11712_v43  ;;  %v13167_v54 = vld [vmem:[#allocation105_spill] sm:$0xff] }
0x1369   :  { %9374 = vtanh.f32 %v11748_v60 }
0x136a   :  { %9376 = vtanh.f32 %v11751_v20 }
0x136b   :  { %9378 = vpow2.f32 %v7195_v39 }
0x136c   :  { %9380 = vpow2.f32 %v7196_v50 }
0x1373   :  { %v9375_v14 = vpop.eup %9374 }
0x1374   :  { %v9377_v48 = vpop.eup %9376  ;;  %5414 = vrot.lane.b32.xlu0 %v9375_v14, %s9580_s23  ;;  %v13168_v14 = vld [vmem:[#allocation120_spill] sm:$0xff] }
0x1375   :  { %5416 = vrot.lane.b32.xlu1 %v9377_v48, %s9580_s23  ;;  %v9379_v43 = vpop.eup %9378 }
0x1376   :  { %v9381_v46 = vpop.eup %9380  ;;  %v5374_v47 = vadd.f32 1.0, %v9379_v43  ;;  %v13169_v43 = vld [vmem:[#allocation109_spill] sm:$0xff] }
0x1377   :  { %v5375_v61 = vadd.f32 1.0, %v9381_v46 }
0x1378   :  { %9382 = vrcp.f32 %v5374_v47 }
0x1379   :  { %9384 = vrcp.f32 %v5375_v61 }
0x13d6   :  { %v5461_v26 = vpop.permute.xlu0 %5460 }
0x13d8   :  { %v5463_v58 = vpop.permute.xlu1 %5462 }
0x13d9   :  { %7199 = vmatprep.mubr.msk.f32.mxu0 %vm818_vm3, %v5463_v58  ;;  %7202 = vmatprep.mubr.msk.f32.mxu1 %vm818_vm3, %v5463_v58  ;;  %v5464_v30 = vsel %vm1455_vm5, %v5461_v26, %v5463_v58 }
0x13da   :  { %5533 = vmatmul.mubr.f32.vlgmr.msra.gmra.mrb[52].mxu0 %v5464_v30  ;;  %5604 = vmatmul.mubr.f32.vlgmr.msra.gmra.mrb[52].mxu1 %v5464_v30 }
0x13db   :  { %8786 = vmatpush1.bf16.msra.mxu0 %v9967_v29  ;;  %7204 = vmatprep.mubr.msk.f32.mxu0 %vm818_vm3, %v5463_v58 }
0x13dc   :  { %8787 = vmatprep.subr.bf16.mxu0 %v12646_v11  ;;  %8814 = vmatpush1.bf16.msra.mxu1 %v9963_v31  ;;  %v9383_v31 = vpop.eup %9382 }
0x13dd   :  { %8816 = vmatprep.subr.bf16.mxu1 %v9969_v36  ;;  %v9385_v4 = vpop.eup %9384 }
0x13df   :  { %8789 = vmatpush1.bf16.msra.mxu0 %v12690_v42 }
0x13e0   :  { %8790 = vmatprep.subr.bf16.mxu0 %v12646_v11  ;;  %8818 = vmatpush1.bf16.msra.mxu1 %v12691_v32 }
0x13e1   :  { %8820 = vmatprep.subr.bf16.mxu1 %v12692_v19 }
0x13e3   :  { %8792 = vmatpush1.bf16.msra.mxu0 %v12694_v51 }
0x13e4   :  { %8793 = vmatprep.subr.bf16.mxu0 %v12646_v11  ;;  %8822 = vmatpush1.bf16.msra.mxu1 %v12695_v44 }
0x13e5   :  { %8824 = vmatprep.subr.bf16.mxu1 %v12696_v5 }
0x13e6   :  { %v5415_v29 = vpop.permute.xlu0 %5414 }
0x13e7   :  { %8795 = vmatpush1.bf16.msra.mxu0 %v12697_v56  ;;  %v11777_v36 = vmul.f32 %v9383_v31, %v5415_v29  ;;  %v5417_v42 = vpop.permute.xlu1 %5416  ;;  %v13145_v56 = vld [vmem:[#allocation88_spill] sm:$0xff] }
0x13e8   :  { %v5418_v32 = vsel %vm1367_vm4, %v5415_v29, %v5417_v42  ;;  %8796 = vmatprep.subr.bf16.mxu0 %v12646_v11  ;;  %8826 = vmatpush1.bf16.msra.mxu1 %v12698_v3  ;;  %v13146_v3 = vld [vmem:[#allocation89_spill] sm:$0xff] }
0x13e9   :  { %v5700_v19 = vrot.slane %v11777_v36, 2  ;;  %v11783_v51 = vmul.f32 %v9385_v4, %v5418_v32  ;;  %8828 = vmatprep.subr.bf16.mxu1 %v12700_v57  ;;  %v13147_v57 = vld [vmem:[#allocation91_spill] sm:$0xff] }
0x13eb   :  { %v5442_v44 = vcombine.low %v11777_v36, %v11783_v51  ;;  %v5701_v5 = vrot.slane %v11783_v51, 2  ;;  %8798 = vmatpush1.bf16.msra.mxu0 %v12701_v17  ;;  %5702 = vrot.lane.b32.xlu0 %v5700_v19, %s9581_s24  ;;  %v13144_v17 = vld [vmem:[#allocation86_spill] sm:$0xff]  ;;  %v13188_v36 = vld [vmem:[#allocation77_spill] sm:$0xff] }
0x13ec   :  { %8799 = vmatprep.subr.bf16.mxu0 %v12646_v11  ;;  %8830 = vmatpush1.bf16.msra.mxu1 %v12702_v22  ;;  %v13143_v22 = vld [vmem:[#allocation85_spill] sm:$0xff]  ;;  %v13189_v51 = vld [vmem:[#allocation82_spill] sm:$0xff] }
0x13ed   :  { %5704 = vrot.lane.b32.xlu1 %v5701_v5, %s9581_s24  ;;  %8832 = vmatprep.subr.bf16.mxu1 %v12769_v1  ;;  %v13150_v1 = vld [vmem:[#allocation95_spill] sm:$0xff] }
0x13ee   :  { %v13170_v5 = vld [vmem:[#allocation115_spill] sm:$0xff] }
0x13ef   :  { %8801 = vmatpush1.bf16.msra.mxu0 %v12770_v12  ;;  %v13152_v12 = vld [vmem:[#allocation98_spill] sm:$0xff] }
0x13f0   :  { %8802 = vmatprep.subr.bf16.mxu0 %v12646_v11  ;;  %8834 = vmatpush1.bf16.msra.mxu1 %v12771_v53  ;;  %v13154_v53 = vld [vmem:[#allocation101_spill] sm:$0xff] }
0x13f1   :  { %8836 = vmatprep.subr.bf16.mxu1 %v12772_v33  ;;  %v13155_v33 = vld [vmem:[#allocation103_spill] sm:$0xff] }
0x13f3   :  { %8804 = vmatpush1.bf16.msra.mxu0 %v12773_v6  ;;  %v13156_v6 = vld [vmem:[#allocation104_spill] sm:$0xff] }
0x13f4   :  { %8805 = vmatprep.subr.bf16.mxu0 %v12646_v11  ;;  %8838 = vmatpush1.bf16.msra.mxu1 %v12774_v25  ;;  %v13157_v25 = vld [vmem:[#allocation122_spill] sm:$0xff] }
0x13f5   :  { %8840 = vmatprep.subr.bf16.mxu1 %v12775_v35  ;;  %v13158_v35 = vld [vmem:[#allocation121_spill] sm:$0xff] }
0x13f7   :  { %8807 = vmatpush1.bf16.msra.mxu0 %v12776_v2 }
0x13f8   :  { %8808 = vmatprep.subr.bf16.mxu0 %v12646_v11  ;;  %8842 = vmatpush1.bf16.msra.mxu1 %v12777_v40 }
0x13f9   :  { %8844 = vmatprep.subr.bf16.mxu1 %v12778_v0 }
0x13fb   :  { %8810 = vmatpush1.bf16.msra.mxu0 %v12779_v9  ;;  %v13159_v9 = vld [vmem:[#allocation81_spill] sm:$0xff] }
0x13fc   :  { %5646 = vmatprep.subr.mxu0 %v12640_v45  ;;  %8846 = vmatpush1.bf16.msra.mxu1 %v12780_v15  ;;  %v13160_v15 = vld [vmem:[#allocation84_spill] sm:$0xff] }
0x13fd   :  { %7205 = vmatprep.subr.msk.mxu1 %vm822_vm1, %v11576_v37  ;;  %v13161_v37 = vld [vmem:[#allocation87_spill] sm:$0xff] }
0x13ff   :  { %7203 = vmatpush1.msk.msra.mxu0 %vm822_vm1, %v11580_v55  ;;  %v13162_v55 = vld [vmem:[#allocation90_spill] sm:$0xff] }
0x1400   :  { %5675 = vmatmul.mubr.f32.vlgmr.msra.gmra.mrb[54].mxu0 %v5464_v30  ;;  %8848 = vmatprep.subr.bf16.mxu0 %v12781_v27  ;;  %v13149_v27 = vld [vmem:[#allocation94_spill] sm:$0xff]  ;;  %v5962_v30 = vrot.slane %v11723_v21, 6 }
0x1401   :  { %8850 = vmatpush1.bf16.msra.mxu0 %v12782_v38  ;;  %7206 = vmatpush1.msk.msra.mxu1 %vm822_vm1, %v11586_v49  ;;  %v13148_v38 = vld [vmem:[#allocation92_spill] sm:$0xff]  ;;  %v13163_v49 = vld [vmem:[#allocation93_spill] sm:$0xff] }
0x1402   :  { %8852 = vmatprep.subr.bf16.mxu0 %v12720_v34  ;;  %8883 = vmatprep.subr.bf16.mxu1 %v12646_v11  ;;  %v13151_v34 = vld [vmem:[#allocation97_spill] sm:$0xff] }
0x1405   :  { %8854 = vmatpush1.bf16.msra.mxu0 %v12721_v23  ;;  %v13153_v23 = vld [vmem:[#allocation100_spill] sm:$0xff] }
0x1406   :  { %8856 = vmatprep.subr.bf16.mxu0 %v13143_v22 }
0x1409   :  { %8858 = vmatpush1.bf16.msra.mxu0 %v13144_v17 }
0x140a   :  { %8860 = vmatprep.subr.bf16.mxu0 %v13145_v56 }
0x140d   :  { %8862 = vmatpush1.bf16.msra.mxu0 %v13146_v3  ;;  %v13171_v3 = vld [vmem:[#allocation116_spill] sm:$0xff] }
0x140e   :  { %8864 = vmatprep.subr.bf16.mxu0 %v13147_v57 }
0x1411   :  { %8866 = vmatpush1.bf16.msra.mxu0 %v13148_v38 }
0x1412   :  { %8868 = vmatprep.subr.bf16.mxu0 %v13149_v27  ;;  %v13172_v27 = vld [vmem:[#allocation111_spill] sm:$0xff] }
0x1415   :  { %8870 = vmatpush1.bf16.msra.mxu0 %v13150_v1 }
0x1416   :  { %8872 = vmatprep.subr.bf16.mxu0 %v13151_v34 }
0x1419   :  { %8874 = vmatpush1.bf16.msra.mxu0 %v13152_v12 }
0x141a   :  { %8876 = vmatprep.subr.bf16.mxu0 %v13153_v23 }
0x141d   :  { %8878 = vmatpush1.bf16.msra.mxu0 %v13154_v53 }
0x141e   :  { %8880 = vmatprep.subr.bf16.mxu0 %v13155_v33 }
0x1421   :  { %8882 = vmatpush1.bf16.msra.mxu0 %v13156_v6  ;;  %v6037_v6 = vrot.slane %v11751_v20, 2 }
0x1422   :  { %7208 = vmatprep.subr.msk.mxu0 %vm822_vm1, %v13157_v25 }
0x1425   :  { %7209 = vmatpush1.msk.msra.mxu0 %vm822_vm1, %v13158_v35 }
0x1426   :  { %8910 = vmatprep.subr.bf16.mxu0 %v12646_v11 }
0x145d   :  { %v5703_v2 = vpop.permute.xlu0 %5702 }
0x145f   :  { %v5705_v40 = vpop.permute.xlu1 %5704 }
0x1460   :  { %7207 = vmatprep.mubr.msk.f32.mxu1 %vm818_vm3, %v5705_v40  ;;  %7210 = vmatprep.mubr.msk.f32.mxu0 %vm818_vm3, %v5705_v40  ;;  %v5706_v0 = vsel %vm1455_vm5, %v5703_v2, %v5705_v40 }
0x1461   :  { %5775 = vmatmul.mubr.f32.vlgmr.msra.gmra.mrb[54].mxu1 %v5706_v0  ;;  %5846 = vmatmul.mubr.f32.vlgmr.msra.gmra.mrb[56].mxu0 %v5706_v0 }
0x1462   :  { %8885 = vmatpush1.bf16.msra.mxu1 %v13159_v9  ;;  %7212 = vmatprep.mubr.msk.f32.mxu1 %vm818_vm3, %v5705_v40 }
0x1463   :  { %8886 = vmatprep.subr.bf16.mxu1 %v12646_v11 }
0x1466   :  { %8888 = vmatpush1.bf16.msra.mxu1 %v13160_v15 }
0x1467   :  { %8889 = vmatprep.subr.bf16.mxu1 %v12646_v11 }
0x146a   :  { %8891 = vmatpush1.bf16.msra.mxu1 %v13161_v37 }
0x146b   :  { %8892 = vmatprep.subr.bf16.mxu1 %v12646_v11 }
0x146e   :  { %8894 = vmatpush1.bf16.msra.mxu1 %v13162_v55  ;;  %v13173_v55 = vld [vmem:[#allocation110_spill] sm:$0xff] }
0x146f   :  { %8895 = vmatprep.subr.bf16.mxu1 %v12646_v11 }
0x1472   :  { %8897 = vmatpush1.bf16.msra.mxu1 %v13163_v49 }
0x1473   :  { %8898 = vmatprep.subr.bf16.mxu1 %v12646_v11 }
0x1476   :  { %8900 = vmatpush1.bf16.msra.mxu1 %v13164_v41 }
0x1477   :  { %8901 = vmatprep.subr.bf16.mxu1 %v12646_v11 }
0x147a   :  { %8903 = vmatpush1.bf16.msra.mxu1 %v13165_v10  ;;  %v13174_v10 = vld [vmem:[#allocation108_spill] sm:$0xff] }
0x147b   :  { %8904 = vmatprep.subr.bf16.mxu1 %v12646_v11 }
0x147e   :  { %8906 = vmatpush1.bf16.msra.mxu1 %v13166_v59 }
0x147f   :  { %8907 = vmatprep.subr.bf16.mxu1 %v12646_v11 }
0x1482   :  { %8909 = vmatpush1.bf16.msra.mxu1 %v13167_v54 }
0x1483   :  { %5888 = vmatprep.subr.mxu1 %v12640_v45 }
0x1486   :  { %7211 = vmatpush1.msk.msra.mxu1 %vm822_vm1, %v13168_v14 }
0x1487   :  { %5917 = vmatmul.mubr.f32.vlgmr.msra.gmra.mrb[56].mxu1 %v5706_v0  ;;  %8937 = vmatprep.subr.bf16.mxu1 %v12646_v11 }
0x14ad   :  { %v5534_v48 = vpop.f32.mrb[52].mxu0  ;;  %v5605_v18 = vpop.f32.mrb[52].mxu1 }
0x14ae   :  { %v5687_v24 = vrot.slane %v5605_v18, 2  ;;  %v5536_v39 = vpop.f32.mrb[53].mxu0  ;;  %v5607_v50 = vpop.f32.mrb[53].mxu1  ;;  %v5685_v15 = vrot.slane %v5534_v48, 2 }
0x14af   :  { %v5688_v4 = vrot.slane %v5607_v50, 2  ;;  %v5686_v0 = vrot.slane %v5536_v39, 2 }
0x14b0   :  { %v5697_v46 = vadd.f32 %v5687_v24, %v13169_v43  ;;  %v5695_v59 = vadd.f32 %v5685_v15, %v13174_v10  ;;  %v13176_v10 = vld [vmem:[#allocation60_spill] sm:$0xff] }
0x14b1   :  { %v11876_v21 = vadd.f32 %v5688_v4, %v13172_v27  ;;  %v5696_v49 = vadd.f32 %v5686_v0, %v13173_v55 }
0x14b2   :  { %v7215_v47 = vmul.f32 -1.442695, %v5697_v46  ;;  %v7213_v20 = vmul.f32 -1.442695, %v5695_v59  ;;  %v13177_v59 = vld [vmem:[#allocation59_spill] sm:$0xff] }
0x14b3   :  { %v7214_v14 = vmul.f32 -1.442695, %v5696_v49 }
0x14b4   :  { %9386 = vpow2.f32 %v7215_v47 }
0x14be   :  { %v9387_v26 = vpop.eup %9386 }
0x14bf   :  { %v5942_v58 = vadd.f32 1.0, %v9387_v26 }
0x14c1   :  { %9388 = vrcp.f32 %v5942_v58 }
0x14cb   :  { %v9389_v61 = vpop.eup %9388 }
0x14cc   :  { %v11867_v31 = vmul.f32 %v9389_v61, %v5962_v30 }
0x14d3   :  { %v11869_v29 = vpop.f32.mrb[54].mxu0 }
0x14d4   :  { %v5678_v42 = vpop.f32.mrb[55].mxu0  ;;  %v5689_v63 = vrot.slane %v11869_v29, 2 }
0x1534   :  { %v5776_v32 = vpop.f32.mrb[54].mxu1  ;;  %v5847_v19 = vpop.f32.mrb[56].mxu0 }
0x1535   :  { %v5924_v22 = vadd.f32 %v5847_v19, %v13170_v5  ;;  %v5778_v17 = vpop.f32.mrb[55].mxu1  ;;  %v5849_v56 = vpop.f32.mrb[57].mxu0  ;;  %v5922_v37 = vadd.f32 %v5776_v32, %v12991_v7 }
0x1536   :  { %v11873_v57 = vadd.f32 %v5849_v56, %v13171_v3  ;;  %v5923_v9 = vadd.f32 %v5778_v17, %v12990_v28  ;;  %v6036_v3 = vrot.slane %v11748_v60, 2  ;;  %v9582_v60 = vmov 1983009808  }
0x1537   :  { %v7220_v38 = vmul.f32 -1.442695, %v5924_v22  ;;  %9390 = vtanh.f32 %v5924_v22  ;;  %v7218_v54 = vmul.f32 -1.442695, %v5922_v37  ;;  %v1446_v15 = vunpack.c.l.s4 %v9582_v60 }
0x1538   :  { %9392 = vtanh.f32 %v11873_v57  ;;  %v7219_v41 = vmul.f32 -1.442695, %v5923_v9 }
0x1539   :  { %9394 = vpow2.f32 %v7220_v38  ;;  %v1447_v37 = vunpack.c.0.s8 %v1446_v15 }
0x153a   :  { %9396 = vtanh.f32 %v5697_v46 }
0x153b   :  { %9398 = vtanh.f32 %v11876_v21 }
0x1541   :  { %v9391_v1 = vpop.eup %9390 }
0x1542   :  { %v9393_v34 = vpop.eup %9392  ;;  %6044 = vrot.lane.b32.xlu0 %v9391_v1, %s9578_s2 }
0x1543   :  { %6046 = vrot.lane.b32.xlu1 %v9393_v34, %s9578_s2  ;;  %v9395_v12 = vpop.eup %9394  ;;  %v5961_v34 = vrot.slane %v11720_v62, 6 }
0x1544   :  { %v9397_v23 = vpop.eup %9396  ;;  %v6017_v53 = vadd.f32 1.0, %v9395_v12 }
0x1545   :  { %v9399_v33 = vpop.eup %9398 }
0x1546   :  { %5969 = vrot.lane.b32.xlu0 %v9397_v23, %s9578_s2  ;;  %9400 = vrcp.f32 %v6017_v53 }
0x1547   :  { %5971 = vrot.lane.b32.xlu1 %v9399_v33, %s9578_s2  ;;  %9402 = vpow2.f32 %v7219_v41 }
0x1548   :  { %9404 = vpow2.f32 %v7218_v54  ;;  %v13178_v54 = vcombine.low %v13176_v10, %v13177_v59  ;;  %v13209_v59 = vld [vmem:[#allocation61_spill] sm:$0xff] }
0x1549   :  { %9406 = vpow2.f32 %v7214_v14 }
0x154a   :  { %9408 = vpow2.f32 %v7213_v20  ;;  %v13179_v20 = vld [vmem:[#allocation124_spill] sm:$0xff] }
0x1550   :  { %v9401_v25 = vpop.eup %9400 }
0x1551   :  { %v6041_v35 = vmul.f32 %v9401_v25, %v6037_v6  ;;  %v9403_v18 = vpop.eup %9402 }
0x1552   :  { %v9405_v24 = vpop.eup %9404  ;;  %v6009_v39 = vadd.f32 1.0, %v9403_v18  ;;  %v13180_v18 = vld [vmem:[#allocation125_spill] sm:$0xff] }
0x1553   :  { %v9407_v50 = vpop.eup %9406  ;;  %v6008_v28 = vadd.f32 1.0, %v9405_v24  ;;  %v13181_v24 = vcombine.low %v13179_v20, %v13180_v18  ;;  %v5699_v18 = vadd.f32 %v5689_v63, %v12992_v8 }
0x1554   :  { %v9409_v48 = vpop.eup %9408  ;;  %v5934_v43 = vadd.f32 1.0, %v9407_v50  ;;  %9410 = vrcp.f32 %v6009_v39 }
0x1555   :  { %v5933_v7 = vadd.f32 1.0, %v9409_v48  ;;  %9412 = vrcp.f32 %v6008_v28 }
0x1556   :  { %9414 = vrcp.f32 %v5934_v43  ;;  %v13182_v43 = vld [vmem:[#allocation80_spill] sm:$0xff] }
0x1557   :  { %9416 = vrcp.f32 %v5933_v7  ;;  %v13183_v7 = vld [vmem:[#allocation55_spill] sm:$0xff] }
0x155a   :  { %v11885_v2 = vpop.f32.mrb[56].mxu1 }
0x155b   :  { %v5920_v40 = vpop.f32.mrb[57].mxu1  ;;  %v5926_v16 = vadd.f32 %v11885_v2, %v12995_v52 }
0x155e   :  { %v9411_v47 = vpop.eup %9410 }
0x155f   :  { %v9413_v58 = vpop.eup %9412  ;;  %v6040_v27 = vmul.f32 %v9411_v47, %v6036_v3  ;;  %v13195_v3 = vld [vmem:[#allocation79_spill] sm:$0xff] }
0x1560   :  { %v9415_v32 = vpop.eup %9414 }
0x1561   :  { %v9417_v5 = vpop.eup %9416  ;;  %v5965_v6 = vmul.f32 %v9415_v32, %v5961_v34  ;;  %v13198_v34 = vld [vmem:[#allocation78_spill] sm:$0xff] }
0x15b4   :  { %v6045_v46 = vpop.permute.xlu0 %6044 }
0x15b5   :  { %v6047_v26 = vpop.permute.xlu1 %6046 }
0x15b6   :  { %v6048_v30 = vsel %vm1342_vm2, %v6045_v46, %v6047_v26  ;;  %v6052_v61 = vmul.f32 %v9411_v47, %v6047_v26  ;;  %v13184_v46 = vcombine.high %v13182_v43, %v13183_v7  ;;  %v13185_v26 = vld [vmem:[#allocation118_spill] sm:$0xff] }
0x15b7   :  { %v6051_v42 = vmul.f32 %v9413_v58, %v6048_v30  ;;  %v13186_v58 = vld [vmem:[#allocation119_spill] sm:$0xff] }
0x15b8   :  { %v5970_v4 = vpop.permute.xlu0 %5969  ;;  %6057 = vrot.lane.b32.xlu1 %v6052_v61, %s9579_s4  ;;  %v13187_v30 = vcombine.high %v13185_v26, %v13186_v58 }
0x15b9   :  { %v5972_v19 = vpop.permute.xlu1 %5971  ;;  %6055 = vrot.lane.b32.xlu0 %v6051_v42, %s9579_s4 }
0x15ba   :  { %v5973_v22 = vsel %vm1342_vm2, %v5970_v4, %v5972_v19  ;;  %v5977_v17 = vmul.f32 %v9415_v32, %v5972_v19  ;;  %v13191_v4 = vld [vmem:[#allocation69_spill] sm:$0xff]  ;;  %v13192_v32 = vld [vmem:[#allocation68_spill] sm:$0xff]  ;;  %vm6475_vm2 = vcmask 56320  }
0x15bb   :  { %v5976_v56 = vmul.f32 %v9417_v5, %v5973_v22  ;;  %v13193_v19 = vcombine.high %v13191_v4, %v13192_v32 }
0x15bc   :  { %5982 = vrot.lane.b32.xlu1 %v5977_v17, %s9579_s4 }
0x15bd   :  { %5980 = vrot.lane.b32.xlu0 %v5976_v56, %s9579_s4  ;;  %v13194_v56 = vld [vmem:[#allocation74_spill] sm:$0xff] }
0x162a   :  { %v6058_v38 = vpop.permute.xlu1 %6057 }
0x162b   :  { %v6056_v1 = vpop.permute.xlu0 %6055 }
0x162c   :  { %v6059_v12 = vsel %vm818_vm3, %v6056_v1, %v6058_v38  ;;  %v6062_v23 = vadd.f32 %v6056_v1, %v6040_v27  ;;  %v13196_v38 = vcombine.low %v13194_v56, %v13195_v3  ;;  %v13197_v1 = vld [vmem:[#allocation76_spill] sm:$0xff] }
0x162d   :  { %v6063_v53 = vadd.f32 %v6059_v12, %v6041_v35  ;;  %v13175_v35 = vld [vmem:[#allocation107_spill] sm:$0xff]  ;;  %v13199_v12 = vcombine.low %v13197_v1, %v13198_v34 }
0x162e   :  { %9418 = vtanh.f32 %v6062_v23  ;;  %v5983_v33 = vpop.permute.xlu1 %5982  ;;  %v11904_v49 = vsub.s32 %v1447_v37, %v13175_v35  ;;  %v13207_v35 = vld [vmem:[#allocation53_spill] sm:$0xff] }
0x162f   :  { %9420 = vtanh.f32 %v6063_v53  ;;  %v5981_v25 = vpop.permute.xlu0 %5980  ;;  %v13200_v53 = vld [vmem:[#allocation83_spill] sm:$0xff] }
0x1630   :  { %v5984_v40 = vsel %vm818_vm3, %v5981_v25, %v5983_v33  ;;  %v5987_v0 = vadd.f32 %v5981_v25, %v5965_v6  ;;  %v1451_v39 = vrot.slane %v13181_v24, %v11904_v49  ;;  %v5449_v50 = vrot.slane %v5442_v44, %v11904_v49  ;;  %v13201_v33 = vld [vmem:[#allocation106_spill] sm:$0xff] }
0x1631   :  { %v5988_v9 = vadd.f32 %v5984_v40, %v11867_v31  ;;  %v2121_v31 = vrot.slane %v13178_v54, %v11904_v49  ;;  %v4113_v47 = vrot.slane %v13184_v46, %v11904_v49  ;;  %v4781_v61 = vrot.slane %v13187_v30, %v11904_v49  ;;  %v13203_v40 = vld [vmem:[#allocation70_spill] sm:$0xff]  ;;  %v13210_v54 = vld [vmem:[#allocation63_spill] sm:$0xff] }
0x1632   :  { %9422 = vtanh.f32 %v5987_v0  ;;  %v5450_v48 = vcombine.high %v5449_v50, %v5449_v50  ;;  %v13190_v44 = vcombine.high %v13188_v36, %v13189_v51  ;;  %v3444_v5 = vrot.slane %v13193_v19, %v11904_v49  ;;  %v13204_v0 = vld [vmem:[#allocation72_spill] sm:$0xff] }
0x1633   :  { %9424 = vtanh.f32 %v5988_v9  ;;  %v2122_v28 = vcombine.high %v2121_v31, %v2121_v31  ;;  %v4114_v22 = vcombine.high %v4113_v47, %v4113_v47  ;;  %v4096_v27 = vrot.slane %v13196_v38, %v11904_v49 }
0x1634   :  { %v2790_v42 = vrot.slane %v13190_v44, %v11904_v49  ;;  %v3445_v17 = vcombine.high %v3444_v5, %v3444_v5  ;;  %v4763_v23 = vrot.slane %v13199_v12, %v11904_v49  ;;  %v13202_v6 = vcombine.low %v13200_v53, %v13201_v33 }
0x1635   :  { %v13205_v9 = vcombine.low %v13203_v40, %v13204_v0  ;;  %v13211_v31 = vcombine.high %v13209_v59, %v13210_v54  ;;  %v7222_v24 = vmul.f32 -1.442695, %v5926_v16  ;;  %v7217_v50 = vmul.f32 -1.442695, %v5699_v18 }
0x1636   :  { %v2807_v25 = vrot.slane %v13202_v6, %v11904_v49  ;;  %v4764_v15 = vcombine.high %v4763_v23, %v4763_v23 }
0x1637   :  { %v3462_v60 = vrot.slane %v13205_v9, %v11904_v49 }
0x1638   :  { %v9419_v62 = vpop.eup %9418  ;;  %v2808_v37 = vcombine.high %v2807_v25, %v2807_v25 }
0x1639   :  { %v9421_v55 = vpop.eup %9420  ;;  %6068 = vrot.lane.b32.xlu0 %v9419_v62, %s9580_s23  ;;  %v5432_v62 = vrot.slane %v5425_v13, %v11904_v49  ;;  %v7221_v13 = vmul.f32 -1.442695, %v11873_v57 }
0x163a   :  { %6070 = vrot.lane.b32.xlu1 %v9421_v55, %s9580_s23  ;;  %v13206_v55 = vld [vmem:[#allocation54_spill] sm:$0xff] }
0x163b   :  { %9426 = vpow2.f32 %v7221_v13 }
0x163c   :  { %v9423_v41 = vpop.eup %9422  ;;  %9428 = vpow2.f32 %v7222_v24 }
0x163d   :  { %v9425_v14 = vpop.eup %9424  ;;  %5993 = vrot.lane.b32.xlu0 %v9423_v41, %s9580_s23  ;;  %v13208_v41 = vcombine.high %v13206_v55, %v13207_v35 }
0x163e   :  { %5995 = vrot.lane.b32.xlu1 %v9425_v14, %s9580_s23  ;;  %v2139_v14 = vrot.slane %v13211_v31, %v11904_v49 }
0x163f   :  { %v1471_v10 = vrot.slane %v13208_v41, %v11904_v49 }
0x1641   :  { %1452 = vrot.lane.b32.xlu0 %v1451_v39, %s9581_s24  ;;  %v1472_v20 = vcombine.high %v1471_v10, %v1471_v10  ;;  %v7216_v39 = vmul.f32 -1.442695, %v11876_v21 }
0x1642   :  { %2123 = vrot.lane.b32.xlu1 %v2122_v28, %s9581_s24 }
0x1643   :  { %9430 = vpow2.f32 %v7216_v39 }
0x1644   :  { %9432 = vpow2.f32 %v7217_v50 }
0x1645   :  { %5451 = vrot.lane.b32.xlu0 %v5450_v48, %s9581_s24  ;;  %v9427_v28 = vpop.eup %9426 }
0x1646   :  { %4782 = vrot.lane.b32.xlu1 %v4781_v61, %s9581_s24  ;;  %v9429_v48 = vpop.eup %9428  ;;  %v6028_v7 = vadd.f32 1.0, %v9427_v28 }
0x1647   :  { %v6029_v29 = vadd.f32 1.0, %v9429_v48 }
0x1648   :  { %9434 = vrcp.f32 %v6028_v7 }
0x1649   :  { %2791 = vrot.lane.b32.xlu0 %v2790_v42, %s9581_s24  ;;  %9436 = vrcp.f32 %v6029_v29 }
0x164a   :  { %4115 = vrot.lane.b32.xlu1 %v4114_v22, %s9581_s24 }
0x164d   :  { %3446 = vrot.lane.b32.xlu0 %v3445_v17, %s9581_s24  ;;  %v9431_v43 = vpop.eup %9430 }
0x164e   :  { %4097 = vrot.lane.b32.xlu1 %v4096_v27, %s9581_s24  ;;  %v9433_v46 = vpop.eup %9432  ;;  %v5953_v47 = vadd.f32 1.0, %v9431_v43 }
0x164f   :  { %v5954_v52 = vadd.f32 1.0, %v9433_v46 }
0x1650   :  { %9438 = vrcp.f32 %v5953_v47 }
0x1651   :  { %3463 = vrot.lane.b32.xlu0 %v3462_v60, %s9581_s24  ;;  %9440 = vrcp.f32 %v5954_v52 }
0x1652   :  { %4765 = vrot.lane.b32.xlu1 %v4764_v15, %s9581_s24  ;;  %v9435_v57 = vpop.eup %9434 }
0x1653   :  { %v9437_v2 = vpop.eup %9436 }
0x1655   :  { %2809 = vrot.lane.b32.xlu0 %v2808_v37, %s9581_s24 }
0x1656   :  { %5433 = vrot.lane.b32.xlu1 %v5432_v62, %s9581_s24 }
0x1659   :  { %2140 = vrot.lane.b32.xlu0 %v2139_v14, %s9581_s24 }
0x165a   :  { %v9439_v61 = vpop.eup %9438 }
0x165b   :  { %v9441_v4 = vpop.eup %9440 }
0x165d   :  { %1473 = vrot.lane.b32.xlu0 %v1472_v20, %s9581_s24 }
0x16ab   :  { %v6069_v8 = vpop.permute.xlu0 %6068 }
0x16ac   :  { %v6071_v21 = vpop.permute.xlu1 %6070  ;;  %v6075_v58 = vmul.f32 %v9435_v57, %v6069_v8 }
0x16ad   :  { %v6072_v26 = vsel %vm1367_vm4, %v6069_v8, %v6071_v21 }
0x16ae   :  { %v6076_v30 = vmul.f32 %v9437_v2, %v6072_v26  ;;  %v6115_v19 = vrot.slane %v6075_v58, 6 }
0x16af   :  { %v5994_v36 = vpop.permute.xlu0 %5993 }
0x16b0   :  { %v6097_v51 = vcombine.low %v6075_v58, %v6076_v30  ;;  %v6000_v44 = vmul.f32 %v9439_v61, %v5994_v36  ;;  %v5996_v42 = vpop.permute.xlu1 %5995  ;;  %v6116_v56 = vrot.slane %v6076_v30, 6 }
0x16b1   :  { %v5997_v32 = vsel %vm1367_vm4, %v5994_v36, %v5996_v42  ;;  %vm6477_vm4 = vcmask 58368  }
0x16b2   :  { %v6104_v5 = vrot.slane %v6097_v51, %v11904_v49  ;;  %v6111_v22 = vrot.slane %v6000_v44, 6  ;;  %v6001_v17 = vmul.f32 %v9441_v4, %v5997_v32 }
0x16b3   :  { %v1453_v3 = vpop.permute.xlu0 %1452 }
0x16b4   :  { %v6119_v38 = vsel %vm1458_vm6, %v6111_v22, %v6115_v19  ;;  %v6079_v27 = vcombine.high %v6000_v44, %v6001_v17  ;;  %v6112_v1 = vrot.slane %v6001_v17, 6  ;;  %v1454_v12 = vrot.slane %v1453_v3, 2  ;;  %v2124_v23 = vpop.permute.xlu1 %2123  ;;  %6105 = vrot.lane.b32.xlu1 %v6104_v5, %s9581_s24 }
0x16b5   :  { %v6123_v53 = vrot.slane %v6119_v38, 1  ;;  %v6130_v33 = vrot.slane %v6119_v38, 2  ;;  %v2125_v6 = vrot.slane %v2124_v23, 2 }
0x16b6   :  { %v6086_v25 = vrot.slane %v6079_v27, %v11904_v49  ;;  %v6120_v40 = vsel %vm1458_vm6, %v6112_v1, %v6116_v56  ;;  %v1456_v0 = vsel %vm1455_vm5, %v1453_v3, %v1454_v12 }
0x16b7   :  { %v6124_v9 = vrot.slane %v6120_v40, 1  ;;  %v6131_v60 = vrot.slane %v6120_v40, 2  ;;  %1461 = vst.msk [vmem:[#allocation2] sm:$0xf] %vm11990_vm8, %v1456_v0  ;;  %v2126_v15 = vsel %vm1455_vm5, %v2124_v23, %v2125_v6  ;;  %v5452_v37 = vpop.permute.xlu0 %5451  ;;  %v6134_v41 = vsel %vm6127_vm9, %v6123_v53, %v6130_v33 }
0x16b8   :  { %v6087_v62 = vcombine.high %v6086_v25, %v6086_v25  ;;  %2129 = vst.msk [vmem:[#allocation2 + $0x4] sm:$0xf] %vm11990_vm8, %v2126_v15  ;;  %v5453_v55 = vrot.slane %v5452_v37, 2  ;;  %v4783_v35 = vpop.permute.xlu1 %4782  ;;  %v6128_v54 = vsel %vm6127_vm9, %v6119_v38, %v6123_v53 }
0x16b9   :  { %v4784_v10 = vrot.slane %v4783_v35, 2  ;;  %v6135_v59 = vsel %vm6127_vm9, %v6124_v9, %v6131_v60  ;;  %v6129_v31 = vsel %vm6127_vm9, %v6120_v40, %v6124_v9 }
0x16ba   :  { %v5454_v14 = vsel %vm1455_vm5, %v5452_v37, %v5453_v55  ;;  %6088 = vrot.lane.b32.xlu1 %v6087_v62, %s9581_s24  ;;  %v6173_v20 = vcombine.low %v6134_v41, %v6135_v59  ;;  %v6140_v63 = vcombine.low %v6128_v54, %v6129_v31 }
0x16bb   :  { %5457 = vst.msk [vmem:[#allocation3 + $0x4] sm:$0xf] %vm11990_vm8, %v5454_v14  ;;  %v4785_v16 = vsel %vm1455_vm5, %v4783_v35, %v4784_v10  ;;  %v2792_v13 = vpop.permute.xlu0 %2791 }
0x16bc   :  { %4788 = vst.msk [vmem:[#allocation3 + $0x8] sm:$0xf] %vm11990_vm8, %v4785_v16  ;;  %v2793_v18 = vrot.slane %v2792_v13, 2  ;;  %v4116_v24 = vpop.permute.xlu1 %4115  ;;  %v6180_v39 = vrot.slane %v6173_v20, %v11904_v49  ;;  %v6147_v50 = vrot.slane %v6140_v63, %v11904_v49 }
0x16bd   :  { %v4117_v28 = vrot.slane %v4116_v24, 2 }
0x16be   :  { %v2794_v48 = vsel %vm1455_vm5, %v2792_v13, %v2793_v18  ;;  %6181 = vrot.lane.b32.xlu1 %v6180_v39, %s9581_s24  ;;  %6148 = vrot.lane.b32.xlu0 %v6147_v50, %s9581_s24  ;;  %v6136_v40 = vld [vmem:[#allocation2] sm:$0xf] }
0x16bf   :  { %2797 = vst.msk [vmem:[#allocation2 + $0x8] sm:$0xf] %vm11990_vm8, %v2794_v48  ;;  %v4118_v43 = vsel %vm1455_vm5, %v4116_v24, %v4117_v28  ;;  %v3447_v7 = vpop.permute.xlu0 %3446  ;;  %v6204_v37 = vld [vmem:[#allocation2 + $0x4] sm:$0xf] }
0x16c0   :  { %4121 = vst.msk [vmem:[#allocation3 + $0xc] sm:$0xf] %vm11990_vm8, %v4118_v43  ;;  %v3448_v29 = vrot.slane %v3447_v7, 2  ;;  %v4098_v46 = vpop.permute.xlu1 %4097 }
0x16c1   :  { %v4099_v47 = vrot.slane %v4098_v46, 2 }
0x16c2   :  { %v3449_v52 = vsel %vm1455_vm5, %v3447_v7, %v3448_v29  ;;  %v6205_v10 = vld [vmem:[#allocation3 + $0x4] sm:$0xf] }
0x16c3   :  { %3452 = vst.msk [vmem:[#allocation2 + $0xc] sm:$0xf] %vm11990_vm8, %v3449_v52  ;;  %v4100_v8 = vsel %vm1455_vm5, %v4098_v46, %v4099_v47  ;;  %v3464_v57 = vpop.permute.xlu0 %3463  ;;  %v6242_v24 = vld [vmem:[#allocation3 + $0x8] sm:$0xf] }
0x16c4   :  { %4103 = vst.msk [vmem:[#allocation2 + $0x10] sm:$0xf] %vm11990_vm8, %v4100_v8  ;;  %v3465_v21 = vrot.slane %v3464_v57, 2  ;;  %v4766_v2 = vpop.permute.xlu1 %4765 }
0x16c5   :  { %v4767_v26 = vrot.slane %v4766_v2, 2 }
0x16c6   :  { %v3466_v58 = vsel %vm1455_vm5, %v3464_v57, %v3465_v21  ;;  %v6241_v60 = vld [vmem:[#allocation2 + $0x8] sm:$0xf] }
0x16c7   :  { %3469 = vst.msk [vmem:[#allocation3 + $0x10] sm:$0xf] %vm11990_vm8, %v3466_v58  ;;  %v4768_v30 = vsel %vm1455_vm5, %v4766_v2, %v4767_v26  ;;  %v2810_v61 = vpop.permute.xlu0 %2809 }
0x16c8   :  { %4771 = vst.msk [vmem:[#allocation2 + $0x14] sm:$0xf] %vm11990_vm8, %v4768_v30  ;;  %v2811_v36 = vrot.slane %v2810_v61, 2  ;;  %v5434_v51 = vpop.permute.xlu1 %5433 }
0x16c9   :  { %v5435_v44 = vrot.slane %v5434_v51, 2 }
0x16ca   :  { %v2812_v42 = vsel %vm1455_vm5, %v2810_v61, %v2811_v36  ;;  %v6278_v15 = vld [vmem:[#allocation2 + $0xc] sm:$0xf] }
0x16cb   :  { %2815 = vst.msk [vmem:[#allocation3 + $0x14] sm:$0xf] %vm11990_vm8, %v2812_v42  ;;  %v5436_v4 = vsel %vm1455_vm5, %v5434_v51, %v5435_v44  ;;  %v2141_v32 = vpop.permute.xlu0 %2140  ;;  %v6315_v41 = vld [vmem:[#allocation2 + $0x10] sm:$0xf] }
0x16cc   :  { %5439 = vst.msk [vmem:[#allocation2 + $0x18] sm:$0xf] %vm11990_vm8, %v5436_v4  ;;  %v2142_v19 = vrot.slane %v2141_v32, 2 }
0x16ce   :  { %v2143_v5 = vsel %vm1455_vm5, %v2141_v32, %v2142_v19 }
0x16cf   :  { %2146 = vst.msk [vmem:[#allocation3 + $0x18] sm:$0xf] %vm11990_vm8, %v2143_v5  ;;  %v1474_v22 = vpop.permute.xlu0 %1473  ;;  %v6352_v59 = vld [vmem:[#allocation2 + $0x14] sm:$0xf]  ;;  %v6279_v5 = vld [vmem:[#allocation3 + $0xc] sm:$0xf] }
0x16d0   :  { %v1475_v17 = vrot.slane %v1474_v22, 2 }
0x16d2   :  { %v1476_v56 = vsel %vm1455_vm5, %v1474_v22, %v1475_v17 }
0x16d3   :  { %1479 = vst.msk [vmem:[#allocation3 + $0x1c] sm:$0xf] %vm11990_vm8, %v1476_v56  ;;  %v6389_v22 = vld [vmem:[#allocation2 + $0x18] sm:$0xf] }
0x1726   :  { %v6106_v3 = vpop.permute.xlu1 %6105 }
0x1727   :  { %v6107_v38 = vrot.slane %v6106_v3, 2 }
0x1729   :  { %v6108_v27 = vsel %vm1455_vm5, %v6106_v3, %v6107_v38 }
0x172a   :  { %6110 = vst.msk [vmem:[#allocation3] sm:$0xf] %vm11990_vm8, %v6108_v27  ;;  %v6316_v27 = vld [vmem:[#allocation3 + $0x10] sm:$0xf] }
0x172c   :  { %v6089_v1 = vpop.permute.xlu1 %6088 }
0x172d   :  { %v6090_v12 = vrot.slane %v6089_v1, 2 }
0x172f   :  { %v6091_v23 = vsel %vm1455_vm5, %v6089_v1, %v6090_v12 }
0x1730   :  { %6094 = vst.msk [vmem:[#allocation2 + $0x1c] sm:$0xf] %vm11990_vm8, %v6091_v23  ;;  %v6182_v53 = vpop.permute.xlu1 %6181  ;;  %v6149_v33 = vpop.permute.xlu0 %6148 }
0x1731   :  { %v6183_v6 = vrot.slane %v6182_v53, 2  ;;  %v6150_v25 = vrot.slane %v6149_v33, 2  ;;  %v6137_v44 = vld [vmem:[#allocation3] sm:$0xf] }
0x1733   :  { %v12055_v0 = vsel %vm1455_vm5, %v6182_v53, %v6183_v6  ;;  %v12058_v9 = vsel %vm1455_vm5, %v6149_v33, %v6150_v25 }
0x1734   :  { %v6243_v62 = vmul.f32 %v6241_v60, %v12058_v9  ;;  %v6153_v55 = vmul.f32 %v12058_v9, %v6136_v40  ;;  %v6280_v34 = vmul.f32 %v6278_v15, %v12058_v9  ;;  %v6206_v35 = vmul.f32 %v6204_v37, %v12058_v9 }
0x1735   :  { %v6317_v54 = vmul.f32 %v6315_v41, %v12058_v9  ;;  %v6223_v31 = vmul.f32 %v6205_v10, %v12055_v0  ;;  %v6354_v14 = vmul.f32 %v6352_v59, %v12058_v9  ;;  %v6260_v48 = vmul.f32 %v6242_v24, %v12055_v0  ;;  %v6353_v10 = vld [vmem:[#allocation3 + $0x14] sm:$0xf] }
0x1736   :  { %v6251_v20 = vrot.slane %v6243_v62, %v11904_v49  ;;  %v6161_v63 = vrot.slane %v6153_v55, %v11904_v49  ;;  %v6288_v16 = vrot.slane %v6280_v34, %v11904_v49  ;;  %v6214_v13 = vrot.slane %v6206_v35, %v11904_v49 }
0x1737   :  { %v6325_v18 = vrot.slane %v6317_v54, %v11904_v49  ;;  %v6231_v28 = vrot.slane %v6223_v31, %v11904_v49  ;;  %v6362_v46 = vrot.slane %v6354_v14, %v11904_v49  ;;  %v6268_v61 = vrot.slane %v6260_v48, %v11904_v49  ;;  %v6426_v25 = vld [vmem:[#allocation2 + $0x1c] sm:$0xf] }
0x1738   :  { %v6252_v39 = vcombine.high %v6251_v20, %v6251_v20  ;;  %v6162_v50 = vcombine.high %v6161_v63, %v6161_v63  ;;  %v6255_v43 = vsel %vm1458_vm6, %v6251_v20, 0.0  ;;  %v6289_v7 = vcombine.high %v6288_v16, %v6288_v16 }
0x1739   :  { %v6215_v29 = vcombine.high %v6214_v13, %v6214_v13  ;;  %v6165_v52 = vsel %vm1458_vm6, %v6161_v63, 0.0  ;;  %v6326_v57 = vcombine.high %v6325_v18, %v6325_v18  ;;  %v6232_v30 = vcombine.high %v6231_v28, %v6231_v28 }
0x173a   :  { %v6256_v47 = vsel %vm6166_vm10, %v6252_v39, 0.0  ;;  %v6167_v8 = vsel %vm6166_vm10, %v6162_v50, 0.0  ;;  %v6293_v26 = vsel %vm6166_vm10, %v6289_v7, 0.0  ;;  %v6292_v36 = vsel %vm1458_vm6, %v6288_v16, 0.0 }
0x173b   :  { %v6257_v21 = vadd.f32 %v6256_v47, %v6255_v43  ;;  %v6168_v2 = vadd.f32 %v6167_v8, %v6165_v52  ;;  %v6219_v58 = vsel %vm6166_vm10, %v6215_v29, 0.0  ;;  %v6218_v51 = vsel %vm1458_vm6, %v6214_v13, 0.0  ;;  %v6427_v47 = vld [vmem:[#allocation3 + $0x1c] sm:$0xf] }
0x173c   :  { %v6294_v42 = vadd.f32 %v6293_v26, %v6292_v36  ;;  %v6220_v4 = vadd.f32 %v6219_v58, %v6218_v51  ;;  %v6330_v32 = vsel %vm6166_vm10, %v6326_v57, 0.0  ;;  %v6186_v19 = vmul.f32 %v12055_v0, %v6137_v44 }
0x173d   :  { %6258 = vadd.xlane.f32.xlu1 %v6257_v21  ;;  %6169 = vadd.xlane.f32.xlu0 %v6168_v2  ;;  %v6236_v17 = vsel %vm6166_vm10, %v6232_v30, 0.0  ;;  %v6363_v56 = vcombine.high %v6362_v46, %v6362_v46  ;;  %v6297_v3 = vmul.f32 %v6279_v5, %v12055_v0  ;;  %v6391_v38 = vmul.f32 %v6389_v22, %v12058_v9 }
0x173e   :  { %v6269_v1 = vcombine.high %v6268_v61, %v6268_v61  ;;  %v6194_v12 = vrot.slane %v6186_v19, %v11904_v49  ;;  %v6334_v23 = vmul.f32 %v6316_v27, %v12055_v0  ;;  %v6329_v53 = vsel %vm1458_vm6, %v6325_v18, 0.0  ;;  %v6390_v18 = vld [vmem:[#allocation3 + $0x18] sm:$0xf] }
0x173f   :  { %v6235_v33 = vsel %vm1458_vm6, %v6231_v28, 0.0  ;;  %v6305_v6 = vrot.slane %v6297_v3, %v11904_v49  ;;  %v6331_v40 = vadd.f32 %v6330_v32, %v6329_v53  ;;  %v6367_v15 = vsel %vm6166_vm10, %v6363_v56, 0.0 }
0x1740   :  { %v6237_v60 = vadd.f32 %v6236_v17, %v6235_v33  ;;  %v6195_v37 = vcombine.high %v6194_v12, %v6194_v12  ;;  %v6399_v62 = vrot.slane %v6391_v38, %v11904_v49  ;;  %v6342_v55 = vrot.slane %v6334_v23, %v11904_v49 }
0x1741   :  { %6295 = vadd.xlane.f32.xlu1 %v6294_v42  ;;  %6221 = vadd.xlane.f32.xlu0 %v6220_v4  ;;  %v6273_v34 = vsel %vm6166_vm10, %v6269_v1, 0.0  ;;  %v6306_v35 = vcombine.high %v6305_v6, %v6305_v6  ;;  %v6428_v41 = vmul.f32 %v6426_v25, %v12058_v9  ;;  %v6366_v59 = vsel %vm1458_vm6, %v6362_v46, 0.0 }
0x1742   :  { %v6371_v54 = vmul.f32 %v6353_v10, %v12055_v0  ;;  %v6368_v31 = vadd.f32 %v6367_v15, %v6366_v59  ;;  %v6272_v14 = vsel %vm1458_vm6, %v6268_v61, 0.0  ;;  %v6199_v63 = vsel %vm6166_vm10, %v6195_v37, 0.0 }
0x1743   :  { %v6274_v20 = vadd.f32 %v6273_v34, %v6272_v14  ;;  %v6400_v16 = vcombine.high %v6399_v62, %v6399_v62  ;;  %v6343_v13 = vcombine.high %v6342_v55, %v6342_v55  ;;  %v6310_v24 = vsel %vm6166_vm10, %v6306_v35, 0.0 }
0x1744   :  { %v6436_v9 = vrot.slane %v6428_v41, %v11904_v49  ;;  %v6379_v39 = vrot.slane %v6371_v54, %v11904_v49  ;;  %v6408_v50 = vmul.f32 %v6390_v18, %v12055_v0  ;;  %v6198_v28 = vsel %vm1458_vm6, %v6194_v12, 0.0 }
0x1745   :  { %6332 = vadd.xlane.f32.xlu1 %v6331_v40  ;;  %6238 = vadd.xlane.f32.xlu0 %v6237_v60  ;;  %v6309_v48 = vsel %vm1458_vm6, %v6305_v6, 0.0  ;;  %v6200_v43 = vadd.f32 %v6199_v63, %v6198_v28  ;;  %v6404_v29 = vsel %vm6166_vm10, %v6400_v16, 0.0  ;;  %v6347_v46 = vsel %vm6166_vm10, %v6343_v13, 0.0 }
0x1746   :  { %v6311_v7 = vadd.f32 %v6310_v24, %v6309_v48  ;;  %v6437_v52 = vcombine.high %v6436_v9, %v6436_v9  ;;  %v6380_v8 = vcombine.high %v6379_v39, %v6379_v39  ;;  %v6416_v57 = vrot.slane %v6408_v50, %v11904_v49 }
0x1747   :  { %v6445_v21 = vmul.f32 %v6427_v47, %v12055_v0  ;;  %v6403_v2 = vsel %vm1458_vm6, %v6399_v62, 0.0  ;;  %v6346_v26 = vsel %vm1458_vm6, %v6342_v55, 0.0  ;;  %v6440_v42 = vsel %vm1458_vm6, %v6436_v9, 0.0 }
0x1748   :  { %v6405_v58 = vadd.f32 %v6404_v29, %v6403_v2  ;;  %v6348_v30 = vadd.f32 %v6347_v46, %v6346_v26  ;;  %v6441_v61 = vsel %vm6166_vm10, %v6437_v52, 0.0  ;;  %v6384_v36 = vsel %vm6166_vm10, %v6380_v8, 0.0  ;;  %v6798_v52 = vld [vmem:[%s12311_s8] sm:$0xff]  ;;  %v6799_v8 = vld [vmem:[%s12311_s8 + $0x8] sm:$0xff] }
0x1749   :  { %6369 = vadd.xlane.f32.xlu1 %v6368_v31  ;;  %6275 = vadd.xlane.f32.xlu0 %v6274_v20  ;;  %v6417_v51 = vcombine.high %v6416_v57, %v6416_v57  ;;  %v6453_v44 = vrot.slane %v6445_v21, %v11904_v49  ;;  %v6383_v0 = vsel %vm1458_vm6, %v6379_v39, 0.0  ;;  %v6442_v4 = vadd.f32 %v6441_v61, %v6440_v42  ;;  %v6780_v2 = vld [vmem:[%s12310_s7 + $0x8] sm:$0xff] }
0x174a   :  { %v6385_v32 = vadd.f32 %v6384_v36, %v6383_v0  ;;  %v6420_v22 = vsel %vm1458_vm6, %v6416_v57, 0.0  ;;  %v9583_v46 = vmov 1   ;;  %v9584_v47 = vmov 0   ;;  %v6779_v57 = vld [vmem:[%s12310_s7] sm:$0xff]  ;;  %v6800_v36 = vld [vmem:[%s12311_s8 + $0x10] sm:$0xff] }
0x174b   :  { %v6421_v19 = vsel %vm6166_vm10, %v6417_v51, 0.0  ;;  %v6454_v5 = vcombine.high %v6453_v44, %v6453_v44  ;;  %v6457_v49 = vsel %vm1458_vm6, %v6453_v44, 0.0  ;;  %8986 = vset.pattern.permute.xlu0 %v9583_v46  ;;  %8985 = vset.pattern.permute.xlu1 %v9584_v47  ;;  %v8911_v21 = vpack.c.bf16 %v6799_v8, %v6798_v52  ;;  %v6801_v51 = vld [vmem:[%s12311_s8 + $0x18] sm:$0xff]  ;;  %v6781_v44 = vld [vmem:[%s12310_s7 + $0x10] sm:$0xff]  ;;  %v6796_v47 = vld [vmem:[%s12310_s7 + $0x88] sm:$0xff] }
0x174c   :  { %v6422_v17 = vadd.f32 %v6421_v19, %v6420_v22  ;;  %v8938_v26 = vpack.c.bf16 %v6780_v2, %v6779_v57  ;;  %v9585_v42 = vmov 2   ;;  %v8914_v0 = vpack.c.bf16 %v6801_v51, %v6800_v36  ;;  %v6803_v22 = vld [vmem:[%s12311_s8 + $0x28] sm:$0xff]  ;;  %v6816_v8 = vld [vmem:[%s12311_s8 + $0x90] sm:$0x3f] }
0x174d   :  { %6201 = vadd.xlane.f32.xlu1 %v6200_v43  ;;  %6312 = vadd.xlane.f32.xlu0 %v6311_v7  ;;  %v6458_v56 = vsel %vm6166_vm10, %v6454_v5, 0.0  ;;  %v6802_v5 = vld [vmem:[%s12311_s8 + $0x20] sm:$0xff] }
0x174e   :  { %v6459_v3 = vadd.f32 %v6458_v56, %v6457_v49  ;;  %8912 = vmatpush1.bf16.msra.mxu0 %v8911_v21  ;;  %8939 = vmatpush1.bf16.msra.mxu1 %v8938_v26  ;;  %v8917_v56 = vpack.c.bf16 %v6803_v22, %v6802_v5  ;;  %v6784_v49 = vld [vmem:[%s12310_s7 + $0x28] sm:$0xff]  ;;  %v7225_v2 = vld.sshfl [vmem:[#allocation2 + $0x4] sm:$0x33 pattern:$0x76325410] }
0x174f   :  { %8913 = vmatprep.subr.bf16.mxu0 %v12646_v11  ;;  %8940 = vmatprep.subr.bf16.mxu1 %v12646_v11  ;;  %v7226_v26 = vld.sshfl [vmem:[#allocation3 + $0x4] sm:$0x33 pattern:$0x76325410] }
0x1750   :  { %v7224_v36 = vld.sshfl [vmem:[#allocation3] sm:$0x33 pattern:$0x76325410] }
0x1751   :  { %6406 = vadd.xlane.f32.xlu1 %v6405_v58  ;;  %6349 = vadd.xlane.f32.xlu0 %v6348_v30  ;;  %v7229_v5 = vld.sshfl [vmem:[#allocation2 + $0xc] sm:$0x33 pattern:$0x76325410] }
0x1752   :  { %8915 = vmatpush1.bf16.msra.mxu0 %v8914_v0  ;;  %v7230_v22 = vld.sshfl [vmem:[#allocation3 + $0xc] sm:$0x33 pattern:$0x76325410] }
0x1753   :  { %8916 = vmatprep.subr.bf16.mxu0 %v12646_v11 }
0x1755   :  { %6443 = vadd.xlane.f32.xlu1 %v6442_v4  ;;  %6386 = vadd.xlane.f32.xlu0 %v6385_v32  ;;  %v6782_v4 = vld [vmem:[%s12310_s7 + $0x18] sm:$0xff]  ;;  %v9586_v32 = vmov 7  }
0x1756   :  { %v8941_v19 = vpack.c.bf16 %v6782_v4, %v6781_v44  ;;  %8918 = vmatpush1.bf16.msra.mxu0 %v8917_v56  ;;  %v6520_v4 = vcombine.high %v7224_v36, %v7224_v36 }
0x1757   :  { %8919 = vmatprep.subr.bf16.mxu0 %v12646_v11 }
0x1758   :  { %8942 = vmatpush1.bf16.msra.mxu1 %v8941_v19 }
0x1759   :  { %6423 = vadd.xlane.f32.xlu0 %v6422_v17  ;;  %v6783_v17 = vld [vmem:[%s12310_s7 + $0x20] sm:$0xff]  ;;  %8943 = vmatprep.subr.bf16.mxu1 %v12646_v11 }
0x175d   :  { %6460 = vadd.xlane.f32.xlu0 %v6459_v3  ;;  %v9587_v3 = vmov 3  }
0x17ca   :  { %v6259_v38 = vpop.xlane.xlu1 %6258  ;;  %v6170_v27 = vpop.xlane.xlu0 %6169 }
0x17ce   :  { %v6296_v1 = vpop.xlane.xlu1 %6295  ;;  %v6222_v12 = vpop.xlane.xlu0 %6221 }
0x17d2   :  { %v6333_v23 = vpop.xlane.xlu1 %6332  ;;  %v6239_v53 = vpop.xlane.xlu0 %6238 }
0x17d3   :  { %v6240_v37 = vadd.f32 %v6239_v53, %v6222_v12  ;;  %v6785_v12 = vld [vmem:[%s12310_s7 + $0x30] sm:$0xff]  ;;  %v6786_v53 = vld [vmem:[%s12310_s7 + $0x38] sm:$0xff] }
0x17d6   :  { %v6370_v33 = vpop.xlane.xlu1 %6369  ;;  %v6276_v6 = vpop.xlane.xlu0 %6275 }
0x17d7   :  { %v6277_v55 = vadd.f32 %v6276_v6, %v6259_v38  ;;  %v8944_v38 = vpack.c.bf16 %v6784_v49, %v6783_v17  ;;  %v6807_v6 = vld [vmem:[%s12311_s8 + $0x48] sm:$0xff] }
0x17d9   :  { %8945 = vmatpush1.bf16.msra.mxu1 %v8944_v38  ;;  %v7231_v38 = vld.sshfl [vmem:[#allocation2 + $0x10] sm:$0x33 pattern:$0x76325410] }
0x17da   :  { %v6202_v25 = vpop.xlane.xlu1 %6201  ;;  %v6313_v40 = vpop.xlane.xlu0 %6312  ;;  %8946 = vmatprep.subr.bf16.mxu1 %v12646_v11 }
0x17db   :  { %v6203_v60 = vadd.f32 %v6202_v25, %v6170_v27  ;;  %v6314_v10 = vadd.f32 %v6313_v40, %v6296_v1  ;;  %v6804_v27 = vld [vmem:[%s12311_s8 + $0x30] sm:$0xff]  ;;  %v6805_v1 = vld [vmem:[%s12311_s8 + $0x38] sm:$0xff]  ;;  %v9588_v25 = vmov 4   ;;  %v8947_v40 = vpack.c.bf16 %v6786_v53, %v6785_v12 }
0x17dc   :  { %v7232_v53 = vld.sshfl [vmem:[#allocation3 + $0x10] sm:$0x33 pattern:$0x76325410] }
0x17dd   :  { %v6464_v62 = vsel %vm6463_vm11, %v6203_v60, %v6240_v37  ;;  %v6787_v60 = vld [vmem:[%s12310_s7 + $0x40] sm:$0xff]  ;;  %8948 = vmatpush1.bf16.msra.mxu1 %v8947_v40 }
0x17de   :  { %v6350_v15 = vpop.xlane.xlu0 %6349  ;;  %v6466_v35 = vsel %vm6465_vm12, %v6464_v62, %v6277_v55  ;;  %v6407_v41 = vpop.xlane.xlu1 %6406  ;;  %8949 = vmatprep.subr.bf16.mxu1 %v12646_v11  ;;  %v6808_v55 = vld [vmem:[%s12311_s8 + $0x50] sm:$0xff] }
0x17df   :  { %v6351_v59 = vadd.f32 %v6350_v15, %v6333_v23  ;;  %v6468_v31 = vsel %vm6467_vm13, %v6466_v35, %v6314_v10  ;;  %v8920_v23 = vpack.c.bf16 %v6805_v1, %v6804_v27  ;;  %v6788_v15 = vld [vmem:[%s12310_s7 + $0x48] sm:$0xff]  ;;  %v6789_v35 = vld [vmem:[%s12310_s7 + $0x50] sm:$0xff]  ;;  %v9589_v10 = vmov 5  }
0x17e0   :  { %v8950_v62 = vpack.c.bf16 %v6788_v15, %v6787_v60  ;;  %v6612_v15 = vcombine.high %v7229_v5, %v7229_v5 }
0x17e1   :  { %v6470_v63 = vsel %vm6469_vm14, %v6468_v31, %v6351_v59  ;;  %8921 = vmatpush1.bf16.msra.mxu0 %v8920_v23  ;;  %v6810_v31 = vld [vmem:[%s12311_s8 + $0x60] sm:$0xff] }
0x17e2   :  { %v6387_v34 = vpop.xlane.xlu0 %6386  ;;  %v6444_v16 = vpop.xlane.xlu1 %6443  ;;  %8922 = vmatprep.subr.bf16.mxu0 %v12646_v11  ;;  %8951 = vmatpush1.bf16.msra.mxu1 %v8950_v62  ;;  %v6648_v62 = vcombine.high %v7231_v38, %v7231_v38 }
0x17e3   :  { %v6388_v14 = vadd.f32 %v6387_v34, %v6370_v33  ;;  %v6806_v33 = vld [vmem:[%s12311_s8 + $0x40] sm:$0xff]  ;;  %v6809_v34 = vld [vmem:[%s12311_s8 + $0x58] sm:$0xff]  ;;  %8952 = vmatprep.subr.bf16.mxu1 %v12646_v11 }
0x17e4   :  { %v8923_v37 = vpack.c.bf16 %v6807_v6, %v6806_v33  ;;  %v8926_v59 = vpack.c.bf16 %v6809_v34, %v6808_v55  ;;  %v6664_v55 = vcombine.high %v7232_v53, %v7232_v53  ;;  %v7233_v34 = vld.sshfl [vmem:[#allocation2 + $0x14] sm:$0x33 pattern:$0x76325410] }
0x17e5   :  { %v6472_v18 = vsel %vm6471_vm15, %v6470_v63, %v6388_v14  ;;  %v6811_v14 = vld [vmem:[%s12311_s8 + $0x68] sm:$0xff] }
0x17e6   :  { %v6424_v54 = vpop.xlane.xlu0 %6423  ;;  %8924 = vmatpush1.bf16.msra.mxu0 %v8923_v37  ;;  %v8929_v63 = vpack.c.bf16 %v6811_v14, %v6810_v31  ;;  %v6628_v37 = vcombine.high %v7230_v22, %v7230_v22  ;;  %v7235_v31 = vld.sshfl [vmem:[#allocation2 + $0x18] sm:$0x33 pattern:$0x76325410] }
0x17e7   :  { %v6425_v20 = vadd.f32 %v6424_v54, %v6407_v41  ;;  %v6790_v41 = vld [vmem:[%s12310_s7 + $0x58] sm:$0xff]  ;;  %8925 = vmatprep.subr.bf16.mxu0 %v12646_v11 }
0x17e8   :  { %v8953_v54 = vpack.c.bf16 %v6790_v41, %v6789_v35  ;;  %v7234_v35 = vld.sshfl [vmem:[#allocation3 + $0x14] sm:$0x33 pattern:$0x76325410] }
0x17e9   :  { %v6474_v9 = vsel %vm6473_vm0, %v6472_v18, %v6425_v20  ;;  %v6791_v20 = vld [vmem:[%s12310_s7 + $0x60] sm:$0xff] }
0x17ea   :  { %v6461_v13 = vpop.xlane.xlu0 %6460  ;;  %8927 = vmatpush1.bf16.msra.mxu0 %v8926_v59  ;;  %8954 = vmatpush1.bf16.msra.mxu1 %v8953_v54 }
0x17eb   :  { %v6462_v24 = vadd.f32 %v6461_v13, %v6444_v16  ;;  %v6792_v16 = vld [vmem:[%s12310_s7 + $0x68] sm:$0xff]  ;;  %v9590_v13 = vmov 6   ;;  %8928 = vmatprep.subr.bf16.mxu0 %v12646_v11  ;;  %8955 = vmatprep.subr.bf16.mxu1 %v12646_v11 }
0x17ec   :  { %v8956_v18 = vpack.c.bf16 %v6792_v16, %v6791_v20 }
0x17ed   :  { %v6476_v39 = vsel %vm6475_vm2, %v6474_v9, %v6462_v24  ;;  %v6812_v24 = vld [vmem:[%s12311_s8 + $0x70] sm:$0xff]  ;;  %v6813_v9 = vld [vmem:[%s12311_s8 + $0x78] sm:$0xff] }
0x17ee   :  { %v6478_v50 = vsel %vm6477_vm4, %v6476_v39, -inf  ;;  %8930 = vmatpush1.bf16.msra.mxu0 %v8929_v63  ;;  %8957 = vmatpush1.bf16.msra.mxu1 %v8956_v18 }
0x17ef   :  { %6479 = vmax.xlane.f32.xlu1 %v6478_v50  ;;  %v6794_v50 = vld [vmem:[%s12310_s7 + $0x78] sm:$0xff]  ;;  %8931 = vmatprep.subr.bf16.mxu0 %v12646_v11 }
0x17f0   :  { %8958 = vmatprep.subr.bf16.mxu1 %v12646_v11 }
0x187c   :  { %v6480_v28 = vpop.xlane.xlu1 %6479 }
0x187d   :  { %v6481_v48 = vsub.f32 %v6476_v39, %v6480_v28  ;;  %v6793_v39 = vld [vmem:[%s12310_s7 + $0x70] sm:$0xff]  ;;  %v8932_v28 = vpack.c.bf16 %v6813_v9, %v6812_v24 }
0x187f   :  { %v6482_v43 = vmul.f32 1.442695, %v6481_v48  ;;  %v8959_v48 = vpack.c.bf16 %v6794_v50, %v6793_v39  ;;  %8933 = vmatpush1.bf16.msra.mxu0 %v8932_v28 }
0x1880   :  { %8934 = vmatprep.subr.bf16.mxu0 %v12646_v11 }
0x1881   :  { %9442 = vpow2.f32 %v6482_v43  ;;  %8960 = vmatpush1.bf16.msra.mxu1 %v8959_v48  ;;  %v6814_v43 = vld [vmem:[%s12311_s8 + $0x80] sm:$0xff] }
0x1882   :  { %8961 = vmatprep.subr.bf16.mxu1 %v12646_v11  ;;  %v6797_v11 = vld [vmem:[%s12310_s7 + $0x90] sm:$0x3f] }
0x188b   :  { %v9443_v7 = vpop.eup %9442 }
0x188c   :  { %v6484_v29 = vsel %vm6477_vm4, %v9443_v7, 0.0 }
0x188d   :  { %6485 = vadd.xlane.f32.xlu0 %v6484_v29  ;;  %v6795_v29 = vld [vmem:[%s12310_s7 + $0x80] sm:$0xff]  ;;  %s9591_s7 = smov [#allocation10]  }
0x188e   :  { %v8962_v52 = vpack.c.bf16 %v6796_v47, %v6795_v29  ;;  %v6684_v29 = vcombine.high %v7233_v34, %v7233_v34  ;;  %v6720_v47 = vcombine.high %v7235_v31, %v7235_v31 }
0x1890   :  { %8963 = vmatpush1.bf16.msra.mxu1 %v8962_v52 }
0x1891   :  { %6935 = vmatprep.subr.mxu1 %v12640_v45 }
0x1894   :  { %7241 = vmatpush1.msk.msra.mxu1 %vm822_vm1, %v6797_v11 }
0x191a   :  { %v6486_v58 = vpop.xlane.xlu0 %6485 }
0x191b   :  { %9444 = vrcp.f32 %v6486_v58  ;;  %v7223_v58 = vld.sshfl [vmem:[#allocation2] sm:$0x33 pattern:$0x76325410] }
0x191c   :  { %v6504_v0 = vcombine.high %v7223_v58, %v7223_v58 }
0x1925   :  { %v9445_v30 = vpop.eup %9444 }
0x1926   :  { %v12140_v61 = vmul.f32 %v9445_v30, %v9443_v7  ;;  %v6815_v7 = vld [vmem:[%s12311_s8 + $0x88] sm:$0xff]  ;;  %s6995_s8 = sshll.u32 %s9591_s7, 4  ;;  %s6996_s8 = int_to_ptr.vmem [resolvable:$true] %s6995_s8 }
0x1927   :  { %v8935_v46 = vpack.c.bf16 %v6815_v7, %v6814_v43  ;;  %v7228_v30 = vld.sshfl [vmem:[#allocation3 + $0x8] sm:$0x33 pattern:$0x76325410]  ;;  %s9520_s23 = scalar_lea.vmem %s6996_s8, 32  ;;  %p9525_p3 = scmp.lt.s32.totalorder %s6996_s8, %s6996_s8 }
0x1928   :  { %6489 = vst.msk [vmem:[#allocation10] sm:$0x3] %vm6477_vm4, %v12140_v61  ;;  %6529 = vperm.xlu0 %8986, %v12140_v61   ;;  %6493 = vperm.xlu1 %8985, %v12140_v61   ;;  %v6592_v19 = vcombine.high %v7228_v30, %v7228_v30  ;;  %p9521_p2 = scmp.ne.s32.totalorder %s6996_s8, %s9520_s23  ;;  %p9526_p4 = scmp.lt.s32.totalorder %s9520_s23, %s9520_s23 }
0x1929   :  { %8936 = vmatpush1.bf16.msra.mxu0 %v8935_v46  ;;  %v6700_v46 = vcombine.high %v7234_v35, %v7234_v35 }
0x192a   :  { %6859 = vmatprep.subr.mxu0 %v12640_v45  ;;  %v6556_v45 = vcombine.high %v7226_v26, %v7226_v26  ;;  %p9527_p5 = por %p9526_p4, %p9525_p3 }
0x192c   :  { %8987 = vset.pattern.permute.xlu1 %v9585_v42  ;;  %8993 = vset.pattern.permute.xlu0 %v9586_v32  ;;  %v6540_v42 = vcombine.high %v7225_v2, %v7225_v2  ;;  %p9528_p6 = pnand %p9527_p5, %p9521_p2 }
0x192d   :  { %6565 = vperm.xlu1 %8987, %v12140_v61   ;;  %7239 = vmatpush1.msk.msra.mxu0 %vm822_vm1, %v6816_v8 }
0x1931   :  { %8988 = vset.pattern.permute.xlu1 %v9587_v3 }
0x1932   :  { %6601 = vperm.xlu1 %8988, %v12140_v61  }
0x1936   :  { %8989 = vset.pattern.permute.xlu1 %v9588_v25 }
0x1937   :  { %6637 = vperm.xlu1 %8989, %v12140_v61  }
0x193b   :  { %8990 = vset.pattern.permute.xlu1 %v9589_v10 }
0x193c   :  { %6673 = vperm.xlu1 %8990, %v12140_v61  }
0x1940   :  { %8991 = vset.pattern.permute.xlu1 %v9590_v13  ;;  %v7236_v13 = vld.sshfl [vmem:[#allocation3 + $0x18] sm:$0x33 pattern:$0x76325410] }
0x1941   :  { %6709 = vperm.xlu1 %8991, %v12140_v61   ;;  %v6736_v52 = vcombine.high %v7236_v13, %v7236_v13 }
0x1945   :  { %8992 = vset.pattern.permute.xlu1 %v9586_v32 }
0x1946   :  { %6745 = vperm.xlu1 %8992, %v12140_v61   ;;  %v7227_v61 = vld.sshfl [vmem:[#allocation2 + $0x8] sm:$0x33 pattern:$0x76325410] }
0x1947   :  { %v6576_v32 = vcombine.high %v7227_v61, %v7227_v61 }
0x19a7   :  { %v6494_v57 = vpop.permute.xlu1 %6493  ;;  %v6530_v51 = vpop.permute.xlu0 %6529 }
0x19a8   :  { %v6543_v17 = vmul.f32 %v7225_v2, %v6530_v51  ;;  %v6544_v56 = vmul.f32 %v6540_v42, %v6530_v51  ;;  %v6559_v49 = vmul.f32 %v7226_v26, %v6530_v51  ;;  %v6560_v3 = vmul.f32 %v6556_v45, %v6530_v51  ;;  %v7238_v45 = vld.sshfl [vmem:[#allocation3 + $0x1c] sm:$0x33 pattern:$0x76325410] }
0x19a9   :  { %v6507_v27 = vmul.f32 %v7223_v58, %v6494_v57  ;;  %v6508_v1 = vmul.f32 %v6504_v0, %v6494_v57  ;;  %v6523_v12 = vmul.f32 %v7224_v36, %v6494_v57  ;;  %v6524_v23 = vmul.f32 %v6520_v4, %v6494_v57 }
0x19ab   :  { %v6545_v41 = vadd.f32 %v6543_v17, %v6507_v27  ;;  %v6546_v10 = vadd.f32 %v6544_v56, %v6508_v1  ;;  %v6561_v59 = vadd.f32 %v6559_v49, %v6523_v12  ;;  %v6562_v54 = vadd.f32 %v6560_v3, %v6524_v23 }
0x19ac   :  { %v6566_v21 = vpop.permute.xlu1 %6565 }
0x19ad   :  { %v6579_v6 = vmul.f32 %v7227_v61, %v6566_v21  ;;  %v6580_v25 = vmul.f32 %v6576_v32, %v6566_v21  ;;  %v6595_v40 = vmul.f32 %v7228_v30, %v6566_v21  ;;  %v6596_v60 = vmul.f32 %v6592_v19, %v6566_v21 }
0x19af   :  { %v6581_v18 = vadd.f32 %v6579_v6, %v6545_v41  ;;  %v6582_v24 = vadd.f32 %v6580_v25, %v6546_v10  ;;  %v6597_v9 = vadd.f32 %v6595_v40, %v6561_v59  ;;  %v6598_v39 = vadd.f32 %v6596_v60, %v6562_v54 }
0x19b1   :  { %v6602_v44 = vpop.permute.xlu1 %6601 }
0x19b2   :  { %v6615_v14 = vmul.f32 %v7229_v5, %v6602_v44  ;;  %v6616_v20 = vmul.f32 %v6612_v15, %v6602_v44  ;;  %v6631_v63 = vmul.f32 %v7230_v22, %v6602_v44  ;;  %v6632_v16 = vmul.f32 %v6628_v37, %v6602_v44  ;;  %v7237_v5 = vld.sshfl [vmem:[#allocation2 + $0x1c] sm:$0x33 pattern:$0x76325410] }
0x19b3   :  { %v6756_v3 = vcombine.high %v7237_v5, %v7237_v5 }
0x19b4   :  { %v6617_v8 = vadd.f32 %v6615_v14, %v6581_v18  ;;  %v6618_v11 = vadd.f32 %v6616_v20, %v6582_v24  ;;  %v6633_v57 = vadd.f32 %v6631_v63, %v6597_v9  ;;  %v6634_v21 = vadd.f32 %v6632_v16, %v6598_v39 }
0x19b6   :  { %v6638_v33 = vpop.permute.xlu1 %6637 }
0x19b7   :  { %v6651_v28 = vmul.f32 %v7231_v38, %v6638_v33  ;;  %v6652_v48 = vmul.f32 %v6648_v62, %v6638_v33  ;;  %v6667_v43 = vmul.f32 %v7232_v53, %v6638_v33  ;;  %v6668_v7 = vmul.f32 %v6664_v55, %v6638_v33 }
0x19b8   :  { %v6772_v38 = vcombine.high %v7238_v45, %v7238_v45 }
0x19b9   :  { %v6653_v61 = vadd.f32 %v6651_v28, %v6617_v8  ;;  %v6654_v36 = vadd.f32 %v6652_v48, %v6618_v11  ;;  %v6669_v51 = vadd.f32 %v6667_v43, %v6633_v57  ;;  %v6670_v44 = vadd.f32 %v6668_v7, %v6634_v21 }
0x19bb   :  { %v6674_v50 = vpop.permute.xlu1 %6673 }
0x19bc   :  { %v6687_v2 = vmul.f32 %v7233_v34, %v6674_v50  ;;  %v6688_v26 = vmul.f32 %v6684_v29, %v6674_v50  ;;  %v6703_v58 = vmul.f32 %v7234_v35, %v6674_v50  ;;  %v6704_v30 = vmul.f32 %v6700_v46, %v6674_v50 }
0x19be   :  { %v6689_v22 = vadd.f32 %v6687_v2, %v6653_v61  ;;  %v6690_v17 = vadd.f32 %v6688_v26, %v6654_v36  ;;  %v6705_v56 = vadd.f32 %v6703_v58, %v6669_v51  ;;  %v6706_v49 = vadd.f32 %v6704_v30, %v6670_v44 }
0x19c0   :  { %v6710_v42 = vpop.permute.xlu1 %6709 }
0x19c1   :  { %v6723_v0 = vmul.f32 %v7235_v31, %v6710_v42  ;;  %v6724_v4 = vmul.f32 %v6720_v47, %v6710_v42  ;;  %v6739_v32 = vmul.f32 %v7236_v13, %v6710_v42  ;;  %v6740_v19 = vmul.f32 %v6736_v52, %v6710_v42 }
0x19c3   :  { %v6725_v27 = vadd.f32 %v6723_v0, %v6689_v22  ;;  %v6726_v1 = vadd.f32 %v6724_v4, %v6690_v17  ;;  %v6741_v12 = vadd.f32 %v6739_v32, %v6705_v56  ;;  %v6742_v23 = vadd.f32 %v6740_v19, %v6706_v49 }
0x19c5   :  { %v6746_v53 = vpop.permute.xlu1 %6745 }
0x19c6   :  { %v6759_v33 = vmul.f32 %v7237_v5, %v6746_v53  ;;  %v6760_v6 = vmul.f32 %v6756_v3, %v6746_v53  ;;  %v6775_v25 = vmul.f32 %v7238_v45, %v6746_v53  ;;  %v6776_v40 = vmul.f32 %v6772_v38, %v6746_v53 }
0x19c8   :  { %v6761_v60 = vadd.f32 %v6759_v33, %v6725_v27  ;;  %v6762_v15 = vadd.f32 %v6760_v6, %v6726_v1  ;;  %v6777_v37 = vadd.f32 %v6775_v25, %v6741_v12  ;;  %v6778_v62 = vadd.f32 %v6776_v40, %v6742_v23 }
0x19ca   :  { %7240 = vmatprep.mubr.msk.f32.mxu0 %vm818_vm3, %v6778_v62  ;;  %7242 = vmatprep.mubr.msk.f32.mxu1 %vm818_vm3, %v6762_v15 }
0x19cb   :  { %6888 = vmatmul.mubr.f32.vlgmr.msra.gmra.mrb[58].mxu0 %v6777_v37  ;;  %6964 = vmatmul.mubr.f32.vlgmr.msra.gmra.mrb[58].mxu1 %v6761_v60 }
0x19cc   :  { %9531 = shalt.err (!%p9528_p6)
}
0x19cd   :  { %s9532_s26 = scalar_lea.hbm %s12314_s11, 32 }
0x19ce   :  { %p9533_p7 = scmp.ne.s32.totalorder %s12314_s11, %s9532_s26  ;;  %p9536_p8 = scmp.lt.u32.totalorder %s9532_s26, %s12314_s11 }
0x19d0   :  { %p9538_p9 = pnand %p9536_p8, %p9533_p7 }
0x19d2   :  { %9541 = shalt.err (!%p9538_p9)
}
0x19d3   :  { %6998 = dma.vmem_to_hbm [thread:$0]  %s6996_s8, 32, %s12314_s11, [#allocation11]   ;;  %v7243_v35 = vld [vmem:[%s12312_s9] ss:$0 sm:$0xff]  ;;  %vm6977_vm1 = vcmask 25600  }
0x19d4   :  { %s9592_s14 = smov [#allocation9]  }
0x19d5   :  { %s6985_s15 = sshll.u32 %s9592_s14, 4  ;;  %s6986_s15 = int_to_ptr.vmem [resolvable:$true] %s6985_s15 }
0x19d6   :  { %s9542_s16 = scalar_lea.vmem %s6986_s15, 32  ;;  %p9547_p11 = scmp.lt.s32.totalorder %s6986_s15, %s6986_s15 }
0x19d7   :  { %p9543_p10 = scmp.ne.s32.totalorder %s6986_s15, %s9542_s16  ;;  %p9548_p12 = scmp.lt.s32.totalorder %s9542_s16, %s9542_s16 }
0x19d9   :  { %p9549_p13 = por %p9548_p12, %p9547_p11 }
0x19db   :  { %p9550_p0 = pnand %p9549_p13, %p9543_p10 }
0x1a9e   :  { %v6889_v55 = vpop.f32.mrb[58].mxu0  ;;  %v6965_v34 = vpop.f32.mrb[58].mxu1 }
0x1a9f   :  { %v6966_v41 = vadd.f32 %v6965_v34, %v6889_v55  ;;  %v6891_v10 = vpop.f32.mrb[59].mxu0  ;;  %v6967_v59 = vpop.f32.mrb[59].mxu1 }
0x1aa1   :  { %v6976_v54 = vadd.f32 %v7243_v35, %v6966_v41 }
0x1aa3   :  { %6978 = vst.msk [vmem:[#allocation9] sm:$0x3] %vm6977_vm1, %v6976_v54 }
0x1aa4   :  { %9553 = shalt.err (!%p9550_p0)
}
0x1aa5   :  { %s9554_s9 = scalar_lea.hbm %s12313_s10, 32 }
0x1aa6   :  { %p9555_p1 = scmp.ne.s32.totalorder %s12313_s10, %s9554_s9  ;;  %p9558_p2 = scmp.lt.u32.totalorder %s9554_s9, %s12313_s10 }
0x1aa8   :  { %p9560_p3 = pnand %p9558_p2, %p9555_p1 }
0x1aaa   :  { %9563 = shalt.err (!%p9560_p3)
}
0x1aab   :  { %6988 = dma.vmem_to_hbm [thread:$0]  %s6986_s15, 32, %s12313_s10, [#allocation6]  }
0x1aac   :  { %9568 = dma.done.wait [#allocation6], 32  }
0x1aad   :  { %9569 = vsyncadd [#allocation6], 4294967264 }
0x1aae   :  { %9570 = dma.done.wait [#allocation11], 32  }
0x1aaf   :  { %9571 = vsyncadd [#allocation11], 4294967264 }
0x1ab0   :  { %7005 = vsyncpa [#allocation5], 1 }
0x1ab1   :  { %7006 = vsyncpa [#allocation8], 1 }
0x1ab2   :  { %7007 = vsyncpa [#allocation6], 1 }
0x1ab3   :  { %7008 = vsyncpa [#allocation11], 1 }

</bundles_post_ra>
